<compile_context>
chip_gen: v5e
topology: v5e:2x2
jax: 0.10.0
libtpu: 0.0.40
codegen_flags: <defaults>
</compile_context>

<pallas_src>
import functools
import math

import jax
import jax.numpy as jnp
from jax.experimental import pallas as pl
from jax.experimental.pallas import tpu as pltpu


_STACK_ORDER = ("wq", "wk", "wv", "bq", "bk", "bv", "wo", "bo",
                "ln1w", "ln1b", "ln2w", "ln2b", "w1", "b1", "w2", "b2")


def _layer_norm(v, w, b):
    mu = jnp.mean(v, axis=-1, keepdims=True)
    var = jnp.mean((v - mu) ** 2, axis=-1, keepdims=True)   # biased var (PyTorch LN)
    return (v - mu) * jax.lax.rsqrt(var + 1e-5) * w + b


# ----------------------------------------------------------------------------
# Fused Pallas kernel: whole ETHEncoder forward in one call
# ----------------------------------------------------------------------------
def _eth_encoder_kernel(*refs, B, A, n_social, nhead_social, n_eth, nhead_eth,
                        norm_first):
    (x_ref, enc_w_ref,
     s_wq, s_wk, s_wv, s_bq, s_bk, s_bv, s_wo, s_bo,
     s_ln1w, s_ln1b, s_ln2w, s_ln2b, s_w1, s_b1, s_w2, s_b2,
     mlp_out_w, mlp_out_b,
     pe_tab, pe1_w, pe1_b, pe2_w, pe2_b,
     agent_q, mpe1_wa, mpe1_wb, mpe1_b, mpe2_w, mpe2_b,
     e_wq, e_wk, e_wv, e_bq, e_bk, e_bv, e_wo, e_bo,
     e_ln1w, e_ln1b, e_ln2w, e_ln2b, e_w1, e_b1, e_w2, e_b2,
     o_ref) = refs

    f32 = jnp.float32

    def tx_stack(v, n_layers, nhead, pre_norm,
                 wq, wk, wv, bq, bk, bv, wo, bo,
                 ln1w, ln1b, ln2w, ln2b, w1, b1, w2, b2):
        """PyTorch nn.TransformerEncoder on flat [B*A, d] rows (dropout = identity)."""
        d = v.shape[-1]
        hd = d // nhead
        scale = 1.0 / math.sqrt(hd)

        def self_attn(u, l):
            attn = None
            for h in range(nhead):        # heads unrolled; weights pre-split per head
                qh = jnp.dot(u, wq[l, h], preferred_element_type=f32) + bq[l, h]
                kh = jnp.dot(u, wk[l, h], preferred_element_type=f32) + bk[l, h]
                vh = jnp.dot(u, wv[l, h], preferred_element_type=f32) + bv[l, h]
                qh = qh.reshape(B, A, hd)
                kh = kh.reshape(B, A, hd)
                vh = vh.reshape(B, A, hd)
                s = jnp.einsum("bqd,bkd->bqk", qh, kh,
                               preferred_element_type=f32) * scale
                s = s - jnp.max(s, axis=-1, keepdims=True)
                p = jnp.exp(s)
                p = p * pl.reciprocal(jnp.sum(p, axis=-1, keepdims=True),
                                      approx=True)
                oh = jnp.einsum("bqk,bkd->bqd", p, vh,
                                preferred_element_type=f32).reshape(B * A, hd)
                # accumulate output projection per head (no lane concat of heads)
                contrib = jnp.dot(oh, wo[l, h], preferred_element_type=f32)
                attn = contrib if attn is None else attn + contrib
            return attn + bo[l]

        def ffn(u, l):
            hmid = jnp.dot(u, w1[l], preferred_element_type=f32) + b1[l]
            hmid = jnp.maximum(hmid, 0.0)
            return jnp.dot(hmid, w2[l], preferred_element_type=f32) + b2[l]

        for l in range(n_layers):             # layers unrolled (static Python ints)
            if pre_norm:
                v = v + self_attn(_layer_norm(v, ln1w[l], ln1b[l]), l)
                v = v + ffn(_layer_norm(v, ln2w[l], ln2b[l]), l)
            else:
                v = _layer_norm(v + self_attn(v, l), ln1w[l], ln1b[l])
                v = _layer_norm(v + ffn(v, l), ln2w[l], ln2b[l])
        return v

    # --- SocialTransformer ---------------------------------------------------
    x = x_ref[...]                                                   # [B*A, P*D]
    h = jnp.dot(x, enc_w_ref[...], preferred_element_type=f32)       # no-bias linear
    h_t = tx_stack(h, n_social, nhead_social, False,
                   s_wq, s_wk, s_wv, s_bq, s_bk, s_bv, s_wo, s_bo,
                   s_ln1w, s_ln1b, s_ln2w, s_ln2b, s_w1, s_b1, s_w2, s_b2)
    h = h + h_t                                                      # residual over encoder
    agent_feature = (jnp.dot(h, mlp_out_w[...], preferred_element_type=f32)
                     + mlp_out_b[...])                               # [B*A, dim]

    # --- positional encoding + agent query (computed once, added to every batch) ---
    pe = jnp.dot(pe_tab[...], pe1_w[...], preferred_element_type=f32) + pe1_b[...]
    pe = jnp.maximum(pe, 0.0)
    pe = jnp.dot(pe, pe2_w[...], preferred_element_type=f32) + pe2_b[...]
    # concat([agent_query, pe]) @ W1  ==  agent_query @ W1_a + pe @ W1_b  (host-split W1)
    pe = (jnp.dot(agent_q[...], mpe1_wa[...], preferred_element_type=f32)
          + jnp.dot(pe, mpe1_wb[...], preferred_element_type=f32) + mpe1_b[...])
    pe = jnp.maximum(pe, 0.0)
    pe = jnp.dot(pe, mpe2_w[...], preferred_element_type=f32) + mpe2_b[...]   # [A, dim]

    dim = agent_feature.shape[-1]
    out = (agent_feature.reshape(B, A, dim) + pe[None]).reshape(B * A, dim)

    # --- main transformer encoder --------------------------------------------
    out = tx_stack(out, n_eth, nhead_eth, norm_first,
                   e_wq, e_wk, e_wv, e_bq, e_bk, e_bv, e_wo, e_bo,
                   e_ln1w, e_ln1b, e_ln2w, e_ln2b, e_w1, e_b1, e_w2, e_b2)

    o_ref[...] = out.reshape(B, A, dim).astype(o_ref.dtype)


# ----------------------------------------------------------------------------
# Parameter construction (deterministic, synthetic; per-head / per-layer stacked)
# ----------------------------------------------------------------------------
def _make_tx_stack_params(key, n_layers, d, ff, nhead):
    hd = d // nhead
    ks = jax.random.split(key, 6)
    s = 0.02
    L = n_layers
    nrm = lambda k, shape: s * jax.random.normal(k, shape, jnp.float32)
    return {
        "wq": nrm(ks[0], (L, nhead, d, hd)),
        "wk": nrm(ks[1], (L, nhead, d, hd)),
        "wv": nrm(ks[2], (L, nhead, d, hd)),
        "bq": jnp.zeros((L, nhead, 1, hd), jnp.float32),
        "bk": jnp.zeros((L, nhead, 1, hd), jnp.float32),
        "bv": jnp.zeros((L, nhead, 1, hd), jnp.float32),
        "wo": nrm(ks[3], (L, nhead, hd, d)),
        "bo": jnp.zeros((L, 1, d), jnp.float32),
        "ln1w": jnp.ones((L, 1, d), jnp.float32),
        "ln1b": jnp.zeros((L, 1, d), jnp.float32),
        "ln2w": jnp.ones((L, 1, d), jnp.float32),
        "ln2b": jnp.zeros((L, 1, d), jnp.float32),
        "w1": nrm(ks[4], (L, d, ff)),
        "b1": jnp.zeros((L, 1, ff), jnp.float32),
        "w2": nrm(ks[5], (L, ff, d)),
        "b2": jnp.zeros((L, 1, d), jnp.float32),
    }


def make_eth_encoder_params(key, *, in_dim, social_hidden, dim, agents,
                            num_attn_layers, nhead):
    ks = jax.random.split(key, 10)
    s = 0.02
    nrm = lambda k, shape: s * jax.random.normal(k, shape, jnp.float32)
    return {
        # SocialTransformer
        "enc_past_w": nrm(ks[0], (in_dim, social_hidden)),
        "social": _make_tx_stack_params(ks[1], 2, social_hidden, social_hidden, 2),
        "mlp_out_w": nrm(ks[2], (social_hidden, dim)),
        "mlp_out_b": jnp.zeros((1, dim), jnp.float32),
        # pos_encoding MLP (after sinusoidal embedding)
        "pe1_w": nrm(ks[3], (dim, dim)),
        "pe1_b": jnp.zeros((1, dim), jnp.float32),
        "pe2_w": nrm(ks[4], (dim, dim)),
        "pe2_b": jnp.zeros((1, dim), jnp.float32),
        # agent query embedding
        "agent_query": nrm(ks[5], (agents, dim)),
        # mlp_pe; first linear's [2*dim, dim] weight pre-split into two [dim, dim] halves
        "mlp_pe1_wa": nrm(ks[6], (dim, dim)),    # acts on agent_query (first half of cat)
        "mlp_pe1_wb": nrm(ks[7], (dim, dim)),    # acts on pos encoding (second half of cat)
        "mlp_pe1_b": jnp.zeros((1, dim), jnp.float32),
        "mlp_pe2_w": nrm(ks[8], (dim, dim)),
        "mlp_pe2_b": jnp.zeros((1, dim), jnp.float32),
        # main transformer encoder
        "eth": _make_tx_stack_params(ks[9], num_attn_layers, dim, 4 * dim, nhead),
    }


# ----------------------------------------------------------------------------
# Forward pass (single fused pallas_call)
# ----------------------------------------------------------------------------
def sinusoidal_pos_emb(positions, dim, theta=10000.0):
    half = dim // 2
    freqs = jnp.exp(-math.log(theta) * jnp.arange(half, dtype=jnp.float32) / (half - 1))
    emb = positions.astype(jnp.float32)[:, None] * freqs[None, :]
    return jnp.concatenate([jnp.sin(emb), jnp.cos(emb)], axis=-1)


def eth_encoder_forward(past_traj, params, *, nhead, use_pre_norm):
    B, A, P, D = past_traj.shape
    dim = params["mlp_out_w"].shape[1]
    n_social, nhead_social = params["social"]["wq"].shape[:2]
    n_eth = params["eth"]["wq"].shape[0]

    x = past_traj.reshape(B * A, P * D)              # 'b a p d -> b a (p d)', rows flattened
    pe_tab = sinusoidal_pos_emb(jnp.arange(A), dim)  # [A, dim] constant table

    flat_args = [x, params["enc_past_w"]]
    flat_args += [params["social"][k] for k in _STACK_ORDER]
    flat_args += [params["mlp_out_w"], params["mlp_out_b"],
                  pe_tab, params["pe1_w"], params["pe1_b"],
                  params["pe2_w"], params["pe2_b"],
                  params["agent_query"], params["mlp_pe1_wa"], params["mlp_pe1_wb"],
                  params["mlp_pe1_b"], params["mlp_pe2_w"], params["mlp_pe2_b"]]
    flat_args += [params["eth"][k] for k in _STACK_ORDER]

    kernel = functools.partial(
        _eth_encoder_kernel, B=B, A=A,
        n_social=n_social, nhead_social=nhead_social,
        n_eth=n_eth, nhead_eth=nhead, norm_first=use_pre_norm)

    vmem_spec = pl.BlockSpec(memory_space=pltpu.MemorySpace.VMEM)
    return pl.pallas_call(
        kernel,
        out_shape=jax.ShapeDtypeStruct((B, A, dim), jnp.float32),
        in_specs=[vmem_spec] * len(flat_args),
        out_specs=vmem_spec,
    )(*flat_args)


# ----------------------------------------------------------------------------
# Main
# ----------------------------------------------------------------------------
if __name__ == "__main__":
    # Config mirrors ETHEncoder's model_cfg: D_MODEL=128, AGENTS=8, NUM_ATTN_HEAD=2,
    # NUM_ATTN_LAYERS=2, use_pre_norm=False. SocialTransformer: in_dim=48 => P=8, D=6.
    B, A, P, D = 2, 8, 8, 6
    DIM = 128
    NHEAD = 2
    NUM_LAYERS = 2
    USE_PRE_NORM = False

    key = jax.random.PRNGKey(0)
    k_x, k_p = jax.random.split(key)
    past_traj = jax.random.normal(k_x, (B, A, P, D), jnp.float32)

    params = make_eth_encoder_params(
        k_p, in_dim=P * D, social_hidden=256, dim=DIM,
        agents=A, num_attn_layers=NUM_LAYERS, nhead=NHEAD)

    fwd = jax.jit(functools.partial(
        eth_encoder_forward, nhead=NHEAD, use_pre_norm=USE_PRE_NORM))
    out = fwd(past_traj, params)
    jax.block_until_ready(out)
    assert out.shape == (B, A, DIM), out.shape
    assert bool(jnp.all(jnp.isfinite(out)))
    print("KERNEL_OK")
</pallas_src>

<mosaic_0001>
module attributes {stable_mosaic.version = 11 : i64} {
  func.func @_eth_encoder_kernel(%arg0: memref<16x48xf32, #tpu.memory_space<vmem>>, %arg1: memref<48x256xf32, #tpu.memory_space<vmem>>, %arg2: memref<2x2x256x128xf32, #tpu.memory_space<vmem>>, %arg3: memref<2x2x256x128xf32, #tpu.memory_space<vmem>>, %arg4: memref<2x2x256x128xf32, #tpu.memory_space<vmem>>, %arg5: memref<2x2x1x128xf32, #tpu.memory_space<vmem>>, %arg6: memref<2x2x1x128xf32, #tpu.memory_space<vmem>>, %arg7: memref<2x2x1x128xf32, #tpu.memory_space<vmem>>, %arg8: memref<2x2x128x256xf32, #tpu.memory_space<vmem>>, %arg9: memref<2x1x256xf32, #tpu.memory_space<vmem>>, %arg10: memref<2x1x256xf32, #tpu.memory_space<vmem>>, %arg11: memref<2x1x256xf32, #tpu.memory_space<vmem>>, %arg12: memref<2x1x256xf32, #tpu.memory_space<vmem>>, %arg13: memref<2x1x256xf32, #tpu.memory_space<vmem>>, %arg14: memref<2x256x256xf32, #tpu.memory_space<vmem>>, %arg15: memref<2x1x256xf32, #tpu.memory_space<vmem>>, %arg16: memref<2x256x256xf32, #tpu.memory_space<vmem>>, %arg17: memref<2x1x256xf32, #tpu.memory_space<vmem>>, %arg18: memref<256x128xf32, #tpu.memory_space<vmem>>, %arg19: memref<1x128xf32, #tpu.memory_space<vmem>>, %arg20: memref<8x128xf32, #tpu.memory_space<vmem>>, %arg21: memref<128x128xf32, #tpu.memory_space<vmem>>, %arg22: memref<1x128xf32, #tpu.memory_space<vmem>>, %arg23: memref<128x128xf32, #tpu.memory_space<vmem>>, %arg24: memref<1x128xf32, #tpu.memory_space<vmem>>, %arg25: memref<8x128xf32, #tpu.memory_space<vmem>>, %arg26: memref<128x128xf32, #tpu.memory_space<vmem>>, %arg27: memref<128x128xf32, #tpu.memory_space<vmem>>, %arg28: memref<1x128xf32, #tpu.memory_space<vmem>>, %arg29: memref<128x128xf32, #tpu.memory_space<vmem>>, %arg30: memref<1x128xf32, #tpu.memory_space<vmem>>, %arg31: memref<2x2x128x64xf32, #tpu.memory_space<vmem>>, %arg32: memref<2x2x128x64xf32, #tpu.memory_space<vmem>>, %arg33: memref<2x2x128x64xf32, #tpu.memory_space<vmem>>, %arg34: memref<2x2x1x64xf32, #tpu.memory_space<vmem>>, %arg35: memref<2x2x1x64xf32, #tpu.memory_space<vmem>>, %arg36: memref<2x2x1x64xf32, #tpu.memory_space<vmem>>, %arg37: memref<2x2x64x128xf32, #tpu.memory_space<vmem>>, %arg38: memref<2x1x128xf32, #tpu.memory_space<vmem>>, %arg39: memref<2x1x128xf32, #tpu.memory_space<vmem>>, %arg40: memref<2x1x128xf32, #tpu.memory_space<vmem>>, %arg41: memref<2x1x128xf32, #tpu.memory_space<vmem>>, %arg42: memref<2x1x128xf32, #tpu.memory_space<vmem>>, %arg43: memref<2x128x512xf32, #tpu.memory_space<vmem>>, %arg44: memref<2x1x512xf32, #tpu.memory_space<vmem>>, %arg45: memref<2x512x128xf32, #tpu.memory_space<vmem>>, %arg46: memref<2x1x128xf32, #tpu.memory_space<vmem>>, %arg47: memref<2x8x128xf32, #tpu.memory_space<vmem>>) attributes {dimension_semantics = [], scalar_prefetch = 0 : i64, scratch_operands = 0 : i64, tpu.core_type = #tpu.core_type<tc>} {
    %c0 = arith.constant 0 : index
    %c0_0 = arith.constant 0 : index
    %0 = vector.load %arg0[%c0, %c0_0] : memref<16x48xf32, #tpu.memory_space<vmem>>, vector<16x48xf32>
    %c0_1 = arith.constant 0 : index
    %c0_2 = arith.constant 0 : index
    %1 = vector.load %arg1[%c0_1, %c0_2] : memref<48x256xf32, #tpu.memory_space<vmem>>, vector<48x256xf32>
    %cst = arith.constant dense<0.000000e+00> : vector<16x256xf32>
    %2 = tpu.matmul %0, %1, %cst {dimension_numbers = #tpu.dot_dimension_numbers<[1], [0], [0], [1], [0, 0, 1, 1], [], []>} : vector<16x48xf32>, vector<48x256xf32>, vector<16x256xf32> -> vector<16x256xf32>
    %c0_3 = arith.constant 0 : index
    %c0_4 = arith.constant 0 : index
    %c0_5 = arith.constant 0 : index
    %c0_6 = arith.constant 0 : index
    %3 = vector.load %arg2[%c0_3, %c0_4, %c0_5, %c0_6] : memref<2x2x256x128xf32, #tpu.memory_space<vmem>>, vector<1x1x256x128xf32>
    %4 = vector.shape_cast %3 : vector<1x1x256x128xf32> to vector<256x128xf32>
    %cst_7 = arith.constant dense<0.000000e+00> : vector<16x128xf32>
    %5 = tpu.matmul %2, %4, %cst_7 {dimension_numbers = #tpu.dot_dimension_numbers<[1], [0], [0], [1], [0, 0, 1, 1], [], []>} : vector<16x256xf32>, vector<256x128xf32>, vector<16x128xf32> -> vector<16x128xf32>
    %c0_8 = arith.constant 0 : index
    %c0_9 = arith.constant 0 : index
    %c0_10 = arith.constant 0 : index
    %c0_11 = arith.constant 0 : index
    %6 = vector.load %arg5[%c0_8, %c0_9, %c0_10, %c0_11] : memref<2x2x1x128xf32, #tpu.memory_space<vmem>>, vector<1x1x1x128xf32>
    %7 = vector.shape_cast %6 : vector<1x1x1x128xf32> to vector<1x128xf32>
    %8 = vector.broadcast %7 : vector<1x128xf32> to vector<16x128xf32>
    %9 = arith.addf %5, %8 : vector<16x128xf32>
    %c0_12 = arith.constant 0 : index
    %c0_13 = arith.constant 0 : index
    %c0_14 = arith.constant 0 : index
    %c0_15 = arith.constant 0 : index
    %10 = vector.load %arg3[%c0_12, %c0_13, %c0_14, %c0_15] : memref<2x2x256x128xf32, #tpu.memory_space<vmem>>, vector<1x1x256x128xf32>
    %11 = vector.shape_cast %10 : vector<1x1x256x128xf32> to vector<256x128xf32>
    %cst_16 = arith.constant dense<0.000000e+00> : vector<16x128xf32>
    %12 = tpu.matmul %2, %11, %cst_16 {dimension_numbers = #tpu.dot_dimension_numbers<[1], [0], [0], [1], [0, 0, 1, 1], [], []>} : vector<16x256xf32>, vector<256x128xf32>, vector<16x128xf32> -> vector<16x128xf32>
    %c0_17 = arith.constant 0 : index
    %c0_18 = arith.constant 0 : index
    %c0_19 = arith.constant 0 : index
    %c0_20 = arith.constant 0 : index
    %13 = vector.load %arg6[%c0_17, %c0_18, %c0_19, %c0_20] : memref<2x2x1x128xf32, #tpu.memory_space<vmem>>, vector<1x1x1x128xf32>
    %14 = vector.shape_cast %13 : vector<1x1x1x128xf32> to vector<1x128xf32>
    %15 = vector.broadcast %14 : vector<1x128xf32> to vector<16x128xf32>
    %16 = arith.addf %12, %15 : vector<16x128xf32>
    %c0_21 = arith.constant 0 : index
    %c0_22 = arith.constant 0 : index
    %c0_23 = arith.constant 0 : index
    %c0_24 = arith.constant 0 : index
    %17 = vector.load %arg4[%c0_21, %c0_22, %c0_23, %c0_24] : memref<2x2x256x128xf32, #tpu.memory_space<vmem>>, vector<1x1x256x128xf32>
    %18 = vector.shape_cast %17 : vector<1x1x256x128xf32> to vector<256x128xf32>
    %cst_25 = arith.constant dense<0.000000e+00> : vector<16x128xf32>
    %19 = tpu.matmul %2, %18, %cst_25 {dimension_numbers = #tpu.dot_dimension_numbers<[1], [0], [0], [1], [0, 0, 1, 1], [], []>} : vector<16x256xf32>, vector<256x128xf32>, vector<16x128xf32> -> vector<16x128xf32>
    %c0_26 = arith.constant 0 : index
    %c0_27 = arith.constant 0 : index
    %c0_28 = arith.constant 0 : index
    %c0_29 = arith.constant 0 : index
    %20 = vector.load %arg7[%c0_26, %c0_27, %c0_28, %c0_29] : memref<2x2x1x128xf32, #tpu.memory_space<vmem>>, vector<1x1x1x128xf32>
    %21 = vector.shape_cast %20 : vector<1x1x1x128xf32> to vector<1x128xf32>
    %22 = vector.broadcast %21 : vector<1x128xf32> to vector<16x128xf32>
    %23 = arith.addf %19, %22 : vector<16x128xf32>
    %24 = vector.shape_cast %9 : vector<16x128xf32> to vector<2x8x128xf32>
    %25 = vector.shape_cast %16 : vector<16x128xf32> to vector<2x8x128xf32>
    %26 = vector.shape_cast %23 : vector<16x128xf32> to vector<2x8x128xf32>
    "tpu.trace_start"() <{level = 10 : i32, message = "bqd,bkd->bqk"}> : () -> ()
    %cst_30 = arith.constant dense<0.000000e+00> : vector<2x8x8xf32>
    %27 = tpu.matmul %24, %25, %cst_30 {dimension_numbers = #tpu.dot_dimension_numbers<[2], [2], [1], [1], [0, 0, 0, 1, 1, 1], [0], [0]>} : vector<2x8x128xf32>, vector<2x8x128xf32>, vector<2x8x8xf32> -> vector<2x8x8xf32>
    "tpu.trace_stop"() : () -> ()
    %cst_31 = arith.constant 0.0883883461 : f32
    %28 = vector.broadcast %cst_31 : f32 to vector<2x8x8xf32>
    %29 = arith.mulf %27, %28 : vector<2x8x8xf32>
    %cst_32 = arith.constant dense<0xFF800000> : vector<2x8xf32>
    %30 = vector.multi_reduction <maximumf>, %29, %cst_32 [2] : vector<2x8x8xf32> to vector<2x8xf32>
    %31 = vector.shape_cast %30 : vector<2x8xf32> to vector<2x8x1xf32>
    %32 = vector.broadcast %31 : vector<2x8x1xf32> to vector<2x8x8xf32>
    %33 = arith.subf %29, %32 : vector<2x8x8xf32>
    %34 = math.exp %33 : vector<2x8x8xf32>
    %cst_33 = arith.constant dense<0.000000e+00> : vector<2x8xf32>
    %35 = vector.multi_reduction <add>, %34, %cst_33 [2] : vector<2x8x8xf32> to vector<2x8xf32>
    %36 = vector.shape_cast %35 : vector<2x8xf32> to vector<2x8x1xf32>
    %37 = tpu.reciprocal %36 {approx = true} : vector<2x8x1xf32> -> vector<2x8x1xf32>
    %38 = vector.broadcast %37 : vector<2x8x1xf32> to vector<2x8x8xf32>
    %39 = arith.mulf %34, %38 : vector<2x8x8xf32>
    "tpu.trace_start"() <{level = 10 : i32, message = "bqk,bkd->bqd"}> : () -> ()
    %cst_34 = arith.constant dense<0.000000e+00> : vector<2x8x128xf32>
    %40 = tpu.matmul %39, %26, %cst_34 {dimension_numbers = #tpu.dot_dimension_numbers<[2], [1], [1], [2], [0, 0, 0, 1, 1, 2], [0], [0]>} : vector<2x8x8xf32>, vector<2x8x128xf32>, vector<2x8x128xf32> -> vector<2x8x128xf32>
    "tpu.trace_stop"() : () -> ()
    %41 = vector.shape_cast %40 : vector<2x8x128xf32> to vector<16x128xf32>
    %c0_35 = arith.constant 0 : index
    %c0_36 = arith.constant 0 : index
    %c0_37 = arith.constant 0 : index
    %c0_38 = arith.constant 0 : index
    %42 = vector.load %arg8[%c0_35, %c0_36, %c0_37, %c0_38] : memref<2x2x128x256xf32, #tpu.memory_space<vmem>>, vector<1x1x128x256xf32>
    %43 = vector.shape_cast %42 : vector<1x1x128x256xf32> to vector<128x256xf32>
    %cst_39 = arith.constant dense<0.000000e+00> : vector<16x256xf32>
    %44 = tpu.matmul %41, %43, %cst_39 {dimension_numbers = #tpu.dot_dimension_numbers<[1], [0], [0], [1], [0, 0, 1, 1], [], []>} : vector<16x128xf32>, vector<128x256xf32>, vector<16x256xf32> -> vector<16x256xf32>
    %c0_40 = arith.constant 0 : index
    %c1 = arith.constant 1 : index
    %c0_41 = arith.constant 0 : index
    %c0_42 = arith.constant 0 : index
    %45 = vector.load %arg2[%c0_40, %c1, %c0_41, %c0_42] : memref<2x2x256x128xf32, #tpu.memory_space<vmem>>, vector<1x1x256x128xf32>
    %46 = vector.shape_cast %45 : vector<1x1x256x128xf32> to vector<256x128xf32>
    %cst_43 = arith.constant dense<0.000000e+00> : vector<16x128xf32>
    %47 = tpu.matmul %2, %46, %cst_43 {dimension_numbers = #tpu.dot_dimension_numbers<[1], [0], [0], [1], [0, 0, 1, 1], [], []>} : vector<16x256xf32>, vector<256x128xf32>, vector<16x128xf32> -> vector<16x128xf32>
    %c0_44 = arith.constant 0 : index
    %c1_45 = arith.constant 1 : index
    %c0_46 = arith.constant 0 : index
    %c0_47 = arith.constant 0 : index
    %48 = vector.load %arg5[%c0_44, %c1_45, %c0_46, %c0_47] : memref<2x2x1x128xf32, #tpu.memory_space<vmem>>, vector<1x1x1x128xf32>
    %49 = vector.shape_cast %48 : vector<1x1x1x128xf32> to vector<1x128xf32>
    %50 = vector.broadcast %49 : vector<1x128xf32> to vector<16x128xf32>
    %51 = arith.addf %47, %50 : vector<16x128xf32>
    %c0_48 = arith.constant 0 : index
    %c1_49 = arith.constant 1 : index
    %c0_50 = arith.constant 0 : index
    %c0_51 = arith.constant 0 : index
    %52 = vector.load %arg3[%c0_48, %c1_49, %c0_50, %c0_51] : memref<2x2x256x128xf32, #tpu.memory_space<vmem>>, vector<1x1x256x128xf32>
    %53 = vector.shape_cast %52 : vector<1x1x256x128xf32> to vector<256x128xf32>
    %cst_52 = arith.constant dense<0.000000e+00> : vector<16x128xf32>
    %54 = tpu.matmul %2, %53, %cst_52 {dimension_numbers = #tpu.dot_dimension_numbers<[1], [0], [0], [1], [0, 0, 1, 1], [], []>} : vector<16x256xf32>, vector<256x128xf32>, vector<16x128xf32> -> vector<16x128xf32>
    %c0_53 = arith.constant 0 : index
    %c1_54 = arith.constant 1 : index
    %c0_55 = arith.constant 0 : index
    %c0_56 = arith.constant 0 : index
    %55 = vector.load %arg6[%c0_53, %c1_54, %c0_55, %c0_56] : memref<2x2x1x128xf32, #tpu.memory_space<vmem>>, vector<1x1x1x128xf32>
    %56 = vector.shape_cast %55 : vector<1x1x1x128xf32> to vector<1x128xf32>
    %57 = vector.broadcast %56 : vector<1x128xf32> to vector<16x128xf32>
    %58 = arith.addf %54, %57 : vector<16x128xf32>
    %c0_57 = arith.constant 0 : index
    %c1_58 = arith.constant 1 : index
    %c0_59 = arith.constant 0 : index
    %c0_60 = arith.constant 0 : index
    %59 = vector.load %arg4[%c0_57, %c1_58, %c0_59, %c0_60] : memref<2x2x256x128xf32, #tpu.memory_space<vmem>>, vector<1x1x256x128xf32>
    %60 = vector.shape_cast %59 : vector<1x1x256x128xf32> to vector<256x128xf32>
    %cst_61 = arith.constant dense<0.000000e+00> : vector<16x128xf32>
    %61 = tpu.matmul %2, %60, %cst_61 {dimension_numbers = #tpu.dot_dimension_numbers<[1], [0], [0], [1], [0, 0, 1, 1], [], []>} : vector<16x256xf32>, vector<256x128xf32>, vector<16x128xf32> -> vector<16x128xf32>
    %c0_62 = arith.constant 0 : index
    %c1_63 = arith.constant 1 : index
    %c0_64 = arith.constant 0 : index
    %c0_65 = arith.constant 0 : index
    %62 = vector.load %arg7[%c0_62, %c1_63, %c0_64, %c0_65] : memref<2x2x1x128xf32, #tpu.memory_space<vmem>>, vector<1x1x1x128xf32>
    %63 = vector.shape_cast %62 : vector<1x1x1x128xf32> to vector<1x128xf32>
    %64 = vector.broadcast %63 : vector<1x128xf32> to vector<16x128xf32>
    %65 = arith.addf %61, %64 : vector<16x128xf32>
    %66 = vector.shape_cast %51 : vector<16x128xf32> to vector<2x8x128xf32>
    %67 = vector.shape_cast %58 : vector<16x128xf32> to vector<2x8x128xf32>
    %68 = vector.shape_cast %65 : vector<16x128xf32> to vector<2x8x128xf32>
    "tpu.trace_start"() <{level = 10 : i32, message = "bqd,bkd->bqk"}> : () -> ()
    %cst_66 = arith.constant dense<0.000000e+00> : vector<2x8x8xf32>
    %69 = tpu.matmul %66, %67, %cst_66 {dimension_numbers = #tpu.dot_dimension_numbers<[2], [2], [1], [1], [0, 0, 0, 1, 1, 1], [0], [0]>} : vector<2x8x128xf32>, vector<2x8x128xf32>, vector<2x8x8xf32> -> vector<2x8x8xf32>
    "tpu.trace_stop"() : () -> ()
    %cst_67 = arith.constant 0.0883883461 : f32
    %70 = vector.broadcast %cst_67 : f32 to vector<2x8x8xf32>
    %71 = arith.mulf %69, %70 : vector<2x8x8xf32>
    %cst_68 = arith.constant dense<0xFF800000> : vector<2x8xf32>
    %72 = vector.multi_reduction <maximumf>, %71, %cst_68 [2] : vector<2x8x8xf32> to vector<2x8xf32>
    %73 = vector.shape_cast %72 : vector<2x8xf32> to vector<2x8x1xf32>
    %74 = vector.broadcast %73 : vector<2x8x1xf32> to vector<2x8x8xf32>
    %75 = arith.subf %71, %74 : vector<2x8x8xf32>
    %76 = math.exp %75 : vector<2x8x8xf32>
    %cst_69 = arith.constant dense<0.000000e+00> : vector<2x8xf32>
    %77 = vector.multi_reduction <add>, %76, %cst_69 [2] : vector<2x8x8xf32> to vector<2x8xf32>
    %78 = vector.shape_cast %77 : vector<2x8xf32> to vector<2x8x1xf32>
    %79 = tpu.reciprocal %78 {approx = true} : vector<2x8x1xf32> -> vector<2x8x1xf32>
    %80 = vector.broadcast %79 : vector<2x8x1xf32> to vector<2x8x8xf32>
    %81 = arith.mulf %76, %80 : vector<2x8x8xf32>
    "tpu.trace_start"() <{level = 10 : i32, message = "bqk,bkd->bqd"}> : () -> ()
    %cst_70 = arith.constant dense<0.000000e+00> : vector<2x8x128xf32>
    %82 = tpu.matmul %81, %68, %cst_70 {dimension_numbers = #tpu.dot_dimension_numbers<[2], [1], [1], [2], [0, 0, 0, 1, 1, 2], [0], [0]>} : vector<2x8x8xf32>, vector<2x8x128xf32>, vector<2x8x128xf32> -> vector<2x8x128xf32>
    "tpu.trace_stop"() : () -> ()
    %83 = vector.shape_cast %82 : vector<2x8x128xf32> to vector<16x128xf32>
    %c0_71 = arith.constant 0 : index
    %c1_72 = arith.constant 1 : index
    %c0_73 = arith.constant 0 : index
    %c0_74 = arith.constant 0 : index
    %84 = vector.load %arg8[%c0_71, %c1_72, %c0_73, %c0_74] : memref<2x2x128x256xf32, #tpu.memory_space<vmem>>, vector<1x1x128x256xf32>
    %85 = vector.shape_cast %84 : vector<1x1x128x256xf32> to vector<128x256xf32>
    %cst_75 = arith.constant dense<0.000000e+00> : vector<16x256xf32>
    %86 = tpu.matmul %83, %85, %cst_75 {dimension_numbers = #tpu.dot_dimension_numbers<[1], [0], [0], [1], [0, 0, 1, 1], [], []>} : vector<16x128xf32>, vector<128x256xf32>, vector<16x256xf32> -> vector<16x256xf32>
    %87 = arith.addf %44, %86 : vector<16x256xf32>
    %c0_76 = arith.constant 0 : index
    %c0_77 = arith.constant 0 : index
    %c0_78 = arith.constant 0 : index
    %88 = vector.load %arg9[%c0_76, %c0_77, %c0_78] : memref<2x1x256xf32, #tpu.memory_space<vmem>>, vector<1x1x256xf32>
    %89 = vector.shape_cast %88 : vector<1x1x256xf32> to vector<1x256xf32>
    %90 = vector.broadcast %89 : vector<1x256xf32> to vector<16x256xf32>
    %91 = arith.addf %87, %90 : vector<16x256xf32>
    %92 = arith.addf %2, %91 : vector<16x256xf32>
    %c0_79 = arith.constant 0 : index
    %c0_80 = arith.constant 0 : index
    %c0_81 = arith.constant 0 : index
    %93 = vector.load %arg10[%c0_79, %c0_80, %c0_81] : memref<2x1x256xf32, #tpu.memory_space<vmem>>, vector<1x1x256xf32>
    %94 = vector.shape_cast %93 : vector<1x1x256xf32> to vector<1x256xf32>
    %c0_82 = arith.constant 0 : index
    %c0_83 = arith.constant 0 : index
    %c0_84 = arith.constant 0 : index
    %95 = vector.load %arg11[%c0_82, %c0_83, %c0_84] : memref<2x1x256xf32, #tpu.memory_space<vmem>>, vector<1x1x256xf32>
    %96 = vector.shape_cast %95 : vector<1x1x256xf32> to vector<1x256xf32>
    %cst_85 = arith.constant dense<0.000000e+00> : vector<16xf32>
    %97 = vector.multi_reduction <add>, %92, %cst_85 [1] : vector<16x256xf32> to vector<16xf32>
    %98 = vector.shape_cast %97 : vector<16xf32> to vector<16x1xf32>
    %cst_86 = arith.constant 2.560000e+02 : f32
    %99 = vector.broadcast %cst_86 : f32 to vector<16x1xf32>
    %100 = arith.divf %98, %99 : vector<16x1xf32>
    %101 = vector.broadcast %100 : vector<16x1xf32> to vector<16x256xf32>
    %102 = arith.subf %92, %101 : vector<16x256xf32>
    %103 = arith.mulf %102, %102 : vector<16x256xf32>
    %cst_87 = arith.constant dense<0.000000e+00> : vector<16xf32>
    %104 = vector.multi_reduction <add>, %103, %cst_87 [1] : vector<16x256xf32> to vector<16xf32>
    %105 = vector.shape_cast %104 : vector<16xf32> to vector<16x1xf32>
    %cst_88 = arith.constant 2.560000e+02 : f32
    %106 = vector.broadcast %cst_88 : f32 to vector<16x1xf32>
    %107 = arith.divf %105, %106 : vector<16x1xf32>
    %108 = vector.broadcast %100 : vector<16x1xf32> to vector<16x256xf32>
    %109 = arith.subf %92, %108 : vector<16x256xf32>
    %cst_89 = arith.constant 9.99999974E-6 : f32
    %110 = vector.broadcast %cst_89 : f32 to vector<16x1xf32>
    %111 = arith.addf %107, %110 : vector<16x1xf32>
    %112 = math.rsqrt %111 : vector<16x1xf32>
    %113 = vector.broadcast %112 : vector<16x1xf32> to vector<16x256xf32>
    %114 = arith.mulf %109, %113 : vector<16x256xf32>
    %115 = vector.broadcast %94 : vector<1x256xf32> to vector<16x256xf32>
    %116 = arith.mulf %114, %115 : vector<16x256xf32>
    %117 = vector.broadcast %96 : vector<1x256xf32> to vector<16x256xf32>
    %118 = arith.addf %116, %117 : vector<16x256xf32>
    %c0_90 = arith.constant 0 : index
    %c0_91 = arith.constant 0 : index
    %c0_92 = arith.constant 0 : index
    %119 = vector.load %arg14[%c0_90, %c0_91, %c0_92] : memref<2x256x256xf32, #tpu.memory_space<vmem>>, vector<1x256x256xf32>
    %120 = vector.shape_cast %119 : vector<1x256x256xf32> to vector<256x256xf32>
    %cst_93 = arith.constant dense<0.000000e+00> : vector<16x256xf32>
    %121 = tpu.matmul %118, %120, %cst_93 {dimension_numbers = #tpu.dot_dimension_numbers<[1], [0], [0], [1], [0, 0, 1, 1], [], []>} : vector<16x256xf32>, vector<256x256xf32>, vector<16x256xf32> -> vector<16x256xf32>
    %c0_94 = arith.constant 0 : index
    %c0_95 = arith.constant 0 : index
    %c0_96 = arith.constant 0 : index
    %122 = vector.load %arg15[%c0_94, %c0_95, %c0_96] : memref<2x1x256xf32, #tpu.memory_space<vmem>>, vector<1x1x256xf32>
    %123 = vector.shape_cast %122 : vector<1x1x256xf32> to vector<1x256xf32>
    %124 = vector.broadcast %123 : vector<1x256xf32> to vector<16x256xf32>
    %125 = arith.addf %121, %124 : vector<16x256xf32>
    %cst_97 = arith.constant 0.000000e+00 : f32
    %126 = vector.broadcast %cst_97 : f32 to vector<16x256xf32>
    %127 = arith.maximumf %125, %126 : vector<16x256xf32>
    %c0_98 = arith.constant 0 : index
    %c0_99 = arith.constant 0 : index
    %c0_100 = arith.constant 0 : index
    %128 = vector.load %arg16[%c0_98, %c0_99, %c0_100] : memref<2x256x256xf32, #tpu.memory_space<vmem>>, vector<1x256x256xf32>
    %129 = vector.shape_cast %128 : vector<1x256x256xf32> to vector<256x256xf32>
    %cst_101 = arith.constant dense<0.000000e+00> : vector<16x256xf32>
    %130 = tpu.matmul %127, %129, %cst_101 {dimension_numbers = #tpu.dot_dimension_numbers<[1], [0], [0], [1], [0, 0, 1, 1], [], []>} : vector<16x256xf32>, vector<256x256xf32>, vector<16x256xf32> -> vector<16x256xf32>
    %c0_102 = arith.constant 0 : index
    %c0_103 = arith.constant 0 : index
    %c0_104 = arith.constant 0 : index
    %131 = vector.load %arg17[%c0_102, %c0_103, %c0_104] : memref<2x1x256xf32, #tpu.memory_space<vmem>>, vector<1x1x256xf32>
    %132 = vector.shape_cast %131 : vector<1x1x256xf32> to vector<1x256xf32>
    %133 = vector.broadcast %132 : vector<1x256xf32> to vector<16x256xf32>
    %134 = arith.addf %130, %133 : vector<16x256xf32>
    %135 = arith.addf %118, %134 : vector<16x256xf32>
    %c0_105 = arith.constant 0 : index
    %c0_106 = arith.constant 0 : index
    %c0_107 = arith.constant 0 : index
    %136 = vector.load %arg12[%c0_105, %c0_106, %c0_107] : memref<2x1x256xf32, #tpu.memory_space<vmem>>, vector<1x1x256xf32>
    %137 = vector.shape_cast %136 : vector<1x1x256xf32> to vector<1x256xf32>
    %c0_108 = arith.constant 0 : index
    %c0_109 = arith.constant 0 : index
    %c0_110 = arith.constant 0 : index
    %138 = vector.load %arg13[%c0_108, %c0_109, %c0_110] : memref<2x1x256xf32, #tpu.memory_space<vmem>>, vector<1x1x256xf32>
    %139 = vector.shape_cast %138 : vector<1x1x256xf32> to vector<1x256xf32>
    %cst_111 = arith.constant dense<0.000000e+00> : vector<16xf32>
    %140 = vector.multi_reduction <add>, %135, %cst_111 [1] : vector<16x256xf32> to vector<16xf32>
    %141 = vector.shape_cast %140 : vector<16xf32> to vector<16x1xf32>
    %cst_112 = arith.constant 2.560000e+02 : f32
    %142 = vector.broadcast %cst_112 : f32 to vector<16x1xf32>
    %143 = arith.divf %141, %142 : vector<16x1xf32>
    %144 = vector.broadcast %143 : vector<16x1xf32> to vector<16x256xf32>
    %145 = arith.subf %135, %144 : vector<16x256xf32>
    %146 = arith.mulf %145, %145 : vector<16x256xf32>
    %cst_113 = arith.constant dense<0.000000e+00> : vector<16xf32>
    %147 = vector.multi_reduction <add>, %146, %cst_113 [1] : vector<16x256xf32> to vector<16xf32>
    %148 = vector.shape_cast %147 : vector<16xf32> to vector<16x1xf32>
    %cst_114 = arith.constant 2.560000e+02 : f32
    %149 = vector.broadcast %cst_114 : f32 to vector<16x1xf32>
    %150 = arith.divf %148, %149 : vector<16x1xf32>
    %151 = vector.broadcast %143 : vector<16x1xf32> to vector<16x256xf32>
    %152 = arith.subf %135, %151 : vector<16x256xf32>
    %cst_115 = arith.constant 9.99999974E-6 : f32
    %153 = vector.broadcast %cst_115 : f32 to vector<16x1xf32>
    %154 = arith.addf %150, %153 : vector<16x1xf32>
    %155 = math.rsqrt %154 : vector<16x1xf32>
    %156 = vector.broadcast %155 : vector<16x1xf32> to vector<16x256xf32>
    %157 = arith.mulf %152, %156 : vector<16x256xf32>
    %158 = vector.broadcast %137 : vector<1x256xf32> to vector<16x256xf32>
    %159 = arith.mulf %157, %158 : vector<16x256xf32>
    %160 = vector.broadcast %139 : vector<1x256xf32> to vector<16x256xf32>
    %161 = arith.addf %159, %160 : vector<16x256xf32>
    %c1_116 = arith.constant 1 : index
    %c0_117 = arith.constant 0 : index
    %c0_118 = arith.constant 0 : index
    %c0_119 = arith.constant 0 : index
    %162 = vector.load %arg2[%c1_116, %c0_117, %c0_118, %c0_119] : memref<2x2x256x128xf32, #tpu.memory_space<vmem>>, vector<1x1x256x128xf32>
    %163 = vector.shape_cast %162 : vector<1x1x256x128xf32> to vector<256x128xf32>
    %cst_120 = arith.constant dense<0.000000e+00> : vector<16x128xf32>
    %164 = tpu.matmul %161, %163, %cst_120 {dimension_numbers = #tpu.dot_dimension_numbers<[1], [0], [0], [1], [0, 0, 1, 1], [], []>} : vector<16x256xf32>, vector<256x128xf32>, vector<16x128xf32> -> vector<16x128xf32>
    %c1_121 = arith.constant 1 : index
    %c0_122 = arith.constant 0 : index
    %c0_123 = arith.constant 0 : index
    %c0_124 = arith.constant 0 : index
    %165 = vector.load %arg5[%c1_121, %c0_122, %c0_123, %c0_124] : memref<2x2x1x128xf32, #tpu.memory_space<vmem>>, vector<1x1x1x128xf32>
    %166 = vector.shape_cast %165 : vector<1x1x1x128xf32> to vector<1x128xf32>
    %167 = vector.broadcast %166 : vector<1x128xf32> to vector<16x128xf32>
    %168 = arith.addf %164, %167 : vector<16x128xf32>
    %c1_125 = arith.constant 1 : index
    %c0_126 = arith.constant 0 : index
    %c0_127 = arith.constant 0 : index
    %c0_128 = arith.constant 0 : index
    %169 = vector.load %arg3[%c1_125, %c0_126, %c0_127, %c0_128] : memref<2x2x256x128xf32, #tpu.memory_space<vmem>>, vector<1x1x256x128xf32>
    %170 = vector.shape_cast %169 : vector<1x1x256x128xf32> to vector<256x128xf32>
    %cst_129 = arith.constant dense<0.000000e+00> : vector<16x128xf32>
    %171 = tpu.matmul %161, %170, %cst_129 {dimension_numbers = #tpu.dot_dimension_numbers<[1], [0], [0], [1], [0, 0, 1, 1], [], []>} : vector<16x256xf32>, vector<256x128xf32>, vector<16x128xf32> -> vector<16x128xf32>
    %c1_130 = arith.constant 1 : index
    %c0_131 = arith.constant 0 : index
    %c0_132 = arith.constant 0 : index
    %c0_133 = arith.constant 0 : index
    %172 = vector.load %arg6[%c1_130, %c0_131, %c0_132, %c0_133] : memref<2x2x1x128xf32, #tpu.memory_space<vmem>>, vector<1x1x1x128xf32>
    %173 = vector.shape_cast %172 : vector<1x1x1x128xf32> to vector<1x128xf32>
    %174 = vector.broadcast %173 : vector<1x128xf32> to vector<16x128xf32>
    %175 = arith.addf %171, %174 : vector<16x128xf32>
    %c1_134 = arith.constant 1 : index
    %c0_135 = arith.constant 0 : index
    %c0_136 = arith.constant 0 : index
    %c0_137 = arith.constant 0 : index
    %176 = vector.load %arg4[%c1_134, %c0_135, %c0_136, %c0_137] : memref<2x2x256x128xf32, #tpu.memory_space<vmem>>, vector<1x1x256x128xf32>
    %177 = vector.shape_cast %176 : vector<1x1x256x128xf32> to vector<256x128xf32>
    %cst_138 = arith.constant dense<0.000000e+00> : vector<16x128xf32>
    %178 = tpu.matmul %161, %177, %cst_138 {dimension_numbers = #tpu.dot_dimension_numbers<[1], [0], [0], [1], [0, 0, 1, 1], [], []>} : vector<16x256xf32>, vector<256x128xf32>, vector<16x128xf32> -> vector<16x128xf32>
    %c1_139 = arith.constant 1 : index
    %c0_140 = arith.constant 0 : index
    %c0_141 = arith.constant 0 : index
    %c0_142 = arith.constant 0 : index
    %179 = vector.load %arg7[%c1_139, %c0_140, %c0_141, %c0_142] : memref<2x2x1x128xf32, #tpu.memory_space<vmem>>, vector<1x1x1x128xf32>
    %180 = vector.shape_cast %179 : vector<1x1x1x128xf32> to vector<1x128xf32>
    %181 = vector.broadcast %180 : vector<1x128xf32> to vector<16x128xf32>
    %182 = arith.addf %178, %181 : vector<16x128xf32>
    %183 = vector.shape_cast %168 : vector<16x128xf32> to vector<2x8x128xf32>
    %184 = vector.shape_cast %175 : vector<16x128xf32> to vector<2x8x128xf32>
    %185 = vector.shape_cast %182 : vector<16x128xf32> to vector<2x8x128xf32>
    "tpu.trace_start"() <{level = 10 : i32, message = "bqd,bkd->bqk"}> : () -> ()
    %cst_143 = arith.constant dense<0.000000e+00> : vector<2x8x8xf32>
    %186 = tpu.matmul %183, %184, %cst_143 {dimension_numbers = #tpu.dot_dimension_numbers<[2], [2], [1], [1], [0, 0, 0, 1, 1, 1], [0], [0]>} : vector<2x8x128xf32>, vector<2x8x128xf32>, vector<2x8x8xf32> -> vector<2x8x8xf32>
    "tpu.trace_stop"() : () -> ()
    %cst_144 = arith.constant 0.0883883461 : f32
    %187 = vector.broadcast %cst_144 : f32 to vector<2x8x8xf32>
    %188 = arith.mulf %186, %187 : vector<2x8x8xf32>
    %cst_145 = arith.constant dense<0xFF800000> : vector<2x8xf32>
    %189 = vector.multi_reduction <maximumf>, %188, %cst_145 [2] : vector<2x8x8xf32> to vector<2x8xf32>
    %190 = vector.shape_cast %189 : vector<2x8xf32> to vector<2x8x1xf32>
    %191 = vector.broadcast %190 : vector<2x8x1xf32> to vector<2x8x8xf32>
    %192 = arith.subf %188, %191 : vector<2x8x8xf32>
    %193 = math.exp %192 : vector<2x8x8xf32>
    %cst_146 = arith.constant dense<0.000000e+00> : vector<2x8xf32>
    %194 = vector.multi_reduction <add>, %193, %cst_146 [2] : vector<2x8x8xf32> to vector<2x8xf32>
    %195 = vector.shape_cast %194 : vector<2x8xf32> to vector<2x8x1xf32>
    %196 = tpu.reciprocal %195 {approx = true} : vector<2x8x1xf32> -> vector<2x8x1xf32>
    %197 = vector.broadcast %196 : vector<2x8x1xf32> to vector<2x8x8xf32>
    %198 = arith.mulf %193, %197 : vector<2x8x8xf32>
    "tpu.trace_start"() <{level = 10 : i32, message = "bqk,bkd->bqd"}> : () -> ()
    %cst_147 = arith.constant dense<0.000000e+00> : vector<2x8x128xf32>
    %199 = tpu.matmul %198, %185, %cst_147 {dimension_numbers = #tpu.dot_dimension_numbers<[2], [1], [1], [2], [0, 0, 0, 1, 1, 2], [0], [0]>} : vector<2x8x8xf32>, vector<2x8x128xf32>, vector<2x8x128xf32> -> vector<2x8x128xf32>
    "tpu.trace_stop"() : () -> ()
    %200 = vector.shape_cast %199 : vector<2x8x128xf32> to vector<16x128xf32>
    %c1_148 = arith.constant 1 : index
    %c0_149 = arith.constant 0 : index
    %c0_150 = arith.constant 0 : index
    %c0_151 = arith.constant 0 : index
    %201 = vector.load %arg8[%c1_148, %c0_149, %c0_150, %c0_151] : memref<2x2x128x256xf32, #tpu.memory_space<vmem>>, vector<1x1x128x256xf32>
    %202 = vector.shape_cast %201 : vector<1x1x128x256xf32> to vector<128x256xf32>
    %cst_152 = arith.constant dense<0.000000e+00> : vector<16x256xf32>
    %203 = tpu.matmul %200, %202, %cst_152 {dimension_numbers = #tpu.dot_dimension_numbers<[1], [0], [0], [1], [0, 0, 1, 1], [], []>} : vector<16x128xf32>, vector<128x256xf32>, vector<16x256xf32> -> vector<16x256xf32>
    %c1_153 = arith.constant 1 : index
    %c1_154 = arith.constant 1 : index
    %c0_155 = arith.constant 0 : index
    %c0_156 = arith.constant 0 : index
    %204 = vector.load %arg2[%c1_153, %c1_154, %c0_155, %c0_156] : memref<2x2x256x128xf32, #tpu.memory_space<vmem>>, vector<1x1x256x128xf32>
    %205 = vector.shape_cast %204 : vector<1x1x256x128xf32> to vector<256x128xf32>
    %cst_157 = arith.constant dense<0.000000e+00> : vector<16x128xf32>
    %206 = tpu.matmul %161, %205, %cst_157 {dimension_numbers = #tpu.dot_dimension_numbers<[1], [0], [0], [1], [0, 0, 1, 1], [], []>} : vector<16x256xf32>, vector<256x128xf32>, vector<16x128xf32> -> vector<16x128xf32>
    %c1_158 = arith.constant 1 : index
    %c1_159 = arith.constant 1 : index
    %c0_160 = arith.constant 0 : index
    %c0_161 = arith.constant 0 : index
    %207 = vector.load %arg5[%c1_158, %c1_159, %c0_160, %c0_161] : memref<2x2x1x128xf32, #tpu.memory_space<vmem>>, vector<1x1x1x128xf32>
    %208 = vector.shape_cast %207 : vector<1x1x1x128xf32> to vector<1x128xf32>
    %209 = vector.broadcast %208 : vector<1x128xf32> to vector<16x128xf32>
    %210 = arith.addf %206, %209 : vector<16x128xf32>
    %c1_162 = arith.constant 1 : index
    %c1_163 = arith.constant 1 : index
    %c0_164 = arith.constant 0 : index
    %c0_165 = arith.constant 0 : index
    %211 = vector.load %arg3[%c1_162, %c1_163, %c0_164, %c0_165] : memref<2x2x256x128xf32, #tpu.memory_space<vmem>>, vector<1x1x256x128xf32>
    %212 = vector.shape_cast %211 : vector<1x1x256x128xf32> to vector<256x128xf32>
    %cst_166 = arith.constant dense<0.000000e+00> : vector<16x128xf32>
    %213 = tpu.matmul %161, %212, %cst_166 {dimension_numbers = #tpu.dot_dimension_numbers<[1], [0], [0], [1], [0, 0, 1, 1], [], []>} : vector<16x256xf32>, vector<256x128xf32>, vector<16x128xf32> -> vector<16x128xf32>
    %c1_167 = arith.constant 1 : index
    %c1_168 = arith.constant 1 : index
    %c0_169 = arith.constant 0 : index
    %c0_170 = arith.constant 0 : index
    %214 = vector.load %arg6[%c1_167, %c1_168, %c0_169, %c0_170] : memref<2x2x1x128xf32, #tpu.memory_space<vmem>>, vector<1x1x1x128xf32>
    %215 = vector.shape_cast %214 : vector<1x1x1x128xf32> to vector<1x128xf32>
    %216 = vector.broadcast %215 : vector<1x128xf32> to vector<16x128xf32>
    %217 = arith.addf %213, %216 : vector<16x128xf32>
    %c1_171 = arith.constant 1 : index
    %c1_172 = arith.constant 1 : index
    %c0_173 = arith.constant 0 : index
    %c0_174 = arith.constant 0 : index
    %218 = vector.load %arg4[%c1_171, %c1_172, %c0_173, %c0_174] : memref<2x2x256x128xf32, #tpu.memory_space<vmem>>, vector<1x1x256x128xf32>
    %219 = vector.shape_cast %218 : vector<1x1x256x128xf32> to vector<256x128xf32>
    %cst_175 = arith.constant dense<0.000000e+00> : vector<16x128xf32>
    %220 = tpu.matmul %161, %219, %cst_175 {dimension_numbers = #tpu.dot_dimension_numbers<[1], [0], [0], [1], [0, 0, 1, 1], [], []>} : vector<16x256xf32>, vector<256x128xf32>, vector<16x128xf32> -> vector<16x128xf32>
    %c1_176 = arith.constant 1 : index
    %c1_177 = arith.constant 1 : index
    %c0_178 = arith.constant 0 : index
    %c0_179 = arith.constant 0 : index
    %221 = vector.load %arg7[%c1_176, %c1_177, %c0_178, %c0_179] : memref<2x2x1x128xf32, #tpu.memory_space<vmem>>, vector<1x1x1x128xf32>
    %222 = vector.shape_cast %221 : vector<1x1x1x128xf32> to vector<1x128xf32>
    %223 = vector.broadcast %222 : vector<1x128xf32> to vector<16x128xf32>
    %224 = arith.addf %220, %223 : vector<16x128xf32>
    %225 = vector.shape_cast %210 : vector<16x128xf32> to vector<2x8x128xf32>
    %226 = vector.shape_cast %217 : vector<16x128xf32> to vector<2x8x128xf32>
    %227 = vector.shape_cast %224 : vector<16x128xf32> to vector<2x8x128xf32>
    "tpu.trace_start"() <{level = 10 : i32, message = "bqd,bkd->bqk"}> : () -> ()
    %cst_180 = arith.constant dense<0.000000e+00> : vector<2x8x8xf32>
    %228 = tpu.matmul %225, %226, %cst_180 {dimension_numbers = #tpu.dot_dimension_numbers<[2], [2], [1], [1], [0, 0, 0, 1, 1, 1], [0], [0]>} : vector<2x8x128xf32>, vector<2x8x128xf32>, vector<2x8x8xf32> -> vector<2x8x8xf32>
    "tpu.trace_stop"() : () -> ()
    %cst_181 = arith.constant 0.0883883461 : f32
    %229 = vector.broadcast %cst_181 : f32 to vector<2x8x8xf32>
    %230 = arith.mulf %228, %229 : vector<2x8x8xf32>
    %cst_182 = arith.constant dense<0xFF800000> : vector<2x8xf32>
    %231 = vector.multi_reduction <maximumf>, %230, %cst_182 [2] : vector<2x8x8xf32> to vector<2x8xf32>
    %232 = vector.shape_cast %231 : vector<2x8xf32> to vector<2x8x1xf32>
    %233 = vector.broadcast %232 : vector<2x8x1xf32> to vector<2x8x8xf32>
    %234 = arith.subf %230, %233 : vector<2x8x8xf32>
    %235 = math.exp %234 : vector<2x8x8xf32>
    %cst_183 = arith.constant dense<0.000000e+00> : vector<2x8xf32>
    %236 = vector.multi_reduction <add>, %235, %cst_183 [2] : vector<2x8x8xf32> to vector<2x8xf32>
    %237 = vector.shape_cast %236 : vector<2x8xf32> to vector<2x8x1xf32>
    %238 = tpu.reciprocal %237 {approx = true} : vector<2x8x1xf32> -> vector<2x8x1xf32>
    %239 = vector.broadcast %238 : vector<2x8x1xf32> to vector<2x8x8xf32>
    %240 = arith.mulf %235, %239 : vector<2x8x8xf32>
    "tpu.trace_start"() <{level = 10 : i32, message = "bqk,bkd->bqd"}> : () -> ()
    %cst_184 = arith.constant dense<0.000000e+00> : vector<2x8x128xf32>
    %241 = tpu.matmul %240, %227, %cst_184 {dimension_numbers = #tpu.dot_dimension_numbers<[2], [1], [1], [2], [0, 0, 0, 1, 1, 2], [0], [0]>} : vector<2x8x8xf32>, vector<2x8x128xf32>, vector<2x8x128xf32> -> vector<2x8x128xf32>
    "tpu.trace_stop"() : () -> ()
    %242 = vector.shape_cast %241 : vector<2x8x128xf32> to vector<16x128xf32>
    %c1_185 = arith.constant 1 : index
    %c1_186 = arith.constant 1 : index
    %c0_187 = arith.constant 0 : index
    %c0_188 = arith.constant 0 : index
    %243 = vector.load %arg8[%c1_185, %c1_186, %c0_187, %c0_188] : memref<2x2x128x256xf32, #tpu.memory_space<vmem>>, vector<1x1x128x256xf32>
    %244 = vector.shape_cast %243 : vector<1x1x128x256xf32> to vector<128x256xf32>
    %cst_189 = arith.constant dense<0.000000e+00> : vector<16x256xf32>
    %245 = tpu.matmul %242, %244, %cst_189 {dimension_numbers = #tpu.dot_dimension_numbers<[1], [0], [0], [1], [0, 0, 1, 1], [], []>} : vector<16x128xf32>, vector<128x256xf32>, vector<16x256xf32> -> vector<16x256xf32>
    %246 = arith.addf %203, %245 : vector<16x256xf32>
    %c1_190 = arith.constant 1 : index
    %c0_191 = arith.constant 0 : index
    %c0_192 = arith.constant 0 : index
    %247 = vector.load %arg9[%c1_190, %c0_191, %c0_192] : memref<2x1x256xf32, #tpu.memory_space<vmem>>, vector<1x1x256xf32>
    %248 = vector.shape_cast %247 : vector<1x1x256xf32> to vector<1x256xf32>
    %249 = vector.broadcast %248 : vector<1x256xf32> to vector<16x256xf32>
    %250 = arith.addf %246, %249 : vector<16x256xf32>
    %251 = arith.addf %161, %250 : vector<16x256xf32>
    %c1_193 = arith.constant 1 : index
    %c0_194 = arith.constant 0 : index
    %c0_195 = arith.constant 0 : index
    %252 = vector.load %arg10[%c1_193, %c0_194, %c0_195] : memref<2x1x256xf32, #tpu.memory_space<vmem>>, vector<1x1x256xf32>
    %253 = vector.shape_cast %252 : vector<1x1x256xf32> to vector<1x256xf32>
    %c1_196 = arith.constant 1 : index
    %c0_197 = arith.constant 0 : index
    %c0_198 = arith.constant 0 : index
    %254 = vector.load %arg11[%c1_196, %c0_197, %c0_198] : memref<2x1x256xf32, #tpu.memory_space<vmem>>, vector<1x1x256xf32>
    %255 = vector.shape_cast %254 : vector<1x1x256xf32> to vector<1x256xf32>
    %cst_199 = arith.constant dense<0.000000e+00> : vector<16xf32>
    %256 = vector.multi_reduction <add>, %251, %cst_199 [1] : vector<16x256xf32> to vector<16xf32>
    %257 = vector.shape_cast %256 : vector<16xf32> to vector<16x1xf32>
    %cst_200 = arith.constant 2.560000e+02 : f32
    %258 = vector.broadcast %cst_200 : f32 to vector<16x1xf32>
    %259 = arith.divf %257, %258 : vector<16x1xf32>
    %260 = vector.broadcast %259 : vector<16x1xf32> to vector<16x256xf32>
    %261 = arith.subf %251, %260 : vector<16x256xf32>
    %262 = arith.mulf %261, %261 : vector<16x256xf32>
    %cst_201 = arith.constant dense<0.000000e+00> : vector<16xf32>
    %263 = vector.multi_reduction <add>, %262, %cst_201 [1] : vector<16x256xf32> to vector<16xf32>
    %264 = vector.shape_cast %263 : vector<16xf32> to vector<16x1xf32>
    %cst_202 = arith.constant 2.560000e+02 : f32
    %265 = vector.broadcast %cst_202 : f32 to vector<16x1xf32>
    %266 = arith.divf %264, %265 : vector<16x1xf32>
    %267 = vector.broadcast %259 : vector<16x1xf32> to vector<16x256xf32>
    %268 = arith.subf %251, %267 : vector<16x256xf32>
    %cst_203 = arith.constant 9.99999974E-6 : f32
    %269 = vector.broadcast %cst_203 : f32 to vector<16x1xf32>
    %270 = arith.addf %266, %269 : vector<16x1xf32>
    %271 = math.rsqrt %270 : vector<16x1xf32>
    %272 = vector.broadcast %271 : vector<16x1xf32> to vector<16x256xf32>
    %273 = arith.mulf %268, %272 : vector<16x256xf32>
    %274 = vector.broadcast %253 : vector<1x256xf32> to vector<16x256xf32>
    %275 = arith.mulf %273, %274 : vector<16x256xf32>
    %276 = vector.broadcast %255 : vector<1x256xf32> to vector<16x256xf32>
    %277 = arith.addf %275, %276 : vector<16x256xf32>
    %c1_204 = arith.constant 1 : index
    %c0_205 = arith.constant 0 : index
    %c0_206 = arith.constant 0 : index
    %278 = vector.load %arg14[%c1_204, %c0_205, %c0_206] : memref<2x256x256xf32, #tpu.memory_space<vmem>>, vector<1x256x256xf32>
    %279 = vector.shape_cast %278 : vector<1x256x256xf32> to vector<256x256xf32>
    %cst_207 = arith.constant dense<0.000000e+00> : vector<16x256xf32>
    %280 = tpu.matmul %277, %279, %cst_207 {dimension_numbers = #tpu.dot_dimension_numbers<[1], [0], [0], [1], [0, 0, 1, 1], [], []>} : vector<16x256xf32>, vector<256x256xf32>, vector<16x256xf32> -> vector<16x256xf32>
    %c1_208 = arith.constant 1 : index
    %c0_209 = arith.constant 0 : index
    %c0_210 = arith.constant 0 : index
    %281 = vector.load %arg15[%c1_208, %c0_209, %c0_210] : memref<2x1x256xf32, #tpu.memory_space<vmem>>, vector<1x1x256xf32>
    %282 = vector.shape_cast %281 : vector<1x1x256xf32> to vector<1x256xf32>
    %283 = vector.broadcast %282 : vector<1x256xf32> to vector<16x256xf32>
    %284 = arith.addf %280, %283 : vector<16x256xf32>
    %cst_211 = arith.constant 0.000000e+00 : f32
    %285 = vector.broadcast %cst_211 : f32 to vector<16x256xf32>
    %286 = arith.maximumf %284, %285 : vector<16x256xf32>
    %c1_212 = arith.constant 1 : index
    %c0_213 = arith.constant 0 : index
    %c0_214 = arith.constant 0 : index
    %287 = vector.load %arg16[%c1_212, %c0_213, %c0_214] : memref<2x256x256xf32, #tpu.memory_space<vmem>>, vector<1x256x256xf32>
    %288 = vector.shape_cast %287 : vector<1x256x256xf32> to vector<256x256xf32>
    %cst_215 = arith.constant dense<0.000000e+00> : vector<16x256xf32>
    %289 = tpu.matmul %286, %288, %cst_215 {dimension_numbers = #tpu.dot_dimension_numbers<[1], [0], [0], [1], [0, 0, 1, 1], [], []>} : vector<16x256xf32>, vector<256x256xf32>, vector<16x256xf32> -> vector<16x256xf32>
    %c1_216 = arith.constant 1 : index
    %c0_217 = arith.constant 0 : index
    %c0_218 = arith.constant 0 : index
    %290 = vector.load %arg17[%c1_216, %c0_217, %c0_218] : memref<2x1x256xf32, #tpu.memory_space<vmem>>, vector<1x1x256xf32>
    %291 = vector.shape_cast %290 : vector<1x1x256xf32> to vector<1x256xf32>
    %292 = vector.broadcast %291 : vector<1x256xf32> to vector<16x256xf32>
    %293 = arith.addf %289, %292 : vector<16x256xf32>
    %294 = arith.addf %277, %293 : vector<16x256xf32>
    %c1_219 = arith.constant 1 : index
    %c0_220 = arith.constant 0 : index
    %c0_221 = arith.constant 0 : index
    %295 = vector.load %arg12[%c1_219, %c0_220, %c0_221] : memref<2x1x256xf32, #tpu.memory_space<vmem>>, vector<1x1x256xf32>
    %296 = vector.shape_cast %295 : vector<1x1x256xf32> to vector<1x256xf32>
    %c1_222 = arith.constant 1 : index
    %c0_223 = arith.constant 0 : index
    %c0_224 = arith.constant 0 : index
    %297 = vector.load %arg13[%c1_222, %c0_223, %c0_224] : memref<2x1x256xf32, #tpu.memory_space<vmem>>, vector<1x1x256xf32>
    %298 = vector.shape_cast %297 : vector<1x1x256xf32> to vector<1x256xf32>
    %cst_225 = arith.constant dense<0.000000e+00> : vector<16xf32>
    %299 = vector.multi_reduction <add>, %294, %cst_225 [1] : vector<16x256xf32> to vector<16xf32>
    %300 = vector.shape_cast %299 : vector<16xf32> to vector<16x1xf32>
    %cst_226 = arith.constant 2.560000e+02 : f32
    %301 = vector.broadcast %cst_226 : f32 to vector<16x1xf32>
    %302 = arith.divf %300, %301 : vector<16x1xf32>
    %303 = vector.broadcast %302 : vector<16x1xf32> to vector<16x256xf32>
    %304 = arith.subf %294, %303 : vector<16x256xf32>
    %305 = arith.mulf %304, %304 : vector<16x256xf32>
    %cst_227 = arith.constant dense<0.000000e+00> : vector<16xf32>
    %306 = vector.multi_reduction <add>, %305, %cst_227 [1] : vector<16x256xf32> to vector<16xf32>
    %307 = vector.shape_cast %306 : vector<16xf32> to vector<16x1xf32>
    %cst_228 = arith.constant 2.560000e+02 : f32
    %308 = vector.broadcast %cst_228 : f32 to vector<16x1xf32>
    %309 = arith.divf %307, %308 : vector<16x1xf32>
    %310 = vector.broadcast %302 : vector<16x1xf32> to vector<16x256xf32>
    %311 = arith.subf %294, %310 : vector<16x256xf32>
    %cst_229 = arith.constant 9.99999974E-6 : f32
    %312 = vector.broadcast %cst_229 : f32 to vector<16x1xf32>
    %313 = arith.addf %309, %312 : vector<16x1xf32>
    %314 = math.rsqrt %313 : vector<16x1xf32>
    %315 = vector.broadcast %314 : vector<16x1xf32> to vector<16x256xf32>
    %316 = arith.mulf %311, %315 : vector<16x256xf32>
    %317 = vector.broadcast %296 : vector<1x256xf32> to vector<16x256xf32>
    %318 = arith.mulf %316, %317 : vector<16x256xf32>
    %319 = vector.broadcast %298 : vector<1x256xf32> to vector<16x256xf32>
    %320 = arith.addf %318, %319 : vector<16x256xf32>
    %321 = arith.addf %2, %320 : vector<16x256xf32>
    %c0_230 = arith.constant 0 : index
    %c0_231 = arith.constant 0 : index
    %322 = vector.load %arg18[%c0_230, %c0_231] : memref<256x128xf32, #tpu.memory_space<vmem>>, vector<256x128xf32>
    %cst_232 = arith.constant dense<0.000000e+00> : vector<16x128xf32>
    %323 = tpu.matmul %321, %322, %cst_232 {dimension_numbers = #tpu.dot_dimension_numbers<[1], [0], [0], [1], [0, 0, 1, 1], [], []>} : vector<16x256xf32>, vector<256x128xf32>, vector<16x128xf32> -> vector<16x128xf32>
    %c0_233 = arith.constant 0 : index
    %c0_234 = arith.constant 0 : index
    %324 = vector.load %arg19[%c0_233, %c0_234] : memref<1x128xf32, #tpu.memory_space<vmem>>, vector<1x128xf32>
    %325 = vector.broadcast %324 : vector<1x128xf32> to vector<16x128xf32>
    %326 = arith.addf %323, %325 : vector<16x128xf32>
    %c0_235 = arith.constant 0 : index
    %c0_236 = arith.constant 0 : index
    %327 = vector.load %arg20[%c0_235, %c0_236] : memref<8x128xf32, #tpu.memory_space<vmem>>, vector<8x128xf32>
    %c0_237 = arith.constant 0 : index
    %c0_238 = arith.constant 0 : index
    %328 = vector.load %arg21[%c0_237, %c0_238] : memref<128x128xf32, #tpu.memory_space<vmem>>, vector<128x128xf32>
    %cst_239 = arith.constant dense<0.000000e+00> : vector<8x128xf32>
    %329 = tpu.matmul %327, %328, %cst_239 {dimension_numbers = #tpu.dot_dimension_numbers<[1], [0], [0], [1], [0, 0, 1, 1], [], []>} : vector<8x128xf32>, vector<128x128xf32>, vector<8x128xf32> -> vector<8x128xf32>
    %c0_240 = arith.constant 0 : index
    %c0_241 = arith.constant 0 : index
    %330 = vector.load %arg22[%c0_240, %c0_241] : memref<1x128xf32, #tpu.memory_space<vmem>>, vector<1x128xf32>
    %331 = vector.broadcast %330 : vector<1x128xf32> to vector<8x128xf32>
    %332 = arith.addf %329, %331 : vector<8x128xf32>
    %cst_242 = arith.constant 0.000000e+00 : f32
    %333 = vector.broadcast %cst_242 : f32 to vector<8x128xf32>
    %334 = arith.maximumf %332, %333 : vector<8x128xf32>
    %c0_243 = arith.constant 0 : index
    %c0_244 = arith.constant 0 : index
    %335 = vector.load %arg23[%c0_243, %c0_244] : memref<128x128xf32, #tpu.memory_space<vmem>>, vector<128x128xf32>
    %cst_245 = arith.constant dense<0.000000e+00> : vector<8x128xf32>
    %336 = tpu.matmul %334, %335, %cst_245 {dimension_numbers = #tpu.dot_dimension_numbers<[1], [0], [0], [1], [0, 0, 1, 1], [], []>} : vector<8x128xf32>, vector<128x128xf32>, vector<8x128xf32> -> vector<8x128xf32>
    %c0_246 = arith.constant 0 : index
    %c0_247 = arith.constant 0 : index
    %337 = vector.load %arg24[%c0_246, %c0_247] : memref<1x128xf32, #tpu.memory_space<vmem>>, vector<1x128xf32>
    %338 = vector.broadcast %337 : vector<1x128xf32> to vector<8x128xf32>
    %339 = arith.addf %336, %338 : vector<8x128xf32>
    %c0_248 = arith.constant 0 : index
    %c0_249 = arith.constant 0 : index
    %340 = vector.load %arg25[%c0_248, %c0_249] : memref<8x128xf32, #tpu.memory_space<vmem>>, vector<8x128xf32>
    %c0_250 = arith.constant 0 : index
    %c0_251 = arith.constant 0 : index
    %341 = vector.load %arg26[%c0_250, %c0_251] : memref<128x128xf32, #tpu.memory_space<vmem>>, vector<128x128xf32>
    %cst_252 = arith.constant dense<0.000000e+00> : vector<8x128xf32>
    %342 = tpu.matmul %340, %341, %cst_252 {dimension_numbers = #tpu.dot_dimension_numbers<[1], [0], [0], [1], [0, 0, 1, 1], [], []>} : vector<8x128xf32>, vector<128x128xf32>, vector<8x128xf32> -> vector<8x128xf32>
    %c0_253 = arith.constant 0 : index
    %c0_254 = arith.constant 0 : index
    %343 = vector.load %arg27[%c0_253, %c0_254] : memref<128x128xf32, #tpu.memory_space<vmem>>, vector<128x128xf32>
    %cst_255 = arith.constant dense<0.000000e+00> : vector<8x128xf32>
    %344 = tpu.matmul %339, %343, %cst_255 {dimension_numbers = #tpu.dot_dimension_numbers<[1], [0], [0], [1], [0, 0, 1, 1], [], []>} : vector<8x128xf32>, vector<128x128xf32>, vector<8x128xf32> -> vector<8x128xf32>
    %345 = arith.addf %342, %344 : vector<8x128xf32>
    %c0_256 = arith.constant 0 : index
    %c0_257 = arith.constant 0 : index
    %346 = vector.load %arg28[%c0_256, %c0_257] : memref<1x128xf32, #tpu.memory_space<vmem>>, vector<1x128xf32>
    %347 = vector.broadcast %346 : vector<1x128xf32> to vector<8x128xf32>
    %348 = arith.addf %345, %347 : vector<8x128xf32>
    %cst_258 = arith.constant 0.000000e+00 : f32
    %349 = vector.broadcast %cst_258 : f32 to vector<8x128xf32>
    %350 = arith.maximumf %348, %349 : vector<8x128xf32>
    %c0_259 = arith.constant 0 : index
    %c0_260 = arith.constant 0 : index
    %351 = vector.load %arg29[%c0_259, %c0_260] : memref<128x128xf32, #tpu.memory_space<vmem>>, vector<128x128xf32>
    %cst_261 = arith.constant dense<0.000000e+00> : vector<8x128xf32>
    %352 = tpu.matmul %350, %351, %cst_261 {dimension_numbers = #tpu.dot_dimension_numbers<[1], [0], [0], [1], [0, 0, 1, 1], [], []>} : vector<8x128xf32>, vector<128x128xf32>, vector<8x128xf32> -> vector<8x128xf32>
    %c0_262 = arith.constant 0 : index
    %c0_263 = arith.constant 0 : index
    %353 = vector.load %arg30[%c0_262, %c0_263] : memref<1x128xf32, #tpu.memory_space<vmem>>, vector<1x128xf32>
    %354 = vector.broadcast %353 : vector<1x128xf32> to vector<8x128xf32>
    %355 = arith.addf %352, %354 : vector<8x128xf32>
    %356 = vector.shape_cast %326 : vector<16x128xf32> to vector<2x8x128xf32>
    %357 = vector.shape_cast %355 : vector<8x128xf32> to vector<1x8x128xf32>
    %358 = vector.broadcast %357 : vector<1x8x128xf32> to vector<2x8x128xf32>
    %359 = arith.addf %356, %358 : vector<2x8x128xf32>
    %360 = vector.shape_cast %359 : vector<2x8x128xf32> to vector<16x128xf32>
    %c0_264 = arith.constant 0 : index
    %c0_265 = arith.constant 0 : index
    %c0_266 = arith.constant 0 : index
    %c0_267 = arith.constant 0 : index
    %361 = vector.load %arg31[%c0_264, %c0_265, %c0_266, %c0_267] : memref<2x2x128x64xf32, #tpu.memory_space<vmem>>, vector<1x1x128x64xf32>
    %362 = vector.shape_cast %361 : vector<1x1x128x64xf32> to vector<128x64xf32>
    %cst_268 = arith.constant dense<0.000000e+00> : vector<16x64xf32>
    %363 = tpu.matmul %360, %362, %cst_268 {dimension_numbers = #tpu.dot_dimension_numbers<[1], [0], [0], [1], [0, 0, 1, 1], [], []>} : vector<16x128xf32>, vector<128x64xf32>, vector<16x64xf32> -> vector<16x64xf32>
    %c0_269 = arith.constant 0 : index
    %c0_270 = arith.constant 0 : index
    %c0_271 = arith.constant 0 : index
    %c0_272 = arith.constant 0 : index
    %364 = vector.load %arg34[%c0_269, %c0_270, %c0_271, %c0_272] : memref<2x2x1x64xf32, #tpu.memory_space<vmem>>, vector<1x1x1x64xf32>
    %365 = vector.shape_cast %364 : vector<1x1x1x64xf32> to vector<1x64xf32>
    %366 = vector.broadcast %365 : vector<1x64xf32> to vector<16x64xf32>
    %367 = arith.addf %363, %366 : vector<16x64xf32>
    %c0_273 = arith.constant 0 : index
    %c0_274 = arith.constant 0 : index
    %c0_275 = arith.constant 0 : index
    %c0_276 = arith.constant 0 : index
    %368 = vector.load %arg32[%c0_273, %c0_274, %c0_275, %c0_276] : memref<2x2x128x64xf32, #tpu.memory_space<vmem>>, vector<1x1x128x64xf32>
    %369 = vector.shape_cast %368 : vector<1x1x128x64xf32> to vector<128x64xf32>
    %cst_277 = arith.constant dense<0.000000e+00> : vector<16x64xf32>
    %370 = tpu.matmul %360, %369, %cst_277 {dimension_numbers = #tpu.dot_dimension_numbers<[1], [0], [0], [1], [0, 0, 1, 1], [], []>} : vector<16x128xf32>, vector<128x64xf32>, vector<16x64xf32> -> vector<16x64xf32>
    %c0_278 = arith.constant 0 : index
    %c0_279 = arith.constant 0 : index
    %c0_280 = arith.constant 0 : index
    %c0_281 = arith.constant 0 : index
    %371 = vector.load %arg35[%c0_278, %c0_279, %c0_280, %c0_281] : memref<2x2x1x64xf32, #tpu.memory_space<vmem>>, vector<1x1x1x64xf32>
    %372 = vector.shape_cast %371 : vector<1x1x1x64xf32> to vector<1x64xf32>
    %373 = vector.broadcast %372 : vector<1x64xf32> to vector<16x64xf32>
    %374 = arith.addf %370, %373 : vector<16x64xf32>
    %c0_282 = arith.constant 0 : index
    %c0_283 = arith.constant 0 : index
    %c0_284 = arith.constant 0 : index
    %c0_285 = arith.constant 0 : index
    %375 = vector.load %arg33[%c0_282, %c0_283, %c0_284, %c0_285] : memref<2x2x128x64xf32, #tpu.memory_space<vmem>>, vector<1x1x128x64xf32>
    %376 = vector.shape_cast %375 : vector<1x1x128x64xf32> to vector<128x64xf32>
    %cst_286 = arith.constant dense<0.000000e+00> : vector<16x64xf32>
    %377 = tpu.matmul %360, %376, %cst_286 {dimension_numbers = #tpu.dot_dimension_numbers<[1], [0], [0], [1], [0, 0, 1, 1], [], []>} : vector<16x128xf32>, vector<128x64xf32>, vector<16x64xf32> -> vector<16x64xf32>
    %c0_287 = arith.constant 0 : index
    %c0_288 = arith.constant 0 : index
    %c0_289 = arith.constant 0 : index
    %c0_290 = arith.constant 0 : index
    %378 = vector.load %arg36[%c0_287, %c0_288, %c0_289, %c0_290] : memref<2x2x1x64xf32, #tpu.memory_space<vmem>>, vector<1x1x1x64xf32>
    %379 = vector.shape_cast %378 : vector<1x1x1x64xf32> to vector<1x64xf32>
    %380 = vector.broadcast %379 : vector<1x64xf32> to vector<16x64xf32>
    %381 = arith.addf %377, %380 : vector<16x64xf32>
    %382 = vector.shape_cast %367 : vector<16x64xf32> to vector<2x8x64xf32>
    %383 = vector.shape_cast %374 : vector<16x64xf32> to vector<2x8x64xf32>
    %384 = vector.shape_cast %381 : vector<16x64xf32> to vector<2x8x64xf32>
    "tpu.trace_start"() <{level = 10 : i32, message = "bqd,bkd->bqk"}> : () -> ()
    %cst_291 = arith.constant dense<0.000000e+00> : vector<2x8x8xf32>
    %385 = tpu.matmul %382, %383, %cst_291 {dimension_numbers = #tpu.dot_dimension_numbers<[2], [2], [1], [1], [0, 0, 0, 1, 1, 1], [0], [0]>} : vector<2x8x64xf32>, vector<2x8x64xf32>, vector<2x8x8xf32> -> vector<2x8x8xf32>
    "tpu.trace_stop"() : () -> ()
    %cst_292 = arith.constant 1.250000e-01 : f32
    %386 = vector.broadcast %cst_292 : f32 to vector<2x8x8xf32>
    %387 = arith.mulf %385, %386 : vector<2x8x8xf32>
    %cst_293 = arith.constant dense<0xFF800000> : vector<2x8xf32>
    %388 = vector.multi_reduction <maximumf>, %387, %cst_293 [2] : vector<2x8x8xf32> to vector<2x8xf32>
    %389 = vector.shape_cast %388 : vector<2x8xf32> to vector<2x8x1xf32>
    %390 = vector.broadcast %389 : vector<2x8x1xf32> to vector<2x8x8xf32>
    %391 = arith.subf %387, %390 : vector<2x8x8xf32>
    %392 = math.exp %391 : vector<2x8x8xf32>
    %cst_294 = arith.constant dense<0.000000e+00> : vector<2x8xf32>
    %393 = vector.multi_reduction <add>, %392, %cst_294 [2] : vector<2x8x8xf32> to vector<2x8xf32>
    %394 = vector.shape_cast %393 : vector<2x8xf32> to vector<2x8x1xf32>
    %395 = tpu.reciprocal %394 {approx = true} : vector<2x8x1xf32> -> vector<2x8x1xf32>
    %396 = vector.broadcast %395 : vector<2x8x1xf32> to vector<2x8x8xf32>
    %397 = arith.mulf %392, %396 : vector<2x8x8xf32>
    "tpu.trace_start"() <{level = 10 : i32, message = "bqk,bkd->bqd"}> : () -> ()
    %cst_295 = arith.constant dense<0.000000e+00> : vector<2x8x64xf32>
    %398 = tpu.matmul %397, %384, %cst_295 {dimension_numbers = #tpu.dot_dimension_numbers<[2], [1], [1], [2], [0, 0, 0, 1, 1, 2], [0], [0]>} : vector<2x8x8xf32>, vector<2x8x64xf32>, vector<2x8x64xf32> -> vector<2x8x64xf32>
    "tpu.trace_stop"() : () -> ()
    %399 = vector.shape_cast %398 : vector<2x8x64xf32> to vector<16x64xf32>
    %c0_296 = arith.constant 0 : index
    %c0_297 = arith.constant 0 : index
    %c0_298 = arith.constant 0 : index
    %c0_299 = arith.constant 0 : index
    %400 = vector.load %arg37[%c0_296, %c0_297, %c0_298, %c0_299] : memref<2x2x64x128xf32, #tpu.memory_space<vmem>>, vector<1x1x64x128xf32>
    %401 = vector.shape_cast %400 : vector<1x1x64x128xf32> to vector<64x128xf32>
    %cst_300 = arith.constant dense<0.000000e+00> : vector<16x128xf32>
    %402 = tpu.matmul %399, %401, %cst_300 {dimension_numbers = #tpu.dot_dimension_numbers<[1], [0], [0], [1], [0, 0, 1, 1], [], []>} : vector<16x64xf32>, vector<64x128xf32>, vector<16x128xf32> -> vector<16x128xf32>
    %c0_301 = arith.constant 0 : index
    %c1_302 = arith.constant 1 : index
    %c0_303 = arith.constant 0 : index
    %c0_304 = arith.constant 0 : index
    %403 = vector.load %arg31[%c0_301, %c1_302, %c0_303, %c0_304] : memref<2x2x128x64xf32, #tpu.memory_space<vmem>>, vector<1x1x128x64xf32>
    %404 = vector.shape_cast %403 : vector<1x1x128x64xf32> to vector<128x64xf32>
    %cst_305 = arith.constant dense<0.000000e+00> : vector<16x64xf32>
    %405 = tpu.matmul %360, %404, %cst_305 {dimension_numbers = #tpu.dot_dimension_numbers<[1], [0], [0], [1], [0, 0, 1, 1], [], []>} : vector<16x128xf32>, vector<128x64xf32>, vector<16x64xf32> -> vector<16x64xf32>
    %c0_306 = arith.constant 0 : index
    %c1_307 = arith.constant 1 : index
    %c0_308 = arith.constant 0 : index
    %c0_309 = arith.constant 0 : index
    %406 = vector.load %arg34[%c0_306, %c1_307, %c0_308, %c0_309] : memref<2x2x1x64xf32, #tpu.memory_space<vmem>>, vector<1x1x1x64xf32>
    %407 = vector.shape_cast %406 : vector<1x1x1x64xf32> to vector<1x64xf32>
    %408 = vector.broadcast %407 : vector<1x64xf32> to vector<16x64xf32>
    %409 = arith.addf %405, %408 : vector<16x64xf32>
    %c0_310 = arith.constant 0 : index
    %c1_311 = arith.constant 1 : index
    %c0_312 = arith.constant 0 : index
    %c0_313 = arith.constant 0 : index
    %410 = vector.load %arg32[%c0_310, %c1_311, %c0_312, %c0_313] : memref<2x2x128x64xf32, #tpu.memory_space<vmem>>, vector<1x1x128x64xf32>
    %411 = vector.shape_cast %410 : vector<1x1x128x64xf32> to vector<128x64xf32>
    %cst_314 = arith.constant dense<0.000000e+00> : vector<16x64xf32>
    %412 = tpu.matmul %360, %411, %cst_314 {dimension_numbers = #tpu.dot_dimension_numbers<[1], [0], [0], [1], [0, 0, 1, 1], [], []>} : vector<16x128xf32>, vector<128x64xf32>, vector<16x64xf32> -> vector<16x64xf32>
    %c0_315 = arith.constant 0 : index
    %c1_316 = arith.constant 1 : index
    %c0_317 = arith.constant 0 : index
    %c0_318 = arith.constant 0 : index
    %413 = vector.load %arg35[%c0_315, %c1_316, %c0_317, %c0_318] : memref<2x2x1x64xf32, #tpu.memory_space<vmem>>, vector<1x1x1x64xf32>
    %414 = vector.shape_cast %413 : vector<1x1x1x64xf32> to vector<1x64xf32>
    %415 = vector.broadcast %414 : vector<1x64xf32> to vector<16x64xf32>
    %416 = arith.addf %412, %415 : vector<16x64xf32>
    %c0_319 = arith.constant 0 : index
    %c1_320 = arith.constant 1 : index
    %c0_321 = arith.constant 0 : index
    %c0_322 = arith.constant 0 : index
    %417 = vector.load %arg33[%c0_319, %c1_320, %c0_321, %c0_322] : memref<2x2x128x64xf32, #tpu.memory_space<vmem>>, vector<1x1x128x64xf32>
    %418 = vector.shape_cast %417 : vector<1x1x128x64xf32> to vector<128x64xf32>
    %cst_323 = arith.constant dense<0.000000e+00> : vector<16x64xf32>
    %419 = tpu.matmul %360, %418, %cst_323 {dimension_numbers = #tpu.dot_dimension_numbers<[1], [0], [0], [1], [0, 0, 1, 1], [], []>} : vector<16x128xf32>, vector<128x64xf32>, vector<16x64xf32> -> vector<16x64xf32>
    %c0_324 = arith.constant 0 : index
    %c1_325 = arith.constant 1 : index
    %c0_326 = arith.constant 0 : index
    %c0_327 = arith.constant 0 : index
    %420 = vector.load %arg36[%c0_324, %c1_325, %c0_326, %c0_327] : memref<2x2x1x64xf32, #tpu.memory_space<vmem>>, vector<1x1x1x64xf32>
    %421 = vector.shape_cast %420 : vector<1x1x1x64xf32> to vector<1x64xf32>
    %422 = vector.broadcast %421 : vector<1x64xf32> to vector<16x64xf32>
    %423 = arith.addf %419, %422 : vector<16x64xf32>
    %424 = vector.shape_cast %409 : vector<16x64xf32> to vector<2x8x64xf32>
    %425 = vector.shape_cast %416 : vector<16x64xf32> to vector<2x8x64xf32>
    %426 = vector.shape_cast %423 : vector<16x64xf32> to vector<2x8x64xf32>
    "tpu.trace_start"() <{level = 10 : i32, message = "bqd,bkd->bqk"}> : () -> ()
    %cst_328 = arith.constant dense<0.000000e+00> : vector<2x8x8xf32>
    %427 = tpu.matmul %424, %425, %cst_328 {dimension_numbers = #tpu.dot_dimension_numbers<[2], [2], [1], [1], [0, 0, 0, 1, 1, 1], [0], [0]>} : vector<2x8x64xf32>, vector<2x8x64xf32>, vector<2x8x8xf32> -> vector<2x8x8xf32>
    "tpu.trace_stop"() : () -> ()
    %cst_329 = arith.constant 1.250000e-01 : f32
    %428 = vector.broadcast %cst_329 : f32 to vector<2x8x8xf32>
    %429 = arith.mulf %427, %428 : vector<2x8x8xf32>
    %cst_330 = arith.constant dense<0xFF800000> : vector<2x8xf32>
    %430 = vector.multi_reduction <maximumf>, %429, %cst_330 [2] : vector<2x8x8xf32> to vector<2x8xf32>
    %431 = vector.shape_cast %430 : vector<2x8xf32> to vector<2x8x1xf32>
    %432 = vector.broadcast %431 : vector<2x8x1xf32> to vector<2x8x8xf32>
    %433 = arith.subf %429, %432 : vector<2x8x8xf32>
    %434 = math.exp %433 : vector<2x8x8xf32>
    %cst_331 = arith.constant dense<0.000000e+00> : vector<2x8xf32>
    %435 = vector.multi_reduction <add>, %434, %cst_331 [2] : vector<2x8x8xf32> to vector<2x8xf32>
    %436 = vector.shape_cast %435 : vector<2x8xf32> to vector<2x8x1xf32>
    %437 = tpu.reciprocal %436 {approx = true} : vector<2x8x1xf32> -> vector<2x8x1xf32>
    %438 = vector.broadcast %437 : vector<2x8x1xf32> to vector<2x8x8xf32>
    %439 = arith.mulf %434, %438 : vector<2x8x8xf32>
    "tpu.trace_start"() <{level = 10 : i32, message = "bqk,bkd->bqd"}> : () -> ()
    %cst_332 = arith.constant dense<0.000000e+00> : vector<2x8x64xf32>
    %440 = tpu.matmul %439, %426, %cst_332 {dimension_numbers = #tpu.dot_dimension_numbers<[2], [1], [1], [2], [0, 0, 0, 1, 1, 2], [0], [0]>} : vector<2x8x8xf32>, vector<2x8x64xf32>, vector<2x8x64xf32> -> vector<2x8x64xf32>
    "tpu.trace_stop"() : () -> ()
    %441 = vector.shape_cast %440 : vector<2x8x64xf32> to vector<16x64xf32>
    %c0_333 = arith.constant 0 : index
    %c1_334 = arith.constant 1 : index
    %c0_335 = arith.constant 0 : index
    %c0_336 = arith.constant 0 : index
    %442 = vector.load %arg37[%c0_333, %c1_334, %c0_335, %c0_336] : memref<2x2x64x128xf32, #tpu.memory_space<vmem>>, vector<1x1x64x128xf32>
    %443 = vector.shape_cast %442 : vector<1x1x64x128xf32> to vector<64x128xf32>
    %cst_337 = arith.constant dense<0.000000e+00> : vector<16x128xf32>
    %444 = tpu.matmul %441, %443, %cst_337 {dimension_numbers = #tpu.dot_dimension_numbers<[1], [0], [0], [1], [0, 0, 1, 1], [], []>} : vector<16x64xf32>, vector<64x128xf32>, vector<16x128xf32> -> vector<16x128xf32>
    %445 = arith.addf %402, %444 : vector<16x128xf32>
    %c0_338 = arith.constant 0 : index
    %c0_339 = arith.constant 0 : index
    %c0_340 = arith.constant 0 : index
    %446 = vector.load %arg38[%c0_338, %c0_339, %c0_340] : memref<2x1x128xf32, #tpu.memory_space<vmem>>, vector<1x1x128xf32>
    %447 = vector.shape_cast %446 : vector<1x1x128xf32> to vector<1x128xf32>
    %448 = vector.broadcast %447 : vector<1x128xf32> to vector<16x128xf32>
    %449 = arith.addf %445, %448 : vector<16x128xf32>
    %450 = arith.addf %360, %449 : vector<16x128xf32>
    %c0_341 = arith.constant 0 : index
    %c0_342 = arith.constant 0 : index
    %c0_343 = arith.constant 0 : index
    %451 = vector.load %arg39[%c0_341, %c0_342, %c0_343] : memref<2x1x128xf32, #tpu.memory_space<vmem>>, vector<1x1x128xf32>
    %452 = vector.shape_cast %451 : vector<1x1x128xf32> to vector<1x128xf32>
    %c0_344 = arith.constant 0 : index
    %c0_345 = arith.constant 0 : index
    %c0_346 = arith.constant 0 : index
    %453 = vector.load %arg40[%c0_344, %c0_345, %c0_346] : memref<2x1x128xf32, #tpu.memory_space<vmem>>, vector<1x1x128xf32>
    %454 = vector.shape_cast %453 : vector<1x1x128xf32> to vector<1x128xf32>
    %cst_347 = arith.constant dense<0.000000e+00> : vector<16xf32>
    %455 = vector.multi_reduction <add>, %450, %cst_347 [1] : vector<16x128xf32> to vector<16xf32>
    %456 = vector.shape_cast %455 : vector<16xf32> to vector<16x1xf32>
    %cst_348 = arith.constant 1.280000e+02 : f32
    %457 = vector.broadcast %cst_348 : f32 to vector<16x1xf32>
    %458 = arith.divf %456, %457 : vector<16x1xf32>
    %459 = vector.broadcast %458 : vector<16x1xf32> to vector<16x128xf32>
    %460 = arith.subf %450, %459 : vector<16x128xf32>
    %461 = arith.mulf %460, %460 : vector<16x128xf32>
    %cst_349 = arith.constant dense<0.000000e+00> : vector<16xf32>
    %462 = vector.multi_reduction <add>, %461, %cst_349 [1] : vector<16x128xf32> to vector<16xf32>
    %463 = vector.shape_cast %462 : vector<16xf32> to vector<16x1xf32>
    %cst_350 = arith.constant 1.280000e+02 : f32
    %464 = vector.broadcast %cst_350 : f32 to vector<16x1xf32>
    %465 = arith.divf %463, %464 : vector<16x1xf32>
    %466 = vector.broadcast %458 : vector<16x1xf32> to vector<16x128xf32>
    %467 = arith.subf %450, %466 : vector<16x128xf32>
    %cst_351 = arith.constant 9.99999974E-6 : f32
    %468 = vector.broadcast %cst_351 : f32 to vector<16x1xf32>
    %469 = arith.addf %465, %468 : vector<16x1xf32>
    %470 = math.rsqrt %469 : vector<16x1xf32>
    %471 = vector.broadcast %470 : vector<16x1xf32> to vector<16x128xf32>
    %472 = arith.mulf %467, %471 : vector<16x128xf32>
    %473 = vector.broadcast %452 : vector<1x128xf32> to vector<16x128xf32>
    %474 = arith.mulf %472, %473 : vector<16x128xf32>
    %475 = vector.broadcast %454 : vector<1x128xf32> to vector<16x128xf32>
    %476 = arith.addf %474, %475 : vector<16x128xf32>
    %c0_352 = arith.constant 0 : index
    %c0_353 = arith.constant 0 : index
    %c0_354 = arith.constant 0 : index
    %477 = vector.load %arg43[%c0_352, %c0_353, %c0_354] : memref<2x128x512xf32, #tpu.memory_space<vmem>>, vector<1x128x512xf32>
    %478 = vector.shape_cast %477 : vector<1x128x512xf32> to vector<128x512xf32>
    %cst_355 = arith.constant dense<0.000000e+00> : vector<16x512xf32>
    %479 = tpu.matmul %476, %478, %cst_355 {dimension_numbers = #tpu.dot_dimension_numbers<[1], [0], [0], [1], [0, 0, 1, 1], [], []>} : vector<16x128xf32>, vector<128x512xf32>, vector<16x512xf32> -> vector<16x512xf32>
    %c0_356 = arith.constant 0 : index
    %c0_357 = arith.constant 0 : index
    %c0_358 = arith.constant 0 : index
    %480 = vector.load %arg44[%c0_356, %c0_357, %c0_358] : memref<2x1x512xf32, #tpu.memory_space<vmem>>, vector<1x1x512xf32>
    %481 = vector.shape_cast %480 : vector<1x1x512xf32> to vector<1x512xf32>
    %482 = vector.broadcast %481 : vector<1x512xf32> to vector<16x512xf32>
    %483 = arith.addf %479, %482 : vector<16x512xf32>
    %cst_359 = arith.constant 0.000000e+00 : f32
    %484 = vector.broadcast %cst_359 : f32 to vector<16x512xf32>
    %485 = arith.maximumf %483, %484 : vector<16x512xf32>
    %c0_360 = arith.constant 0 : index
    %c0_361 = arith.constant 0 : index
    %c0_362 = arith.constant 0 : index
    %486 = vector.load %arg45[%c0_360, %c0_361, %c0_362] : memref<2x512x128xf32, #tpu.memory_space<vmem>>, vector<1x512x128xf32>
    %487 = vector.shape_cast %486 : vector<1x512x128xf32> to vector<512x128xf32>
    %cst_363 = arith.constant dense<0.000000e+00> : vector<16x128xf32>
    %488 = tpu.matmul %485, %487, %cst_363 {dimension_numbers = #tpu.dot_dimension_numbers<[1], [0], [0], [1], [0, 0, 1, 1], [], []>} : vector<16x512xf32>, vector<512x128xf32>, vector<16x128xf32> -> vector<16x128xf32>
    %c0_364 = arith.constant 0 : index
    %c0_365 = arith.constant 0 : index
    %c0_366 = arith.constant 0 : index
    %489 = vector.load %arg46[%c0_364, %c0_365, %c0_366] : memref<2x1x128xf32, #tpu.memory_space<vmem>>, vector<1x1x128xf32>
    %490 = vector.shape_cast %489 : vector<1x1x128xf32> to vector<1x128xf32>
    %491 = vector.broadcast %490 : vector<1x128xf32> to vector<16x128xf32>
    %492 = arith.addf %488, %491 : vector<16x128xf32>
    %493 = arith.addf %476, %492 : vector<16x128xf32>
    %c0_367 = arith.constant 0 : index
    %c0_368 = arith.constant 0 : index
    %c0_369 = arith.constant 0 : index
    %494 = vector.load %arg41[%c0_367, %c0_368, %c0_369] : memref<2x1x128xf32, #tpu.memory_space<vmem>>, vector<1x1x128xf32>
    %495 = vector.shape_cast %494 : vector<1x1x128xf32> to vector<1x128xf32>
    %c0_370 = arith.constant 0 : index
    %c0_371 = arith.constant 0 : index
    %c0_372 = arith.constant 0 : index
    %496 = vector.load %arg42[%c0_370, %c0_371, %c0_372] : memref<2x1x128xf32, #tpu.memory_space<vmem>>, vector<1x1x128xf32>
    %497 = vector.shape_cast %496 : vector<1x1x128xf32> to vector<1x128xf32>
    %cst_373 = arith.constant dense<0.000000e+00> : vector<16xf32>
    %498 = vector.multi_reduction <add>, %493, %cst_373 [1] : vector<16x128xf32> to vector<16xf32>
    %499 = vector.shape_cast %498 : vector<16xf32> to vector<16x1xf32>
    %cst_374 = arith.constant 1.280000e+02 : f32
    %500 = vector.broadcast %cst_374 : f32 to vector<16x1xf32>
    %501 = arith.divf %499, %500 : vector<16x1xf32>
    %502 = vector.broadcast %501 : vector<16x1xf32> to vector<16x128xf32>
    %503 = arith.subf %493, %502 : vector<16x128xf32>
    %504 = arith.mulf %503, %503 : vector<16x128xf32>
    %cst_375 = arith.constant dense<0.000000e+00> : vector<16xf32>
    %505 = vector.multi_reduction <add>, %504, %cst_375 [1] : vector<16x128xf32> to vector<16xf32>
    %506 = vector.shape_cast %505 : vector<16xf32> to vector<16x1xf32>
    %cst_376 = arith.constant 1.280000e+02 : f32
    %507 = vector.broadcast %cst_376 : f32 to vector<16x1xf32>
    %508 = arith.divf %506, %507 : vector<16x1xf32>
    %509 = vector.broadcast %501 : vector<16x1xf32> to vector<16x128xf32>
    %510 = arith.subf %493, %509 : vector<16x128xf32>
    %cst_377 = arith.constant 9.99999974E-6 : f32
    %511 = vector.broadcast %cst_377 : f32 to vector<16x1xf32>
    %512 = arith.addf %508, %511 : vector<16x1xf32>
    %513 = math.rsqrt %512 : vector<16x1xf32>
    %514 = vector.broadcast %513 : vector<16x1xf32> to vector<16x128xf32>
    %515 = arith.mulf %510, %514 : vector<16x128xf32>
    %516 = vector.broadcast %495 : vector<1x128xf32> to vector<16x128xf32>
    %517 = arith.mulf %515, %516 : vector<16x128xf32>
    %518 = vector.broadcast %497 : vector<1x128xf32> to vector<16x128xf32>
    %519 = arith.addf %517, %518 : vector<16x128xf32>
    %c1_378 = arith.constant 1 : index
    %c0_379 = arith.constant 0 : index
    %c0_380 = arith.constant 0 : index
    %c0_381 = arith.constant 0 : index
    %520 = vector.load %arg31[%c1_378, %c0_379, %c0_380, %c0_381] : memref<2x2x128x64xf32, #tpu.memory_space<vmem>>, vector<1x1x128x64xf32>
    %521 = vector.shape_cast %520 : vector<1x1x128x64xf32> to vector<128x64xf32>
    %cst_382 = arith.constant dense<0.000000e+00> : vector<16x64xf32>
    %522 = tpu.matmul %519, %521, %cst_382 {dimension_numbers = #tpu.dot_dimension_numbers<[1], [0], [0], [1], [0, 0, 1, 1], [], []>} : vector<16x128xf32>, vector<128x64xf32>, vector<16x64xf32> -> vector<16x64xf32>
    %c1_383 = arith.constant 1 : index
    %c0_384 = arith.constant 0 : index
    %c0_385 = arith.constant 0 : index
    %c0_386 = arith.constant 0 : index
    %523 = vector.load %arg34[%c1_383, %c0_384, %c0_385, %c0_386] : memref<2x2x1x64xf32, #tpu.memory_space<vmem>>, vector<1x1x1x64xf32>
    %524 = vector.shape_cast %523 : vector<1x1x1x64xf32> to vector<1x64xf32>
    %525 = vector.broadcast %524 : vector<1x64xf32> to vector<16x64xf32>
    %526 = arith.addf %522, %525 : vector<16x64xf32>
    %c1_387 = arith.constant 1 : index
    %c0_388 = arith.constant 0 : index
    %c0_389 = arith.constant 0 : index
    %c0_390 = arith.constant 0 : index
    %527 = vector.load %arg32[%c1_387, %c0_388, %c0_389, %c0_390] : memref<2x2x128x64xf32, #tpu.memory_space<vmem>>, vector<1x1x128x64xf32>
    %528 = vector.shape_cast %527 : vector<1x1x128x64xf32> to vector<128x64xf32>
    %cst_391 = arith.constant dense<0.000000e+00> : vector<16x64xf32>
    %529 = tpu.matmul %519, %528, %cst_391 {dimension_numbers = #tpu.dot_dimension_numbers<[1], [0], [0], [1], [0, 0, 1, 1], [], []>} : vector<16x128xf32>, vector<128x64xf32>, vector<16x64xf32> -> vector<16x64xf32>
    %c1_392 = arith.constant 1 : index
    %c0_393 = arith.constant 0 : index
    %c0_394 = arith.constant 0 : index
    %c0_395 = arith.constant 0 : index
    %530 = vector.load %arg35[%c1_392, %c0_393, %c0_394, %c0_395] : memref<2x2x1x64xf32, #tpu.memory_space<vmem>>, vector<1x1x1x64xf32>
    %531 = vector.shape_cast %530 : vector<1x1x1x64xf32> to vector<1x64xf32>
    %532 = vector.broadcast %531 : vector<1x64xf32> to vector<16x64xf32>
    %533 = arith.addf %529, %532 : vector<16x64xf32>
    %c1_396 = arith.constant 1 : index
    %c0_397 = arith.constant 0 : index
    %c0_398 = arith.constant 0 : index
    %c0_399 = arith.constant 0 : index
    %534 = vector.load %arg33[%c1_396, %c0_397, %c0_398, %c0_399] : memref<2x2x128x64xf32, #tpu.memory_space<vmem>>, vector<1x1x128x64xf32>
    %535 = vector.shape_cast %534 : vector<1x1x128x64xf32> to vector<128x64xf32>
    %cst_400 = arith.constant dense<0.000000e+00> : vector<16x64xf32>
    %536 = tpu.matmul %519, %535, %cst_400 {dimension_numbers = #tpu.dot_dimension_numbers<[1], [0], [0], [1], [0, 0, 1, 1], [], []>} : vector<16x128xf32>, vector<128x64xf32>, vector<16x64xf32> -> vector<16x64xf32>
    %c1_401 = arith.constant 1 : index
    %c0_402 = arith.constant 0 : index
    %c0_403 = arith.constant 0 : index
    %c0_404 = arith.constant 0 : index
    %537 = vector.load %arg36[%c1_401, %c0_402, %c0_403, %c0_404] : memref<2x2x1x64xf32, #tpu.memory_space<vmem>>, vector<1x1x1x64xf32>
    %538 = vector.shape_cast %537 : vector<1x1x1x64xf32> to vector<1x64xf32>
    %539 = vector.broadcast %538 : vector<1x64xf32> to vector<16x64xf32>
    %540 = arith.addf %536, %539 : vector<16x64xf32>
    %541 = vector.shape_cast %526 : vector<16x64xf32> to vector<2x8x64xf32>
    %542 = vector.shape_cast %533 : vector<16x64xf32> to vector<2x8x64xf32>
    %543 = vector.shape_cast %540 : vector<16x64xf32> to vector<2x8x64xf32>
    "tpu.trace_start"() <{level = 10 : i32, message = "bqd,bkd->bqk"}> : () -> ()
    %cst_405 = arith.constant dense<0.000000e+00> : vector<2x8x8xf32>
    %544 = tpu.matmul %541, %542, %cst_405 {dimension_numbers = #tpu.dot_dimension_numbers<[2], [2], [1], [1], [0, 0, 0, 1, 1, 1], [0], [0]>} : vector<2x8x64xf32>, vector<2x8x64xf32>, vector<2x8x8xf32> -> vector<2x8x8xf32>
    "tpu.trace_stop"() : () -> ()
    %cst_406 = arith.constant 1.250000e-01 : f32
    %545 = vector.broadcast %cst_406 : f32 to vector<2x8x8xf32>
    %546 = arith.mulf %544, %545 : vector<2x8x8xf32>
    %cst_407 = arith.constant dense<0xFF800000> : vector<2x8xf32>
    %547 = vector.multi_reduction <maximumf>, %546, %cst_407 [2] : vector<2x8x8xf32> to vector<2x8xf32>
    %548 = vector.shape_cast %547 : vector<2x8xf32> to vector<2x8x1xf32>
    %549 = vector.broadcast %548 : vector<2x8x1xf32> to vector<2x8x8xf32>
    %550 = arith.subf %546, %549 : vector<2x8x8xf32>
    %551 = math.exp %550 : vector<2x8x8xf32>
    %cst_408 = arith.constant dense<0.000000e+00> : vector<2x8xf32>
    %552 = vector.multi_reduction <add>, %551, %cst_408 [2] : vector<2x8x8xf32> to vector<2x8xf32>
    %553 = vector.shape_cast %552 : vector<2x8xf32> to vector<2x8x1xf32>
    %554 = tpu.reciprocal %553 {approx = true} : vector<2x8x1xf32> -> vector<2x8x1xf32>
    %555 = vector.broadcast %554 : vector<2x8x1xf32> to vector<2x8x8xf32>
    %556 = arith.mulf %551, %555 : vector<2x8x8xf32>
    "tpu.trace_start"() <{level = 10 : i32, message = "bqk,bkd->bqd"}> : () -> ()
    %cst_409 = arith.constant dense<0.000000e+00> : vector<2x8x64xf32>
    %557 = tpu.matmul %556, %543, %cst_409 {dimension_numbers = #tpu.dot_dimension_numbers<[2], [1], [1], [2], [0, 0, 0, 1, 1, 2], [0], [0]>} : vector<2x8x8xf32>, vector<2x8x64xf32>, vector<2x8x64xf32> -> vector<2x8x64xf32>
    "tpu.trace_stop"() : () -> ()
    %558 = vector.shape_cast %557 : vector<2x8x64xf32> to vector<16x64xf32>
    %c1_410 = arith.constant 1 : index
    %c0_411 = arith.constant 0 : index
    %c0_412 = arith.constant 0 : index
    %c0_413 = arith.constant 0 : index
    %559 = vector.load %arg37[%c1_410, %c0_411, %c0_412, %c0_413] : memref<2x2x64x128xf32, #tpu.memory_space<vmem>>, vector<1x1x64x128xf32>
    %560 = vector.shape_cast %559 : vector<1x1x64x128xf32> to vector<64x128xf32>
    %cst_414 = arith.constant dense<0.000000e+00> : vector<16x128xf32>
    %561 = tpu.matmul %558, %560, %cst_414 {dimension_numbers = #tpu.dot_dimension_numbers<[1], [0], [0], [1], [0, 0, 1, 1], [], []>} : vector<16x64xf32>, vector<64x128xf32>, vector<16x128xf32> -> vector<16x128xf32>
    %c1_415 = arith.constant 1 : index
    %c1_416 = arith.constant 1 : index
    %c0_417 = arith.constant 0 : index
    %c0_418 = arith.constant 0 : index
    %562 = vector.load %arg31[%c1_415, %c1_416, %c0_417, %c0_418] : memref<2x2x128x64xf32, #tpu.memory_space<vmem>>, vector<1x1x128x64xf32>
    %563 = vector.shape_cast %562 : vector<1x1x128x64xf32> to vector<128x64xf32>
    %cst_419 = arith.constant dense<0.000000e+00> : vector<16x64xf32>
    %564 = tpu.matmul %519, %563, %cst_419 {dimension_numbers = #tpu.dot_dimension_numbers<[1], [0], [0], [1], [0, 0, 1, 1], [], []>} : vector<16x128xf32>, vector<128x64xf32>, vector<16x64xf32> -> vector<16x64xf32>
    %c1_420 = arith.constant 1 : index
    %c1_421 = arith.constant 1 : index
    %c0_422 = arith.constant 0 : index
    %c0_423 = arith.constant 0 : index
    %565 = vector.load %arg34[%c1_420, %c1_421, %c0_422, %c0_423] : memref<2x2x1x64xf32, #tpu.memory_space<vmem>>, vector<1x1x1x64xf32>
    %566 = vector.shape_cast %565 : vector<1x1x1x64xf32> to vector<1x64xf32>
    %567 = vector.broadcast %566 : vector<1x64xf32> to vector<16x64xf32>
    %568 = arith.addf %564, %567 : vector<16x64xf32>
    %c1_424 = arith.constant 1 : index
    %c1_425 = arith.constant 1 : index
    %c0_426 = arith.constant 0 : index
    %c0_427 = arith.constant 0 : index
    %569 = vector.load %arg32[%c1_424, %c1_425, %c0_426, %c0_427] : memref<2x2x128x64xf32, #tpu.memory_space<vmem>>, vector<1x1x128x64xf32>
    %570 = vector.shape_cast %569 : vector<1x1x128x64xf32> to vector<128x64xf32>
    %cst_428 = arith.constant dense<0.000000e+00> : vector<16x64xf32>
    %571 = tpu.matmul %519, %570, %cst_428 {dimension_numbers = #tpu.dot_dimension_numbers<[1], [0], [0], [1], [0, 0, 1, 1], [], []>} : vector<16x128xf32>, vector<128x64xf32>, vector<16x64xf32> -> vector<16x64xf32>
    %c1_429 = arith.constant 1 : index
    %c1_430 = arith.constant 1 : index
    %c0_431 = arith.constant 0 : index
    %c0_432 = arith.constant 0 : index
    %572 = vector.load %arg35[%c1_429, %c1_430, %c0_431, %c0_432] : memref<2x2x1x64xf32, #tpu.memory_space<vmem>>, vector<1x1x1x64xf32>
    %573 = vector.shape_cast %572 : vector<1x1x1x64xf32> to vector<1x64xf32>
    %574 = vector.broadcast %573 : vector<1x64xf32> to vector<16x64xf32>
    %575 = arith.addf %571, %574 : vector<16x64xf32>
    %c1_433 = arith.constant 1 : index
    %c1_434 = arith.constant 1 : index
    %c0_435 = arith.constant 0 : index
    %c0_436 = arith.constant 0 : index
    %576 = vector.load %arg33[%c1_433, %c1_434, %c0_435, %c0_436] : memref<2x2x128x64xf32, #tpu.memory_space<vmem>>, vector<1x1x128x64xf32>
    %577 = vector.shape_cast %576 : vector<1x1x128x64xf32> to vector<128x64xf32>
    %cst_437 = arith.constant dense<0.000000e+00> : vector<16x64xf32>
    %578 = tpu.matmul %519, %577, %cst_437 {dimension_numbers = #tpu.dot_dimension_numbers<[1], [0], [0], [1], [0, 0, 1, 1], [], []>} : vector<16x128xf32>, vector<128x64xf32>, vector<16x64xf32> -> vector<16x64xf32>
    %c1_438 = arith.constant 1 : index
    %c1_439 = arith.constant 1 : index
    %c0_440 = arith.constant 0 : index
    %c0_441 = arith.constant 0 : index
    %579 = vector.load %arg36[%c1_438, %c1_439, %c0_440, %c0_441] : memref<2x2x1x64xf32, #tpu.memory_space<vmem>>, vector<1x1x1x64xf32>
    %580 = vector.shape_cast %579 : vector<1x1x1x64xf32> to vector<1x64xf32>
    %581 = vector.broadcast %580 : vector<1x64xf32> to vector<16x64xf32>
    %582 = arith.addf %578, %581 : vector<16x64xf32>
    %583 = vector.shape_cast %568 : vector<16x64xf32> to vector<2x8x64xf32>
    %584 = vector.shape_cast %575 : vector<16x64xf32> to vector<2x8x64xf32>
    %585 = vector.shape_cast %582 : vector<16x64xf32> to vector<2x8x64xf32>
    "tpu.trace_start"() <{level = 10 : i32, message = "bqd,bkd->bqk"}> : () -> ()
    %cst_442 = arith.constant dense<0.000000e+00> : vector<2x8x8xf32>
    %586 = tpu.matmul %583, %584, %cst_442 {dimension_numbers = #tpu.dot_dimension_numbers<[2], [2], [1], [1], [0, 0, 0, 1, 1, 1], [0], [0]>} : vector<2x8x64xf32>, vector<2x8x64xf32>, vector<2x8x8xf32> -> vector<2x8x8xf32>
    "tpu.trace_stop"() : () -> ()
    %cst_443 = arith.constant 1.250000e-01 : f32
    %587 = vector.broadcast %cst_443 : f32 to vector<2x8x8xf32>
    %588 = arith.mulf %586, %587 : vector<2x8x8xf32>
    %cst_444 = arith.constant dense<0xFF800000> : vector<2x8xf32>
    %589 = vector.multi_reduction <maximumf>, %588, %cst_444 [2] : vector<2x8x8xf32> to vector<2x8xf32>
    %590 = vector.shape_cast %589 : vector<2x8xf32> to vector<2x8x1xf32>
    %591 = vector.broadcast %590 : vector<2x8x1xf32> to vector<2x8x8xf32>
    %592 = arith.subf %588, %591 : vector<2x8x8xf32>
    %593 = math.exp %592 : vector<2x8x8xf32>
    %cst_445 = arith.constant dense<0.000000e+00> : vector<2x8xf32>
    %594 = vector.multi_reduction <add>, %593, %cst_445 [2] : vector<2x8x8xf32> to vector<2x8xf32>
    %595 = vector.shape_cast %594 : vector<2x8xf32> to vector<2x8x1xf32>
    %596 = tpu.reciprocal %595 {approx = true} : vector<2x8x1xf32> -> vector<2x8x1xf32>
    %597 = vector.broadcast %596 : vector<2x8x1xf32> to vector<2x8x8xf32>
    %598 = arith.mulf %593, %597 : vector<2x8x8xf32>
    "tpu.trace_start"() <{level = 10 : i32, message = "bqk,bkd->bqd"}> : () -> ()
    %cst_446 = arith.constant dense<0.000000e+00> : vector<2x8x64xf32>
    %599 = tpu.matmul %598, %585, %cst_446 {dimension_numbers = #tpu.dot_dimension_numbers<[2], [1], [1], [2], [0, 0, 0, 1, 1, 2], [0], [0]>} : vector<2x8x8xf32>, vector<2x8x64xf32>, vector<2x8x64xf32> -> vector<2x8x64xf32>
    "tpu.trace_stop"() : () -> ()
    %600 = vector.shape_cast %599 : vector<2x8x64xf32> to vector<16x64xf32>
    %c1_447 = arith.constant 1 : index
    %c1_448 = arith.constant 1 : index
    %c0_449 = arith.constant 0 : index
    %c0_450 = arith.constant 0 : index
    %601 = vector.load %arg37[%c1_447, %c1_448, %c0_449, %c0_450] : memref<2x2x64x128xf32, #tpu.memory_space<vmem>>, vector<1x1x64x128xf32>
    %602 = vector.shape_cast %601 : vector<1x1x64x128xf32> to vector<64x128xf32>
    %cst_451 = arith.constant dense<0.000000e+00> : vector<16x128xf32>
    %603 = tpu.matmul %600, %602, %cst_451 {dimension_numbers = #tpu.dot_dimension_numbers<[1], [0], [0], [1], [0, 0, 1, 1], [], []>} : vector<16x64xf32>, vector<64x128xf32>, vector<16x128xf32> -> vector<16x128xf32>
    %604 = arith.addf %561, %603 : vector<16x128xf32>
    %c1_452 = arith.constant 1 : index
    %c0_453 = arith.constant 0 : index
    %c0_454 = arith.constant 0 : index
    %605 = vector.load %arg38[%c1_452, %c0_453, %c0_454] : memref<2x1x128xf32, #tpu.memory_space<vmem>>, vector<1x1x128xf32>
    %606 = vector.shape_cast %605 : vector<1x1x128xf32> to vector<1x128xf32>
    %607 = vector.broadcast %606 : vector<1x128xf32> to vector<16x128xf32>
    %608 = arith.addf %604, %607 : vector<16x128xf32>
    %609 = arith.addf %519, %608 : vector<16x128xf32>
    %c1_455 = arith.constant 1 : index
    %c0_456 = arith.constant 0 : index
    %c0_457 = arith.constant 0 : index
    %610 = vector.load %arg39[%c1_455, %c0_456, %c0_457] : memref<2x1x128xf32, #tpu.memory_space<vmem>>, vector<1x1x128xf32>
    %611 = vector.shape_cast %610 : vector<1x1x128xf32> to vector<1x128xf32>
    %c1_458 = arith.constant 1 : index
    %c0_459 = arith.constant 0 : index
    %c0_460 = arith.constant 0 : index
    %612 = vector.load %arg40[%c1_458, %c0_459, %c0_460] : memref<2x1x128xf32, #tpu.memory_space<vmem>>, vector<1x1x128xf32>
    %613 = vector.shape_cast %612 : vector<1x1x128xf32> to vector<1x128xf32>
    %cst_461 = arith.constant dense<0.000000e+00> : vector<16xf32>
    %614 = vector.multi_reduction <add>, %609, %cst_461 [1] : vector<16x128xf32> to vector<16xf32>
    %615 = vector.shape_cast %614 : vector<16xf32> to vector<16x1xf32>
    %cst_462 = arith.constant 1.280000e+02 : f32
    %616 = vector.broadcast %cst_462 : f32 to vector<16x1xf32>
    %617 = arith.divf %615, %616 : vector<16x1xf32>
    %618 = vector.broadcast %617 : vector<16x1xf32> to vector<16x128xf32>
    %619 = arith.subf %609, %618 : vector<16x128xf32>
    %620 = arith.mulf %619, %619 : vector<16x128xf32>
    %cst_463 = arith.constant dense<0.000000e+00> : vector<16xf32>
    %621 = vector.multi_reduction <add>, %620, %cst_463 [1] : vector<16x128xf32> to vector<16xf32>
    %622 = vector.shape_cast %621 : vector<16xf32> to vector<16x1xf32>
    %cst_464 = arith.constant 1.280000e+02 : f32
    %623 = vector.broadcast %cst_464 : f32 to vector<16x1xf32>
    %624 = arith.divf %622, %623 : vector<16x1xf32>
    %625 = vector.broadcast %617 : vector<16x1xf32> to vector<16x128xf32>
    %626 = arith.subf %609, %625 : vector<16x128xf32>
    %cst_465 = arith.constant 9.99999974E-6 : f32
    %627 = vector.broadcast %cst_465 : f32 to vector<16x1xf32>
    %628 = arith.addf %624, %627 : vector<16x1xf32>
    %629 = math.rsqrt %628 : vector<16x1xf32>
    %630 = vector.broadcast %629 : vector<16x1xf32> to vector<16x128xf32>
    %631 = arith.mulf %626, %630 : vector<16x128xf32>
    %632 = vector.broadcast %611 : vector<1x128xf32> to vector<16x128xf32>
    %633 = arith.mulf %631, %632 : vector<16x128xf32>
    %634 = vector.broadcast %613 : vector<1x128xf32> to vector<16x128xf32>
    %635 = arith.addf %633, %634 : vector<16x128xf32>
    %c1_466 = arith.constant 1 : index
    %c0_467 = arith.constant 0 : index
    %c0_468 = arith.constant 0 : index
    %636 = vector.load %arg43[%c1_466, %c0_467, %c0_468] : memref<2x128x512xf32, #tpu.memory_space<vmem>>, vector<1x128x512xf32>
    %637 = vector.shape_cast %636 : vector<1x128x512xf32> to vector<128x512xf32>
    %cst_469 = arith.constant dense<0.000000e+00> : vector<16x512xf32>
    %638 = tpu.matmul %635, %637, %cst_469 {dimension_numbers = #tpu.dot_dimension_numbers<[1], [0], [0], [1], [0, 0, 1, 1], [], []>} : vector<16x128xf32>, vector<128x512xf32>, vector<16x512xf32> -> vector<16x512xf32>
    %c1_470 = arith.constant 1 : index
    %c0_471 = arith.constant 0 : index
    %c0_472 = arith.constant 0 : index
    %639 = vector.load %arg44[%c1_470, %c0_471, %c0_472] : memref<2x1x512xf32, #tpu.memory_space<vmem>>, vector<1x1x512xf32>
    %640 = vector.shape_cast %639 : vector<1x1x512xf32> to vector<1x512xf32>
    %641 = vector.broadcast %640 : vector<1x512xf32> to vector<16x512xf32>
    %642 = arith.addf %638, %641 : vector<16x512xf32>
    %cst_473 = arith.constant 0.000000e+00 : f32
    %643 = vector.broadcast %cst_473 : f32 to vector<16x512xf32>
    %644 = arith.maximumf %642, %643 : vector<16x512xf32>
    %c1_474 = arith.constant 1 : index
    %c0_475 = arith.constant 0 : index
    %c0_476 = arith.constant 0 : index
    %645 = vector.load %arg45[%c1_474, %c0_475, %c0_476] : memref<2x512x128xf32, #tpu.memory_space<vmem>>, vector<1x512x128xf32>
    %646 = vector.shape_cast %645 : vector<1x512x128xf32> to vector<512x128xf32>
    %cst_477 = arith.constant dense<0.000000e+00> : vector<16x128xf32>
    %647 = tpu.matmul %644, %646, %cst_477 {dimension_numbers = #tpu.dot_dimension_numbers<[1], [0], [0], [1], [0, 0, 1, 1], [], []>} : vector<16x512xf32>, vector<512x128xf32>, vector<16x128xf32> -> vector<16x128xf32>
    %c1_478 = arith.constant 1 : index
    %c0_479 = arith.constant 0 : index
    %c0_480 = arith.constant 0 : index
    %648 = vector.load %arg46[%c1_478, %c0_479, %c0_480] : memref<2x1x128xf32, #tpu.memory_space<vmem>>, vector<1x1x128xf32>
    %649 = vector.shape_cast %648 : vector<1x1x128xf32> to vector<1x128xf32>
    %650 = vector.broadcast %649 : vector<1x128xf32> to vector<16x128xf32>
    %651 = arith.addf %647, %650 : vector<16x128xf32>
    %652 = arith.addf %635, %651 : vector<16x128xf32>
    %c1_481 = arith.constant 1 : index
    %c0_482 = arith.constant 0 : index
    %c0_483 = arith.constant 0 : index
    %653 = vector.load %arg41[%c1_481, %c0_482, %c0_483] : memref<2x1x128xf32, #tpu.memory_space<vmem>>, vector<1x1x128xf32>
    %654 = vector.shape_cast %653 : vector<1x1x128xf32> to vector<1x128xf32>
    %c1_484 = arith.constant 1 : index
    %c0_485 = arith.constant 0 : index
    %c0_486 = arith.constant 0 : index
    %655 = vector.load %arg42[%c1_484, %c0_485, %c0_486] : memref<2x1x128xf32, #tpu.memory_space<vmem>>, vector<1x1x128xf32>
    %656 = vector.shape_cast %655 : vector<1x1x128xf32> to vector<1x128xf32>
    %cst_487 = arith.constant dense<0.000000e+00> : vector<16xf32>
    %657 = vector.multi_reduction <add>, %652, %cst_487 [1] : vector<16x128xf32> to vector<16xf32>
    %658 = vector.shape_cast %657 : vector<16xf32> to vector<16x1xf32>
    %cst_488 = arith.constant 1.280000e+02 : f32
    %659 = vector.broadcast %cst_488 : f32 to vector<16x1xf32>
    %660 = arith.divf %658, %659 : vector<16x1xf32>
    %661 = vector.broadcast %660 : vector<16x1xf32> to vector<16x128xf32>
    %662 = arith.subf %652, %661 : vector<16x128xf32>
    %663 = arith.mulf %662, %662 : vector<16x128xf32>
    %cst_489 = arith.constant dense<0.000000e+00> : vector<16xf32>
    %664 = vector.multi_reduction <add>, %663, %cst_489 [1] : vector<16x128xf32> to vector<16xf32>
    %665 = vector.shape_cast %664 : vector<16xf32> to vector<16x1xf32>
    %cst_490 = arith.constant 1.280000e+02 : f32
    %666 = vector.broadcast %cst_490 : f32 to vector<16x1xf32>
    %667 = arith.divf %665, %666 : vector<16x1xf32>
    %668 = vector.broadcast %660 : vector<16x1xf32> to vector<16x128xf32>
    %669 = arith.subf %652, %668 : vector<16x128xf32>
    %cst_491 = arith.constant 9.99999974E-6 : f32
    %670 = vector.broadcast %cst_491 : f32 to vector<16x1xf32>
    %671 = arith.addf %667, %670 : vector<16x1xf32>
    %672 = math.rsqrt %671 : vector<16x1xf32>
    %673 = vector.broadcast %672 : vector<16x1xf32> to vector<16x128xf32>
    %674 = arith.mulf %669, %673 : vector<16x128xf32>
    %675 = vector.broadcast %654 : vector<1x128xf32> to vector<16x128xf32>
    %676 = arith.mulf %674, %675 : vector<16x128xf32>
    %677 = vector.broadcast %656 : vector<1x128xf32> to vector<16x128xf32>
    %678 = arith.addf %676, %677 : vector<16x128xf32>
    %679 = vector.shape_cast %678 : vector<16x128xf32> to vector<2x8x128xf32>
    %c0_492 = arith.constant 0 : index
    %c0_493 = arith.constant 0 : index
    %c0_494 = arith.constant 0 : index
    %680 = vector.load %arg47[%c0_492, %c0_493, %c0_494] : memref<2x8x128xf32, #tpu.memory_space<vmem>>, vector<2x8x128xf32>
    tpu.vector_store %arg47[%c0_492, %c0_493, %c0_494], %679 {strides = array<i32>} : memref<2x8x128xf32, #tpu.memory_space<vmem>>, vector<2x8x128xf32>,
    return
  }
}

</mosaic_0001>

<bundles_post_ra>
// kernel: eth_encoder_forward.1
= control target key start
LH: loop header
LB: loop body
LE: loop exit
PB: predicated region body
PF: predicated region fallthrough
CT: control target
= control target key end

     0   :  { %s7003_s6 = smov 1   ;;  %s7004_s10 = smov 2   ;;  %s8535_s0 = inlined_call_operand.smem [shape: u32[48], index: -1, kind: input, shape index: {}] }
   0x1   :  { %s7093_s5 = sld [smem:[%s8535_s0]]   ;;  %s7005_s14 = smov 3  }
   0x2   :  { %s7098_s9 = sld [smem:[%s8535_s0 + %s7003_s6]]   ;;  %s7006_s18 = smov 4  }
   0x3   :  { %s7103_s13 = sld [smem:[%s8535_s0 + %s7004_s10]]   ;;  %s7007_s22 = smov 5  }
   0x4   :  { %s7108_s17 = sld [smem:[%s8535_s0 + %s7005_s14]]   ;;  %s7008_s26 = smov 6  }
   0x5   :  { %s7113_s21 = sld [smem:[%s8535_s0 + %s7006_s18]]   ;;  %s7009_s30 = smov 7  }
   0x6   :  { %s7118_s25 = sld [smem:[%s8535_s0 + %s7007_s22]]   ;;  %s7010_s4 = smov 8  }
   0x7   :  { %8563 = sst [smem:[#allocation55_spill]] %s7093_s5  ;;  %s7011_s10 = smov 9  }
   0x8   :  { %s7123_s29 = sld [smem:[%s8535_s0 + %s7008_s26]]   ;;  %s7012_s15 = smov 10  }
   0x9   :  { %8564 = sst [smem:[#allocation56_spill]] %s7103_s13  ;;  %s7013_s20 = smov 11  }
   0xa   :  { %s7128_s3 = sld [smem:[%s8535_s0 + %s7009_s30]]   ;;  %s7014_s26 = smov 12  }
   0xb   :  { %s7133_s8 = sld [smem:[%s8535_s0 + %s7010_s4]]   ;;  %s7015_s1 = smov 13  }
   0xc   :  { %8565 = sst [smem:[#allocation57_spill]] %s7118_s25  ;;  %s7016_s7 = smov 14  }
   0xd   :  { %s7138_s14 = sld [smem:[%s8535_s0 + %s7011_s10]]   ;;  %s7018_s22 = smov 16  }
   0xe   :  { %8566 = sst [smem:[#allocation58_spill]] %s7123_s29  ;;  %s7019_s28 = smov 17  }
   0xf   :  { %s7143_s19 = sld [smem:[%s8535_s0 + %s7012_s15]]   ;;  %s7017_s15 = smov 15  }
  0x10   :  { %8567 = sst [smem:[#allocation59_spill]] %s7128_s3 }
  0x11   :  { %s7148_s24 = sld [smem:[%s8535_s0 + %s7013_s20]]  }
  0x12   :  { %s7153_s30 = sld [smem:[%s8535_s0 + %s7014_s26]]  }
  0x13   :  { %8568 = sst [smem:[#allocation60_spill]] %s7138_s14 }
  0x14   :  { %s7158_s6 = sld [smem:[%s8535_s0 + %s7015_s1]]  }
  0x15   :  { %8569 = sst [smem:[#allocation61_spill]] %s7143_s19 }
  0x16   :  { %s7163_s12 = sld [smem:[%s8535_s0 + %s7016_s7]]   ;;  %s7020_s7 = smov 18  }
  0x17   :  { %8570 = sst [smem:[#allocation62_spill]] %s7148_s24 }
  0x18   :  { %8571 = sst [smem:[#allocation63_spill]] %s7153_s30 }
  0x19   :  { %s7168_s20 = sld [smem:[%s8535_s0 + %s7017_s15]]   ;;  %s7021_s15 = smov 19  }
  0x1a   :  { %8572 = sst [smem:[#allocation64_spill]] %s7158_s6 }
  0x1b   :  { %s7173_s27 = sld [smem:[%s8535_s0 + %s7018_s22]]   ;;  %s7022_s22 = smov 20  }
  0x1c   :  { %s7178_s4 = sld [smem:[%s8535_s0 + %s7019_s28]]   ;;  %s7023_s28 = smov 21  }
  0x1d   :  { %s7183_s6 = sld [smem:[%s8535_s0 + %s7020_s7]]   ;;  %s7024_s7 = smov 22  }
  0x1e   :  { %s7188_s30 = sld [smem:[%s8535_s0 + %s7021_s15]]   ;;  %s7025_s15 = smov 23  }
  0x1f   :  { %8573 = sst [smem:[#allocation65_spill]] %s7168_s20 }
  0x20   :  { %s7193_s20 = sld [smem:[%s8535_s0 + %s7022_s22]]   ;;  %s7026_s22 = smov 24  }
  0x21   :  { %s7198_s24 = sld [smem:[%s8535_s0 + %s7023_s28]]   ;;  %s7027_s28 = smov 25  }
  0x22   :  { %8574 = sst [smem:[#allocation66_spill]] %s7178_s4 }
  0x23   :  { %8575 = sst [smem:[#allocation67_spill]] %s7183_s6 }
  0x24   :  { %s7203_s6 = sld [smem:[%s8535_s0 + %s7024_s7]]   ;;  %s7028_s7 = smov 26  }
  0x25   :  { %s7208_s19 = sld [smem:[%s8535_s0 + %s7025_s15]]   ;;  %s7029_s15 = smov 27  }
  0x26   :  { %8576 = sst [smem:[#allocation68_spill]] %s7193_s20 }
  0x27   :  { %8577 = sst [smem:[#allocation69_spill]] %s7198_s24 }
  0x28   :  { %s7213_s20 = sld [smem:[%s8535_s0 + %s7026_s22]]   ;;  %s7030_s22 = smov 28  }
  0x29   :  { %s7218_s24 = sld [smem:[%s8535_s0 + %s7027_s28]]   ;;  %s7031_s28 = smov 29  }
  0x2a   :  { %8578 = sst [smem:[#allocation70_spill]] %s7203_s6 }
  0x2b   :  { %8579 = sst [smem:[#allocation71_spill]] %s7208_s19 }
  0x2c   :  { %s7223_s14 = sld [smem:[%s8535_s0 + %s7028_s7]]   ;;  %s7032_s7 = smov 30  }
  0x2d   :  { %s7228_s19 = sld [smem:[%s8535_s0 + %s7029_s15]]   ;;  %s7033_s15 = smov 31  }
  0x2e   :  { %8580 = sst [smem:[#allocation72_spill]] %s7213_s20 }
  0x2f   :  { %8581 = sst [smem:[#allocation73_spill]] %s7218_s24 }
  0x30   :  { %s7233_s20 = sld [smem:[%s8535_s0 + %s7030_s22]]   ;;  %s7034_s22 = smov 32  }
  0x31   :  { %s7238_s24 = sld [smem:[%s8535_s0 + %s7031_s28]]   ;;  %s7035_s28 = smov 33  }
  0x32   :  { %8582 = sst [smem:[#allocation74_spill]] %s7223_s14 }
  0x33   :  { %s7243_s14 = sld [smem:[%s8535_s0 + %s7032_s7]]   ;;  %s7036_s7 = smov 34  }
  0x34   :  { %s7248_s3 = sld [smem:[%s8535_s0 + %s7033_s15]]   ;;  %s7037_s15 = smov 35  }
  0x35   :  { %s7253_s25 = sld [smem:[%s8535_s0 + %s7034_s22]]   ;;  %s7038_s22 = smov 36  }
  0x36   :  { %8583 = sst [smem:[#allocation75_spill]] %s7233_s20 }
  0x37   :  { %s7258_s29 = sld [smem:[%s8535_s0 + %s7035_s28]]   ;;  %s7039_s28 = smov 37  }
  0x38   :  { %s7263_s5 = sld [smem:[%s8535_s0 + %s7036_s7]]   ;;  %s7040_s7 = smov 38  }
  0x39   :  { %8584 = sst [smem:[#allocation76_spill]] %s7243_s14 }
  0x3a   :  { %8585 = sst [smem:[#allocation77_spill]] %s7248_s3 }
  0x3b   :  { %8586 = sst [smem:[#allocation78_spill]] %s7253_s25 }
  0x3c   :  { %s7268_s3 = sld [smem:[%s8535_s0 + %s7037_s15]]   ;;  %s7041_s15 = smov 39  }
  0x3d   :  { %8587 = sst [smem:[#allocation79_spill]] %s7258_s29 }
  0x3e   :  { %s7273_s25 = sld [smem:[%s8535_s0 + %s7038_s22]]   ;;  %s7042_s22 = smov 40  }
  0x3f   :  { %s7278_s29 = sld [smem:[%s8535_s0 + %s7039_s28]]   ;;  %s7043_s28 = smov 41  }
  0x40   :  { %s7283_s13 = sld [smem:[%s8535_s0 + %s7040_s7]]   ;;  %s7044_s7 = smov 42  }
  0x41   :  { %s7293_s14 = sld [smem:[%s8535_s0 + %s7042_s22]]   ;;  %s7046_s22 = smov 44  }
  0x42   :  { %8588 = sst [smem:[#allocation80_spill]] %s7268_s3 }
  0x43   :  { %s7288_s3 = sld [smem:[%s8535_s0 + %s7041_s15]]   ;;  %s7045_s15 = smov 43  }
  0x44   :  { %s7308_s20 = sld [smem:[%s8535_s0 + %s7045_s15]]   ;;  %s7049_s15 = smov 47  }
  0x45   :  { %8589 = sst [smem:[#allocation81_spill]] %s7278_s29 }
  0x46   :  { %8590 = sst [smem:[#allocation82_spill]] %s7283_s13 }
  0x47   :  { %8591 = sst [smem:[#allocation83_spill]] %s7293_s14 }
  0x48   :  { %s7298_s29 = sld [smem:[%s8535_s0 + %s7043_s28]]   ;;  %s7047_s28 = smov 45  }
  0x49   :  { %s7303_s13 = sld [smem:[%s8535_s0 + %s7044_s7]]   ;;  %s7048_s7 = smov 46  }
  0x4a   :  { %s7313_s14 = sld [smem:[%s8535_s0 + %s7046_s22]]  }
  0x4b   :  { %s7318_s6 = sld [smem:[%s8535_s0 + %s7047_s28]]  }
  0x4c   :  { %s7328_s4 = sld [smem:[%s8535_s0 + %s7049_s15]]  }
  0x4f   :  { %8592 = sst [smem:[#allocation84_spill]] %s7303_s13 }
  0x50   :  { %s7323_s13 = sld [smem:[%s8535_s0 + %s7048_s7]]  }
  0x51   :  { %100 = vsyncpa [#allocation3], 0 }
  0x52   :  { %101 = vsyncpa [#allocation6], 0 }
  0x53   :  { %102 = vsyncpa [#allocation9], 0 }
  0x54   :  { %103 = vsyncpa [#allocation12], 0 }
  0x55   :  { %104 = vsyncpa [#allocation15], 0 }
  0x56   :  { %105 = vsyncpa [#allocation18], 0 }
  0x57   :  { %106 = vsyncpa [#allocation21], 0 }
  0x58   :  { %107 = vsyncpa [#allocation24], 0 }
  0x59   :  { %108 = vsyncpa [#allocation27], 0 }
  0x5a   :  { %109 = vsyncpa [#allocation30], 0 }
  0x5b   :  { %110 = vsyncpa [#allocation33], 0 }
  0x5c   :  { %111 = vsyncpa [#allocation36], 0 }
  0x5d   :  { %112 = vsyncpa [#allocation39], 0  ;;  %s135_s22 = sshll.u32 %s7108_s17, 4  ;;  %s136_s22 = int_to_ptr.hbm [resolvable:$true] %s135_s22 }
  0x5e   :  { %113 = vsyncpa [#allocation4], 0  ;;  %s7050_s0 = smov [#allocation5]   ;;  %s6375_s26 = sshra.s32 %s136_s22, 4  ;;  %s6376_s26 = int_to_ptr.hbm [resolvable:$true] %s6375_s26 }
  0x5f   :  { %s137_s23 = sshll.u32 %s7050_s0, 4  ;;  %s6377_s28 = scalar_lea.hbm %s6376_s26, 1024  ;;  %s138_s23 = int_to_ptr.vmem [resolvable:$true] %s137_s23 }
  0x60   :  { %p6378_p0 = scmp.ne.s32.totalorder %s6376_s26, %s6377_s28  ;;  %s6379_s1 = scalar_lea.hbm %s7108_s17, 1024 }
  0x61   :  { %p6380_p1 = scmp.lt.s32.totalorder %s6376_s26, %s7108_s17  ;;  %p6381_p2 = scmp.lt.s32.totalorder %s6379_s1, %s6377_s28 }
  0x63   :  { %p6382_p3 = por %p6381_p2, %p6380_p1 }
  0x65   :  { %p6383_p4 = pnand %p6382_p3, %p6378_p0 }
  0x67   :  { %6386 = shalt.err (!%p6383_p4)
}
  0x68   :  { %s7051_s2 = smov 128   ;;  %s7052_s7 = smov 8  }
  0x69   :  { %143 = dma.hbm_to_vmem [thread:$0]  %s136_s22, 16384, %s138_s23, [#allocation6], %s7051_s2, %s7051_s2, %s7052_s7  }
  0x6a   :  { %s167_s10 = sshll.u32 %s7133_s8, 4  ;;  %s7053_s11 = smov [#allocation8]   ;;  %s168_s10 = int_to_ptr.hbm [resolvable:$true] %s167_s10 }
  0x6b   :  { %s169_s15 = sshll.u32 %s7053_s11, 4  ;;  %s205_s16 = sshll.u32 %s7173_s27, 4  ;;  %s170_s15 = int_to_ptr.vmem [resolvable:$true] %s169_s15  ;;  %s7338_s16 = int_to_ptr.hbm [resolvable:$true] %s205_s16 }
  0x6c   :  { %s6399_s17 = sshra.s32 %s168_s10, 4  ;;  %s6403_s0 = scalar_lea.hbm %s7133_s8, 1024  ;;  %s6400_s17 = int_to_ptr.hbm [resolvable:$true] %s6399_s17 }
  0x6d   :  { %s6401_s18 = scalar_lea.hbm %s6400_s17, 1024  ;;  %p6404_p6 = scmp.lt.s32.totalorder %s6400_s17, %s7133_s8 }
  0x6e   :  { %p6402_p5 = scmp.ne.s32.totalorder %s6400_s17, %s6401_s18  ;;  %p6405_p7 = scmp.lt.s32.totalorder %s6403_s0, %s6401_s18 }
  0x70   :  { %p6406_p8 = por %p6405_p7, %p6404_p6 }
  0x72   :  { %p6407_p9 = pnand %p6406_p8, %p6402_p5 }
  0x74   :  { %6410 = shalt.err (!%p6407_p9)
}
  0x75   :  { %s7054_s26 = smov 256   ;;  %s7055_s22 = smov 16  }
  0x76   :  { %175 = dma.hbm_to_vmem [thread:$0]  %s168_s10, 16384, %s170_s15, [#allocation9], %s7054_s26, %s7054_s26, %s7055_s22  }
  0x77   :  { %s234_s23 = sshll.u32 %s7188_s30, 4  ;;  %s7056_s28 = smov [#allocation11]   ;;  %s235_s23 = int_to_ptr.hbm [resolvable:$true] %s234_s23 }
  0x78   :  { %s207_s1 = sshll.u32 %s7056_s28, 4  ;;  %s6423_s8 = sshra.s32 %s7338_s16, 4  ;;  %s208_s1 = int_to_ptr.vmem [resolvable:$true] %s207_s1  ;;  %s6424_s8 = int_to_ptr.hbm [resolvable:$true] %s6423_s8 }
  0x79   :  { %s6425_s11 = scalar_lea.hbm %s6424_s8, 1024  ;;  %s6427_s17 = scalar_lea.hbm %s7173_s27, 1024 }
  0x7a   :  { %p6426_p10 = scmp.ne.s32.totalorder %s6424_s8, %s6425_s11  ;;  %p6428_p11 = scmp.lt.s32.totalorder %s6424_s8, %s7173_s27 }
  0x7b   :  { %p6429_p12 = scmp.lt.s32.totalorder %s6427_s17, %s6425_s11 }
  0x7d   :  { %p6430_p13 = por %p6429_p12, %p6428_p11 }
  0x7f   :  { %p6431_p0 = pnand %p6430_p13, %p6426_p10 }
  0x81   :  { %6434 = shalt.err (!%p6431_p0)
}
  0x82   :  { %213 = dma.hbm_to_vmem [thread:$0]  %s7338_s16, 16384, %s208_s1, [#allocation12], %s7054_s26, %s7054_s26, %s7055_s22  }
  0x83   :  { %s7057_s10 = smov [#allocation14]   ;;  %s267_s18 = sshll.u32 %s7228_s19, 4  ;;  %s7354_s18 = int_to_ptr.hbm [resolvable:$true] %s267_s18 }
  0x84   :  { %s236_s15 = sshll.u32 %s7057_s10, 4  ;;  %s6447_s0 = sshra.s32 %s235_s23, 4  ;;  %s237_s15 = int_to_ptr.vmem [resolvable:$true] %s236_s15  ;;  %s6448_s0 = int_to_ptr.hbm [resolvable:$true] %s6447_s0 }
  0x85   :  { %s6449_s27 = scalar_lea.hbm %s6448_s0, 1  ;;  %s6451_s28 = scalar_lea.hbm %s7188_s30, 1 }
  0x86   :  { %p6450_p1 = scmp.ne.s32.totalorder %s6448_s0, %s6449_s27  ;;  %p6452_p2 = scmp.lt.s32.totalorder %s6448_s0, %s7188_s30 }
  0x87   :  { %p6453_p3 = scmp.lt.s32.totalorder %s6451_s28, %s6449_s27 }
  0x89   :  { %p6454_p4 = por %p6453_p3, %p6452_p2 }
  0x8b   :  { %p6455_p5 = pnand %p6454_p4, %p6450_p1 }
  0x8d   :  { %6458 = shalt.err (!%p6455_p5)
}
  0x8e   :  { %239 = dma.hbm_to_vmem [thread:$0]  %s235_s23, 16, %s237_s15, [#allocation15]  }
  0x8f   :  { %s291_s16 = sshll.u32 %s7238_s24, 4  ;;  %s7058_s1 = smov [#allocation17]   ;;  %s7359_s16 = int_to_ptr.hbm [resolvable:$true] %s291_s16 }
  0x90   :  { %s269_s8 = sshll.u32 %s7058_s1, 4  ;;  %s6471_s11 = sshra.s32 %s7354_s18, 4  ;;  %s270_s8 = int_to_ptr.vmem [resolvable:$true] %s269_s8  ;;  %s6472_s11 = int_to_ptr.hbm [resolvable:$true] %s6471_s11 }
  0x91   :  { %s6473_s17 = scalar_lea.hbm %s6472_s11, 128  ;;  %s6475_s30 = scalar_lea.hbm %s7228_s19, 128 }
  0x92   :  { %p6474_p6 = scmp.ne.s32.totalorder %s6472_s11, %s6473_s17  ;;  %p6476_p7 = scmp.lt.s32.totalorder %s6472_s11, %s7228_s19 }
  0x93   :  { %p6477_p8 = scmp.lt.s32.totalorder %s6475_s30, %s6473_s17 }
  0x95   :  { %p6478_p9 = por %p6477_p8, %p6476_p7 }
  0x97   :  { %p6479_p10 = pnand %p6478_p9, %p6474_p6 }
  0x99   :  { %6482 = shalt.err (!%p6479_p10)
}
  0x9a   :  { %275 = dma.hbm_to_vmem [thread:$0]  %s7354_s18, 2048, %s270_s8, [#allocation18], %s7051_s2, %s7051_s2, %s7052_s7  }
  0x9b   :  { %s7059_s23 = smov [#allocation20]   ;;  %s321_s15 = sshll.u32 %s7263_s5, 4  ;;  %s7369_s15 = int_to_ptr.hbm [resolvable:$true] %s321_s15 }
  0x9c   :  { %s293_s10 = sshll.u32 %s7059_s23, 4  ;;  %s6495_s19 = sshra.s32 %s7359_s16, 4  ;;  %s294_s10 = int_to_ptr.vmem [resolvable:$true] %s293_s10  ;;  %s6496_s19 = int_to_ptr.hbm [resolvable:$true] %s6495_s19 }
  0x9d   :  { %s6497_s0 = scalar_lea.hbm %s6496_s19, 128  ;;  %s6499_s27 = scalar_lea.hbm %s7238_s24, 128 }
  0x9e   :  { %p6498_p11 = scmp.ne.s32.totalorder %s6496_s19, %s6497_s0  ;;  %p6500_p12 = scmp.lt.s32.totalorder %s6496_s19, %s7238_s24 }
  0x9f   :  { %p6501_p13 = scmp.lt.s32.totalorder %s6499_s27, %s6497_s0 }
  0xa1   :  { %p6502_p0 = por %p6501_p13, %p6500_p12 }
  0xa3   :  { %p6503_p1 = pnand %p6502_p0, %p6498_p11 }
  0xa5   :  { %6506 = shalt.err (!%p6503_p1)
}
  0xa6   :  { %299 = dma.hbm_to_vmem [thread:$0]  %s7359_s16, 2048, %s294_s10, [#allocation21], %s7051_s2, %s7051_s2, %s7052_s7  }
  0xa7   :  { %s7060_s18 = smov [#allocation23]   ;;  %s347_s1 = sshll.u32 %s7273_s25, 4  ;;  %s7379_s1 = int_to_ptr.hbm [resolvable:$true] %s347_s1 }
  0xa8   :  { %s323_s28 = sshll.u32 %s7060_s18, 4  ;;  %s6519_s24 = sshra.s32 %s7369_s15, 4  ;;  %s324_s28 = int_to_ptr.vmem [resolvable:$true] %s323_s28  ;;  %s6520_s24 = int_to_ptr.hbm [resolvable:$true] %s6519_s24 }
  0xa9   :  { %s6521_s8 = scalar_lea.hbm %s6520_s24, 4  ;;  %s6523_s11 = scalar_lea.hbm %s7263_s5, 4 }
  0xaa   :  { %p6522_p2 = scmp.ne.s32.totalorder %s6520_s24, %s6521_s8  ;;  %p6524_p3 = scmp.lt.s32.totalorder %s6520_s24, %s7263_s5 }
  0xab   :  { %p6525_p4 = scmp.lt.s32.totalorder %s6523_s11, %s6521_s8 }
  0xad   :  { %p6526_p5 = por %p6525_p4, %p6524_p3 }
  0xaf   :  { %p6527_p6 = pnand %p6526_p5, %p6522_p2 }
  0xb1   :  { %6530 = shalt.err (!%p6527_p6)
}
  0xb2   :  { %s7061_s17 = smov 1   ;;  %s375_s16 = sshll.u32 %s7288_s3, 4  ;;  %s7389_s16 = int_to_ptr.hbm [resolvable:$true] %s375_s16 }
  0xb3   :  { %329 = dma.hbm_to_vmem [thread:$0]  %s7369_s15, 64, %s324_s28, [#allocation24], %s7055_s22, %s7055_s22, %s7061_s17  }
  0xb4   :  { %s7062_s30 = smov [#allocation26]   ;;  %s6543_s5 = sshra.s32 %s7379_s1, 4  ;;  %s6544_s5 = int_to_ptr.hbm [resolvable:$true] %s6543_s5 }
  0xb5   :  { %s349_s23 = sshll.u32 %s7062_s30, 4  ;;  %s6545_s10 = scalar_lea.hbm %s6544_s5, 4  ;;  %s350_s23 = int_to_ptr.vmem [resolvable:$true] %s349_s23 }
  0xb6   :  { %p6546_p7 = scmp.ne.s32.totalorder %s6544_s5, %s6545_s10  ;;  %s6547_s19 = scalar_lea.hbm %s7273_s25, 4 }
  0xb7   :  { %p6548_p8 = scmp.lt.s32.totalorder %s6544_s5, %s7273_s25  ;;  %p6549_p9 = scmp.lt.s32.totalorder %s6547_s19, %s6545_s10 }
  0xb9   :  { %p6550_p10 = por %p6549_p9, %p6548_p8 }
  0xbb   :  { %p6551_p11 = pnand %p6550_p10, %p6546_p7 }
  0xbd   :  { %6554 = shalt.err (!%p6551_p11)
}
  0xbe   :  { %355 = dma.hbm_to_vmem [thread:$0]  %s7379_s1, 64, %s350_s23, [#allocation27], %s7055_s22, %s7055_s22, %s7061_s17  }
  0xbf   :  { %s7063_s15 = smov [#allocation29]   ;;  %s401_s27 = sshll.u32 %s7298_s29, 4  ;;  %s7399_s27 = int_to_ptr.hbm [resolvable:$true] %s401_s27 }
  0xc0   :  { %s377_s0 = sshll.u32 %s7063_s15, 4  ;;  %s6567_s25 = sshra.s32 %s7389_s16, 4  ;;  %s378_s0 = int_to_ptr.vmem [resolvable:$true] %s377_s0  ;;  %s6568_s25 = int_to_ptr.hbm [resolvable:$true] %s6567_s25 }
  0xc1   :  { %s6569_s18 = scalar_lea.hbm %s6568_s25, 2  ;;  %s6571_s28 = scalar_lea.hbm %s7288_s3, 2 }
  0xc2   :  { %p6570_p12 = scmp.ne.s32.totalorder %s6568_s25, %s6569_s18  ;;  %p6572_p13 = scmp.lt.s32.totalorder %s6568_s25, %s7288_s3 }
  0xc3   :  { %p6573_p0 = scmp.lt.s32.totalorder %s6571_s28, %s6569_s18 }
  0xc5   :  { %p6574_p1 = por %p6573_p0, %p6572_p13 }
  0xc7   :  { %p6575_p2 = pnand %p6574_p1, %p6570_p12 }
  0xc9   :  { %6578 = shalt.err (!%p6575_p2)
}
  0xca   :  { %383 = dma.hbm_to_vmem [thread:$0]  %s7389_s16, 32, %s378_s0, [#allocation30], %s7055_s22, %s7055_s22, %s7061_s17  }
  0xcb   :  { %s7064_s1 = smov [#allocation32]   ;;  %s427_s8 = sshll.u32 %s7308_s20, 4  ;;  %s7409_s8 = int_to_ptr.hbm [resolvable:$true] %s427_s8 }
  0xcc   :  { %s403_s24 = sshll.u32 %s7064_s1, 4  ;;  %s6591_s3 = sshra.s32 %s7399_s27, 4  ;;  %s404_s24 = int_to_ptr.vmem [resolvable:$true] %s403_s24  ;;  %s6592_s3 = int_to_ptr.hbm [resolvable:$true] %s6591_s3 }
  0xcd   :  { %s6593_s11 = scalar_lea.hbm %s6592_s3, 2  ;;  %s6595_s30 = scalar_lea.hbm %s7298_s29, 2 }
  0xce   :  { %p6594_p3 = scmp.ne.s32.totalorder %s6592_s3, %s6593_s11  ;;  %p6596_p4 = scmp.lt.s32.totalorder %s6592_s3, %s7298_s29 }
  0xcf   :  { %p6597_p5 = scmp.lt.s32.totalorder %s6595_s30, %s6593_s11 }
  0xd1   :  { %p6598_p6 = por %p6597_p5, %p6596_p4 }
  0xd3   :  { %p6599_p7 = pnand %p6598_p6, %p6594_p3 }
  0xd5   :  { %6602 = shalt.err (!%p6599_p7)
}
  0xd6   :  { %409 = dma.hbm_to_vmem [thread:$0]  %s7399_s27, 32, %s404_s24, [#allocation33], %s7055_s22, %s7055_s22, %s7061_s17  }
  0xd7   :  { %s7065_s16 = smov [#allocation35]   ;;  %s120_s5 = sshll.u32 %s7098_s9, 4  ;;  %s7419_s5 = int_to_ptr.hbm [resolvable:$true] %s120_s5 }
  0xd8   :  { %s429_s23 = sshll.u32 %s7065_s16, 4  ;;  %s6615_s29 = sshra.s32 %s7409_s8, 4  ;;  %s430_s23 = int_to_ptr.vmem [resolvable:$true] %s429_s23  ;;  %s6616_s29 = int_to_ptr.hbm [resolvable:$true] %s6615_s29 }
  0xd9   :  { %s6617_s10 = scalar_lea.hbm %s6616_s29, 1024  ;;  %s6619_s19 = scalar_lea.hbm %s7308_s20, 1024 }
  0xda   :  { %p6618_p8 = scmp.ne.s32.totalorder %s6616_s29, %s6617_s10  ;;  %p6620_p9 = scmp.lt.s32.totalorder %s6616_s29, %s7308_s20 }
  0xdb   :  { %p6621_p10 = scmp.lt.s32.totalorder %s6619_s19, %s6617_s10 }
  0xdd   :  { %p6622_p11 = por %p6621_p10, %p6620_p9 }
  0xdf   :  { %p6623_p12 = pnand %p6622_p11, %p6618_p8 }
  0xe1   :  { %6626 = shalt.err (!%p6623_p12)
}
  0xe2   :  { %s7066_s15 = smov 512   ;;  %s7067_s0 = smov 32  }
  0xe3   :  { %435 = dma.hbm_to_vmem [thread:$0]  %s7409_s8, 16384, %s430_s23, [#allocation36], %s7066_s15, %s7066_s15, %s7067_s0  }
  0xe4   :  { %s148_s27 = sshll.u32 %s7113_s21, 4  ;;  %s7068_s25 = smov [#allocation2]   ;;  %s7427_s27 = int_to_ptr.hbm [resolvable:$true] %s148_s27 }
  0xe5   :  { %s122_s18 = sshll.u32 %s7068_s25, 4  ;;  %s6639_s20 = sshra.s32 %s7419_s5, 4  ;;  %s123_s18 = int_to_ptr.vmem [resolvable:$true] %s122_s18  ;;  %s6640_s20 = int_to_ptr.hbm [resolvable:$true] %s6639_s20 }
  0xe6   :  { %s6641_s28 = scalar_lea.hbm %s6640_s20, 96  ;;  %s6643_s1 = scalar_lea.hbm %s7098_s9, 96 }
  0xe7   :  { %p6642_p13 = scmp.ne.s32.totalorder %s6640_s20, %s6641_s28  ;;  %p6644_p0 = scmp.lt.s32.totalorder %s6640_s20, %s7098_s9 }
  0xe8   :  { %p6645_p1 = scmp.lt.s32.totalorder %s6643_s1, %s6641_s28 }
  0xea   :  { %p6646_p2 = por %p6645_p1, %p6644_p0 }
  0xec   :  { %p6647_p3 = pnand %p6646_p2, %p6642_p13 }
  0xee   :  { %6650 = shalt.err (!%p6647_p3)
}
  0xef   :  { %128 = dma.hbm_to_vmem [thread:$0]  %s7419_s5, 1536, %s123_s18, [#allocation3], %s7054_s26, %s7054_s26, %s7055_s22  }
  0xf0   :  { %s7069_s24 = smov [#allocation7]   ;;  %s190_s3 = sshll.u32 %s7163_s12, 4  ;;  %s7437_s3 = int_to_ptr.hbm [resolvable:$true] %s190_s3 }
  0xf1   :  { %s150_s8 = sshll.u32 %s7069_s24, 4  ;;  %s6663_s9 = sshra.s32 %s7427_s27, 4  ;;  %s151_s8 = int_to_ptr.vmem [resolvable:$true] %s150_s8  ;;  %s6664_s9 = int_to_ptr.hbm [resolvable:$true] %s6663_s9 }
  0xf2   :  { %s6665_s11 = scalar_lea.hbm %s6664_s9, 1024  ;;  %s6667_s30 = scalar_lea.hbm %s7113_s21, 1024 }
  0xf3   :  { %p6666_p4 = scmp.ne.s32.totalorder %s6664_s9, %s6665_s11  ;;  %p6668_p5 = scmp.lt.s32.totalorder %s6664_s9, %s7113_s21 }
  0xf4   :  { %p6669_p6 = scmp.lt.s32.totalorder %s6667_s30, %s6665_s11 }
  0xf6   :  { %p6670_p7 = por %p6669_p6, %p6668_p5 }
  0xf8   :  { %p6671_p8 = pnand %p6670_p7, %p6666_p4 }
  0xfa   :  { %6674 = shalt.err (!%p6671_p8)
}
  0xfb   :  { %s8593_s16 = sld [smem:[#allocation66_spill]]  ;;  %s7070_s5 = smov [#allocation10]  }
  0xfc   :  { %156 = dma.hbm_to_vmem [thread:$0]  %s7427_s27, 16384, %s151_s8, [#allocation6], %s7051_s2, %s7051_s2, %s7052_s7  }
  0xfd   :  { %s192_s29 = sshll.u32 %s7070_s5, 4  ;;  %s6687_s21 = sshra.s32 %s7437_s3, 4  ;;  %s193_s29 = int_to_ptr.vmem [resolvable:$true] %s192_s29  ;;  %s6688_s21 = int_to_ptr.hbm [resolvable:$true] %s6687_s21 }
  0xfe   :  { %s6689_s10 = scalar_lea.hbm %s6688_s21, 1024  ;;  %s6691_s19 = scalar_lea.hbm %s7163_s12, 1024 }
  0xff   :  { %p6690_p9 = scmp.ne.s32.totalorder %s6688_s21, %s6689_s10  ;;  %p6692_p10 = scmp.lt.s32.totalorder %s6688_s21, %s7163_s12 }
 0x100   :  { %p6693_p11 = scmp.lt.s32.totalorder %s6691_s19, %s6689_s10 }
 0x101   :  { %s218_s23 = sshll.u32 %s8593_s16, 4  ;;  %s7447_s23 = int_to_ptr.hbm [resolvable:$true] %s218_s23 }
 0x102   :  { %p6694_p12 = por %p6693_p11, %p6692_p10 }
 0x104   :  { %p6695_p13 = pnand %p6694_p12, %p6690_p9 }
 0x106   :  { %6698 = shalt.err (!%p6695_p13)
}
 0x107   :  { %s8594_s15 = sld [smem:[#allocation70_spill]]  ;;  %s7071_s27 = smov [#allocation13]  }
 0x108   :  { %198 = dma.hbm_to_vmem [thread:$0]  %s7437_s3, 16384, %s193_s29, [#allocation9], %s7054_s26, %s7054_s26, %s7055_s22  }
 0x109   :  { %s220_s25 = sshll.u32 %s7071_s27, 4  ;;  %s6711_s20 = sshra.s32 %s7447_s23, 4  ;;  %s221_s25 = int_to_ptr.vmem [resolvable:$true] %s220_s25  ;;  %s6712_s20 = int_to_ptr.hbm [resolvable:$true] %s6711_s20 }
 0x10a   :  { %s6713_s12 = scalar_lea.hbm %s6712_s20, 4  ;;  %s6715_s28 = scalar_lea.hbm %s8593_s16, 4 }
 0x10b   :  { %p6714_p0 = scmp.ne.s32.totalorder %s6712_s20, %s6713_s12  ;;  %p6716_p1 = scmp.lt.s32.totalorder %s6712_s20, %s8593_s16 }
 0x10c   :  { %p6717_p2 = scmp.lt.s32.totalorder %s6715_s28, %s6713_s12 }
 0x10d   :  { %s249_s18 = sshll.u32 %s8594_s15, 4  ;;  %s250_s18 = int_to_ptr.hbm [resolvable:$true] %s249_s18 }
 0x10e   :  { %p6718_p3 = por %p6717_p2, %p6716_p1 }
 0x110   :  { %p6719_p4 = pnand %p6718_p3, %p6714_p0 }
 0x112   :  { %6722 = shalt.err (!%p6719_p4)
}
 0x113   :  { %s7072_s1 = smov 2   ;;  %s8595_s24 = sld [smem:[#allocation75_spill]] }
 0x114   :  { %226 = dma.hbm_to_vmem [thread:$0]  %s7447_s23, 64, %s221_s25, [#allocation12], %s7067_s0, %s7067_s0, %s7072_s1  }
 0x115   :  { %s7073_s26 = smov [#allocation16]   ;;  %s6735_s9 = sshra.s32 %s250_s18, 4  ;;  %s6736_s9 = int_to_ptr.hbm [resolvable:$true] %s6735_s9 }
 0x116   :  { %s251_s8 = sshll.u32 %s7073_s26, 4  ;;  %s6737_s11 = scalar_lea.hbm %s6736_s9, 1  ;;  %s252_s8 = int_to_ptr.vmem [resolvable:$true] %s251_s8 }
 0x117   :  { %p6738_p5 = scmp.ne.s32.totalorder %s6736_s9, %s6737_s11  ;;  %s6739_s30 = scalar_lea.hbm %s8594_s15, 1 }
 0x118   :  { %p6740_p6 = scmp.lt.s32.totalorder %s6736_s9, %s8594_s15  ;;  %p6741_p7 = scmp.lt.s32.totalorder %s6739_s30, %s6737_s11 }
 0x119   :  { %s281_s3 = sshll.u32 %s8595_s24, 4  ;;  %s282_s3 = int_to_ptr.hbm [resolvable:$true] %s281_s3 }
 0x11a   :  { %p6742_p8 = por %p6741_p7, %p6740_p6 }
 0x11c   :  { %p6743_p9 = pnand %p6742_p8, %p6738_p5 }
 0x11e   :  { %6746 = shalt.err (!%p6743_p9)
}
 0x11f   :  { %254 = dma.hbm_to_vmem [thread:$0]  %s250_s18, 16, %s252_s8, [#allocation15]  }
 0x120   :  { %s8596_s16 = sld [smem:[#allocation76_spill]]  ;;  %s7074_s23 = smov [#allocation19]  }
 0x121   :  { %s283_s5 = sshll.u32 %s7074_s23, 4  ;;  %s6759_s29 = sshra.s32 %s282_s3, 4  ;;  %s284_s5 = int_to_ptr.vmem [resolvable:$true] %s283_s5  ;;  %s6760_s29 = int_to_ptr.hbm [resolvable:$true] %s6759_s29 }
 0x122   :  { %s6761_s21 = scalar_lea.hbm %s6760_s29, 1  ;;  %s6763_s10 = scalar_lea.hbm %s8595_s24, 1 }
 0x123   :  { %p6762_p10 = scmp.ne.s32.totalorder %s6760_s29, %s6761_s21  ;;  %p6764_p11 = scmp.lt.s32.totalorder %s6760_s29, %s8595_s24 }
 0x124   :  { %p6765_p12 = scmp.lt.s32.totalorder %s6763_s10, %s6761_s21 }
 0x126   :  { %s305_s0 = sshll.u32 %s8596_s16, 4  ;;  %p6766_p13 = por %p6765_p12, %p6764_p11  ;;  %s306_s0 = int_to_ptr.hbm [resolvable:$true] %s305_s0 }
 0x128   :  { %p6767_p0 = pnand %p6766_p13, %p6762_p10 }
 0x12a   :  { %6770 = shalt.err (!%p6767_p0)
}
 0x12b   :  { %286 = dma.hbm_to_vmem [thread:$0]  %s282_s3, 16, %s284_s5, [#allocation18]  }
 0x12c   :  { %s8597_s19 = sld [smem:[#allocation80_spill]]  ;;  %s7075_s15 = smov [#allocation22]  }
 0x12d   :  { %s307_s27 = sshll.u32 %s7075_s15, 4  ;;  %s6783_s18 = sshra.s32 %s306_s0, 4  ;;  %s308_s27 = int_to_ptr.vmem [resolvable:$true] %s307_s27  ;;  %s6784_s18 = int_to_ptr.hbm [resolvable:$true] %s6783_s18 }
 0x12e   :  { %s6785_s20 = scalar_lea.hbm %s6784_s18, 1  ;;  %s6787_s12 = scalar_lea.hbm %s8596_s16, 1 }
 0x12f   :  { %p6786_p1 = scmp.ne.s32.totalorder %s6784_s18, %s6785_s20  ;;  %p6788_p2 = scmp.lt.s32.totalorder %s6784_s18, %s8596_s16 }
 0x130   :  { %p6789_p3 = scmp.lt.s32.totalorder %s6787_s12, %s6785_s20 }
 0x132   :  { %s334_s25 = sshll.u32 %s8597_s19, 4  ;;  %p6790_p4 = por %p6789_p3, %p6788_p2  ;;  %s7470_s25 = int_to_ptr.hbm [resolvable:$true] %s334_s25 }
 0x134   :  { %p6791_p5 = pnand %p6790_p4, %p6786_p1 }
 0x136   :  { %6794 = shalt.err (!%p6791_p5)
}
 0x137   :  { %310 = dma.hbm_to_vmem [thread:$0]  %s306_s0, 16, %s308_s27, [#allocation21]  }
 0x138   :  { %s8598_s28 = sld [smem:[#allocation82_spill]]  ;;  %s7076_s24 = smov [#allocation25]  }
 0x139   :  { %s336_s26 = sshll.u32 %s7076_s24, 4  ;;  %s6807_s8 = sshra.s32 %s7470_s25, 4  ;;  %s337_s26 = int_to_ptr.vmem [resolvable:$true] %s336_s26  ;;  %s6808_s8 = int_to_ptr.hbm [resolvable:$true] %s6807_s8 }
 0x13a   :  { %s6809_s3 = scalar_lea.hbm %s6808_s8, 4  ;;  %s6811_s9 = scalar_lea.hbm %s8597_s19, 4 }
 0x13b   :  { %p6810_p6 = scmp.ne.s32.totalorder %s6808_s8, %s6809_s3  ;;  %p6812_p7 = scmp.lt.s32.totalorder %s6808_s8, %s8597_s19 }
 0x13c   :  { %p6813_p8 = scmp.lt.s32.totalorder %s6811_s9, %s6809_s3 }
 0x13e   :  { %s362_s1 = sshll.u32 %s8598_s28, 4  ;;  %p6814_p9 = por %p6813_p8, %p6812_p7  ;;  %s7475_s1 = int_to_ptr.hbm [resolvable:$true] %s362_s1 }
 0x140   :  { %p6815_p10 = pnand %p6814_p9, %p6810_p6 }
 0x142   :  { %6818 = shalt.err (!%p6815_p10)
}
 0x143   :  { %s8599_s11 = sld [smem:[#allocation83_spill]]  ;;  %s7077_s30 = smov [#allocation28]  }
 0x144   :  { %342 = dma.hbm_to_vmem [thread:$0]  %s7470_s25, 64, %s337_s26, [#allocation24], %s7055_s22, %s7055_s22, %s7061_s17  }
 0x145   :  { %s364_s16 = sshll.u32 %s7077_s30, 4  ;;  %s6831_s23 = sshra.s32 %s7475_s1, 4  ;;  %s365_s16 = int_to_ptr.vmem [resolvable:$true] %s364_s16  ;;  %s6832_s23 = int_to_ptr.hbm [resolvable:$true] %s6831_s23 }
 0x146   :  { %s6833_s5 = scalar_lea.hbm %s6832_s23, 2  ;;  %s6835_s29 = scalar_lea.hbm %s8598_s28, 2 }
 0x147   :  { %p6834_p11 = scmp.ne.s32.totalorder %s6832_s23, %s6833_s5  ;;  %p6836_p12 = scmp.lt.s32.totalorder %s6832_s23, %s8598_s28 }
 0x148   :  { %p6837_p13 = scmp.lt.s32.totalorder %s6835_s29, %s6833_s5 }
 0x149   :  { %s388_s0 = sshll.u32 %s8599_s11, 4  ;;  %s7485_s0 = int_to_ptr.hbm [resolvable:$true] %s388_s0 }
 0x14a   :  { %p6838_p0 = por %p6837_p13, %p6836_p12 }
 0x14c   :  { %p6839_p1 = pnand %p6838_p0, %p6834_p11 }
 0x14e   :  { %6842 = shalt.err (!%p6839_p1)
}
 0x14f   :  { %s8600_s21 = sld [smem:[#allocation84_spill]]  ;;  %s7078_s19 = smov [#allocation31]  }
 0x150   :  { %370 = dma.hbm_to_vmem [thread:$0]  %s7475_s1, 32, %s365_s16, [#allocation27], %s7055_s22, %s7055_s22, %s7061_s17  }
 0x151   :  { %s390_s15 = sshll.u32 %s7078_s19, 4  ;;  %s6855_s27 = sshra.s32 %s7485_s0, 4  ;;  %s391_s15 = int_to_ptr.vmem [resolvable:$true] %s390_s15  ;;  %s6856_s27 = int_to_ptr.hbm [resolvable:$true] %s6855_s27 }
 0x152   :  { %s6857_s25 = scalar_lea.hbm %s6856_s27, 2  ;;  %s6859_s18 = scalar_lea.hbm %s8599_s11, 2 }
 0x153   :  { %p6858_p2 = scmp.ne.s32.totalorder %s6856_s27, %s6857_s25  ;;  %p6860_p3 = scmp.lt.s32.totalorder %s6856_s27, %s8599_s11 }
 0x154   :  { %p6861_p4 = scmp.lt.s32.totalorder %s6859_s18, %s6857_s25 }
 0x155   :  { %s414_s10 = sshll.u32 %s8600_s21, 4  ;;  %s7495_s10 = int_to_ptr.hbm [resolvable:$true] %s414_s10 }
 0x156   :  { %p6862_p5 = por %p6861_p4, %p6860_p3 }
 0x158   :  { %p6863_p6 = pnand %p6862_p5, %p6858_p2 }
 0x15a   :  { %6866 = shalt.err (!%p6863_p6)
}
 0x15b   :  { %396 = dma.hbm_to_vmem [thread:$0]  %s7485_s0, 32, %s391_s15, [#allocation30], %s7055_s22, %s7055_s22, %s7061_s17  }
 0x15c   :  { %s7079_s20 = smov [#allocation34]   ;;  %s442_s28 = sshll.u32 %s7318_s6, 4  ;;  %s7505_s28 = int_to_ptr.hbm [resolvable:$true] %s442_s28 }
 0x15d   :  { %s416_s12 = sshll.u32 %s7079_s20, 4  ;;  %s6879_s1 = sshra.s32 %s7495_s10, 4  ;;  %s417_s12 = int_to_ptr.vmem [resolvable:$true] %s416_s12  ;;  %s6880_s1 = int_to_ptr.hbm [resolvable:$true] %s6879_s1 }
 0x15e   :  { %s6881_s24 = scalar_lea.hbm %s6880_s1, 2  ;;  %s6883_s26 = scalar_lea.hbm %s8600_s21, 2 }
 0x15f   :  { %p6882_p7 = scmp.ne.s32.totalorder %s6880_s1, %s6881_s24  ;;  %p6884_p8 = scmp.lt.s32.totalorder %s6880_s1, %s8600_s21 }
 0x160   :  { %p6885_p9 = scmp.lt.s32.totalorder %s6883_s26, %s6881_s24 }
 0x162   :  { %p6886_p10 = por %p6885_p9, %p6884_p8 }
 0x164   :  { %p6887_p11 = pnand %p6886_p10, %p6882_p7 }
 0x166   :  { %6890 = shalt.err (!%p6887_p11)
}
 0x167   :  { %422 = dma.hbm_to_vmem [thread:$0]  %s7495_s10, 32, %s417_s12, [#allocation33], %s7055_s22, %s7055_s22, %s7061_s17  }
 0x168   :  { %s455_s8 = sshll.u32 %s7323_s13, 4  ;;  %s7080_s3 = smov [#allocation37]   ;;  %s7515_s8 = int_to_ptr.hbm [resolvable:$true] %s455_s8 }
 0x169   :  { %s444_s9 = sshll.u32 %s7080_s3, 4  ;;  %s6903_s11 = sshra.s32 %s7505_s28, 4  ;;  %s445_s9 = int_to_ptr.vmem [resolvable:$true] %s444_s9  ;;  %s6904_s11 = int_to_ptr.hbm [resolvable:$true] %s6903_s11 }
 0x16a   :  { %s6905_s30 = scalar_lea.hbm %s6904_s11, 1024  ;;  %s6907_s16 = scalar_lea.hbm %s7318_s6, 1024 }
 0x16b   :  { %p6906_p12 = scmp.ne.s32.totalorder %s6904_s11, %s6905_s30  ;;  %p6908_p13 = scmp.lt.s32.totalorder %s6904_s11, %s7318_s6 }
 0x16c   :  { %p6909_p0 = scmp.lt.s32.totalorder %s6907_s16, %s6905_s30 }
 0x16e   :  { %p6910_p1 = por %p6909_p0, %p6908_p13 }
 0x170   :  { %p6911_p2 = pnand %p6910_p1, %p6906_p12 }
 0x172   :  { %6914 = shalt.err (!%p6911_p2)
}
 0x173   :  { %450 = dma.hbm_to_vmem [thread:$0]  %s7505_s28, 16384, %s445_s9, [#allocation36], %s7051_s2, %s7051_s2, %s7052_s7  }
 0x174   :  { %s7081_s0 = smov [#allocation38]   ;;  %s6927_s5 = sshra.s32 %s7515_s8, 4  ;;  %s6928_s5 = int_to_ptr.hbm [resolvable:$true] %s6927_s5 }
 0x175   :  { %s457_s23 = sshll.u32 %s7081_s0, 4  ;;  %s6929_s29 = scalar_lea.hbm %s6928_s5, 2  ;;  %s458_s23 = int_to_ptr.vmem [resolvable:$true] %s457_s23 }
 0x176   :  { %p6930_p3 = scmp.ne.s32.totalorder %s6928_s5, %s6929_s29  ;;  %s6931_s6 = scalar_lea.hbm %s7323_s13, 2 }
 0x177   :  { %p6932_p4 = scmp.lt.s32.totalorder %s6928_s5, %s7323_s13  ;;  %p6933_p5 = scmp.lt.s32.totalorder %s6931_s6, %s6929_s29 }
 0x179   :  { %p6934_p6 = por %p6933_p5, %p6932_p4 }
 0x17b   :  { %p6935_p7 = pnand %p6934_p6, %p6930_p3 }
 0x17d   :  { %6938 = shalt.err (!%p6935_p7)
}
 0x17e   :  { %463 = dma.hbm_to_vmem [thread:$0]  %s7515_s8, 32, %s458_s23, [#allocation39], %s7055_s22, %s7055_s22, %s7061_s17  }
 0x17f   :  { %6975 = dma.done.wait [#allocation3], 1536  }
 0x180   :  { %6976 = vsyncadd [#allocation3], 4294965760 }
 0x181   :  { %6977 = dma.done.wait [#allocation6], 32768  }
 0x182   :  { %6978 = vsyncadd [#allocation6], 4294934528 }
 0x183   :  { %6979 = dma.done.wait [#allocation9], 32768  }
 0x184   :  { %6980 = vsyncadd [#allocation9], 4294934528 }
 0x185   :  { %6981 = dma.done.wait [#allocation12], 16448  }
 0x186   :  { %6982 = vsyncadd [#allocation12], 4294950848 }
 0x187   :  { %6983 = dma.done.wait [#allocation15], 32  }
 0x188   :  { %6984 = vsyncadd [#allocation15], 4294967264 }
 0x189   :  { %6985 = dma.done.wait [#allocation18], 2064  }
 0x18a   :  { %6986 = vsyncadd [#allocation18], 4294965232 }
 0x18b   :  { %6987 = dma.done.wait [#allocation21], 2064  }
 0x18c   :  { %6988 = vsyncadd [#allocation21], 4294965232 }
 0x18d   :  { %6989 = dma.done.wait [#allocation24], 128  }
 0x18e   :  { %6990 = vsyncadd [#allocation24], 4294967168 }
 0x18f   :  { %6991 = dma.done.wait [#allocation27], 96  }
 0x190   :  { %6992 = vsyncadd [#allocation27], 4294967200 }
 0x191   :  { %6993 = dma.done.wait [#allocation30], 64  }
 0x192   :  { %6994 = vsyncadd [#allocation30], 4294967232 }
 0x193   :  { %6995 = dma.done.wait [#allocation33], 64  }
 0x194   :  { %6996 = vsyncadd [#allocation33], 4294967232 }
 0x195   :  { %6997 = dma.done.wait [#allocation36], 32768  }
 0x196   :  { %6998 = vsyncadd [#allocation36], 4294934528 }
 0x197   :  { %6999 = dma.done.wait [#allocation39], 32  }
 0x198   :  { %7000 = vsyncadd [#allocation39], 4294967264  ;;  %s8601_s13 = sld [smem:[#allocation56_spill]]  ;;  %v572_v0 = vld [vmem:[#allocation2 + $0x50] sm:$0xff]  ;;  %v573_v1 = vld [vmem:[#allocation2 + $0x58] sm:$0xff]  ;;  %vm574_vm0 = vcmask 392192  }
 0x199   :  { %v570_v2 = vld [vmem:[#allocation2 + $0x40] sm:$0xff]  ;;  %591 = vmatpush.msra.mxu0 %v572_v0  ;;  %614 = vmatpush.msra.mxu1 %v573_v1  ;;  %v571_v3 = vld [vmem:[#allocation2 + $0x48] sm:$0xff]  ;;  %v568_v4 = vld [vmem:[#allocation2 + $0x30] sm:$0xff]  ;;  %s8602_s22 = sld [smem:[#allocation55_spill]]  ;;  %vm915_vm1 = vcmask 64512   ;;  %s5756_s23 = sshll.u32 %s7328_s4, 4  ;;  %s5757_s23 = int_to_ptr.hbm [resolvable:$true] %s5756_s23 }
 0x19a   :  { %v569_v5 = vld [vmem:[#allocation2 + $0x38] sm:$0xff]  ;;  %v566_v6 = vld [vmem:[#allocation2 + $0x20] sm:$0xff]  ;;  %v567_v7 = vld [vmem:[#allocation2 + $0x28] sm:$0xff]  ;;  %s8603_s17 = sld [smem:[#allocation58_spill]]  ;;  %s6963_s5 = sshra.s32 %s5757_s23, 4  ;;  %s6964_s5 = int_to_ptr.hbm [resolvable:$true] %s6963_s5 }
 0x19b   :  { %592 = vmatpush.msra.mxu0 %v570_v2  ;;  %615 = vmatpush.msra.mxu1 %v571_v3  ;;  %v564_v12 = vld [vmem:[#allocation2 + $0x10] sm:$0xff]  ;;  %v565_v13 = vld [vmem:[#allocation2 + $0x18] sm:$0xff]  ;;  %v562_v16 = vld [vmem:[#allocation2] sm:$0xff]  ;;  %s8604_s21 = sld [smem:[#allocation57_spill]]  ;;  %s6965_s29 = scalar_lea.hbm %s6964_s5, 16 }
 0x19c   :  { %v563_v17 = vld [vmem:[#allocation2 + $0x8] sm:$0xff]  ;;  %v724_v26 = vld [vmem:[#allocation5 + $0x78] sm:$0xff]  ;;  %v723_v28 = vld [vmem:[#allocation5 + $0x70] sm:$0xff]  ;;  %s8605_s10 = sld [smem:[#allocation59_spill]]  ;;  %p6966_p8 = scmp.ne.s32.totalorder %s6964_s5, %s6965_s29 }
 0x19d   :  { %593 = vmatpush.msra.mxu0 %v568_v4  ;;  %616 = vmatpush.msra.mxu1 %v569_v5  ;;  %v740_v29 = vld [vmem:[#allocation5 + $0xf8] sm:$0xff]  ;;  %v722_v33 = vld [vmem:[#allocation5 + $0x68] sm:$0xff]  ;;  %v739_v34 = vld [vmem:[#allocation5 + $0xf0] sm:$0xff]  ;;  %s8606_s19 = sld [smem:[#allocation60_spill]]  ;;  %s6967_s6 = scalar_lea.hbm %s7328_s4, 16 }
 0x19e   :  { %v642_v8 = vld [vmem:[%s8601_s13 + $0x78] sm:$0xff]  ;;  %v641_v10 = vld [vmem:[%s8601_s13 + $0x70] sm:$0xff]  ;;  %v640_v14 = vld [vmem:[%s8601_s13 + $0x68] sm:$0xff]  ;;  %s8607_s15 = sld [smem:[#allocation61_spill]]  ;;  %p6968_p9 = scmp.lt.s32.totalorder %s6964_s5, %s7328_s4 }
 0x19f   :  { %v658_v9 = vld [vmem:[%s8601_s13 + $0xf8] sm:$0xff]  ;;  %v657_v11 = vld [vmem:[%s8601_s13 + $0xf0] sm:$0xff]  ;;  %663 = vmatpush.msra.mxu2 %v642_v8  ;;  %594 = vmatpush.msra.mxu0 %v566_v6  ;;  %v656_v15 = vld [vmem:[%s8601_s13 + $0xe8] sm:$0xff]  ;;  %s8608_s27 = sld [smem:[#allocation62_spill]]  ;;  %p6969_p10 = scmp.lt.s32.totalorder %s6967_s6, %s6965_s29 }
 0x1a0   :  { %686 = vmatpush.msra.mxu3 %v658_v9  ;;  %617 = vmatpush.msra.mxu1 %v567_v7  ;;  %v560_v18 = vld [vmem:[%s8602_s22] sm:$0xff]  ;;  %v638_v21 = vld [vmem:[%s8601_s13 + $0x58] sm:$0xff]  ;;  %v637_v23 = vld [vmem:[%s8601_s13 + $0x50] sm:$0xff]  ;;  %s8609_s25 = sld [smem:[#allocation65_spill]] }
 0x1a1   :  { %664 = vmatpush.msra.mxu2 %v641_v10  ;;  %595 = vmatpush.msra.mxu0 %v564_v12  ;;  %v639_v19 = vld [vmem:[%s8601_s13 + $0x60] sm:$0xff]  ;;  %v654_v22 = vld [vmem:[%s8601_s13 + $0xd8] sm:$0xff]  ;;  %v653_v24 = vld [vmem:[%s8601_s13 + $0xd0] sm:$0xff]  ;;  %s8610_s18 = sld [smem:[#allocation63_spill]]  ;;  %p6970_p11 = por %p6969_p10, %p6968_p9 }
 0x1a2   :  { %687 = vmatpush.msra.mxu3 %v657_v11  ;;  %618 = vmatpush.msra.mxu1 %v565_v13  ;;  %v655_v20 = vld [vmem:[%s8601_s13 + $0xe0] sm:$0xff]  ;;  %v636_v25 = vld [vmem:[%s8601_s13 + $0x48] sm:$0xff]  ;;  %v634_v35 = vld [vmem:[%s8601_s13 + $0x38] sm:$0xff]  ;;  %s8611_s20 = sld [smem:[#allocation64_spill]] }
 0x1a3   :  { %665 = vmatpush.msra.mxu2 %v640_v14  ;;  %596 = vmatpush.msra.mxu0 %v562_v16  ;;  %v652_v27 = vld [vmem:[%s8601_s13 + $0xc8] sm:$0xff]  ;;  %v635_v31 = vld [vmem:[%s8601_s13 + $0x40] sm:$0xff]  ;;  %v650_v36 = vld [vmem:[%s8601_s13 + $0xb8] sm:$0xff]  ;;  %s8612_s12 = sld [smem:[#allocation69_spill]]  ;;  %p6971_p12 = pnand %p6970_p11, %p6966_p8 }
 0x1a4   :  { %688 = vmatpush.msra.mxu3 %v656_v15  ;;  %619 = vmatpush.msra.mxu1 %v563_v17  ;;  %v561_v30 = vld [vmem:[%s8602_s22 + $0x8] sm:$0xff]  ;;  %v651_v32 = vld [vmem:[%s8601_s13 + $0xc0] sm:$0xff]  ;;  %v633_v39 = vld [vmem:[%s8601_s13 + $0x30] sm:$0xff]  ;;  %s8613_s28 = sld [smem:[#allocation68_spill]] }
 0x1a5   :  { %5828 = vmatmul.msk.f32.vlgmr.msra.gmra.mxu0 %vm574_vm0, %v560_v18  ;;  %5830 = vmatmul.msk.f32.vlgmr.msra.gmra.mxu1 %vm574_vm0, %v560_v18  ;;  %v721_v37 = vld [vmem:[#allocation5 + $0x60] sm:$0xff]  ;;  %v738_v38 = vld [vmem:[#allocation5 + $0xe8] sm:$0xff]  ;;  %v649_v40 = vld [vmem:[%s8601_s13 + $0xb0] sm:$0xff]  ;;  %s8614_s1 = sld [smem:[#allocation71_spill]] }
 0x1a6   :  { %666 = vmatpush.msra.mxu2 %v639_v19  ;;  %689 = vmatpush.msra.mxu3 %v655_v20  ;;  %v720_v41 = vld [vmem:[#allocation5 + $0x58] sm:$0xff]  ;;  %v737_v42 = vld [vmem:[#allocation5 + $0xe0] sm:$0xff]  ;;  %v632_v43 = vld [vmem:[%s8601_s13 + $0x28] sm:$0xff]  ;;  %s8615_s24 = sld [smem:[#allocation67_spill]] }
 0x1a7   :  { %745 = vmatpush.msrb.mxu0 %v724_v26  ;;  %768 = vmatpush.msrb.mxu1 %v740_v29  ;;  %v648_v44 = vld [vmem:[%s8601_s13 + $0xa8] sm:$0xff]  ;;  %v719_v45 = vld [vmem:[#allocation5 + $0x50] sm:$0xff]  ;;  %v736_v46 = vld [vmem:[#allocation5 + $0xd8] sm:$0xff]  ;;  %s8616_s26 = sld [smem:[#allocation74_spill]] }
 0x1a8   :  { %667 = vmatpush.msra.mxu2 %v638_v21  ;;  %690 = vmatpush.msra.mxu3 %v654_v22  ;;  %v631_v47 = vld [vmem:[%s8601_s13 + $0x20] sm:$0xff]  ;;  %v718_v49 = vld [vmem:[#allocation5 + $0x48] sm:$0xff]  ;;  %v735_v50 = vld [vmem:[#allocation5 + $0xd0] sm:$0xff]  ;;  %s8617_s8 = sld [smem:[#allocation72_spill]] }
 0x1a9   :  { %746 = vmatpush.msrb.mxu0 %v723_v28  ;;  %769 = vmatpush.msrb.mxu1 %v739_v34  ;;  %v647_v48 = vld [vmem:[%s8601_s13 + $0xa0] sm:$0xff]  ;;  %v630_v51 = vld [vmem:[%s8601_s13 + $0x18] sm:$0xff]  ;;  %v734_v54 = vld [vmem:[#allocation5 + $0xc8] sm:$0xff]  ;;  %s8618_s3 = sld [smem:[#allocation73_spill]] }
 0x1aa   :  { %668 = vmatpush.msra.mxu2 %v637_v23  ;;  %691 = vmatpush.msra.mxu3 %v653_v24  ;;  %v646_v52 = vld [vmem:[%s8601_s13 + $0x98] sm:$0xff]  ;;  %v717_v53 = vld [vmem:[#allocation5 + $0x40] sm:$0xff]  ;;  %v629_v55 = vld [vmem:[%s8601_s13 + $0x10] sm:$0xff]  ;;  %s8619_s9 = sld [smem:[#allocation78_spill]] }
 0x1ab   :  { %747 = vmatpush.msrb.mxu0 %v722_v33  ;;  %770 = vmatpush.msrb.mxu1 %v738_v38  ;;  %v645_v56 = vld [vmem:[%s8601_s13 + $0x90] sm:$0xff]  ;;  %v628_v57 = vld [vmem:[%s8601_s13 + $0x8] sm:$0xff]  ;;  %v716_v58 = vld [vmem:[#allocation5 + $0x38] sm:$0xff]  ;;  %s8620_s11 = sld [smem:[#allocation77_spill]] }
 0x1ac   :  { %669 = vmatpush.msra.mxu2 %v636_v25  ;;  %692 = vmatpush.msra.mxu3 %v652_v27  ;;  %v733_v59 = vld [vmem:[#allocation5 + $0xc0] sm:$0xff]  ;;  %v644_v60 = vld [vmem:[%s8601_s13 + $0x88] sm:$0xff]  ;;  %v806_v63 = vld [vmem:[#allocation7 + $0x78] sm:$0xff]  ;;  %s8621_s30 = sld [smem:[#allocation79_spill]] }
 0x1ad   :  { %5829 = vmatmul.msk.f32.gmra.mxu0 %vm574_vm0, %v561_v30  ;;  %5831 = vmatmul.msk.f32.gmra.mxu1 %vm574_vm0, %v561_v30  ;;  %v627_v61 = vld [vmem:[%s8601_s13] sm:$0xff]  ;;  %v715_v0 = vld [vmem:[#allocation5 + $0x30] sm:$0xff]  ;;  %v732_v1 = vld [vmem:[#allocation5 + $0xb8] sm:$0xff]  ;;  %s8622_s16 = sld [smem:[#allocation81_spill]] }
 0x1ae   :  { %670 = vmatpush.msra.mxu2 %v635_v31  ;;  %693 = vmatpush.msra.mxu3 %v651_v32  ;;  %v643_v62 = vld [vmem:[%s8601_s13 + $0x80] sm:$0xff]  ;;  %v822_v2 = vld [vmem:[#allocation7 + $0xf8] sm:$0xff]  ;;  %v714_v3 = vld [vmem:[#allocation5 + $0x28] sm:$0xff] }
 0x1af   :  { %748 = vmatpush.msrb.mxu0 %v721_v37  ;;  %771 = vmatpush.msrb.mxu1 %v737_v42  ;;  %v731_v4 = vld [vmem:[#allocation5 + $0xb0] sm:$0xff]  ;;  %v713_v7 = vld [vmem:[#allocation5 + $0x20] sm:$0xff]  ;;  %v730_v8 = vld [vmem:[#allocation5 + $0xa8] sm:$0xff] }
 0x1b0   :  { %671 = vmatpush.msra.mxu2 %v634_v35  ;;  %694 = vmatpush.msra.mxu3 %v650_v36  ;;  %v805_v5 = vld [vmem:[#allocation7 + $0x70] sm:$0xff]  ;;  %v804_v9 = vld [vmem:[#allocation7 + $0x68] sm:$0xff]  ;;  %v712_v11 = vld [vmem:[#allocation5 + $0x18] sm:$0xff] }
 0x1b1   :  { %749 = vmatpush.msrb.mxu0 %v720_v41  ;;  %772 = vmatpush.msrb.mxu1 %v736_v46  ;;  %v821_v6 = vld [vmem:[#allocation7 + $0xf0] sm:$0xff]  ;;  %v820_v10 = vld [vmem:[#allocation7 + $0xe8] sm:$0xff]  ;;  %v729_v12 = vld [vmem:[#allocation5 + $0xa0] sm:$0xff] }
 0x1b2   :  { %672 = vmatpush.msra.mxu2 %v633_v39  ;;  %695 = vmatpush.msra.mxu3 %v649_v40  ;;  %v803_v13 = vld [vmem:[#allocation7 + $0x60] sm:$0xff]  ;;  %v711_v15 = vld [vmem:[#allocation5 + $0x10] sm:$0xff]  ;;  %v728_v16 = vld [vmem:[#allocation5 + $0x98] sm:$0xff] }
 0x1b3   :  { %750 = vmatpush.msrb.mxu0 %v719_v45  ;;  %773 = vmatpush.msrb.mxu1 %v735_v50  ;;  %v819_v14 = vld [vmem:[#allocation7 + $0xe0] sm:$0xff]  ;;  %v802_v17 = vld [vmem:[#allocation7 + $0x58] sm:$0xff]  ;;  %v710_v19 = vld [vmem:[#allocation5 + $0x8] sm:$0xff] }
 0x1b4   :  { %673 = vmatpush.msra.mxu2 %v632_v43  ;;  %696 = vmatpush.msra.mxu3 %v648_v44  ;;  %v818_v18 = vld [vmem:[#allocation7 + $0xd8] sm:$0xff]  ;;  %v727_v20 = vld [vmem:[#allocation5 + $0x90] sm:$0xff]  ;;  %v800_v23 = vld [vmem:[#allocation7 + $0x48] sm:$0xff] }
 0x1b5   :  { %751 = vmatpush.msrb.mxu0 %v718_v49  ;;  %774 = vmatpush.msrb.mxu1 %v734_v54  ;;  %v801_v21 = vld [vmem:[#allocation7 + $0x50] sm:$0xff]  ;;  %v816_v24 = vld [vmem:[#allocation7 + $0xc8] sm:$0xff]  ;;  %v799_v25 = vld [vmem:[#allocation7 + $0x40] sm:$0xff] }
 0x1b6   :  { %674 = vmatpush.msra.mxu2 %v631_v47  ;;  %697 = vmatpush.msra.mxu3 %v647_v48  ;;  %v817_v22 = vld [vmem:[#allocation7 + $0xd0] sm:$0xff]  ;;  %v815_v26 = vld [vmem:[#allocation7 + $0xc0] sm:$0xff]  ;;  %v798_v27 = vld [vmem:[#allocation7 + $0x38] sm:$0xff] }
 0x1b7   :  { %752 = vmatpush.msrb.mxu0 %v717_v53  ;;  %775 = vmatpush.msrb.mxu1 %v733_v59  ;;  %v814_v28 = vld [vmem:[#allocation7 + $0xb8] sm:$0xff]  ;;  %v797_v29 = vld [vmem:[#allocation7 + $0x30] sm:$0xff]  ;;  %v796_v31 = vld [vmem:[#allocation7 + $0x28] sm:$0xff] }
 0x1b8   :  { %675 = vmatpush.msra.mxu2 %v630_v51  ;;  %698 = vmatpush.msra.mxu3 %v646_v52  ;;  %v813_v30 = vld [vmem:[#allocation7 + $0xb0] sm:$0xff]  ;;  %v812_v32 = vld [vmem:[#allocation7 + $0xa8] sm:$0xff]  ;;  %v795_v33 = vld [vmem:[#allocation7 + $0x20] sm:$0xff] }
 0x1b9   :  { %753 = vmatpush.msrb.mxu0 %v716_v58  ;;  %776 = vmatpush.msrb.mxu1 %v732_v1  ;;  %v811_v34 = vld [vmem:[#allocation7 + $0xa0] sm:$0xff]  ;;  %v794_v35 = vld [vmem:[#allocation7 + $0x18] sm:$0xff]  ;;  %v793_v37 = vld [vmem:[#allocation7 + $0x10] sm:$0xff] }
 0x1ba   :  { %676 = vmatpush.msra.mxu2 %v629_v55  ;;  %699 = vmatpush.msra.mxu3 %v645_v56  ;;  %v810_v36 = vld [vmem:[#allocation7 + $0x98] sm:$0xff]  ;;  %v809_v38 = vld [vmem:[#allocation7 + $0x90] sm:$0xff]  ;;  %v792_v39 = vld [vmem:[#allocation7 + $0x8] sm:$0xff] }
 0x1bb   :  { %754 = vmatpush.msrb.mxu0 %v715_v0  ;;  %777 = vmatpush.msrb.mxu1 %v731_v4  ;;  %v808_v40 = vld [vmem:[#allocation7 + $0x88] sm:$0xff]  ;;  %v709_v41 = vld [vmem:[#allocation5] sm:$0xff]  ;;  %v5849_v46 = vld [vmem:[%s8601_s13 + $0x178] sm:$0xff] }
 0x1bc   :  { %677 = vmatpush.msra.mxu2 %v628_v57  ;;  %700 = vmatpush.msra.mxu3 %v644_v60  ;;  %v726_v42 = vld [vmem:[#allocation5 + $0x88] sm:$0xff]  ;;  %v791_v43 = vld [vmem:[#allocation7] sm:$0xff]  ;;  %v5865_v49 = vld [vmem:[%s8601_s13 + $0x1f8] sm:$0xff] }
 0x1bd   :  { %755 = vmatpush.msrb.mxu0 %v714_v3  ;;  %778 = vmatpush.msrb.mxu1 %v730_v8  ;;  %v807_v44 = vld [vmem:[#allocation7 + $0x80] sm:$0xff]  ;;  %v5848_v50 = vld [vmem:[%s8601_s13 + $0x170] sm:$0xff]  ;;  %v5847_v52 = vld [vmem:[%s8601_s13 + $0x168] sm:$0xff] }
 0x1be   :  { %678 = vmatpush.msra.mxu2 %v627_v61  ;;  %701 = vmatpush.msra.mxu3 %v643_v62  ;;  %v725_v45 = vld [vmem:[#allocation5 + $0x80] sm:$0xff]  ;;  %v5864_v51 = vld [vmem:[%s8601_s13 + $0x1f0] sm:$0xff]  ;;  %v5863_v53 = vld [vmem:[%s8601_s13 + $0x1e8] sm:$0xff] }
 0x1bf   :  { %756 = vmatpush.msrb.mxu0 %v713_v7  ;;  %779 = vmatpush.msrb.mxu1 %v729_v12  ;;  %v5846_v54 = vld [vmem:[%s8601_s13 + $0x160] sm:$0xff]  ;;  %v5845_v58 = vld [vmem:[%s8601_s13 + $0x158] sm:$0xff]  ;;  %v5844_v60 = vld [vmem:[%s8601_s13 + $0x150] sm:$0xff] }
 0x1c0   :  { %827 = vmatpush.msrb.mxu2 %v806_v63  ;;  %850 = vmatpush.msrb.mxu3 %v822_v2  ;;  %v5862_v55 = vld [vmem:[%s8601_s13 + $0x1e0] sm:$0xff]  ;;  %v5861_v59 = vld [vmem:[%s8601_s13 + $0x1d8] sm:$0xff]  ;;  %v5860_v61 = vld [vmem:[%s8601_s13 + $0x1d0] sm:$0xff] }
 0x1c1   :  { %757 = vmatpush.msrb.mxu0 %v712_v11  ;;  %780 = vmatpush.msrb.mxu1 %v728_v16  ;;  %v5843_v62 = vld [vmem:[%s8601_s13 + $0x148] sm:$0xff]  ;;  %v5842_v0 = vld [vmem:[%s8601_s13 + $0x140] sm:$0xff]  ;;  %v5841_v2 = vld [vmem:[%s8601_s13 + $0x138] sm:$0xff] }
 0x1c2   :  { %828 = vmatpush.msrb.mxu2 %v805_v5  ;;  %851 = vmatpush.msrb.mxu3 %v821_v6  ;;  %v5859_v63 = vld [vmem:[%s8601_s13 + $0x1c8] sm:$0xff]  ;;  %v5858_v1 = vld [vmem:[%s8601_s13 + $0x1c0] sm:$0xff]  ;;  %v5857_v3 = vld [vmem:[%s8601_s13 + $0x1b8] sm:$0xff] }
 0x1c3   :  { %758 = vmatpush.msrb.mxu0 %v711_v15  ;;  %781 = vmatpush.msrb.mxu1 %v727_v20  ;;  %v5840_v4 = vld [vmem:[%s8601_s13 + $0x130] sm:$0xff]  ;;  %v5839_v6 = vld [vmem:[%s8601_s13 + $0x128] sm:$0xff]  ;;  %v5838_v8 = vld [vmem:[%s8601_s13 + $0x120] sm:$0xff] }
 0x1c4   :  { %829 = vmatpush.msrb.mxu2 %v804_v9  ;;  %852 = vmatpush.msrb.mxu3 %v820_v10  ;;  %v5856_v5 = vld [vmem:[%s8601_s13 + $0x1b0] sm:$0xff]  ;;  %v5855_v7 = vld [vmem:[%s8601_s13 + $0x1a8] sm:$0xff]  ;;  %v5854_v9 = vld [vmem:[%s8601_s13 + $0x1a0] sm:$0xff] }
 0x1c5   :  { %759 = vmatpush.msrb.mxu0 %v710_v19  ;;  %782 = vmatpush.msrb.mxu1 %v726_v42  ;;  %v5837_v10 = vld [vmem:[%s8601_s13 + $0x118] sm:$0xff]  ;;  %v5836_v12 = vld [vmem:[%s8601_s13 + $0x110] sm:$0xff]  ;;  %v5851_v15 = vld [vmem:[%s8601_s13 + $0x188] sm:$0xff] }
 0x1c6   :  { %830 = vmatpush.msrb.mxu2 %v803_v13  ;;  %853 = vmatpush.msrb.mxu3 %v819_v14  ;;  %v5853_v11 = vld [vmem:[%s8601_s13 + $0x198] sm:$0xff]  ;;  %v5852_v13 = vld [vmem:[%s8601_s13 + $0x190] sm:$0xff]  ;;  %v5835_v14 = vld [vmem:[%s8601_s13 + $0x108] sm:$0xff] }
 0x1c7   :  { %760 = vmatpush.msrb.mxu0 %v709_v41  ;;  %783 = vmatpush.msrb.mxu1 %v725_v45  ;;  %v5834_v16 = vld [vmem:[%s8601_s13 + $0x100] sm:$0xff]  ;;  %v1216_v19 = vld [vmem:[#allocation7 + $0x1f8] sm:$0xff]  ;;  %v1199_v20 = vld [vmem:[#allocation7 + $0x170] sm:$0xff] }
 0x1c8   :  { %831 = vmatpush.msrb.mxu2 %v802_v17  ;;  %854 = vmatpush.msrb.mxu3 %v818_v18  ;;  %v5850_v17 = vld [vmem:[%s8601_s13 + $0x180] sm:$0xff]  ;;  %v1200_v18 = vld [vmem:[#allocation7 + $0x178] sm:$0xff]  ;;  %v1203_v45 = vld [vmem:[#allocation7 + $0x190] sm:$0xff] }
 0x1c9   :  { %v1205_v41 = vld [vmem:[#allocation7 + $0x1a0] sm:$0xff]  ;;  %v1188_v42 = vld [vmem:[#allocation7 + $0x118] sm:$0xff] }
 0x1ca   :  { %832 = vmatpush.msrb.mxu2 %v801_v21  ;;  %855 = vmatpush.msrb.mxu3 %v817_v22  ;;  %v1215_v21 = vld [vmem:[#allocation7 + $0x1f0] sm:$0xff]  ;;  %v1198_v22 = vld [vmem:[#allocation7 + $0x168] sm:$0xff] }
 0x1cc   :  { %833 = vmatpush.msrb.mxu2 %v800_v23  ;;  %856 = vmatpush.msrb.mxu3 %v816_v24  ;;  %v1214_v23 = vld [vmem:[#allocation7 + $0x1e8] sm:$0xff]  ;;  %v1197_v24 = vld [vmem:[#allocation7 + $0x160] sm:$0xff] }
 0x1ce   :  { %834 = vmatpush.msrb.mxu2 %v799_v25  ;;  %857 = vmatpush.msrb.mxu3 %v815_v26  ;;  %v1213_v25 = vld [vmem:[#allocation7 + $0x1e0] sm:$0xff]  ;;  %v1196_v26 = vld [vmem:[#allocation7 + $0x158] sm:$0xff] }
 0x1d0   :  { %835 = vmatpush.msrb.mxu2 %v798_v27  ;;  %858 = vmatpush.msrb.mxu3 %v814_v28  ;;  %v1212_v27 = vld [vmem:[#allocation7 + $0x1d8] sm:$0xff]  ;;  %v1195_v28 = vld [vmem:[#allocation7 + $0x150] sm:$0xff] }
 0x1d2   :  { %836 = vmatpush.msrb.mxu2 %v797_v29  ;;  %859 = vmatpush.msrb.mxu3 %v813_v30  ;;  %v1211_v29 = vld [vmem:[#allocation7 + $0x1d0] sm:$0xff]  ;;  %v1194_v30 = vld [vmem:[#allocation7 + $0x148] sm:$0xff] }
 0x1d4   :  { %837 = vmatpush.msrb.mxu2 %v796_v31  ;;  %860 = vmatpush.msrb.mxu3 %v812_v32  ;;  %v1210_v31 = vld [vmem:[#allocation7 + $0x1c8] sm:$0xff]  ;;  %v1193_v32 = vld [vmem:[#allocation7 + $0x140] sm:$0xff] }
 0x1d6   :  { %838 = vmatpush.msrb.mxu2 %v795_v33  ;;  %861 = vmatpush.msrb.mxu3 %v811_v34  ;;  %v1209_v33 = vld [vmem:[#allocation7 + $0x1c0] sm:$0xff]  ;;  %v1192_v34 = vld [vmem:[#allocation7 + $0x138] sm:$0xff] }
 0x1d8   :  { %839 = vmatpush.msrb.mxu2 %v794_v35  ;;  %862 = vmatpush.msrb.mxu3 %v810_v36  ;;  %v1208_v35 = vld [vmem:[#allocation7 + $0x1b8] sm:$0xff]  ;;  %v1191_v36 = vld [vmem:[#allocation7 + $0x130] sm:$0xff] }
 0x1da   :  { %840 = vmatpush.msrb.mxu2 %v793_v37  ;;  %863 = vmatpush.msrb.mxu3 %v809_v38  ;;  %v1207_v37 = vld [vmem:[#allocation7 + $0x1b0] sm:$0xff]  ;;  %v1190_v38 = vld [vmem:[#allocation7 + $0x128] sm:$0xff] }
 0x1dc   :  { %841 = vmatpush.msrb.mxu2 %v792_v39  ;;  %864 = vmatpush.msrb.mxu3 %v808_v40  ;;  %v1206_v39 = vld [vmem:[#allocation7 + $0x1a8] sm:$0xff]  ;;  %v1189_v40 = vld [vmem:[#allocation7 + $0x120] sm:$0xff] }
 0x1de   :  { %842 = vmatpush.msrb.mxu2 %v791_v43  ;;  %865 = vmatpush.msrb.mxu3 %v807_v44  ;;  %v1204_v43 = vld [vmem:[#allocation7 + $0x198] sm:$0xff]  ;;  %v1187_v44 = vld [vmem:[#allocation7 + $0x110] sm:$0xff] }
 0x222   :  { %v7570_v47 = vpop.f32.mrf.mxu0  ;;  %v7572_v48 = vpop.f32.mrf.mxu1 }
 0x223   :  { %679 = vmatmul.f32.vlgmr.msra.gmra.mxu2 %v7570_v47  ;;  %702 = vmatmul.f32.vlgmr.msra.gmra.mxu3 %v7572_v48 }
 0x224   :  { %761 = vmatmul.f32.vlgmr.msrb.gmra.mxu0 %v7570_v47  ;;  %1054 = vmatpush.msra.mxu2 %v5849_v46  ;;  %v1186_v46 = vld [vmem:[#allocation7 + $0x108] sm:$0xff] }
 0x225   :  { %1077 = vmatpush.msra.mxu3 %v5865_v49  ;;  %784 = vmatmul.f32.vlgmr.msrb.gmra.mxu1 %v7572_v48  ;;  %v1202_v49 = vld [vmem:[#allocation7 + $0x188] sm:$0xff] }
 0x226   :  { %1055 = vmatpush.msra.mxu2 %v5848_v50  ;;  %v1185_v50 = vld [vmem:[#allocation7 + $0x100] sm:$0xff] }
 0x227   :  { %1078 = vmatpush.msra.mxu3 %v5864_v51  ;;  %v1201_v51 = vld [vmem:[#allocation7 + $0x180] sm:$0xff] }
 0x228   :  { %1056 = vmatpush.msra.mxu2 %v5847_v52  ;;  %v6234_v52 = vld [vmem:[%s8603_s17] ss:$0 sm:$0xff] }
 0x229   :  { %1079 = vmatpush.msra.mxu3 %v5863_v53 }
 0x22a   :  { %1057 = vmatpush.msra.mxu2 %v5846_v54  ;;  %v7585_v56 = vpop.f32.mrf.mxu0  ;;  %v7587_v57 = vpop.f32.mrf.mxu1 }
 0x22b   :  { %1080 = vmatpush.msra.mxu3 %v5862_v55  ;;  %682 = vmatmul.f32.gmra.mxu2 %v7585_v56 }
 0x22c   :  { %705 = vmatmul.f32.gmra.mxu3 %v7587_v57  ;;  %764 = vmatmul.f32.gmra.mxu0 %v7585_v56 }
 0x22d   :  { %1058 = vmatpush.msra.mxu2 %v5845_v58  ;;  %1081 = vmatpush.msra.mxu3 %v5861_v59  ;;  %v6235_v58 = vld [vmem:[%s8604_s21] ss:$0 sm:$0xff] }
 0x22e   :  { %787 = vmatmul.f32.gmra.mxu1 %v7587_v57 }
 0x22f   :  { %1059 = vmatpush.msra.mxu2 %v5844_v60  ;;  %1082 = vmatpush.msra.mxu3 %v5860_v61 }
 0x231   :  { %1060 = vmatpush.msra.mxu2 %v5843_v62  ;;  %1083 = vmatpush.msra.mxu3 %v5859_v63 }
 0x233   :  { %1061 = vmatpush.msra.mxu2 %v5842_v0  ;;  %1084 = vmatpush.msra.mxu3 %v5858_v1 }
 0x234   :  { %843 = vmatmul.f32.vlgmr.msrb.gmra.mxu2 %v7570_v47  ;;  %866 = vmatmul.f32.vlgmr.msrb.gmra.mxu3 %v7572_v48 }
 0x235   :  { %1062 = vmatpush.msra.mxu2 %v5841_v2  ;;  %1085 = vmatpush.msra.mxu3 %v5857_v3 }
 0x237   :  { %1063 = vmatpush.msra.mxu2 %v5840_v4  ;;  %1086 = vmatpush.msra.mxu3 %v5856_v5 }
 0x239   :  { %1064 = vmatpush.msra.mxu2 %v5839_v6  ;;  %1087 = vmatpush.msra.mxu3 %v5855_v7 }
 0x23b   :  { %1065 = vmatpush.msra.mxu2 %v5838_v8  ;;  %1088 = vmatpush.msra.mxu3 %v5854_v9  ;;  %v6236_v8 = vld [vmem:[%s8605_s10] ss:$0 sm:$0xff] }
 0x23c   :  { %846 = vmatmul.f32.gmra.mxu2 %v7585_v56  ;;  %869 = vmatmul.f32.gmra.mxu3 %v7587_v57 }
 0x23d   :  { %1066 = vmatpush.msra.mxu2 %v5837_v10  ;;  %1089 = vmatpush.msra.mxu3 %v5853_v11 }
 0x23f   :  { %1067 = vmatpush.msra.mxu2 %v5836_v12  ;;  %1090 = vmatpush.msra.mxu3 %v5852_v13 }
 0x241   :  { %1068 = vmatpush.msra.mxu2 %v5835_v14  ;;  %1091 = vmatpush.msra.mxu3 %v5851_v15 }
 0x243   :  { %1069 = vmatpush.msra.mxu2 %v5834_v16  ;;  %1092 = vmatpush.msra.mxu3 %v5850_v17 }
 0x244   :  { %1070 = vmatmul.f32.vlgmr.msra.gmra.mxu2 %v7570_v47  ;;  %1093 = vmatmul.f32.vlgmr.msra.gmra.mxu3 %v7572_v48 }
 0x245   :  { %1222 = vmatpush.msrb.mxu2 %v1200_v18  ;;  %1245 = vmatpush.msrb.mxu3 %v1216_v19 }
 0x247   :  { %1223 = vmatpush.msrb.mxu2 %v1199_v20  ;;  %1246 = vmatpush.msrb.mxu3 %v1215_v21 }
 0x249   :  { %1224 = vmatpush.msrb.mxu2 %v1198_v22  ;;  %1247 = vmatpush.msrb.mxu3 %v1214_v23  ;;  %v1116_v23 = vld [vmem:[#allocation5 + $0x178] sm:$0xff] }
 0x24b   :  { %1225 = vmatpush.msrb.mxu2 %v1197_v24  ;;  %1248 = vmatpush.msrb.mxu3 %v1213_v25  ;;  %v1115_v24 = vld [vmem:[#allocation5 + $0x170] sm:$0xff]  ;;  %v1132_v25 = vld [vmem:[#allocation5 + $0x1f8] sm:$0xff] }
 0x24c   :  { %1073 = vmatmul.f32.gmra.mxu2 %v7585_v56  ;;  %1096 = vmatmul.f32.gmra.mxu3 %v7587_v57 }
 0x24d   :  { %1226 = vmatpush.msrb.mxu2 %v1196_v26  ;;  %1249 = vmatpush.msrb.mxu3 %v1212_v27  ;;  %v1114_v26 = vld [vmem:[#allocation5 + $0x168] sm:$0xff]  ;;  %v1131_v27 = vld [vmem:[#allocation5 + $0x1f0] sm:$0xff] }
 0x24f   :  { %1227 = vmatpush.msrb.mxu2 %v1195_v28  ;;  %1250 = vmatpush.msrb.mxu3 %v1211_v29  ;;  %v1130_v28 = vld [vmem:[#allocation5 + $0x1e8] sm:$0xff]  ;;  %v1113_v29 = vld [vmem:[#allocation5 + $0x160] sm:$0xff] }
 0x251   :  { %1228 = vmatpush.msrb.mxu2 %v1194_v30  ;;  %1251 = vmatpush.msrb.mxu3 %v1210_v31  ;;  %v1112_v30 = vld [vmem:[#allocation5 + $0x158] sm:$0xff]  ;;  %v1111_v31 = vld [vmem:[#allocation5 + $0x150] sm:$0xff] }
 0x253   :  { %1229 = vmatpush.msrb.mxu2 %v1193_v32  ;;  %1252 = vmatpush.msrb.mxu3 %v1209_v33  ;;  %v1110_v32 = vld [vmem:[#allocation5 + $0x148] sm:$0xff] }
 0x255   :  { %1230 = vmatpush.msrb.mxu2 %v1192_v34  ;;  %1253 = vmatpush.msrb.mxu3 %v1208_v35 }
 0x257   :  { %1231 = vmatpush.msrb.mxu2 %v1191_v36  ;;  %1254 = vmatpush.msrb.mxu3 %v1207_v37 }
 0x259   :  { %1232 = vmatpush.msrb.mxu2 %v1190_v38  ;;  %1255 = vmatpush.msrb.mxu3 %v1206_v39 }
 0x25b   :  { %1233 = vmatpush.msrb.mxu2 %v1189_v40  ;;  %1256 = vmatpush.msrb.mxu3 %v1205_v41 }
 0x25d   :  { %1234 = vmatpush.msrb.mxu2 %v1188_v42  ;;  %1257 = vmatpush.msrb.mxu3 %v1204_v43  ;;  %v1109_v43 = vld [vmem:[#allocation5 + $0x140] sm:$0xff] }
 0x25f   :  { %1235 = vmatpush.msrb.mxu2 %v1187_v44  ;;  %1258 = vmatpush.msrb.mxu3 %v1203_v45  ;;  %v1129_v44 = vld [vmem:[#allocation5 + $0x1e0] sm:$0xff]  ;;  %v1108_v45 = vld [vmem:[#allocation5 + $0x138] sm:$0xff] }
 0x261   :  { %1236 = vmatpush.msrb.mxu2 %v1186_v46  ;;  %1259 = vmatpush.msrb.mxu3 %v1202_v49  ;;  %v1128_v46 = vld [vmem:[#allocation5 + $0x1d8] sm:$0xff]  ;;  %v1107_v49 = vld [vmem:[#allocation5 + $0x130] sm:$0xff] }
 0x263   :  { %1237 = vmatpush.msrb.mxu2 %v1185_v50  ;;  %1260 = vmatpush.msrb.mxu3 %v1201_v51  ;;  %v1127_v50 = vld [vmem:[#allocation5 + $0x1d0] sm:$0xff]  ;;  %v1106_v51 = vld [vmem:[#allocation5 + $0x128] sm:$0xff] }
 0x264   :  { %1238 = vmatmul.f32.vlgmr.msrb.gmra.mxu2 %v7570_v47  ;;  %1261 = vmatmul.f32.vlgmr.msrb.gmra.mxu3 %v7572_v48 }
 0x26c   :  { %1241 = vmatmul.f32.gmra.mxu2 %v7585_v56  ;;  %1264 = vmatmul.f32.gmra.mxu3 %v7587_v57 }
 0x2a1   :  { %v762_v53 = vpop.f32.mrf.mxu0 }
 0x2a2   :  { %v763_v54 = vadd.f32 %v6234_v52, %v762_v53  ;;  %v785_v55 = vpop.f32.mrf.mxu1  ;;  %v1105_v53 = vld [vmem:[#allocation5 + $0x120] sm:$0xff] }
 0x2a4   :  { %v786_v59 = vadd.f32 %v785_v55, %v763_v54  ;;  %v1125_v54 = vld [vmem:[#allocation5 + $0x1c0] sm:$0xff]  ;;  %v1104_v55 = vld [vmem:[#allocation5 + $0x118] sm:$0xff] }
 0x2a6   :  { %888 = vmatpush.xpose.msra.mxu0 %v786_v59  ;;  %v680_v60 = vpop.f32.mrf.mxu2  ;;  %v703_v61 = vpop.f32.mrf.mxu3  ;;  %v1103_v59 = vld [vmem:[#allocation5 + $0x110] sm:$0xff] }
 0x2a7   :  { %v681_v62 = vadd.f32 %v6235_v58, %v680_v60  ;;  %v1123_v60 = vld [vmem:[#allocation5 + $0x1b0] sm:$0xff] }
 0x2a9   :  { %v704_v63 = vadd.f32 %v703_v61, %v681_v62  ;;  %v765_v0 = vpop.f32.mrf.mxu0  ;;  %v1102_v61 = vld [vmem:[#allocation5 + $0x108] sm:$0xff] }
 0x2aa   :  { %v766_v1 = vadd.f32 %v6234_v52, %v765_v0  ;;  %v1126_v52 = vld [vmem:[#allocation5 + $0x1c8] sm:$0xff]  ;;  %v1121_v0 = vld [vmem:[#allocation5 + $0x1a0] sm:$0xff] }
 0x2ab   :  { %v788_v2 = vpop.f32.mrf.mxu1  ;;  %889 = vmatmul.f32.vlgmr.msra.gmra.mxu0 %v704_v63  ;;  %v1122_v62 = vld [vmem:[#allocation5 + $0x1a8] sm:$0xff]  ;;  %v1101_v63 = vld [vmem:[#allocation5 + $0x100] sm:$0xff] }
 0x2ac   :  { %v789_v3 = vadd.f32 %v788_v2, %v766_v1  ;;  %v1120_v1 = vld [vmem:[#allocation5 + $0x198] sm:$0xff]  ;;  %v1119_v2 = vld [vmem:[#allocation5 + $0x190] sm:$0xff] }
 0x2ae   :  { %908 = vmatpush.xpose.msra.mxu1 %v789_v3  ;;  %v683_v4 = vpop.f32.mrf.mxu2  ;;  %v1118_v3 = vld [vmem:[#allocation5 + $0x188] sm:$0xff] }
 0x2af   :  { %v684_v5 = vadd.f32 %v6235_v58, %v683_v4  ;;  %v706_v6 = vpop.f32.mrf.mxu3  ;;  %v1124_v58 = vld [vmem:[#allocation5 + $0x1b8] sm:$0xff]  ;;  %v1117_v4 = vld [vmem:[#allocation5 + $0x180] sm:$0xff] }
 0x2b1   :  { %v707_v7 = vadd.f32 %v706_v6, %v684_v5  ;;  %v1014_v6 = vld [vmem:[#allocation8 + $0xf0] sm:$0xff] }
 0x2b2   :  { %1457 = vmatpush.msra.mxu2 %v1014_v6 }
 0x2b3   :  { %909 = vmatmul.f32.vlgmr.msra.gmra.mxu1 %v707_v7  ;;  %v1015_v7 = vld [vmem:[#allocation8 + $0xf8] sm:$0xff] }
 0x2b4   :  { %1480 = vmatpush.msra.mxu3 %v1015_v7 }
 0x2b7   :  { %v844_v9 = vpop.f32.mrf.mxu2  ;;  %v867_v10 = vpop.f32.mrf.mxu3 }
 0x2b8   :  { %v845_v11 = vadd.f32 %v6236_v8, %v844_v9  ;;  %v1013_v9 = vld [vmem:[#allocation8 + $0xe8] sm:$0xff] }
 0x2b9   :  { %1481 = vmatpush.msra.mxu3 %v1013_v9 }
 0x2ba   :  { %v868_v12 = vadd.f32 %v867_v10, %v845_v11  ;;  %v1010_v10 = vld [vmem:[#allocation8 + $0xd0] sm:$0xff]  ;;  %v1011_v11 = vld [vmem:[#allocation8 + $0xd8] sm:$0xff] }
 0x2bb   :  { %1482 = vmatpush.msra.mxu3 %v1011_v11 }
 0x2bc   :  { %956 = vmatpush.msrb.mxu0 %v868_v12  ;;  %v1008_v12 = vld [vmem:[#allocation8 + $0xc0] sm:$0xff] }
 0x2be   :  { %1138 = vmatpush.msra.mxu0 %v1116_v23  ;;  %v1000_v23 = vld [vmem:[#allocation8 + $0x80] sm:$0xff] }
 0x2bf   :  { %v847_v13 = vpop.f32.mrf.mxu2  ;;  %v870_v15 = vpop.f32.mrf.mxu3 }
 0x2c0   :  { %v848_v14 = vadd.f32 %v6236_v8, %v847_v13  ;;  %1139 = vmatpush.msra.mxu0 %v1115_v24  ;;  %v1012_v8 = vld [vmem:[#allocation8 + $0xe0] sm:$0xff]  ;;  %v1009_v13 = vld [vmem:[#allocation8 + $0xc8] sm:$0xff] }
 0x2c1   :  { %1458 = vmatpush.msra.mxu2 %v1012_v8  ;;  %1483 = vmatpush.msra.mxu3 %v1009_v13  ;;  %v1001_v24 = vld [vmem:[#allocation8 + $0x88] sm:$0xff] }
 0x2c2   :  { %v871_v16 = vadd.f32 %v870_v15, %v848_v14  ;;  %1140 = vmatpush.msra.mxu0 %v1114_v26 }
 0x2c3   :  { %1459 = vmatpush.msra.mxu2 %v1010_v10 }
 0x2c4   :  { %979 = vmatpush.msrb.mxu1 %v871_v16  ;;  %1141 = vmatpush.msra.mxu0 %v1113_v29  ;;  %v996_v29 = vld [vmem:[#allocation8 + $0x60] sm:$0xff] }
 0x2c5   :  { %1460 = vmatpush.msra.mxu2 %v1008_v12 }
 0x2c6   :  { %1161 = vmatpush.msra.mxu1 %v1132_v25  ;;  %1142 = vmatpush.msra.mxu0 %v1112_v30  ;;  %v997_v30 = vld [vmem:[#allocation8 + $0x68] sm:$0xff] }
 0x2c8   :  { %1162 = vmatpush.msra.mxu1 %v1131_v27  ;;  %1143 = vmatpush.msra.mxu0 %v1111_v31  ;;  %v998_v27 = vld [vmem:[#allocation8 + $0x70] sm:$0xff] }
 0x2c9   :  { %v994_v31 = vld [vmem:[#allocation8 + $0x50] sm:$0xff] }
 0x2ca   :  { %1163 = vmatpush.msra.mxu1 %v1130_v28  ;;  %1144 = vmatpush.msra.mxu0 %v1110_v32  ;;  %v999_v28 = vld [vmem:[#allocation8 + $0x78] sm:$0xff] }
 0x2cb   :  { %v995_v32 = vld [vmem:[#allocation8 + $0x58] sm:$0xff] }
 0x2cc   :  { %1145 = vmatpush.msra.mxu0 %v1109_v43  ;;  %1164 = vmatpush.msra.mxu1 %v1129_v44  ;;  %v1071_v43 = vpop.f32.mrf.mxu2  ;;  %v1094_v44 = vpop.f32.mrf.mxu3 }
 0x2ce   :  { %1146 = vmatpush.msra.mxu0 %v1108_v45  ;;  %1165 = vmatpush.msra.mxu1 %v1128_v46 }
 0x2d0   :  { %1147 = vmatpush.msra.mxu0 %v1107_v49  ;;  %1166 = vmatpush.msra.mxu1 %v1127_v50 }
 0x2d2   :  { %1148 = vmatpush.msra.mxu0 %v1106_v51  ;;  %1167 = vmatpush.msra.mxu1 %v1126_v52  ;;  %v6238_v52 = vld [vmem:[%s8605_s10 + $0x1] ss:$0 sm:$0xff] }
 0x2d4   :  { %1149 = vmatpush.msra.mxu0 %v1105_v53  ;;  %1168 = vmatpush.msra.mxu1 %v1125_v54  ;;  %v1074_v46 = vpop.f32.mrf.mxu2  ;;  %v1097_v49 = vpop.f32.mrf.mxu3  ;;  %v6239_v54 = vld [vmem:[%s8603_s17 + $0x1] ss:$0 sm:$0xff] }
 0x2d6   :  { %1150 = vmatpush.msra.mxu0 %v1104_v55  ;;  %1169 = vmatpush.msra.mxu1 %v1124_v58  ;;  %v6237_v55 = vld [vmem:[%s8604_s21 + $0x1] ss:$0 sm:$0xff] }
 0x2d7   :  { %v1075_v6 = vadd.f32 %v6237_v55, %v1074_v46  ;;  %v1394_v46 = vld [vmem:[#allocation8 + $0x178] sm:$0xff] }
 0x2d8   :  { %1151 = vmatpush.msra.mxu0 %v1103_v59  ;;  %1170 = vmatpush.msra.mxu1 %v1123_v60 }
 0x2d9   :  { %v1098_v11 = vadd.f32 %v1097_v49, %v1075_v6  ;;  %v1391_v49 = vld [vmem:[#allocation8 + $0x160] sm:$0xff] }
 0x2da   :  { %1152 = vmatpush.msra.mxu0 %v1102_v61  ;;  %1171 = vmatpush.msra.mxu1 %v1122_v62  ;;  %v1072_v61 = vadd.f32 %v6237_v55, %v1071_v43  ;;  %v1396_v43 = vld [vmem:[#allocation8 + $0x188] sm:$0xff] }
 0x2dc   :  { %1153 = vmatpush.msra.mxu0 %v1101_v63  ;;  %1172 = vmatpush.msra.mxu1 %v1121_v0 }
 0x2de   :  { %1173 = vmatpush.msra.mxu1 %v1120_v1 }
 0x2e0   :  { %1174 = vmatpush.msra.mxu1 %v1119_v2  ;;  %v1095_v2 = vadd.f32 %v1094_v44, %v1072_v61  ;;  %v1386_v61 = vld [vmem:[#allocation8 + $0x138] sm:$0xff] }
 0x2e2   :  { %1175 = vmatpush.msra.mxu1 %v1118_v3 }
 0x2e4   :  { %1176 = vmatpush.msra.mxu1 %v1117_v4 }
 0x2e7   :  { %v1239_v51 = vpop.f32.mrf.mxu2  ;;  %v1262_v59 = vpop.f32.mrf.mxu3 }
 0x2e8   :  { %v1240_v58 = vadd.f32 %v6238_v52, %v1239_v51  ;;  %v1389_v51 = vld [vmem:[#allocation8 + $0x150] sm:$0xff] }
 0x2ea   :  { %v1263_v0 = vadd.f32 %v1262_v59, %v1240_v58 }
 0x2ef   :  { %v1242_v1 = vpop.f32.mrf.mxu2  ;;  %v1265_v8 = vpop.f32.mrf.mxu3 }
 0x2f0   :  { %v1243_v4 = vadd.f32 %v6238_v52, %v1242_v1  ;;  %v1390_v52 = vld [vmem:[#allocation8 + $0x158] sm:$0xff] }
 0x2f1   :  { %v1382_v1 = vld [vmem:[#allocation8 + $0x118] sm:$0xff] }
 0x2f2   :  { %v1266_v10 = vadd.f32 %v1265_v8, %v1243_v4  ;;  %v1379_v4 = vld [vmem:[#allocation8 + $0x100] sm:$0xff] }
 0x2f3   :  { %v1503_v8 = vld [vmem:[%s8606_s19] sm:$0x3] }
 0x328   :  { %v890_v17 = vpop.f32.mrf.mxu0 }
 0x329   :  { %v913_v18 = vmul.f32 0.088388346, %v890_v17  ;;  %v1006_v17 = vld [vmem:[#allocation8 + $0xb0] sm:$0xff] }
 0x32a   :  { %1461 = vmatpush.msra.mxu2 %v1006_v17 }
 0x32b   :  { %v916_v19 = vsel %vm915_vm1, %v913_v18, -inf }
 0x32c   :  { %917 = vmax.xlane.f32.xlu0 %v916_v19  ;;  %v1004_v19 = vld [vmem:[#allocation8 + $0xa0] sm:$0xff] }
 0x32d   :  { %1462 = vmatpush.msra.mxu2 %v1004_v19 }
 0x330   :  { %v910_v20 = vpop.f32.mrf.mxu1 }
 0x331   :  { %v914_v21 = vmul.f32 0.088388346, %v910_v20  ;;  %v1005_v20 = vld [vmem:[#allocation8 + $0xa8] sm:$0xff] }
 0x333   :  { %v919_v22 = vsel %vm915_vm1, %v914_v21, -inf }
 0x334   :  { %920 = vmax.xlane.f32.xlu0 %v919_v22  ;;  %v1003_v22 = vld [vmem:[#allocation8 + $0x98] sm:$0xff] }
 0x39f   :  { %v918_v33 = vpop.xlane.xlu0 %917 }
 0x3a0   :  { %v922_v34 = vsub.f32 %v913_v18, %v918_v33  ;;  %v1007_v18 = vld [vmem:[#allocation8 + $0xb8] sm:$0xff]  ;;  %v992_v33 = vld [vmem:[#allocation8 + $0x40] sm:$0xff] }
 0x3a1   :  { %1484 = vmatpush.msra.mxu3 %v1007_v18 }
 0x3a2   :  { %v924_v35 = vmul.f32 1.442695, %v922_v34  ;;  %v993_v34 = vld [vmem:[#allocation8 + $0x48] sm:$0xff] }
 0x3a3   :  { %1485 = vmatpush.msra.mxu3 %v1005_v20 }
 0x3a4   :  { %6275 = vpow2.f32 %v924_v35  ;;  %v990_v35 = vld [vmem:[#allocation8 + $0x30] sm:$0xff] }
 0x3a5   :  { %1486 = vmatpush.msra.mxu3 %v1003_v22 }
 0x3a7   :  { %v921_v36 = vpop.xlane.xlu0 %920  ;;  %1487 = vmatpush.msra.mxu3 %v1001_v24 }
 0x3a8   :  { %v923_v37 = vsub.f32 %v914_v21, %v921_v36  ;;  %v1002_v21 = vld [vmem:[#allocation8 + $0x90] sm:$0xff]  ;;  %v991_v36 = vld [vmem:[#allocation8 + $0x38] sm:$0xff] }
 0x3a9   :  { %1463 = vmatpush.msra.mxu2 %v1002_v21  ;;  %1488 = vmatpush.msra.mxu3 %v999_v28  ;;  %v1409_v28 = vld [vmem:[#allocation8 + $0x1f0] sm:$0xff] }
 0x3aa   :  { %v7634_v38 = vpop.eup %6275  ;;  %v926_v39 = vmul.f32 1.442695, %v923_v37  ;;  %v988_v37 = vld [vmem:[#allocation8 + $0x20] sm:$0xff] }
 0x3ab   :  { %v928_v40 = vsel %vm915_vm1, %v7634_v38, 0.0  ;;  %1464 = vmatpush.msra.mxu2 %v1000_v23  ;;  %1489 = vmatpush.msra.mxu3 %v997_v30  ;;  %v1407_v30 = vld [vmem:[#allocation8 + $0x1e0] sm:$0xff] }
 0x3ac   :  { %6277 = vpow2.f32 %v926_v39  ;;  %929 = vadd.xlane.f32.xlu1 %v928_v40  ;;  %v986_v39 = vld [vmem:[#allocation8 + $0x10] sm:$0xff]  ;;  %v987_v40 = vld [vmem:[#allocation8 + $0x18] sm:$0xff] }
 0x3ad   :  { %1465 = vmatpush.msra.mxu2 %v998_v27  ;;  %1490 = vmatpush.msra.mxu3 %v995_v32  ;;  %v1405_v32 = vld [vmem:[#allocation8 + $0x1d0] sm:$0xff] }
 0x3af   :  { %1466 = vmatpush.msra.mxu2 %v996_v29  ;;  %1491 = vmatpush.msra.mxu3 %v993_v34  ;;  %v1410_v29 = vld [vmem:[#allocation8 + $0x1f8] sm:$0xff]  ;;  %v1403_v34 = vld [vmem:[#allocation8 + $0x1c0] sm:$0xff] }
 0x3b1   :  { %1467 = vmatpush.msra.mxu2 %v994_v31  ;;  %1492 = vmatpush.msra.mxu3 %v991_v36  ;;  %v1408_v31 = vld [vmem:[#allocation8 + $0x1e8] sm:$0xff]  ;;  %v1401_v36 = vld [vmem:[#allocation8 + $0x1b0] sm:$0xff] }
 0x3b2   :  { %v7638_v41 = vpop.eup %6277 }
 0x3b3   :  { %v931_v42 = vsel %vm915_vm1, %v7638_v41, 0.0  ;;  %1468 = vmatpush.msra.mxu2 %v992_v33  ;;  %v1406_v33 = vld [vmem:[#allocation8 + $0x1d8] sm:$0xff] }
 0x3b4   :  { %932 = vadd.xlane.f32.xlu1 %v931_v42  ;;  %v985_v42 = vld [vmem:[#allocation8 + $0x8] sm:$0xff] }
 0x3b5   :  { %1469 = vmatpush.msra.mxu2 %v990_v35  ;;  %v1404_v35 = vld [vmem:[#allocation8 + $0x1c8] sm:$0xff] }
 0x3b7   :  { %1470 = vmatpush.msra.mxu2 %v988_v37  ;;  %v1402_v37 = vld [vmem:[#allocation8 + $0x1b8] sm:$0xff] }
 0x3b9   :  { %1471 = vmatpush.msra.mxu2 %v986_v39  ;;  %v1400_v39 = vld [vmem:[#allocation8 + $0x1a8] sm:$0xff] }
 0x41f   :  { %v930_v5 = vpop.xlane.xlu1 %929 }
 0x420   :  { %6279 = vrcp.f32 %v930_v5 }
 0x426   :  { %v6280_v14 = vpop.eup %6279 }
 0x427   :  { %v936_v15 = vmul.f32 %v6280_v14, %v7634_v38  ;;  %v933_v16 = vpop.xlane.xlu1 %932  ;;  %v989_v38 = vld [vmem:[#allocation8 + $0x28] sm:$0xff] }
 0x428   :  { %6281 = vrcp.f32 %v933_v16  ;;  %1493 = vmatpush.msra.mxu3 %v989_v38  ;;  %v1399_v38 = vld [vmem:[#allocation8 + $0x1a0] sm:$0xff] }
 0x429   :  { %5832 = vmatmul.msk.f32.vlgmr.msrb.gmra.mxu0 %vm915_vm1, %v936_v15 }
 0x42a   :  { %1494 = vmatpush.msra.mxu3 %v987_v40  ;;  %v1397_v40 = vld [vmem:[#allocation8 + $0x190] sm:$0xff] }
 0x42c   :  { %1495 = vmatpush.msra.mxu3 %v985_v42  ;;  %v1395_v42 = vld [vmem:[#allocation8 + $0x180] sm:$0xff] }
 0x42e   :  { %v6282_v25 = vpop.eup %6281 }
 0x42f   :  { %v937_v26 = vmul.f32 %v6282_v25, %v7638_v41  ;;  %v984_v41 = vld [vmem:[#allocation8] sm:$0xff] }
 0x430   :  { %1472 = vmatpush.msra.mxu2 %v984_v41  ;;  %v1398_v41 = vld [vmem:[#allocation8 + $0x198] sm:$0xff] }
 0x431   :  { %5833 = vmatmul.msk.f32.vlgmr.msrb.gmra.mxu1 %vm915_vm1, %v937_v26  ;;  %1154 = vmatmul.f32.vlgmr.msra.gmra.mxu0 %v7570_v47 }
 0x439   :  { %1157 = vmatmul.f32.gmra.mxu0 %v7585_v56  ;;  %1177 = vmatmul.f32.vlgmr.msra.gmra.mxu1 %v7572_v48 }
 0x441   :  { %1180 = vmatmul.f32.gmra.mxu1 %v7587_v57 }
 0x4a6   :  { %v958_v45 = vpop.f32.mrf.mxu0 }
 0x4a7   :  { %1473 = vmatmul.f32.vlgmr.msra.gmra.mxu2 %v958_v45  ;;  %1496 = vmatmul.f32.vlgmr.msra.gmra.mxu3 %v958_v45  ;;  %v1393_v45 = vld [vmem:[#allocation8 + $0x170] sm:$0xff] }
 0x4ae   :  { %v981_v50 = vpop.f32.mrf.mxu1  ;;  %v1155_v53 = vpop.f32.mrf.mxu0 }
 0x4af   :  { %1476 = vmatmul.f32.gmra.mxu2 %v981_v50  ;;  %1499 = vmatmul.f32.gmra.mxu3 %v981_v50  ;;  %v1156_v60 = vadd.f32 %v6239_v54, %v1155_v53  ;;  %v1392_v50 = vld [vmem:[#allocation8 + $0x168] sm:$0xff]  ;;  %v1387_v53 = vld [vmem:[#allocation8 + $0x140] sm:$0xff] }
 0x4b6   :  { %v1178_v62 = vpop.f32.mrf.mxu1  ;;  %v1158_v3 = vpop.f32.mrf.mxu0 }
 0x4b7   :  { %v1179_v63 = vadd.f32 %v1178_v62, %v1156_v60  ;;  %v1159_v5 = vadd.f32 %v6239_v54, %v1158_v3  ;;  %v1388_v54 = vld [vmem:[#allocation8 + $0x148] sm:$0xff]  ;;  %v1385_v60 = vld [vmem:[#allocation8 + $0x130] sm:$0xff]  ;;  %v1383_v62 = vld [vmem:[#allocation8 + $0x120] sm:$0xff] }
 0x4b9   :  { %1283 = vmatpush.xpose.msrb.mxu0 %v1179_v63  ;;  %v1384_v63 = vld [vmem:[#allocation8 + $0x128] sm:$0xff] }
 0x4bc   :  { %1284 = vmatmul.f32.vlgmr.msrb.gmra.mxu0 %v1095_v2 }
 0x4bd   :  { %1350 = vmatpush.msra.mxu0 %v1263_v0  ;;  %v1381_v0 = vld [vmem:[#allocation8 + $0x110] sm:$0xff] }
 0x4be   :  { %v1181_v7 = vpop.f32.mrf.mxu1 }
 0x4bf   :  { %v1182_v9 = vadd.f32 %v1181_v7, %v1159_v5  ;;  %1411 = vmatpush.msrb.mxu0 %v1409_v28  ;;  %v1380_v5 = vld [vmem:[#allocation8 + $0x108] sm:$0xff] }
 0x4c1   :  { %1303 = vmatpush.xpose.msrb.mxu1 %v1182_v9  ;;  %1412 = vmatpush.msrb.mxu0 %v1407_v30 }
 0x4c3   :  { %1413 = vmatpush.msrb.mxu0 %v1405_v32 }
 0x4c4   :  { %1304 = vmatmul.f32.vlgmr.msrb.gmra.mxu1 %v1098_v11  ;;  %v1505_v11 = vperm.slane %v1503_v8, 0 }
 0x4c5   :  { %1373 = vmatpush.msra.mxu1 %v1266_v10  ;;  %1414 = vmatpush.msrb.mxu0 %v1403_v34 }
 0x4c7   :  { %1434 = vmatpush.msrb.mxu1 %v1410_v29  ;;  %1415 = vmatpush.msrb.mxu0 %v1401_v36  ;;  %v1624_v36 = vld [vmem:[#allocation10 + $0xf0] sm:$0xff] }
 0x4c9   :  { %1435 = vmatpush.msrb.mxu1 %v1408_v31  ;;  %1416 = vmatpush.msrb.mxu0 %v1399_v38  ;;  %v1625_v38 = vld [vmem:[#allocation10 + $0xf8] sm:$0xff] }
 0x4ca   :  { %1710 = vmatpush.msrb.mxu2 %v1625_v38  ;;  %v1602_v38 = vld [vmem:[#allocation10 + $0x40] sm:$0xff] }
 0x4cb   :  { %1436 = vmatpush.msrb.mxu1 %v1406_v33  ;;  %1417 = vmatpush.msrb.mxu0 %v1397_v40  ;;  %v7082_v33 = vmov 256.0   ;;  %v1657_v40 = vld [vmem:[#allocation10 + $0x1f8] sm:$0xff] }
 0x4cc   :  { %1733 = vmatpush.msrb.mxu3 %v1657_v40  ;;  %v1603_v40 = vld [vmem:[#allocation10 + $0x48] sm:$0xff] }
 0x4cd   :  { %1437 = vmatpush.msrb.mxu1 %v1404_v35  ;;  %1418 = vmatpush.msrb.mxu0 %v1395_v42  ;;  %v1654_v42 = vld [vmem:[#allocation10 + $0x1e0] sm:$0xff] }
 0x4cf   :  { %1438 = vmatpush.msrb.mxu1 %v1402_v37  ;;  %1419 = vmatpush.msrb.mxu0 %v1393_v45  ;;  %v1656_v37 = vld [vmem:[#allocation10 + $0x1f0] sm:$0xff] }
 0x4d1   :  { %1439 = vmatpush.msrb.mxu1 %v1400_v39  ;;  %1420 = vmatpush.msrb.mxu0 %v1391_v49 }
 0x4d3   :  { %1440 = vmatpush.msrb.mxu1 %v1398_v41  ;;  %1421 = vmatpush.msrb.mxu0 %v1389_v51  ;;  %v1622_v41 = vld [vmem:[#allocation10 + $0xe0] sm:$0xff] }
 0x4d5   :  { %1441 = vmatpush.msrb.mxu1 %v1396_v43  ;;  %1422 = vmatpush.msrb.mxu0 %v1387_v53  ;;  %v1623_v43 = vld [vmem:[#allocation10 + $0xe8] sm:$0xff] }
 0x4d6   :  { %1711 = vmatpush.msrb.mxu2 %v1623_v43  ;;  %v1632_v43 = vld [vmem:[#allocation10 + $0x130] sm:$0xff] }
 0x4d7   :  { %1442 = vmatpush.msrb.mxu1 %v1394_v46  ;;  %1423 = vmatpush.msrb.mxu0 %v1385_v60 }
 0x4d9   :  { %1443 = vmatpush.msrb.mxu1 %v1392_v50  ;;  %1424 = vmatpush.msrb.mxu0 %v1383_v62 }
 0x4db   :  { %1444 = vmatpush.msrb.mxu1 %v1390_v52  ;;  %1425 = vmatpush.msrb.mxu0 %v1381_v0 }
 0x4dd   :  { %1445 = vmatpush.msrb.mxu1 %v1388_v54  ;;  %1426 = vmatpush.msrb.mxu0 %v1379_v4  ;;  %v1621_v4 = vld [vmem:[#allocation10 + $0xd8] sm:$0xff] }
 0x4de   :  { %1712 = vmatpush.msrb.mxu2 %v1621_v4 }
 0x4df   :  { %1446 = vmatpush.msrb.mxu1 %v1386_v61 }
 0x4e1   :  { %1447 = vmatpush.msrb.mxu1 %v1384_v63 }
 0x4e3   :  { %1448 = vmatpush.msrb.mxu1 %v1382_v1 }
 0x4e5   :  { %1449 = vmatpush.msrb.mxu1 %v1380_v5  ;;  %v1653_v5 = vld [vmem:[#allocation10 + $0x1d8] sm:$0xff] }
 0x52a   :  { %v1474_v9 = vpop.f32.mrf.mxu2  ;;  %v1497_v10 = vpop.f32.mrf.mxu3 }
 0x539   :  { %v1285_v12 = vpop.f32.mrf.mxu0 }
 0x53a   :  { %v1308_v13 = vmul.f32 0.088388346, %v1285_v12  ;;  %v1506_v12 = vperm.slane %v1503_v8, 1  ;;  %v1619_v8 = vld [vmem:[#allocation10 + $0xc8] sm:$0xff] }
 0x53b   :  { %1713 = vmatpush.msrb.mxu2 %v1619_v8  ;;  %v1788_v8 = vld [vmem:[#allocation11 + $0xe0] sm:$0xff] }
 0x53c   :  { %v1310_v14 = vsel %vm915_vm1, %v1308_v13, -inf }
 0x53d   :  { %1311 = vmax.xlane.f32.xlu2 %v1310_v14 }
 0x541   :  { %v1305_v15 = vpop.f32.mrf.mxu1 }
 0x542   :  { %v1309_v16 = vmul.f32 0.088388346, %v1305_v15 }
 0x544   :  { %v1313_v17 = vsel %vm915_vm1, %v1309_v16, -inf }
 0x545   :  { %1314 = vmax.xlane.f32.xlu2 %v1313_v17 }
 0x5b0   :  { %v1312_v18 = vpop.xlane.xlu2 %1311 }
 0x5b1   :  { %v1316_v19 = vsub.f32 %v1308_v13, %v1312_v18 }
 0x5b3   :  { %v1318_v20 = vmul.f32 1.442695, %v1316_v19 }
 0x5b5   :  { %6283 = vpow2.f32 %v1318_v20 }
 0x5b8   :  { %v1315_v21 = vpop.xlane.xlu2 %1314 }
 0x5b9   :  { %v1317_v22 = vsub.f32 %v1309_v16, %v1315_v21  ;;  %v1477_v21 = vpop.f32.mrf.mxu2 }
 0x5bb   :  { %v6284_v23 = vpop.eup %6283  ;;  %v1320_v24 = vmul.f32 1.442695, %v1317_v22  ;;  %v1500_v22 = vpop.f32.mrf.mxu3 }
 0x5bc   :  { %v1322_v25 = vsel %vm915_vm1, %v6284_v23, 0.0 }
 0x5bd   :  { %6285 = vpow2.f32 %v1320_v24  ;;  %1323 = vadd.xlane.f32.xlu0 %v1322_v25 }
 0x5c3   :  { %v7656_v26 = vpop.eup %6285 }
 0x5c4   :  { %v1325_v27 = vsel %vm915_vm1, %v7656_v26, 0.0 }
 0x5c5   :  { %1326 = vadd.xlane.f32.xlu1 %v1325_v27 }
 0x630   :  { %v1324_v44 = vpop.xlane.xlu0 %1323 }
 0x631   :  { %6287 = vrcp.f32 %v1324_v44  ;;  %v1655_v44 = vld [vmem:[#allocation10 + $0x1e8] sm:$0xff] }
 0x632   :  { %1734 = vmatpush.msrb.mxu3 %v1655_v44  ;;  %v1601_v44 = vld [vmem:[#allocation10 + $0x38] sm:$0xff] }
 0x634   :  { %1735 = vmatpush.msrb.mxu3 %v1653_v5 }
 0x637   :  { %v6288_v55 = vpop.eup %6287 }
 0x638   :  { %v1330_v58 = vmul.f32 %v6288_v55, %v6284_v23  ;;  %v1327_v59 = vpop.xlane.xlu1 %1326 }
 0x639   :  { %6289 = vrcp.f32 %v1327_v59 }
 0x63a   :  { %5869 = vmatmul.msk.f32.vlgmr.msra.gmra.mxu0 %vm915_vm1, %v1330_v58  ;;  %6291 = vrcp.f32 %v7082_v33  ;;  %v1639_v33 = vld [vmem:[#allocation10 + $0x168] sm:$0xff] }
 0x63b   :  { %1664 = vmatpush.msra.mxu0 %v1624_v36  ;;  %v1605_v36 = vld [vmem:[#allocation10 + $0x58] sm:$0xff] }
 0x63d   :  { %1665 = vmatpush.msra.mxu0 %v1622_v41  ;;  %v1635_v41 = vld [vmem:[#allocation10 + $0x148] sm:$0xff] }
 0x63f   :  { %v6290_v2 = vpop.eup %6289 }
 0x640   :  { %v1331_v3 = vmul.f32 %v6290_v2, %v7656_v26  ;;  %v6292_v34 = vpop.eup %6291  ;;  %v1620_v2 = vld [vmem:[#allocation10 + $0xd0] sm:$0xff] }
 0x641   :  { %v1526_v35 = vmul.f32 256.0, %v6292_v34  ;;  %vm1530_vm2 = vweird.f32 %v6292_v34  ;;  %1666 = vmatpush.msra.mxu0 %v1620_v2  ;;  %v1627_v2 = vld [vmem:[#allocation10 + $0x108] sm:$0xff] }
 0x642   :  { %5870 = vmatmul.msk.f32.vlgmr.msra.gmra.mxu1 %vm915_vm1, %v1331_v3  ;;  %v1652_v3 = vld [vmem:[#allocation10 + $0x1d0] sm:$0xff] }
 0x643   :  { %v1527_v39 = vsub.f32 1.0, %v1526_v35  ;;  %1687 = vmatpush.msra.mxu1 %v1656_v37  ;;  %v1636_v35 = vld [vmem:[#allocation10 + $0x150] sm:$0xff]  ;;  %v1637_v37 = vld [vmem:[#allocation10 + $0x158] sm:$0xff] }
 0x645   :  { %1688 = vmatpush.msra.mxu1 %v1654_v42  ;;  %v1528_v45 = vmul.f32 %v6292_v34, %v1527_v39  ;;  %v1634_v39 = vld [vmem:[#allocation10 + $0x140] sm:$0xff]  ;;  %v1600_v42 = vld [vmem:[#allocation10 + $0x30] sm:$0xff] }
 0x647   :  { %v1529_v46 = vadd.f32 %v6292_v34, %v1528_v45  ;;  %1689 = vmatpush.msra.mxu1 %v1652_v3  ;;  %v1633_v45 = vld [vmem:[#allocation10 + $0x138] sm:$0xff] }
 0x649   :  { %v7668_v49 = vsel %vm1530_vm2, %v6292_v34, %v1529_v46  ;;  %v1604_v34 = vld [vmem:[#allocation10 + $0x50] sm:$0xff]  ;;  %v1598_v46 = vld [vmem:[#allocation10 + $0x20] sm:$0xff] }
 0x6b7   :  { %v1352_v6 = vpop.f32.mrf.mxu0 }
 0x6b8   :  { %1427 = vmatmul.f32.vlgmr.msrb.gmra.mxu0 %v1352_v6  ;;  %1450 = vmatmul.f32.vlgmr.msrb.gmra.mxu1 %v1352_v6  ;;  %v1618_v6 = vld [vmem:[#allocation10 + $0xc0] sm:$0xff] }
 0x6b9   :  { %1667 = vmatpush.msra.mxu0 %v1618_v6  ;;  %v1790_v6 = vld [vmem:[#allocation11 + $0xf0] sm:$0xff] }
 0x6bf   :  { %v1375_v7 = vpop.f32.mrf.mxu1 }
 0x6c0   :  { %1430 = vmatmul.f32.gmra.mxu0 %v1375_v7  ;;  %1453 = vmatmul.f32.gmra.mxu1 %v1375_v7  ;;  %v1650_v7 = vld [vmem:[#allocation10 + $0x1c0] sm:$0xff] }
 0x6c1   :  { %1690 = vmatpush.msra.mxu1 %v1650_v7  ;;  %v1791_v7 = vld [vmem:[#allocation11 + $0xf8] sm:$0xff] }
 0x735   :  { %v1428_v13 = vpop.f32.mrf.mxu0  ;;  %v1451_v14 = vpop.f32.mrf.mxu1 }
 0x736   :  { %v1475_v15 = vadd.f32 %v1474_v9, %v1428_v13  ;;  %v1498_v16 = vadd.f32 %v1497_v10, %v1451_v14  ;;  %v1651_v9 = vld [vmem:[#allocation10 + $0x1c8] sm:$0xff]  ;;  %v1616_v10 = vld [vmem:[#allocation10 + $0xb0] sm:$0xff]  ;;  %v1649_v13 = vld [vmem:[#allocation10 + $0x1b8] sm:$0xff] }
 0x737   :  { %1736 = vmatpush.msrb.mxu3 %v1651_v9  ;;  %1668 = vmatpush.msra.mxu0 %v1616_v10  ;;  %v1614_v14 = vld [vmem:[#allocation10 + $0xa0] sm:$0xff]  ;;  %v1789_v9 = vld [vmem:[#allocation11 + $0xe8] sm:$0xff] }
 0x738   :  { %v1509_v17 = vadd.f32 %v1505_v11, %v1475_v15  ;;  %v1510_v18 = vadd.f32 %v1506_v12, %v1498_v16  ;;  %v1646_v15 = vld [vmem:[#allocation10 + $0x1a0] sm:$0xff]  ;;  %v1615_v16 = vld [vmem:[#allocation10 + $0xa8] sm:$0xff] }
 0x739   :  { %1737 = vmatpush.msrb.mxu3 %v1649_v13  ;;  %1669 = vmatpush.msra.mxu0 %v1614_v14  ;;  %v1822_v13 = vld [vmem:[#allocation11 + $0x1f0] sm:$0xff] }
 0x73a   :  { %v1513_v19 = vadd.f32 %v1509_v17, %v7570_v47  ;;  %v1514_v20 = vadd.f32 %v1510_v18, %v7572_v48  ;;  %v1647_v17 = vld [vmem:[#allocation10 + $0x1a8] sm:$0xff]  ;;  %v1612_v18 = vld [vmem:[#allocation10 + $0x90] sm:$0xff] }
 0x73b   :  { %1738 = vmatpush.msrb.mxu3 %v1647_v17  ;;  %1670 = vmatpush.msra.mxu0 %v1612_v18  ;;  %v1784_v17 = vld [vmem:[#allocation11 + $0xc0] sm:$0xff]  ;;  %v1785_v18 = vld [vmem:[#allocation11 + $0xc8] sm:$0xff] }
 0x73c   :  { %v1519_v23 = vadd.f32 %v1514_v20, %v1513_v19 }
 0x73d   :  { %v1431_v24 = vpop.f32.mrf.mxu0  ;;  %v1454_v25 = vpop.f32.mrf.mxu1 }
 0x73e   :  { %v1478_v26 = vadd.f32 %v1477_v21, %v1431_v24  ;;  %v1501_v27 = vadd.f32 %v1500_v22, %v1454_v25  ;;  %1520 = vadd.xlane.f32.xlu2 %v1519_v23  ;;  %v1645_v21 = vld [vmem:[#allocation10 + $0x198] sm:$0xff]  ;;  %v1610_v22 = vld [vmem:[#allocation10 + $0x80] sm:$0xff]  ;;  %v1611_v24 = vld [vmem:[#allocation10 + $0x88] sm:$0xff] }
 0x73f   :  { %1739 = vmatpush.msrb.mxu3 %v1645_v21  ;;  %v1642_v23 = vld [vmem:[#allocation10 + $0x180] sm:$0xff]  ;;  %1671 = vmatpush.msra.mxu0 %v1610_v22  ;;  %v1643_v25 = vld [vmem:[#allocation10 + $0x188] sm:$0xff]  ;;  %v1818_v22 = vld [vmem:[#allocation11 + $0x1d0] sm:$0xff] }
 0x740   :  { %v1511_v28 = vadd.f32 %v1505_v11, %v1478_v26  ;;  %v1512_v29 = vadd.f32 %v1506_v12, %v1501_v27  ;;  %v1648_v11 = vld [vmem:[#allocation10 + $0x1b0] sm:$0xff]  ;;  %v1617_v12 = vld [vmem:[#allocation10 + $0xb8] sm:$0xff] }
 0x741   :  { %1691 = vmatpush.msra.mxu1 %v1648_v11  ;;  %1714 = vmatpush.msrb.mxu2 %v1617_v12  ;;  %v1608_v26 = vld [vmem:[#allocation10 + $0x70] sm:$0xff]  ;;  %v1787_v12 = vld [vmem:[#allocation11 + $0xd8] sm:$0xff] }
 0x742   :  { %v1515_v30 = vadd.f32 %v1511_v28, %v7585_v56  ;;  %v1516_v31 = vadd.f32 %v1512_v29, %v7587_v57  ;;  %1740 = vmatpush.msrb.mxu3 %v1643_v25  ;;  %v1640_v27 = vld [vmem:[#allocation10 + $0x170] sm:$0xff]  ;;  %v1609_v28 = vld [vmem:[#allocation10 + $0x78] sm:$0xff]  ;;  %1672 = vmatpush.msra.mxu0 %v1608_v26 }
 0x743   :  { %1692 = vmatpush.msra.mxu1 %v1646_v15  ;;  %1715 = vmatpush.msrb.mxu2 %v1615_v16  ;;  %v1641_v29 = vld [vmem:[#allocation10 + $0x178] sm:$0xff]  ;;  %v1786_v11 = vld [vmem:[#allocation11 + $0xd0] sm:$0xff]  ;;  %v1820_v16 = vld [vmem:[#allocation11 + $0x1e0] sm:$0xff] }
 0x744   :  { %v1522_v32 = vadd.f32 %v1516_v31, %v1515_v30  ;;  %1741 = vmatpush.msrb.mxu3 %v1641_v29  ;;  %v1823_v15 = vld [vmem:[#allocation11 + $0x1f8] sm:$0xff]  ;;  %v1782_v25 = vld [vmem:[#allocation11 + $0xb0] sm:$0xff] }
 0x745   :  { %v1783_v26 = vld [vmem:[#allocation11 + $0xb8] sm:$0xff] }
 0x746   :  { %1523 = vadd.xlane.f32.xlu0 %v1522_v32  ;;  %v1607_v32 = vld [vmem:[#allocation10 + $0x68] sm:$0xff]  ;;  %1742 = vmatpush.msrb.mxu3 %v1639_v33  ;;  %v1815_v33 = vld [vmem:[#allocation11 + $0x1b8] sm:$0xff] }
 0x748   :  { %1743 = vmatpush.msrb.mxu3 %v1637_v37  ;;  %v1812_v37 = vld [vmem:[#allocation11 + $0x1a0] sm:$0xff] }
 0x74a   :  { %1744 = vmatpush.msrb.mxu3 %v1635_v41  ;;  %v1776_v41 = vld [vmem:[#allocation11 + $0x80] sm:$0xff] }
 0x74c   :  { %1745 = vmatpush.msrb.mxu3 %v1633_v45  ;;  %v1811_v45 = vld [vmem:[#allocation11 + $0x198] sm:$0xff] }
 0x7b1   :  { %v1521_v50 = vpop.xlane.xlu2 %1520 }
 0x7b2   :  { %v1532_v51 = vmul.f32 %v7668_v49, %v1521_v50  ;;  %v1630_v50 = vld [vmem:[#allocation10 + $0x120] sm:$0xff] }
 0x7b4   :  { %v7671_v52 = vsub.f32 %v1513_v19, %v1532_v51  ;;  %v7673_v53 = vsub.f32 %v1514_v20, %v1532_v51  ;;  %v1644_v19 = vld [vmem:[#allocation10 + $0x190] sm:$0xff]  ;;  %v1613_v20 = vld [vmem:[#allocation10 + $0x98] sm:$0xff]  ;;  %v1599_v51 = vld [vmem:[#allocation10 + $0x28] sm:$0xff] }
 0x7b5   :  { %1693 = vmatpush.msra.mxu1 %v1644_v19  ;;  %1716 = vmatpush.msrb.mxu2 %v1613_v20  ;;  %v1821_v19 = vld [vmem:[#allocation11 + $0x1e8] sm:$0xff] }
 0x7b6   :  { %v1538_v54 = vmul.f32 %v7671_v52, %v7671_v52  ;;  %v1539_v55 = vmul.f32 %v7673_v53, %v7673_v53 }
 0x7b7   :  { %1694 = vmatpush.msra.mxu1 %v1642_v23  ;;  %1717 = vmatpush.msrb.mxu2 %v1611_v24  ;;  %v1819_v23 = vld [vmem:[#allocation11 + $0x1d8] sm:$0xff] }
 0x7b8   :  { %v1542_v58 = vadd.f32 %v1539_v55, %v1538_v54  ;;  %v1631_v54 = vld [vmem:[#allocation10 + $0x128] sm:$0xff]  ;;  %v1596_v55 = vld [vmem:[#allocation10 + $0x10] sm:$0xff] }
 0x7b9   :  { %v1524_v59 = vpop.xlane.xlu0 %1523  ;;  %1695 = vmatpush.msra.mxu1 %v1640_v27  ;;  %1718 = vmatpush.msrb.mxu2 %v1609_v28  ;;  %v1816_v27 = vld [vmem:[#allocation11 + $0x1c0] sm:$0xff]  ;;  %v1817_v28 = vld [vmem:[#allocation11 + $0x1c8] sm:$0xff] }
 0x7ba   :  { %v1533_v60 = vmul.f32 %v7668_v49, %v1524_v59  ;;  %1543 = vadd.xlane.f32.xlu1 %v1542_v58  ;;  %1746 = vmatpush.msrb.mxu3 %v1631_v54  ;;  %v1628_v58 = vld [vmem:[#allocation10 + $0x110] sm:$0xff]  ;;  %v1597_v59 = vld [vmem:[#allocation10 + $0x18] sm:$0xff] }
 0x7bb   :  { %1719 = vmatpush.msrb.mxu2 %v1607_v32  ;;  %v1814_v32 = vld [vmem:[#allocation11 + $0x1b0] sm:$0xff] }
 0x7bc   :  { %v7680_v61 = vsub.f32 %v1515_v30, %v1533_v60  ;;  %v7682_v62 = vsub.f32 %v1516_v31, %v1533_v60  ;;  %v1606_v30 = vld [vmem:[#allocation10 + $0x60] sm:$0xff]  ;;  %v1629_v60 = vld [vmem:[#allocation10 + $0x118] sm:$0xff]  ;;  %v1774_v54 = vld [vmem:[#allocation11 + $0x70] sm:$0xff] }
 0x7bd   :  { %v1638_v31 = vld [vmem:[#allocation10 + $0x160] sm:$0xff]  ;;  %1673 = vmatpush.msra.mxu0 %v1606_v30  ;;  %1720 = vmatpush.msrb.mxu2 %v1605_v36  ;;  %v1779_v36 = vld [vmem:[#allocation11 + $0x98] sm:$0xff] }
 0x7be   :  { %v1540_v63 = vmul.f32 %v7680_v61, %v7680_v61  ;;  %v1541_v0 = vmul.f32 %v7682_v62, %v7682_v62  ;;  %1696 = vmatpush.msra.mxu1 %v1638_v31  ;;  %1747 = vmatpush.msrb.mxu3 %v1629_v60  ;;  %v1780_v30 = vld [vmem:[#allocation11 + $0xa0] sm:$0xff]  ;;  %v1781_v31 = vld [vmem:[#allocation11 + $0xa8] sm:$0xff] }
 0x7bf   :  { %1674 = vmatpush.msra.mxu0 %v1604_v34  ;;  %1721 = vmatpush.msrb.mxu2 %v1603_v40  ;;  %v7698_v40 = vld [vmem:[%s8607_s15] sm:$0x3] }
 0x7c0   :  { %v1545_v1 = vadd.f32 %v1541_v0, %v1540_v63  ;;  %1697 = vmatpush.msra.mxu1 %v1636_v35  ;;  %v1594_v63 = vld [vmem:[#allocation10] sm:$0xff]  ;;  %1748 = vmatpush.msrb.mxu3 %v1627_v2  ;;  %v1778_v35 = vld [vmem:[#allocation11 + $0x90] sm:$0xff] }
 0x7c1   :  { %1675 = vmatpush.msra.mxu0 %v1602_v38  ;;  %1722 = vmatpush.msrb.mxu2 %v1601_v44  ;;  %v1626_v0 = vld [vmem:[#allocation10 + $0x100] sm:$0xff]  ;;  %v1813_v38 = vld [vmem:[#allocation11 + $0x1a8] sm:$0xff]  ;;  %v1810_v44 = vld [vmem:[#allocation11 + $0x190] sm:$0xff] }
 0x7c2   :  { %1546 = vadd.xlane.f32.xlu2 %v1545_v1  ;;  %1698 = vmatpush.msra.mxu1 %v1634_v39  ;;  %v1595_v1 = vld [vmem:[#allocation10 + $0x8] sm:$0xff]  ;;  %v1808_v60 = vld [vmem:[#allocation11 + $0x180] sm:$0xff] }
 0x7c3   :  { %1676 = vmatpush.msra.mxu0 %v1600_v42  ;;  %1723 = vmatpush.msrb.mxu2 %v1599_v51  ;;  %v1777_v42 = vld [vmem:[#allocation11 + $0x88] sm:$0xff]  ;;  %v1518_v51 = vld [vmem:[%s8608_s27] sm:$0x3] }
 0x7c4   :  { %1699 = vmatpush.msra.mxu1 %v1632_v43  ;;  %1899 = vmatpush.msra.mxu3 %v1823_v15  ;;  %v1772_v2 = vld [vmem:[#allocation11 + $0x60] sm:$0xff] }
 0x7c5   :  { %1677 = vmatpush.msra.mxu0 %v1598_v46  ;;  %1724 = vmatpush.msrb.mxu2 %v1597_v59  ;;  %v1578_v59 = vperm.slane %v7698_v40, 1 }
 0x7c6   :  { %1700 = vmatpush.msra.mxu1 %v1630_v50  ;;  %1900 = vmatpush.msra.mxu3 %v1821_v19 }
 0x7c7   :  { %1678 = vmatpush.msra.mxu0 %v1596_v55  ;;  %1725 = vmatpush.msrb.mxu2 %v1595_v1  ;;  %v1775_v55 = vld [vmem:[#allocation11 + $0x78] sm:$0xff] }
 0x7c8   :  { %1701 = vmatpush.msra.mxu1 %v1628_v58  ;;  %1901 = vmatpush.msra.mxu3 %v1819_v23  ;;  %v1577_v58 = vperm.slane %v7698_v40, 0  ;;  %v1796_v40 = vld [vmem:[#allocation11 + $0x120] sm:$0xff] }
 0x7c9   :  { %1679 = vmatpush.msra.mxu0 %v1594_v63  ;;  %1876 = vmatpush.msra.mxu2 %v1791_v7  ;;  %v1809_v63 = vld [vmem:[#allocation11 + $0x188] sm:$0xff]  ;;  %v1587_v7 = vperm.slane %v1518_v51, 1 }
 0x7ca   :  { %1702 = vmatpush.msra.mxu1 %v1626_v0  ;;  %1902 = vmatpush.msra.mxu3 %v1817_v28  ;;  %v1764_v28 = vld [vmem:[#allocation11 + $0x20] sm:$0xff] }
 0x7cb   :  { %1830 = vmatpush.msrb.mxu0 %v1790_v6  ;;  %1877 = vmatpush.msra.mxu2 %v1789_v9  ;;  %v1586_v6 = vperm.slane %v1518_v51, 0  ;;  %v1807_v9 = vld [vmem:[#allocation11 + $0x178] sm:$0xff] }
 0x7cc   :  { %1853 = vmatpush.msrb.mxu1 %v1822_v13  ;;  %1903 = vmatpush.msra.mxu3 %v1815_v33  ;;  %v1800_v33 = vld [vmem:[#allocation11 + $0x140] sm:$0xff] }
 0x7cd   :  { %1831 = vmatpush.msrb.mxu0 %v1788_v8  ;;  %1878 = vmatpush.msra.mxu2 %v1787_v12  ;;  %v1806_v8 = vld [vmem:[#allocation11 + $0x170] sm:$0xff]  ;;  %v1771_v12 = vld [vmem:[#allocation11 + $0x58] sm:$0xff] }
 0x7ce   :  { %1854 = vmatpush.msrb.mxu1 %v1820_v16  ;;  %1904 = vmatpush.msra.mxu3 %v1813_v38  ;;  %v1761_v38 = vld [vmem:[#allocation11 + $0x8] sm:$0xff] }
 0x7cf   :  { %1832 = vmatpush.msrb.mxu0 %v1786_v11  ;;  %1879 = vmatpush.msra.mxu2 %v1785_v18  ;;  %v1770_v11 = vld [vmem:[#allocation11 + $0x50] sm:$0xff]  ;;  %v1769_v18 = vld [vmem:[#allocation11 + $0x48] sm:$0xff] }
 0x7d0   :  { %1855 = vmatpush.msrb.mxu1 %v1818_v22  ;;  %1905 = vmatpush.msra.mxu3 %v1811_v45  ;;  %v1793_v45 = vld [vmem:[#allocation11 + $0x108] sm:$0xff] }
 0x7d1   :  { %1833 = vmatpush.msrb.mxu0 %v1784_v17  ;;  %1880 = vmatpush.msra.mxu2 %v1783_v26  ;;  %v1768_v17 = vld [vmem:[#allocation11 + $0x40] sm:$0xff]  ;;  %v1766_v26 = vld [vmem:[#allocation11 + $0x30] sm:$0xff] }
 0x7d2   :  { %1856 = vmatpush.msrb.mxu1 %v1816_v27  ;;  %1906 = vmatpush.msra.mxu3 %v1809_v63  ;;  %v1767_v27 = vld [vmem:[#allocation11 + $0x38] sm:$0xff] }
 0x7d3   :  { %1834 = vmatpush.msrb.mxu0 %v1782_v25  ;;  %1881 = vmatpush.msra.mxu2 %v1781_v31  ;;  %v1803_v31 = vld [vmem:[#allocation11 + $0x158] sm:$0xff] }
 0x7d4   :  { %1857 = vmatpush.msrb.mxu1 %v1814_v32  ;;  %1907 = vmatpush.msra.mxu3 %v1807_v9  ;;  %v1762_v32 = vld [vmem:[#allocation11 + $0x10] sm:$0xff] }
 0x7d5   :  { %1835 = vmatpush.msrb.mxu0 %v1780_v30  ;;  %1882 = vmatpush.msra.mxu2 %v1779_v36  ;;  %v1765_v30 = vld [vmem:[#allocation11 + $0x28] sm:$0xff]  ;;  %v1760_v36 = vld [vmem:[#allocation11] sm:$0xff] }
 0x7d6   :  { %1858 = vmatpush.msrb.mxu1 %v1812_v37  ;;  %v1798_v37 = vld [vmem:[#allocation11 + $0x130] sm:$0xff] }
 0x7d7   :  { %1836 = vmatpush.msrb.mxu0 %v1778_v35  ;;  %1883 = vmatpush.msra.mxu2 %v1777_v42  ;;  %v1801_v35 = vld [vmem:[#allocation11 + $0x148] sm:$0xff]  ;;  %v1794_v42 = vld [vmem:[#allocation11 + $0x110] sm:$0xff] }
 0x7d8   :  { %1859 = vmatpush.msrb.mxu1 %v1810_v44  ;;  %v1792_v44 = vld [vmem:[#allocation11 + $0x100] sm:$0xff] }
 0x7d9   :  { %1837 = vmatpush.msrb.mxu0 %v1776_v41  ;;  %1884 = vmatpush.msra.mxu2 %v1775_v55  ;;  %v1797_v41 = vld [vmem:[#allocation11 + $0x128] sm:$0xff] }
 0x7da   :  { %1860 = vmatpush.msrb.mxu1 %v1808_v60 }
 0x7db   :  { %1838 = vmatpush.msrb.mxu0 %v1774_v54 }
 0x7dc   :  { %1861 = vmatpush.msrb.mxu1 %v1806_v8 }
 0x7dd   :  { %1839 = vmatpush.msrb.mxu0 %v1772_v2 }
 0x7df   :  { %1840 = vmatpush.msrb.mxu0 %v1770_v11 }
 0x7e1   :  { %1841 = vmatpush.msrb.mxu0 %v1768_v17 }
 0x7e3   :  { %1842 = vmatpush.msrb.mxu0 %v1766_v26 }
 0x7e5   :  { %1843 = vmatpush.msrb.mxu0 %v1764_v28 }
 0x7e7   :  { %1844 = vmatpush.msrb.mxu0 %v1762_v32 }
 0x7e9   :  { %1845 = vmatpush.msrb.mxu0 %v1760_v36 }
 0x82d   :  { %v1544_v3 = vpop.xlane.xlu1 %1543 }
 0x82e   :  { %v1548_v4 = vmul.f32 %v1544_v3, %v7668_v49  ;;  %v1773_v3 = vld [vmem:[#allocation11 + $0x68] sm:$0xff] }
 0x82f   :  { %1885 = vmatpush.msra.mxu2 %v1773_v3 }
 0x830   :  { %v7689_v5 = vadd.f32 1e-05, %v1548_v4 }
 0x831   :  { %1886 = vmatpush.msra.mxu2 %v1771_v12 }
 0x832   :  { %6293 = vrsqrt.f32 %v7689_v5  ;;  %vm1558_vm4 = vweird.f32 %v7689_v5 }
 0x833   :  { %1887 = vmatpush.msra.mxu2 %v1769_v18 }
 0x835   :  { %v1547_v10 = vpop.xlane.xlu2 %1546  ;;  %1888 = vmatpush.msra.mxu2 %v1767_v27 }
 0x836   :  { %v1549_v14 = vmul.f32 %v1547_v10, %v7668_v49 }
 0x837   :  { %1889 = vmatpush.msra.mxu2 %v1765_v30 }
 0x838   :  { %v6294_v20 = vpop.eup %6293  ;;  %v7693_v21 = vadd.f32 1e-05, %v1549_v14 }
 0x839   :  { %v1553_v24 = vmul.f32 %v6294_v20, %v7689_v5  ;;  %vm1559_vm3 = vweird.f32 %v6294_v20 }
 0x83a   :  { %6295 = vrsqrt.f32 %v7693_v21  ;;  %vm1560_vm5 = vmor %vm1558_vm4, %vm1559_vm3  ;;  %vm1568_vm7 = vweird.f32 %v7693_v21 }
 0x83b   :  { %v1554_v29 = vmul.f32 %v6294_v20, %v1553_v24 }
 0x83d   :  { %v1555_v34 = vmul.f32 0.5, %v1554_v29  ;;  %v1802_v29 = vld [vmem:[#allocation11 + $0x150] sm:$0xff] }
 0x83f   :  { %v1556_v39 = vsub.f32 1.5, %v1555_v34  ;;  %v1763_v34 = vld [vmem:[#allocation11 + $0x18] sm:$0xff] }
 0x840   :  { %v6296_v43 = vpop.eup %6295  ;;  %1890 = vmatpush.msra.mxu2 %v1763_v34 }
 0x841   :  { %v1557_v46 = vmul.f32 %v6294_v20, %v1556_v39  ;;  %v1563_v50 = vmul.f32 %v6296_v43, %v7693_v21  ;;  %vm1569_vm6 = vweird.f32 %v6296_v43  ;;  %v1799_v39 = vld [vmem:[#allocation11 + $0x138] sm:$0xff] }
 0x842   :  { %vm1570_vm8 = vmor %vm1568_vm7, %vm1569_vm6  ;;  %1891 = vmatpush.msra.mxu2 %v1761_v38  ;;  %v5902_v38 = vld [vmem:[%s8601_s13 + $0x2f8] sm:$0xff] }
 0x843   :  { %v1561_v0 = vsel %vm1560_vm5, %v6294_v20, %v1557_v46  ;;  %v1564_v1 = vmul.f32 %v6296_v43, %v1563_v50  ;;  %v1658_v46 = vld [vmem:[%s8609_s25] sm:$0x3] }
 0x844   :  { %v1572_v4 = vmul.f32 %v1561_v0, %v7671_v52  ;;  %v1573_v5 = vmul.f32 %v1561_v0, %v7673_v53  ;;  %v1660_v50 = vperm.slane %v1658_v46, 0 }
 0x845   :  { %v1565_v10 = vmul.f32 0.5, %v1564_v1 }
 0x846   :  { %v1581_v13 = vmul.f32 %v1577_v58, %v1572_v4  ;;  %v1582_v14 = vmul.f32 %v1578_v59, %v1573_v5 }
 0x847   :  { %v1566_v15 = vsub.f32 1.5, %v1565_v10 }
 0x848   :  { %v7708_v52 = vadd.f32 %v1586_v6, %v1581_v13  ;;  %v7710_v53 = vadd.f32 %v1587_v7, %v1582_v14  ;;  %v1824_v14 = vld [vmem:[#allocation13] sm:$0x3] }
 0x849   :  { %v1567_v16 = vmul.f32 %v6296_v43, %v1566_v15 }
 0x84a   :  { %1680 = vmatmul.f32.vlgmr.msra.gmra.mxu0 %v7708_v52  ;;  %1703 = vmatmul.f32.vlgmr.msra.gmra.mxu1 %v7710_v53 }
 0x84b   :  { %v1571_v19 = vsel %vm1570_vm8, %v6296_v43, %v1567_v16  ;;  %1726 = vmatmul.f32.vlgmr.msrb.gmra.mxu2 %v7708_v52  ;;  %1749 = vmatmul.f32.vlgmr.msrb.gmra.mxu3 %v7710_v53  ;;  %v1795_v43 = vld [vmem:[#allocation11 + $0x118] sm:$0xff]  ;;  %v1826_v16 = vperm.slane %v1824_v14, 0 }
 0x84c   :  { %v1574_v20 = vmul.f32 %v1571_v19, %v7680_v61  ;;  %v1575_v22 = vmul.f32 %v1571_v19, %v7682_v62  ;;  %v1804_v61 = vld [vmem:[#allocation11 + $0x160] sm:$0xff]  ;;  %v1805_v62 = vld [vmem:[#allocation11 + $0x168] sm:$0xff]  ;;  %v1827_v19 = vperm.slane %v1824_v14, 1 }
 0x84d   :  { %1862 = vmatpush.msrb.mxu1 %v1804_v61  ;;  %1908 = vmatpush.msra.mxu3 %v1805_v62 }
 0x84e   :  { %v1583_v23 = vmul.f32 %v1577_v58, %v1574_v20  ;;  %v1584_v21 = vmul.f32 %v1578_v59, %v1575_v22  ;;  %v1661_v59 = vperm.slane %v1658_v46, 1  ;;  %v5897_v46 = vld [vmem:[%s8601_s13 + $0x2d0] sm:$0xff] }
 0x84f   :  { %1863 = vmatpush.msrb.mxu1 %v1802_v29  ;;  %1909 = vmatpush.msra.mxu3 %v1803_v31 }
 0x850   :  { %v7719_v24 = vadd.f32 %v1586_v6, %v1583_v23  ;;  %v7721_v25 = vadd.f32 %v1587_v7, %v1584_v21 }
 0x851   :  { %1864 = vmatpush.msrb.mxu1 %v1800_v33  ;;  %1910 = vmatpush.msra.mxu3 %v1801_v35 }
 0x852   :  { %1683 = vmatmul.f32.gmra.mxu0 %v7719_v24  ;;  %1706 = vmatmul.f32.gmra.mxu1 %v7721_v25 }
 0x853   :  { %1729 = vmatmul.f32.gmra.mxu2 %v7719_v24  ;;  %1752 = vmatmul.f32.gmra.mxu3 %v7721_v25 }
 0x854   :  { %1865 = vmatpush.msrb.mxu1 %v1798_v37  ;;  %1911 = vmatpush.msra.mxu3 %v1799_v39  ;;  %v5886_v37 = vld [vmem:[%s8601_s13 + $0x278] sm:$0xff]  ;;  %v5885_v39 = vld [vmem:[%s8601_s13 + $0x270] sm:$0xff] }
 0x855   :  { %2034 = vmatpush.msra.mxu0 %v5886_v37  ;;  %v2109_v37 = vld [vmem:[#allocation5 + $0x2e0] sm:$0xff] }
 0x856   :  { %1866 = vmatpush.msrb.mxu1 %v1796_v40  ;;  %1912 = vmatpush.msra.mxu3 %v1797_v41  ;;  %v5901_v40 = vld [vmem:[%s8601_s13 + $0x2f0] sm:$0xff]  ;;  %v5884_v41 = vld [vmem:[%s8601_s13 + $0x268] sm:$0xff] }
 0x857   :  { %2035 = vmatpush.msra.mxu0 %v5885_v39  ;;  %v2193_v39 = vld [vmem:[#allocation7 + $0x2e0] sm:$0xff] }
 0x858   :  { %1867 = vmatpush.msrb.mxu1 %v1794_v42  ;;  %1913 = vmatpush.msra.mxu3 %v1795_v43  ;;  %v5899_v42 = vld [vmem:[%s8601_s13 + $0x2e0] sm:$0xff]  ;;  %v5882_v43 = vld [vmem:[%s8601_s13 + $0x258] sm:$0xff] }
 0x859   :  { %2036 = vmatpush.msra.mxu0 %v5884_v41  ;;  %v2108_v41 = vld [vmem:[#allocation5 + $0x2d8] sm:$0xff] }
 0x85a   :  { %1868 = vmatpush.msrb.mxu1 %v1792_v44  ;;  %1914 = vmatpush.msra.mxu3 %v1793_v45  ;;  %v5898_v44 = vld [vmem:[%s8601_s13 + $0x2d8] sm:$0xff]  ;;  %v5881_v45 = vld [vmem:[%s8601_s13 + $0x250] sm:$0xff] }
 0x85c   :  { %2057 = vmatpush.msra.mxu1 %v5902_v38  ;;  %v2177_v38 = vld [vmem:[#allocation7 + $0x260] sm:$0xff] }
 0x85e   :  { %2058 = vmatpush.msra.mxu1 %v5901_v40  ;;  %v2092_v40 = vld [vmem:[#allocation5 + $0x258] sm:$0xff] }
 0x8c7   :  { %v1681_v51 = vpop.f32.mrf.mxu0  ;;  %v1704_v54 = vpop.f32.mrf.mxu1 }
 0x8c8   :  { %v1682_v55 = vadd.f32 %v1681_v51, %v1660_v50  ;;  %v5896_v51 = vld [vmem:[%s8601_s13 + $0x2c8] sm:$0xff] }
 0x8ca   :  { %v1705_v58 = vadd.f32 %v1704_v54, %v1682_v55  ;;  %v2096_v54 = vld [vmem:[#allocation5 + $0x278] sm:$0xff]  ;;  %v5879_v55 = vld [vmem:[%s8601_s13 + $0x240] sm:$0xff] }
 0x8cb   :  { %2118 = vmatpush.msrb.mxu2 %v2096_v54  ;;  %v2190_v54 = vld [vmem:[#allocation7 + $0x2c8] sm:$0xff] }
 0x8cc   :  { %v1756_v60 = vmax.f32 %v1705_v58, 0.0  ;;  %v2112_v58 = vld [vmem:[#allocation5 + $0x2f8] sm:$0xff] }
 0x8cd   :  { %2141 = vmatpush.msrb.mxu3 %v2112_v58  ;;  %v2105_v58 = vld [vmem:[#allocation5 + $0x2c0] sm:$0xff] }
 0x8ce   :  { %v1727_v63 = vpop.f32.mrf.mxu2  ;;  %v1750_v0 = vpop.f32.mrf.mxu3  ;;  %1846 = vmatmul.f32.vlgmr.msrb.gmra.mxu0 %v1756_v60  ;;  %1892 = vmatmul.f32.vlgmr.msra.gmra.mxu2 %v1756_v60  ;;  %v2095_v60 = vld [vmem:[#allocation5 + $0x270] sm:$0xff] }
 0x8cf   :  { %v1728_v1 = vadd.f32 %v1727_v63, %v1661_v59  ;;  %v1684_v2 = vpop.f32.mrf.mxu0  ;;  %v1707_v5 = vpop.f32.mrf.mxu1  ;;  %v2111_v63 = vld [vmem:[#allocation5 + $0x2f0] sm:$0xff]  ;;  %2119 = vmatpush.msrb.mxu2 %v2095_v60  ;;  %v2189_v60 = vld [vmem:[#allocation7 + $0x2c0] sm:$0xff] }
 0x8d0   :  { %v1685_v3 = vadd.f32 %v1684_v2, %v1660_v50  ;;  %v5880_v50 = vld [vmem:[%s8601_s13 + $0x248] sm:$0xff]  ;;  %2142 = vmatpush.msrb.mxu3 %v2111_v63  ;;  %v2088_v63 = vld [vmem:[#allocation5 + $0x238] sm:$0xff] }
 0x8d1   :  { %v1751_v4 = vadd.f32 %v1750_v0, %v1728_v1  ;;  %v5878_v0 = vld [vmem:[%s8601_s13 + $0x238] sm:$0xff] }
 0x8d2   :  { %v1708_v6 = vadd.f32 %v1707_v5, %v1685_v3  ;;  %v5894_v1 = vld [vmem:[%s8601_s13 + $0x2b8] sm:$0xff]  ;;  %v5893_v5 = vld [vmem:[%s8601_s13 + $0x2b0] sm:$0xff] }
 0x8d3   :  { %v1757_v7 = vmax.f32 %v1751_v4, 0.0  ;;  %v5877_v4 = vld [vmem:[%s8601_s13 + $0x230] sm:$0xff] }
 0x8d4   :  { %v1758_v8 = vmax.f32 %v1708_v6, 0.0 }
 0x8d5   :  { %1869 = vmatmul.f32.vlgmr.msrb.gmra.mxu1 %v1757_v7  ;;  %1915 = vmatmul.f32.vlgmr.msra.gmra.mxu3 %v1757_v7 }
 0x8d6   :  { %v1730_v9 = vpop.f32.mrf.mxu2  ;;  %1849 = vmatmul.f32.gmra.mxu0 %v1758_v8  ;;  %1895 = vmatmul.f32.gmra.mxu2 %v1758_v8  ;;  %v1753_v11 = vpop.f32.mrf.mxu3  ;;  %v5876_v8 = vld [vmem:[%s8601_s13 + $0x228] sm:$0xff] }
 0x8d7   :  { %v1731_v10 = vadd.f32 %v1730_v9, %v1661_v59  ;;  %v5895_v59 = vld [vmem:[%s8601_s13 + $0x2c0] sm:$0xff]  ;;  %v5892_v9 = vld [vmem:[%s8601_s13 + $0x2a8] sm:$0xff] }
 0x8d9   :  { %v1754_v12 = vadd.f32 %v1753_v11, %v1731_v10 }
 0x8db   :  { %v1759_v13 = vmax.f32 %v1754_v12, 0.0  ;;  %v5875_v12 = vld [vmem:[%s8601_s13 + $0x220] sm:$0xff] }
 0x8dd   :  { %1872 = vmatmul.f32.gmra.mxu1 %v1759_v13  ;;  %1918 = vmatmul.f32.gmra.mxu3 %v1759_v13  ;;  %v5891_v13 = vld [vmem:[%s8601_s13 + $0x2a0] sm:$0xff] }
 0x94b   :  { %v1847_v15 = vpop.f32.mrf.mxu0 }
 0x94c   :  { %v1848_v20 = vadd.f32 %v1847_v15, %v1826_v16  ;;  %v5874_v15 = vld [vmem:[%s8601_s13 + $0x218] sm:$0xff] }
 0x951   :  { %v1893_v18 = vpop.f32.mrf.mxu2 }
 0x952   :  { %v1870_v17 = vpop.f32.mrf.mxu1  ;;  %v1894_v23 = vadd.f32 %v1893_v18, %v1827_v19 }
 0x953   :  { %v1871_v22 = vadd.f32 %v1870_v17, %v1848_v20  ;;  %v1850_v61 = vpop.f32.mrf.mxu0  ;;  %v5889_v20 = vld [vmem:[%s8601_s13 + $0x290] sm:$0xff] }
 0x954   :  { %v1851_v30 = vadd.f32 %v1850_v61, %v1826_v16  ;;  %v5890_v16 = vld [vmem:[%s8601_s13 + $0x298] sm:$0xff] }
 0x955   :  { %v7729_v27 = vadd.f32 %v1871_v22, %v7708_v52 }
 0x958   :  { %v1916_v21 = vpop.f32.mrf.mxu3 }
 0x959   :  { %v1917_v26 = vadd.f32 %v1916_v21, %v1894_v23  ;;  %v1896_v29 = vpop.f32.mrf.mxu2  ;;  %v5872_v21 = vld [vmem:[%s8601_s13 + $0x208] sm:$0xff] }
 0x95a   :  { %v1873_v28 = vpop.f32.mrf.mxu1  ;;  %v1897_v33 = vadd.f32 %v1896_v29, %v1827_v19  ;;  %v5873_v19 = vld [vmem:[%s8601_s13 + $0x210] sm:$0xff]  ;;  %v2180_v29 = vld [vmem:[#allocation7 + $0x278] sm:$0xff] }
 0x95b   :  { %v7732_v62 = vadd.f32 %v1917_v26, %v7710_v53  ;;  %v1874_v32 = vadd.f32 %v1873_v28, %v1851_v30  ;;  %v5888_v26 = vld [vmem:[%s8601_s13 + $0x288] sm:$0xff]  ;;  %v5887_v28 = vld [vmem:[%s8601_s13 + $0x280] sm:$0xff] }
 0x95d   :  { %v1928_v31 = vadd.f32 %v7732_v62, %v7729_v27  ;;  %v7737_v53 = vadd.f32 %v1874_v32, %v7719_v24  ;;  %v5900_v24 = vld [vmem:[%s8601_s13 + $0x2e8] sm:$0xff]  ;;  %v2179_v32 = vld [vmem:[#allocation7 + $0x270] sm:$0xff] }
 0x95e   :  { %2059 = vmatpush.msra.mxu1 %v5900_v24  ;;  %v2176_v24 = vld [vmem:[#allocation7 + $0x258] sm:$0xff] }
 0x95f   :  { %1929 = vadd.xlane.f32.xlu0 %v1928_v31  ;;  %v2196_v31 = vld [vmem:[#allocation7 + $0x2f8] sm:$0xff] }
 0x960   :  { %v1919_v34 = vpop.f32.mrf.mxu3  ;;  %2060 = vmatpush.msra.mxu1 %v5899_v42  ;;  %v2091_v42 = vld [vmem:[#allocation5 + $0x250] sm:$0xff] }
 0x961   :  { %v1920_v52 = vadd.f32 %v1919_v34, %v1897_v33  ;;  %v2195_v33 = vld [vmem:[#allocation7 + $0x2f0] sm:$0xff]  ;;  %v2094_v34 = vld [vmem:[#allocation5 + $0x268] sm:$0xff] }
 0x962   :  { %2061 = vmatpush.msra.mxu1 %v5898_v44  ;;  %2120 = vmatpush.msrb.mxu2 %v2094_v34  ;;  %v2175_v44 = vld [vmem:[#allocation7 + $0x250] sm:$0xff]  ;;  %v2181_v34 = vld [vmem:[#allocation7 + $0x280] sm:$0xff] }
 0x963   :  { %v7740_v35 = vadd.f32 %v1920_v52, %v7721_v25  ;;  %v5883_v25 = vld [vmem:[%s8601_s13 + $0x260] sm:$0xff]  ;;  %v2110_v52 = vld [vmem:[#allocation5 + $0x2e8] sm:$0xff] }
 0x964   :  { %2037 = vmatpush.msra.mxu0 %v5883_v25  ;;  %2062 = vmatpush.msra.mxu1 %v5897_v46  ;;  %v2192_v25 = vld [vmem:[#allocation7 + $0x2d8] sm:$0xff]  ;;  %v2090_v46 = vld [vmem:[#allocation5 + $0x248] sm:$0xff] }
 0x965   :  { %v1931_v36 = vadd.f32 %v7740_v35, %v7737_v53  ;;  %2143 = vmatpush.msrb.mxu3 %v2110_v52 }
 0x966   :  { %2038 = vmatpush.msra.mxu0 %v5882_v43  ;;  %2063 = vmatpush.msra.mxu1 %v5896_v51  ;;  %v2107_v43 = vld [vmem:[#allocation5 + $0x2d0] sm:$0xff]  ;;  %v2174_v51 = vld [vmem:[#allocation7 + $0x248] sm:$0xff] }
 0x967   :  { %1932 = vadd.xlane.f32.xlu1 %v1931_v36  ;;  %v2093_v36 = vld [vmem:[#allocation5 + $0x260] sm:$0xff]  ;;  %2144 = vmatpush.msrb.mxu3 %v2109_v37 }
 0x968   :  { %2039 = vmatpush.msra.mxu0 %v5881_v45  ;;  %2064 = vmatpush.msra.mxu1 %v5895_v59  ;;  %v2191_v45 = vld [vmem:[#allocation7 + $0x2d0] sm:$0xff]  ;;  %v2173_v59 = vld [vmem:[#allocation7 + $0x240] sm:$0xff] }
 0x969   :  { %2121 = vmatpush.msrb.mxu2 %v2093_v36  ;;  %2145 = vmatpush.msrb.mxu3 %v2108_v41 }
 0x96a   :  { %2040 = vmatpush.msra.mxu0 %v5880_v50  ;;  %2065 = vmatpush.msra.mxu1 %v5894_v1  ;;  %v2106_v50 = vld [vmem:[#allocation5 + $0x2c8] sm:$0xff]  ;;  %v2172_v1 = vld [vmem:[#allocation7 + $0x238] sm:$0xff] }
 0x96b   :  { %2122 = vmatpush.msrb.mxu2 %v2092_v40  ;;  %2146 = vmatpush.msrb.mxu3 %v2107_v43 }
 0x96c   :  { %2041 = vmatpush.msra.mxu0 %v5879_v55  ;;  %2066 = vmatpush.msra.mxu1 %v5893_v5  ;;  %v2089_v55 = vld [vmem:[#allocation5 + $0x240] sm:$0xff]  ;;  %v2171_v5 = vld [vmem:[#allocation7 + $0x230] sm:$0xff] }
 0x96d   :  { %2123 = vmatpush.msrb.mxu2 %v2091_v42  ;;  %2147 = vmatpush.msrb.mxu3 %v2106_v50 }
 0x96e   :  { %2042 = vmatpush.msra.mxu0 %v5878_v0  ;;  %2067 = vmatpush.msra.mxu1 %v5892_v9  ;;  %v2104_v0 = vld [vmem:[#allocation5 + $0x2b8] sm:$0xff]  ;;  %v2086_v9 = vld [vmem:[#allocation5 + $0x228] sm:$0xff] }
 0x96f   :  { %2124 = vmatpush.msrb.mxu2 %v2090_v46  ;;  %2148 = vmatpush.msrb.mxu3 %v2105_v58 }
 0x970   :  { %2043 = vmatpush.msra.mxu0 %v5877_v4  ;;  %2068 = vmatpush.msra.mxu1 %v5891_v13  ;;  %v2103_v4 = vld [vmem:[#allocation5 + $0x2b0] sm:$0xff]  ;;  %v2085_v13 = vld [vmem:[#allocation5 + $0x220] sm:$0xff] }
 0x971   :  { %2125 = vmatpush.msrb.mxu2 %v2089_v55  ;;  %2149 = vmatpush.msrb.mxu3 %v2104_v0 }
 0x972   :  { %2044 = vmatpush.msra.mxu0 %v5876_v8  ;;  %2069 = vmatpush.msra.mxu1 %v5890_v16  ;;  %v2187_v8 = vld [vmem:[#allocation7 + $0x2b0] sm:$0xff]  ;;  %v2185_v16 = vld [vmem:[#allocation7 + $0x2a0] sm:$0xff] }
 0x973   :  { %2126 = vmatpush.msrb.mxu2 %v2088_v63  ;;  %2150 = vmatpush.msrb.mxu3 %v2103_v4 }
 0x974   :  { %2045 = vmatpush.msra.mxu0 %v5875_v12  ;;  %2070 = vmatpush.msra.mxu1 %v5889_v20  ;;  %v2186_v12 = vld [vmem:[#allocation7 + $0x2a8] sm:$0xff]  ;;  %v2184_v20 = vld [vmem:[#allocation7 + $0x298] sm:$0xff] }
 0x976   :  { %2046 = vmatpush.msra.mxu0 %v5874_v15  ;;  %2071 = vmatpush.msra.mxu1 %v5888_v26  ;;  %v2169_v15 = vld [vmem:[#allocation7 + $0x220] sm:$0xff]  ;;  %v2099_v26 = vld [vmem:[#allocation5 + $0x290] sm:$0xff] }
 0x978   :  { %2047 = vmatpush.msra.mxu0 %v5873_v19  ;;  %2072 = vmatpush.msra.mxu1 %v5887_v28  ;;  %v2168_v19 = vld [vmem:[#allocation7 + $0x218] sm:$0xff]  ;;  %v2098_v28 = vld [vmem:[#allocation5 + $0x288] sm:$0xff] }
 0x97a   :  { %2048 = vmatpush.msra.mxu0 %v5872_v21  ;;  %2225 = vmatpush.msrb.mxu1 %v2196_v31  ;;  %v2083_v21 = vld [vmem:[#allocation5 + $0x210] sm:$0xff]  ;;  %v2081_v31 = vld [vmem:[#allocation5 + $0x200] sm:$0xff] }
 0x97c   :  { %2226 = vmatpush.msrb.mxu1 %v2195_v33  ;;  %v2165_v33 = vld [vmem:[#allocation7 + $0x200] sm:$0xff] }
 0x9d2   :  { %v1930_v2 = vpop.xlane.xlu0 %1929 }
 0x9d3   :  { %v1934_v3 = vmul.f32 %v1930_v2, %v7668_v49  ;;  %v2188_v2 = vld [vmem:[#allocation7 + $0x2b8] sm:$0xff] }
 0x9d5   :  { %v7766_v6 = vsub.f32 %v7729_v27, %v1934_v3  ;;  %v7769_v7 = vsub.f32 %v7732_v62, %v1934_v3  ;;  %v5871_v62 = vld [vmem:[%s8601_s13 + $0x200] sm:$0xff]  ;;  %v2087_v3 = vld [vmem:[#allocation5 + $0x230] sm:$0xff] }
 0x9d6   :  { %2049 = vmatpush.msra.mxu0 %v5871_v62  ;;  %2127 = vmatpush.msrb.mxu2 %v2087_v3  ;;  %v2082_v62 = vld [vmem:[#allocation5 + $0x208] sm:$0xff] }
 0x9d7   :  { %v1940_v10 = vmul.f32 %v7766_v6, %v7766_v6  ;;  %v1941_v11 = vmul.f32 %v7769_v7, %v7769_v7 }
 0x9d8   :  { %2202 = vmatpush.msrb.mxu0 %v2180_v29  ;;  %2128 = vmatpush.msrb.mxu2 %v2086_v9  ;;  %v2166_v29 = vld [vmem:[#allocation7 + $0x208] sm:$0xff]  ;;  %v2491_v9 = vld [vmem:[#allocation5 + $0x378] sm:$0xff] }
 0x9d9   :  { %v1944_v14 = vadd.f32 %v1941_v11, %v1940_v10  ;;  %v2102_v10 = vld [vmem:[#allocation5 + $0x2a8] sm:$0xff] }
 0x9da   :  { %v1933_v17 = vpop.xlane.xlu1 %1932  ;;  %2203 = vmatpush.msrb.mxu0 %v2179_v32  ;;  %2151 = vmatpush.msrb.mxu3 %v2102_v10  ;;  %v2170_v11 = vld [vmem:[#allocation7 + $0x228] sm:$0xff]  ;;  %v2097_v32 = vld [vmem:[#allocation5 + $0x280] sm:$0xff]  ;;  %v2507_v10 = vld [vmem:[#allocation5 + $0x3f8] sm:$0xff] }
 0x9db   :  { %v1935_v18 = vmul.f32 %v1933_v17, %v7668_v49  ;;  %1945 = vadd.xlane.f32.xlu2 %v1944_v14  ;;  %v2101_v14 = vld [vmem:[#allocation5 + $0x2a0] sm:$0xff]  ;;  %2129 = vmatpush.msrb.mxu2 %v2085_v13  ;;  %v2084_v17 = vld [vmem:[#allocation5 + $0x218] sm:$0xff] }
 0x9dc   :  { %2152 = vmatpush.msrb.mxu3 %v2101_v14  ;;  %v2489_v14 = vld [vmem:[#allocation5 + $0x368] sm:$0xff] }
 0x9dd   :  { %v7785_v22 = vsub.f32 %v7737_v53, %v1935_v18  ;;  %v7788_v23 = vsub.f32 %v7740_v35, %v1935_v18  ;;  %v2178_v53 = vld [vmem:[#allocation7 + $0x268] sm:$0xff]  ;;  %v2100_v18 = vld [vmem:[#allocation5 + $0x298] sm:$0xff]  ;;  %2130 = vmatpush.msrb.mxu2 %v2084_v17 }
 0x9de   :  { %v2194_v35 = vld [vmem:[#allocation7 + $0x2e8] sm:$0xff]  ;;  %2204 = vmatpush.msrb.mxu0 %v2178_v53  ;;  %2153 = vmatpush.msrb.mxu3 %v2100_v18  ;;  %v2488_v18 = vld [vmem:[#allocation5 + $0x360] sm:$0xff] }
 0x9df   :  { %v1942_v61 = vmul.f32 %v7785_v22, %v7785_v22  ;;  %v1943_v27 = vmul.f32 %v7788_v23, %v7788_v23  ;;  %2227 = vmatpush.msrb.mxu1 %v2194_v35  ;;  %2131 = vmatpush.msrb.mxu2 %v2083_v21 }
 0x9e0   :  { %2205 = vmatpush.msrb.mxu0 %v2177_v38  ;;  %2154 = vmatpush.msrb.mxu3 %v2099_v26  ;;  %v2486_v26 = vld [vmem:[#allocation5 + $0x350] sm:$0xff] }
 0x9e1   :  { %v1947_v30 = vadd.f32 %v1943_v27, %v1942_v61  ;;  %2228 = vmatpush.msrb.mxu1 %v2193_v39  ;;  %v2167_v61 = vld [vmem:[#allocation7 + $0x210] sm:$0xff]  ;;  %2132 = vmatpush.msrb.mxu2 %v2082_v62  ;;  %v2501_v62 = vld [vmem:[#allocation5 + $0x3c8] sm:$0xff] }
 0x9e2   :  { %2206 = vmatpush.msrb.mxu0 %v2176_v24  ;;  %v2183_v27 = vld [vmem:[#allocation7 + $0x290] sm:$0xff]  ;;  %2155 = vmatpush.msrb.mxu3 %v2098_v28  ;;  %v2484_v28 = vld [vmem:[#allocation5 + $0x340] sm:$0xff] }
 0x9e3   :  { %1948 = vadd.xlane.f32.xlu0 %v1947_v30  ;;  %2229 = vmatpush.msrb.mxu1 %v2192_v25  ;;  %v2182_v30 = vld [vmem:[#allocation7 + $0x288] sm:$0xff]  ;;  %v1926_v25 = vld [vmem:[%s8610_s18] sm:$0x3] }
 0x9e4   :  { %2207 = vmatpush.msrb.mxu0 %v2175_v44  ;;  %2133 = vmatpush.msrb.mxu2 %v2081_v31  ;;  %v1927_v44 = vld [vmem:[%s8611_s20] sm:$0x3]  ;;  %v1979_v50 = vperm.slane %v1926_v25, 0  ;;  %v2499_v31 = vld [vmem:[#allocation5 + $0x3b8] sm:$0xff] }
 0x9e5   :  { %2230 = vmatpush.msrb.mxu1 %v2191_v45  ;;  %2156 = vmatpush.msrb.mxu3 %v2097_v32  ;;  %v1988_v58 = vperm.slane %v1927_v44, 0  ;;  %v2482_v32 = vld [vmem:[#allocation5 + $0x330] sm:$0xff] }
 0x9e6   :  { %2208 = vmatpush.msrb.mxu0 %v2174_v51  ;;  %v1980_v51 = vperm.slane %v1926_v25, 1  ;;  %v2492_v25 = vld [vmem:[#allocation5 + $0x380] sm:$0xff] }
 0x9e7   :  { %2231 = vmatpush.msrb.mxu1 %v2190_v54 }
 0x9e8   :  { %2209 = vmatpush.msrb.mxu0 %v2173_v59  ;;  %v1989_v59 = vperm.slane %v1927_v44, 1  ;;  %v6241_v44 = vld [vmem:[%s8603_s17 + $0x2] ss:$0 sm:$0xff] }
 0x9e9   :  { %2232 = vmatpush.msrb.mxu1 %v2189_v60 }
 0x9ea   :  { %2210 = vmatpush.msrb.mxu0 %v2172_v1 }
 0x9eb   :  { %2233 = vmatpush.msrb.mxu1 %v2188_v2 }
 0x9ec   :  { %2211 = vmatpush.msrb.mxu0 %v2171_v5 }
 0x9ed   :  { %2234 = vmatpush.msrb.mxu1 %v2187_v8 }
 0x9ee   :  { %2212 = vmatpush.msrb.mxu0 %v2170_v11  ;;  %v2506_v11 = vld [vmem:[#allocation5 + $0x3f0] sm:$0xff] }
 0x9ef   :  { %2235 = vmatpush.msrb.mxu1 %v2186_v12 }
 0x9f0   :  { %2213 = vmatpush.msrb.mxu0 %v2169_v15  ;;  %v2505_v15 = vld [vmem:[#allocation5 + $0x3e8] sm:$0xff] }
 0x9f1   :  { %2236 = vmatpush.msrb.mxu1 %v2185_v16 }
 0x9f2   :  { %2214 = vmatpush.msrb.mxu0 %v2168_v19  ;;  %v2504_v19 = vld [vmem:[#allocation5 + $0x3e0] sm:$0xff] }
 0x9f3   :  { %2237 = vmatpush.msrb.mxu1 %v2184_v20 }
 0x9f4   :  { %2215 = vmatpush.msrb.mxu0 %v2167_v61  ;;  %v2502_v61 = vld [vmem:[#allocation5 + $0x3d0] sm:$0xff] }
 0x9f5   :  { %2238 = vmatpush.msrb.mxu1 %v2183_v27  ;;  %v2485_v27 = vld [vmem:[#allocation5 + $0x348] sm:$0xff] }
 0x9f6   :  { %2216 = vmatpush.msrb.mxu0 %v2166_v29  ;;  %v2500_v29 = vld [vmem:[#allocation5 + $0x3c0] sm:$0xff] }
 0x9f7   :  { %2239 = vmatpush.msrb.mxu1 %v2182_v30  ;;  %v2483_v30 = vld [vmem:[#allocation5 + $0x338] sm:$0xff] }
 0x9f8   :  { %2217 = vmatpush.msrb.mxu0 %v2165_v33  ;;  %v2498_v33 = vld [vmem:[#allocation5 + $0x3b0] sm:$0xff] }
 0x9f9   :  { %2240 = vmatpush.msrb.mxu1 %v2181_v34  ;;  %v2481_v34 = vld [vmem:[#allocation5 + $0x328] sm:$0xff] }
 0xa4e   :  { %v1946_v52 = vpop.xlane.xlu2 %1945 }
 0xa4f   :  { %v1950_v53 = vmul.f32 %v1946_v52, %v7668_v49  ;;  %v2497_v52 = vld [vmem:[#allocation5 + $0x3a8] sm:$0xff] }
 0xa51   :  { %v1952_v35 = vadd.f32 1e-05, %v1950_v53  ;;  %v2480_v53 = vld [vmem:[#allocation5 + $0x320] sm:$0xff] }
 0xa53   :  { %6297 = vrsqrt.f32 %v1952_v35  ;;  %vm1960_vm10 = vweird.f32 %v1952_v35 }
 0xa56   :  { %v1949_v36 = vpop.xlane.xlu0 %1948 }
 0xa57   :  { %v1951_v37 = vmul.f32 %v1949_v36, %v7668_v49  ;;  %v2479_v36 = vld [vmem:[#allocation5 + $0x318] sm:$0xff] }
 0xa59   :  { %v6298_v38 = vpop.eup %6297  ;;  %v1953_v39 = vadd.f32 1e-05, %v1951_v37  ;;  %v2495_v37 = vld [vmem:[#allocation5 + $0x398] sm:$0xff] }
 0xa5a   :  { %v1955_v40 = vmul.f32 %v6298_v38, %v1952_v35  ;;  %vm1961_vm9 = vweird.f32 %v6298_v38  ;;  %v2496_v35 = vld [vmem:[#allocation5 + $0x3a0] sm:$0xff] }
 0xa5b   :  { %6299 = vrsqrt.f32 %v1953_v39  ;;  %vm1962_vm11 = vmor %vm1960_vm10, %vm1961_vm9  ;;  %vm1970_vm13 = vweird.f32 %v1953_v39 }
 0xa5c   :  { %v1956_v41 = vmul.f32 %v6298_v38, %v1955_v40  ;;  %v2477_v40 = vld [vmem:[#allocation5 + $0x308] sm:$0xff] }
 0xa5e   :  { %v1957_v24 = vmul.f32 0.5, %v1956_v41  ;;  %v2493_v41 = vld [vmem:[#allocation5 + $0x388] sm:$0xff] }
 0xa60   :  { %v1958_v42 = vsub.f32 1.5, %v1957_v24  ;;  %v2476_v24 = vld [vmem:[#allocation5 + $0x300] sm:$0xff] }
 0xa61   :  { %v6300_v43 = vpop.eup %6299 }
 0xa62   :  { %v1959_v45 = vmul.f32 %v6298_v38, %v1958_v42  ;;  %v1965_v46 = vmul.f32 %v6300_v43, %v1953_v39  ;;  %vm1971_vm12 = vweird.f32 %v6300_v43  ;;  %v2494_v39 = vld [vmem:[#allocation5 + $0x390] sm:$0xff] }
 0xa63   :  { %vm1972_vm14 = vmor %vm1970_vm13, %vm1971_vm12  ;;  %vm3791_vm12 = vcmask 523264  }
 0xa64   :  { %v1963_v54 = vsel %vm1962_vm11, %v6298_v38, %v1959_v45  ;;  %v1966_v55 = vmul.f32 %v6300_v43, %v1965_v46  ;;  %v2478_v38 = vld [vmem:[#allocation5 + $0x310] sm:$0xff]  ;;  %v6240_v45 = vld [vmem:[%s8604_s21 + $0x2] ss:$0 sm:$0xff] }
 0xa65   :  { %v1974_v60 = vmul.f32 %v1963_v54, %v7766_v6  ;;  %v1975_v63 = vmul.f32 %v1963_v54, %v7769_v7  ;;  %v2490_v7 = vld [vmem:[#allocation5 + $0x370] sm:$0xff] }
 0xa66   :  { %v1967_v0 = vmul.f32 0.5, %v1966_v55 }
 0xa67   :  { %v1983_v1 = vmul.f32 %v1979_v50, %v1974_v60  ;;  %v1984_v2 = vmul.f32 %v1980_v51, %v1975_v63  ;;  %v6242_v63 = vld [vmem:[%s8605_s10 + $0x2] ss:$0 sm:$0xff] }
 0xa68   :  { %v1968_v3 = vsub.f32 1.5, %v1967_v0 }
 0xa69   :  { %v7804_v4 = vadd.f32 %v1988_v58, %v1983_v1  ;;  %v7806_v5 = vadd.f32 %v1989_v59, %v1984_v2 }
 0xa6a   :  { %v1969_v8 = vmul.f32 %v6300_v43, %v1968_v3 }
 0xa6b   :  { %2050 = vmatmul.f32.vlgmr.msra.gmra.mxu0 %v7804_v4  ;;  %2073 = vmatmul.f32.vlgmr.msra.gmra.mxu1 %v7806_v5 }
 0xa6c   :  { %v1973_v6 = vsel %vm1972_vm14, %v6300_v43, %v1969_v8  ;;  %2134 = vmatmul.f32.vlgmr.msrb.gmra.mxu2 %v7804_v4  ;;  %2157 = vmatmul.f32.vlgmr.msrb.gmra.mxu3 %v7806_v5 }
 0xa6d   :  { %v1976_v12 = vmul.f32 %v1973_v6, %v7785_v22  ;;  %v1977_v13 = vmul.f32 %v1973_v6, %v7788_v23  ;;  %2513 = vmatpush.msra.mxu0 %v2491_v9  ;;  %2536 = vmatpush.msra.mxu1 %v2507_v10  ;;  %v2487_v22 = vld [vmem:[#allocation5 + $0x358] sm:$0xff] }
 0xa6e   :  { %v2503_v23 = vld [vmem:[#allocation5 + $0x3d8] sm:$0xff] }
 0xa6f   :  { %v1985_v16 = vmul.f32 %v1979_v50, %v1976_v12  ;;  %v1986_v17 = vmul.f32 %v1980_v51, %v1977_v13  ;;  %2514 = vmatpush.msra.mxu0 %v2490_v7  ;;  %2537 = vmatpush.msra.mxu1 %v2506_v11 }
 0xa71   :  { %v7814_v20 = vadd.f32 %v1988_v58, %v1985_v16  ;;  %v7816_v21 = vadd.f32 %v1989_v59, %v1986_v17  ;;  %2515 = vmatpush.msra.mxu0 %v2489_v14  ;;  %2538 = vmatpush.msra.mxu1 %v2505_v15  ;;  %v6243_v16 = vld [vmem:[%s8603_s17 + $0x3] ss:$0 sm:$0xff] }
 0xa73   :  { %2516 = vmatpush.msra.mxu0 %v2488_v18  ;;  %2539 = vmatpush.msra.mxu1 %v2504_v19 }
 0xa74   :  { %2053 = vmatmul.f32.gmra.mxu0 %v7814_v20  ;;  %2076 = vmatmul.f32.gmra.mxu1 %v7816_v21 }
 0xa75   :  { %2137 = vmatmul.f32.gmra.mxu2 %v7814_v20  ;;  %2160 = vmatmul.f32.gmra.mxu3 %v7816_v21 }
 0xa76   :  { %2517 = vmatpush.msra.mxu0 %v2487_v22  ;;  %2540 = vmatpush.msra.mxu1 %v2503_v23 }
 0xa78   :  { %2518 = vmatpush.msra.mxu0 %v2486_v26  ;;  %2541 = vmatpush.msra.mxu1 %v2502_v61 }
 0xa7a   :  { %2519 = vmatpush.msra.mxu0 %v2485_v27  ;;  %2542 = vmatpush.msra.mxu1 %v2501_v62 }
 0xa7c   :  { %2520 = vmatpush.msra.mxu0 %v2484_v28  ;;  %2543 = vmatpush.msra.mxu1 %v2500_v29 }
 0xa7d   :  { %2218 = vmatmul.f32.vlgmr.msrb.gmra.mxu0 %v7804_v4  ;;  %2241 = vmatmul.f32.vlgmr.msrb.gmra.mxu1 %v7806_v5 }
 0xa7e   :  { %2521 = vmatpush.msra.mxu0 %v2483_v30  ;;  %2544 = vmatpush.msra.mxu1 %v2499_v31 }
 0xa80   :  { %2522 = vmatpush.msra.mxu0 %v2482_v32  ;;  %2545 = vmatpush.msra.mxu1 %v2498_v33  ;;  %v5923_v33 = vld [vmem:[%s8601_s13 + $0x378] sm:$0xff] }
 0xa82   :  { %2523 = vmatpush.msra.mxu0 %v2481_v34  ;;  %2546 = vmatpush.msra.mxu1 %v2497_v52  ;;  %v5922_v34 = vld [vmem:[%s8601_s13 + $0x370] sm:$0xff]  ;;  %v5939_v52 = vld [vmem:[%s8601_s13 + $0x3f8] sm:$0xff] }
 0xa84   :  { %2524 = vmatpush.msra.mxu0 %v2480_v53  ;;  %2547 = vmatpush.msra.mxu1 %v2496_v35  ;;  %v5921_v53 = vld [vmem:[%s8601_s13 + $0x368] sm:$0xff]  ;;  %v5938_v35 = vld [vmem:[%s8601_s13 + $0x3f0] sm:$0xff] }
 0xa85   :  { %2221 = vmatmul.f32.gmra.mxu0 %v7814_v20  ;;  %2244 = vmatmul.f32.gmra.mxu1 %v7816_v21 }
 0xa86   :  { %2525 = vmatpush.msra.mxu0 %v2479_v36  ;;  %2548 = vmatpush.msra.mxu1 %v2495_v37  ;;  %v5937_v36 = vld [vmem:[%s8601_s13 + $0x3e8] sm:$0xff]  ;;  %v5920_v37 = vld [vmem:[%s8601_s13 + $0x360] sm:$0xff] }
 0xa88   :  { %2526 = vmatpush.msra.mxu0 %v2478_v38  ;;  %2549 = vmatpush.msra.mxu1 %v2494_v39  ;;  %v5936_v38 = vld [vmem:[%s8601_s13 + $0x3e0] sm:$0xff]  ;;  %v5919_v39 = vld [vmem:[%s8601_s13 + $0x358] sm:$0xff] }
 0xa8a   :  { %2527 = vmatpush.msra.mxu0 %v2477_v40  ;;  %2550 = vmatpush.msra.mxu1 %v2493_v41  ;;  %v5935_v40 = vld [vmem:[%s8601_s13 + $0x3d8] sm:$0xff]  ;;  %v5918_v41 = vld [vmem:[%s8601_s13 + $0x350] sm:$0xff] }
 0xa8c   :  { %2528 = vmatpush.msra.mxu0 %v2476_v24  ;;  %2551 = vmatpush.msra.mxu1 %v2492_v25  ;;  %v5934_v24 = vld [vmem:[%s8601_s13 + $0x3d0] sm:$0xff] }
 0xa8d   :  { %2529 = vmatmul.f32.vlgmr.msra.gmra.mxu0 %v7804_v4  ;;  %2552 = vmatmul.f32.vlgmr.msra.gmra.mxu1 %v7806_v5 }
 0xa95   :  { %2532 = vmatmul.f32.gmra.mxu0 %v7814_v20  ;;  %2555 = vmatmul.f32.gmra.mxu1 %v7816_v21 }
 0xae8   :  { %v2051_v42 = vpop.f32.mrf.mxu0  ;;  %v2074_v43 = vpop.f32.mrf.mxu1 }
 0xae9   :  { %v2052_v54 = vadd.f32 %v6240_v45, %v2051_v42  ;;  %v5917_v42 = vld [vmem:[%s8601_s13 + $0x348] sm:$0xff] }
 0xaeb   :  { %v2075_v60 = vadd.f32 %v2074_v43, %v2052_v54  ;;  %v5913_v54 = vld [vmem:[%s8601_s13 + $0x328] sm:$0xff] }
 0xaef   :  { %v2135_v46 = vpop.f32.mrf.mxu2  ;;  %v2158_v50 = vpop.f32.mrf.mxu3 }
 0xaf0   :  { %v2136_v51 = vadd.f32 %v6241_v44, %v2135_v46 }
 0xaf1   :  { %v2054_v55 = vpop.f32.mrf.mxu0  ;;  %v2077_v58 = vpop.f32.mrf.mxu1 }
 0xaf2   :  { %v2159_v59 = vadd.f32 %v2158_v50, %v2136_v51  ;;  %v2055_v3 = vadd.f32 %v6240_v45, %v2054_v55  ;;  %v5916_v45 = vld [vmem:[%s8601_s13 + $0x340] sm:$0xff]  ;;  %v5915_v50 = vld [vmem:[%s8601_s13 + $0x338] sm:$0xff]  ;;  %v5914_v51 = vld [vmem:[%s8601_s13 + $0x330] sm:$0xff] }
 0xaf4   :  { %2263 = vmatpush.xpose.msra.mxu2 %v2159_v59  ;;  %v2078_v11 = vadd.f32 %v2077_v58, %v2055_v3  ;;  %v5932_v3 = vld [vmem:[%s8601_s13 + $0x3c0] sm:$0xff] }
 0xaf7   :  { %2264 = vmatmul.f32.vlgmr.msra.gmra.mxu2 %v2075_v60 }
 0xaf8   :  { %v2138_v0 = vpop.f32.mrf.mxu2  ;;  %v2161_v2 = vpop.f32.mrf.mxu3 }
 0xaf9   :  { %v2139_v1 = vadd.f32 %v6241_v44, %v2138_v0  ;;  %v5933_v44 = vld [vmem:[%s8601_s13 + $0x3c8] sm:$0xff] }
 0xafa   :  { %v2219_v8 = vpop.f32.mrf.mxu0  ;;  %v2242_v9 = vpop.f32.mrf.mxu1 }
 0xafb   :  { %v2162_v10 = vadd.f32 %v2161_v2, %v2139_v1  ;;  %v2220_v6 = vadd.f32 %v6242_v63, %v2219_v8  ;;  %v5912_v2 = vld [vmem:[%s8601_s13 + $0x320] sm:$0xff]  ;;  %v5911_v8 = vld [vmem:[%s8601_s13 + $0x318] sm:$0xff] }
 0xafd   :  { %v2243_v7 = vadd.f32 %v2242_v9, %v2220_v6  ;;  %2283 = vmatpush.xpose.msra.mxu3 %v2162_v10  ;;  %v5931_v9 = vld [vmem:[%s8601_s13 + $0x3b8] sm:$0xff]  ;;  %v5910_v10 = vld [vmem:[%s8601_s13 + $0x310] sm:$0xff] }
 0xafe   :  { %v5930_v6 = vld [vmem:[%s8601_s13 + $0x3b0] sm:$0xff] }
 0xaff   :  { %2330 = vmatpush.msrb.mxu2 %v2243_v7  ;;  %v5909_v7 = vld [vmem:[%s8601_s13 + $0x308] sm:$0xff] }
 0xb00   :  { %2284 = vmatmul.f32.vlgmr.msra.gmra.mxu3 %v2078_v11  ;;  %v5929_v11 = vld [vmem:[%s8601_s13 + $0x3a8] sm:$0xff] }
 0xb01   :  { %2429 = vmatpush.msra.mxu2 %v5923_v33  ;;  %v2590_v33 = vld [vmem:[#allocation7 + $0x3f0] sm:$0xff] }
 0xb02   :  { %v2222_v12 = vpop.f32.mrf.mxu0  ;;  %v2245_v13 = vpop.f32.mrf.mxu1 }
 0xb03   :  { %v2223_v14 = vadd.f32 %v6242_v63, %v2222_v12  ;;  %2430 = vmatpush.msra.mxu2 %v5922_v34  ;;  %v5908_v12 = vld [vmem:[%s8601_s13 + $0x300] sm:$0xff]  ;;  %v2569_v34 = vld [vmem:[#allocation7 + $0x348] sm:$0xff] }
 0xb05   :  { %v2246_v15 = vadd.f32 %v2245_v13, %v2223_v14  ;;  %2431 = vmatpush.msra.mxu2 %v5921_v53  ;;  %v5928_v13 = vld [vmem:[%s8601_s13 + $0x3a0] sm:$0xff]  ;;  %v5927_v14 = vld [vmem:[%s8601_s13 + $0x398] sm:$0xff] }
 0xb06   :  { %v2568_v53 = vld [vmem:[#allocation7 + $0x340] sm:$0xff] }
 0xb07   :  { %2353 = vmatpush.msrb.mxu3 %v2246_v15  ;;  %2432 = vmatpush.msra.mxu2 %v5920_v37  ;;  %v5926_v15 = vld [vmem:[%s8601_s13 + $0x390] sm:$0xff]  ;;  %v2587_v37 = vld [vmem:[#allocation7 + $0x3d8] sm:$0xff] }
 0xb09   :  { %2452 = vmatpush.msra.mxu3 %v5939_v52  ;;  %2433 = vmatpush.msra.mxu2 %v5919_v39  ;;  %v2589_v52 = vld [vmem:[#allocation7 + $0x3e8] sm:$0xff]  ;;  %v2586_v39 = vld [vmem:[#allocation7 + $0x3d0] sm:$0xff] }
 0xb0a   :  { %v2530_v17 = vpop.f32.mrf.mxu0  ;;  %v2553_v18 = vpop.f32.mrf.mxu1 }
 0xb0b   :  { %v2531_v19 = vadd.f32 %v6243_v16, %v2530_v17  ;;  %2453 = vmatpush.msra.mxu3 %v5938_v35  ;;  %2434 = vmatpush.msra.mxu2 %v5918_v41  ;;  %v5924_v17 = vld [vmem:[%s8601_s13 + $0x380] sm:$0xff]  ;;  %v2585_v41 = vld [vmem:[#allocation7 + $0x3c8] sm:$0xff] }
 0xb0c   :  { %v2588_v35 = vld [vmem:[#allocation7 + $0x3e0] sm:$0xff] }
 0xb0d   :  { %v2554_v22 = vadd.f32 %v2553_v18, %v2531_v19  ;;  %2454 = vmatpush.msra.mxu3 %v5937_v36  ;;  %2435 = vmatpush.msra.mxu2 %v5917_v42  ;;  %v2567_v36 = vld [vmem:[#allocation7 + $0x338] sm:$0xff] }
 0xb0e   :  { %v2563_v42 = vld [vmem:[#allocation7 + $0x318] sm:$0xff] }
 0xb0f   :  { %2658 = vmatpush.xpose.msrb.mxu0 %v2554_v22  ;;  %2455 = vmatpush.msra.mxu3 %v5936_v38  ;;  %v2566_v38 = vld [vmem:[#allocation7 + $0x330] sm:$0xff] }
 0xb10   :  { %2436 = vmatpush.msra.mxu2 %v5916_v45  ;;  %v2582_v45 = vld [vmem:[#allocation7 + $0x3b0] sm:$0xff] }
 0xb11   :  { %2456 = vmatpush.msra.mxu3 %v5935_v40  ;;  %v2565_v40 = vld [vmem:[#allocation7 + $0x328] sm:$0xff] }
 0xb12   :  { %v2533_v23 = vpop.f32.mrf.mxu0  ;;  %v2556_v61 = vpop.f32.mrf.mxu1  ;;  %2437 = vmatpush.msra.mxu2 %v5915_v50  ;;  %v2581_v50 = vld [vmem:[#allocation7 + $0x3a8] sm:$0xff] }
 0xb13   :  { %v2534_v26 = vadd.f32 %v6243_v16, %v2533_v23  ;;  %2457 = vmatpush.msra.mxu3 %v5934_v24  ;;  %v5925_v16 = vld [vmem:[%s8601_s13 + $0x388] sm:$0xff]  ;;  %v2575_v23 = vld [vmem:[#allocation7 + $0x378] sm:$0xff]  ;;  %v2564_v24 = vld [vmem:[#allocation7 + $0x320] sm:$0xff] }
 0xb14   :  { %2438 = vmatpush.msra.mxu2 %v5914_v51  ;;  %v2560_v51 = vld [vmem:[#allocation7 + $0x300] sm:$0xff] }
 0xb15   :  { %v2557_v27 = vadd.f32 %v2556_v61, %v2534_v26  ;;  %2458 = vmatpush.msra.mxu3 %v5933_v44  ;;  %v2574_v61 = vld [vmem:[#allocation7 + $0x370] sm:$0xff] }
 0xb16   :  { %2439 = vmatpush.msra.mxu2 %v5913_v54  ;;  %v2562_v44 = vld [vmem:[#allocation7 + $0x310] sm:$0xff]  ;;  %v2580_v54 = vld [vmem:[#allocation7 + $0x3a0] sm:$0xff] }
 0xb17   :  { %2678 = vmatpush.xpose.msrb.mxu1 %v2557_v27  ;;  %2459 = vmatpush.msra.mxu3 %v5932_v3  ;;  %v2573_v27 = vld [vmem:[#allocation7 + $0x368] sm:$0xff]  ;;  %v2381_v3 = vld [vmem:[#allocation8 + $0x2b0] sm:$0xff] }
 0xb18   :  { %2440 = vmatpush.msra.mxu2 %v5912_v2  ;;  %v2576_v2 = vld [vmem:[#allocation7 + $0x380] sm:$0xff] }
 0xb19   :  { %2460 = vmatpush.msra.mxu3 %v5931_v9  ;;  %v2379_v9 = vld [vmem:[#allocation8 + $0x2a0] sm:$0xff] }
 0xb1a   :  { %2441 = vmatpush.msra.mxu2 %v5911_v8  ;;  %v2390_v8 = vld [vmem:[#allocation8 + $0x2f8] sm:$0xff] }
 0xb1b   :  { %2461 = vmatpush.msra.mxu3 %v5930_v6  ;;  %v2377_v6 = vld [vmem:[#allocation8 + $0x290] sm:$0xff] }
 0xb1c   :  { %2442 = vmatpush.msra.mxu2 %v5910_v10  ;;  %v2388_v10 = vld [vmem:[#allocation8 + $0x2e8] sm:$0xff] }
 0xb1d   :  { %2462 = vmatpush.msra.mxu3 %v5929_v11  ;;  %v2375_v11 = vld [vmem:[#allocation8 + $0x280] sm:$0xff] }
 0xb1e   :  { %2443 = vmatpush.msra.mxu2 %v5909_v7  ;;  %v2386_v7 = vld [vmem:[#allocation8 + $0x2d8] sm:$0xff] }
 0xb1f   :  { %2463 = vmatpush.msra.mxu3 %v5928_v13  ;;  %v2373_v13 = vld [vmem:[#allocation8 + $0x270] sm:$0xff] }
 0xb20   :  { %2444 = vmatpush.msra.mxu2 %v5908_v12  ;;  %v2384_v12 = vld [vmem:[#allocation8 + $0x2c8] sm:$0xff] }
 0xb21   :  { %2464 = vmatpush.msra.mxu3 %v5927_v14  ;;  %v2382_v14 = vld [vmem:[#allocation8 + $0x2b8] sm:$0xff] }
 0xb23   :  { %2465 = vmatpush.msra.mxu3 %v5926_v15  ;;  %v2371_v15 = vld [vmem:[#allocation8 + $0x260] sm:$0xff] }
 0xb25   :  { %2466 = vmatpush.msra.mxu3 %v5925_v16  ;;  %v2380_v16 = vld [vmem:[#allocation8 + $0x2a8] sm:$0xff] }
 0xb27   :  { %2467 = vmatpush.msra.mxu3 %v5924_v17  ;;  %v2369_v17 = vld [vmem:[#allocation8 + $0x250] sm:$0xff] }
 0xb7a   :  { %v2265_v62 = vpop.f32.mrf.mxu2 }
 0xb7b   :  { %v2288_v28 = vmul.f32 0.088388346, %v2265_v62  ;;  %v2572_v62 = vld [vmem:[#allocation7 + $0x360] sm:$0xff] }
 0xb7d   :  { %v2290_v29 = vsel %vm915_vm1, %v2288_v28, -inf }
 0xb7e   :  { %2291 = vmax.xlane.f32.xlu1 %v2290_v29  ;;  %v2571_v29 = vld [vmem:[#allocation7 + $0x358] sm:$0xff] }
 0xb83   :  { %v2285_v30 = vpop.f32.mrf.mxu3 }
 0xb84   :  { %v2289_v31 = vmul.f32 0.088388346, %v2285_v30 }
 0xb86   :  { %v2293_v32 = vsel %vm915_vm1, %v2289_v31, -inf }
 0xb87   :  { %2294 = vmax.xlane.f32.xlu2 %v2293_v32  ;;  %v2570_v32 = vld [vmem:[#allocation7 + $0x350] sm:$0xff] }
 0xbf1   :  { %v2292_v25 = vpop.xlane.xlu1 %2291 }
 0xbf2   :  { %v2296_v43 = vsub.f32 %v2288_v28, %v2292_v25  ;;  %v2584_v25 = vld [vmem:[#allocation7 + $0x3c0] sm:$0xff] }
 0xbf4   :  { %v2298_v46 = vmul.f32 1.442695, %v2296_v43  ;;  %v2583_v43 = vld [vmem:[#allocation7 + $0x3b8] sm:$0xff] }
 0xbf6   :  { %6301 = vpow2.f32 %v2298_v46  ;;  %v2561_v46 = vld [vmem:[#allocation7 + $0x308] sm:$0xff] }
 0xbfa   :  { %v2295_v55 = vpop.xlane.xlu2 %2294 }
 0xbfb   :  { %v2297_v58 = vsub.f32 %v2289_v31, %v2295_v55  ;;  %v2591_v31 = vld [vmem:[#allocation7 + $0x3f8] sm:$0xff]  ;;  %v2389_v55 = vld [vmem:[#allocation8 + $0x2f0] sm:$0xff] }
 0xbfc   :  { %v6302_v59 = vpop.eup %6301 }
 0xbfd   :  { %v2300_v60 = vmul.f32 1.442695, %v2297_v58  ;;  %v2302_v63 = vsel %vm915_vm1, %v6302_v59, 0.0  ;;  %v2579_v58 = vld [vmem:[#allocation7 + $0x398] sm:$0xff] }
 0xbfe   :  { %2303 = vadd.xlane.f32.xlu0 %v2302_v63  ;;  %v2385_v63 = vld [vmem:[#allocation8 + $0x2d0] sm:$0xff] }
 0xbff   :  { %6303 = vpow2.f32 %v2300_v60  ;;  %v2578_v60 = vld [vmem:[#allocation7 + $0x390] sm:$0xff] }
 0xc05   :  { %v6304_v0 = vpop.eup %6303 }
 0xc06   :  { %v2305_v1 = vsel %vm915_vm1, %v6304_v0, 0.0 }
 0xc07   :  { %2306 = vadd.xlane.f32.xlu1 %v2305_v1  ;;  %v2383_v1 = vld [vmem:[#allocation8 + $0x2c0] sm:$0xff] }
 0xc71   :  { %v2304_v18 = vpop.xlane.xlu0 %2303 }
 0xc72   :  { %6305 = vrcp.f32 %v2304_v18  ;;  %v2378_v18 = vld [vmem:[#allocation8 + $0x298] sm:$0xff] }
 0xc78   :  { %v6306_v19 = vpop.eup %6305 }
 0xc79   :  { %v2310_v22 = vmul.f32 %v6306_v19, %v6302_v59  ;;  %v2387_v59 = vld [vmem:[#allocation8 + $0x2e0] sm:$0xff] }
 0xc7a   :  { %v2307_v26 = vpop.xlane.xlu1 %2306  ;;  %v2367_v19 = vld [vmem:[#allocation8 + $0x240] sm:$0xff] }
 0xc7b   :  { %6307 = vrcp.f32 %v2307_v26  ;;  %5906 = vmatmul.msk.f32.vlgmr.msrb.gmra.mxu2 %vm915_vm1, %v2310_v22  ;;  %v2376_v22 = vld [vmem:[#allocation8 + $0x288] sm:$0xff]  ;;  %v2374_v26 = vld [vmem:[#allocation8 + $0x278] sm:$0xff] }
 0xc7c   :  { %2597 = vmatpush.msrb.mxu2 %v2575_v23  ;;  %v2365_v23 = vld [vmem:[#allocation8 + $0x230] sm:$0xff] }
 0xc7e   :  { %2598 = vmatpush.msrb.mxu2 %v2574_v61  ;;  %v2363_v61 = vld [vmem:[#allocation8 + $0x220] sm:$0xff] }
 0xc80   :  { %2599 = vmatpush.msrb.mxu2 %v2573_v27  ;;  %v2372_v27 = vld [vmem:[#allocation8 + $0x268] sm:$0xff] }
 0xc81   :  { %v6308_v28 = vpop.eup %6307 }
 0xc82   :  { %v2311_v30 = vmul.f32 %v6308_v28, %v6304_v0  ;;  %2600 = vmatpush.msrb.mxu2 %v2572_v62  ;;  %v2577_v0 = vld [vmem:[#allocation7 + $0x388] sm:$0xff]  ;;  %v2361_v62 = vld [vmem:[#allocation8 + $0x210] sm:$0xff]  ;;  %v2370_v28 = vld [vmem:[#allocation8 + $0x258] sm:$0xff] }
 0xc83   :  { %2445 = vmatmul.f32.vlgmr.msra.gmra.mxu2 %v7804_v4 }
 0xc84   :  { %5907 = vmatmul.msk.f32.vlgmr.msrb.gmra.mxu3 %vm915_vm1, %v2311_v30  ;;  %2601 = vmatpush.msrb.mxu2 %v2571_v29  ;;  %v2368_v29 = vld [vmem:[#allocation8 + $0x248] sm:$0xff]  ;;  %v2366_v30 = vld [vmem:[#allocation8 + $0x238] sm:$0xff] }
 0xc85   :  { %2620 = vmatpush.msrb.mxu3 %v2591_v31  ;;  %v2364_v31 = vld [vmem:[#allocation8 + $0x228] sm:$0xff] }
 0xc86   :  { %2602 = vmatpush.msrb.mxu2 %v2570_v32  ;;  %v2362_v32 = vld [vmem:[#allocation8 + $0x218] sm:$0xff] }
 0xc87   :  { %2621 = vmatpush.msrb.mxu3 %v2590_v33  ;;  %v2359_v33 = vld [vmem:[#allocation8 + $0x200] sm:$0xff] }
 0xc88   :  { %2603 = vmatpush.msrb.mxu2 %v2569_v34  ;;  %v2360_v34 = vld [vmem:[#allocation8 + $0x208] sm:$0xff] }
 0xc89   :  { %2622 = vmatpush.msrb.mxu3 %v2589_v52 }
 0xc8a   :  { %2604 = vmatpush.msrb.mxu2 %v2568_v53 }
 0xc8b   :  { %2623 = vmatpush.msrb.mxu3 %v2588_v35  ;;  %2448 = vmatmul.f32.gmra.mxu2 %v7814_v20 }
 0xc8c   :  { %2468 = vmatmul.f32.vlgmr.msra.gmra.mxu3 %v7806_v5  ;;  %2605 = vmatpush.msrb.mxu2 %v2567_v36  ;;  %v6244_v36 = vld [vmem:[%s8604_s21 + $0x3] ss:$0 sm:$0xff] }
 0xc8d   :  { %2624 = vmatpush.msrb.mxu3 %v2587_v37 }
 0xc8e   :  { %2606 = vmatpush.msrb.mxu2 %v2566_v38 }
 0xc8f   :  { %2625 = vmatpush.msrb.mxu3 %v2586_v39 }
 0xc90   :  { %2607 = vmatpush.msrb.mxu2 %v2565_v40 }
 0xc91   :  { %2626 = vmatpush.msrb.mxu3 %v2585_v41 }
 0xc92   :  { %2608 = vmatpush.msrb.mxu2 %v2564_v24 }
 0xc93   :  { %2627 = vmatpush.msrb.mxu3 %v2584_v25 }
 0xc94   :  { %2471 = vmatmul.f32.gmra.mxu3 %v7816_v21  ;;  %2609 = vmatpush.msrb.mxu2 %v2563_v42 }
 0xc95   :  { %2628 = vmatpush.msrb.mxu3 %v2583_v43  ;;  %v6245_v43 = vld [vmem:[%s8605_s10 + $0x3] ss:$0 sm:$0xff] }
 0xc96   :  { %2610 = vmatpush.msrb.mxu2 %v2562_v44 }
 0xc97   :  { %2629 = vmatpush.msrb.mxu3 %v2582_v45 }
 0xc98   :  { %2611 = vmatpush.msrb.mxu2 %v2561_v46 }
 0xc99   :  { %2630 = vmatpush.msrb.mxu3 %v2581_v50 }
 0xc9a   :  { %2612 = vmatpush.msrb.mxu2 %v2560_v51 }
 0xc9b   :  { %2631 = vmatpush.msrb.mxu3 %v2580_v54  ;;  %2613 = vmatmul.f32.vlgmr.msrb.gmra.mxu2 %v7804_v4 }
 0xc9c   :  { %2832 = vmatpush.msra.mxu2 %v2389_v55 }
 0xc9d   :  { %2632 = vmatpush.msrb.mxu3 %v2579_v58 }
 0xc9e   :  { %2833 = vmatpush.msra.mxu2 %v2387_v59 }
 0xc9f   :  { %2633 = vmatpush.msrb.mxu3 %v2578_v60 }
 0xca0   :  { %2834 = vmatpush.msra.mxu2 %v2385_v63 }
 0xca1   :  { %2634 = vmatpush.msrb.mxu3 %v2577_v0 }
 0xca2   :  { %2835 = vmatpush.msra.mxu2 %v2383_v1 }
 0xca3   :  { %2635 = vmatpush.msrb.mxu3 %v2576_v2  ;;  %2616 = vmatmul.f32.gmra.mxu2 %v7814_v20 }
 0xca4   :  { %2636 = vmatmul.f32.vlgmr.msrb.gmra.mxu3 %v7806_v5  ;;  %2836 = vmatpush.msra.mxu2 %v2381_v3 }
 0xca5   :  { %2855 = vmatpush.msra.mxu3 %v2390_v8 }
 0xca6   :  { %2837 = vmatpush.msra.mxu2 %v2379_v9 }
 0xca7   :  { %2856 = vmatpush.msra.mxu3 %v2388_v10 }
 0xca8   :  { %2838 = vmatpush.msra.mxu2 %v2377_v6 }
 0xca9   :  { %2857 = vmatpush.msra.mxu3 %v2386_v7 }
 0xcaa   :  { %2839 = vmatpush.msra.mxu2 %v2375_v11 }
 0xcab   :  { %2858 = vmatpush.msra.mxu3 %v2384_v12 }
 0xcac   :  { %2639 = vmatmul.f32.gmra.mxu3 %v7816_v21  ;;  %2840 = vmatpush.msra.mxu2 %v2373_v13 }
 0xcad   :  { %2859 = vmatpush.msra.mxu3 %v2382_v14  ;;  %v2784_v14 = vld [vmem:[#allocation8 + $0x3f0] sm:$0xff] }
 0xcae   :  { %2841 = vmatpush.msra.mxu2 %v2371_v15  ;;  %v2785_v15 = vld [vmem:[#allocation8 + $0x3f8] sm:$0xff] }
 0xcaf   :  { %2860 = vmatpush.msra.mxu3 %v2380_v16  ;;  %v2782_v16 = vld [vmem:[#allocation8 + $0x3e0] sm:$0xff] }
 0xcb0   :  { %2842 = vmatpush.msra.mxu2 %v2369_v17  ;;  %v2783_v17 = vld [vmem:[#allocation8 + $0x3e8] sm:$0xff] }
 0xcb1   :  { %2861 = vmatpush.msra.mxu3 %v2378_v18  ;;  %v2780_v18 = vld [vmem:[#allocation8 + $0x3d0] sm:$0xff] }
 0xcb2   :  { %2843 = vmatpush.msra.mxu2 %v2367_v19  ;;  %v2781_v19 = vld [vmem:[#allocation8 + $0x3d8] sm:$0xff] }
 0xcb3   :  { %2862 = vmatpush.msra.mxu3 %v2376_v22  ;;  %v2778_v22 = vld [vmem:[#allocation8 + $0x3c0] sm:$0xff] }
 0xcb4   :  { %2844 = vmatpush.msra.mxu2 %v2365_v23  ;;  %v2779_v23 = vld [vmem:[#allocation8 + $0x3c8] sm:$0xff] }
 0xcb5   :  { %2863 = vmatpush.msra.mxu3 %v2374_v26  ;;  %v2776_v26 = vld [vmem:[#allocation8 + $0x3b0] sm:$0xff] }
 0xcb6   :  { %2845 = vmatpush.msra.mxu2 %v2363_v61  ;;  %v2777_v61 = vld [vmem:[#allocation8 + $0x3b8] sm:$0xff] }
 0xcb7   :  { %2864 = vmatpush.msra.mxu3 %v2372_v27  ;;  %v2774_v27 = vld [vmem:[#allocation8 + $0x3a0] sm:$0xff] }
 0xcb8   :  { %2846 = vmatpush.msra.mxu2 %v2361_v62  ;;  %v2775_v62 = vld [vmem:[#allocation8 + $0x3a8] sm:$0xff] }
 0xcb9   :  { %2865 = vmatpush.msra.mxu3 %v2370_v28  ;;  %v2772_v28 = vld [vmem:[#allocation8 + $0x390] sm:$0xff] }
 0xcba   :  { %2847 = vmatpush.msra.mxu2 %v2359_v33  ;;  %v2768_v33 = vld [vmem:[#allocation8 + $0x370] sm:$0xff] }
 0xcbb   :  { %2866 = vmatpush.msra.mxu3 %v2368_v29  ;;  %v2773_v29 = vld [vmem:[#allocation8 + $0x398] sm:$0xff] }
 0xcbd   :  { %2867 = vmatpush.msra.mxu3 %v2366_v30  ;;  %v2770_v30 = vld [vmem:[#allocation8 + $0x380] sm:$0xff] }
 0xcbf   :  { %2868 = vmatpush.msra.mxu3 %v2364_v31  ;;  %v2771_v31 = vld [vmem:[#allocation8 + $0x388] sm:$0xff] }
 0xcc1   :  { %2869 = vmatpush.msra.mxu3 %v2362_v32 }
 0xcc3   :  { %2870 = vmatpush.msra.mxu3 %v2360_v34  ;;  %v2769_v34 = vld [vmem:[#allocation8 + $0x378] sm:$0xff] }
 0xcfe   :  { %v2332_v52 = vpop.f32.mrf.mxu2 }
 0xcff   :  { %2848 = vmatmul.f32.vlgmr.msra.gmra.mxu2 %v2332_v52  ;;  %2871 = vmatmul.f32.vlgmr.msra.gmra.mxu3 %v2332_v52  ;;  %v2766_v52 = vld [vmem:[#allocation8 + $0x360] sm:$0xff] }
 0xd06   :  { %v2446_v35 = vpop.f32.mrf.mxu2 }
 0xd07   :  { %v2355_v53 = vpop.f32.mrf.mxu3  ;;  %v2447_v37 = vadd.f32 %v6244_v36, %v2446_v35  ;;  %v2764_v35 = vld [vmem:[#allocation8 + $0x350] sm:$0xff] }
 0xd08   :  { %2851 = vmatmul.f32.gmra.mxu2 %v2355_v53  ;;  %2874 = vmatmul.f32.gmra.mxu3 %v2355_v53  ;;  %v2767_v53 = vld [vmem:[#allocation8 + $0x368] sm:$0xff] }
 0xd0e   :  { %v2449_v40 = vpop.f32.mrf.mxu2 }
 0xd0f   :  { %v2469_v38 = vpop.f32.mrf.mxu3  ;;  %v2450_v41 = vadd.f32 %v6244_v36, %v2449_v40  ;;  %v2765_v36 = vld [vmem:[#allocation8 + $0x358] sm:$0xff] }
 0xd10   :  { %v2470_v39 = vadd.f32 %v2469_v38, %v2447_v37  ;;  %v2762_v37 = vld [vmem:[#allocation8 + $0x340] sm:$0xff]  ;;  %v2763_v38 = vld [vmem:[#allocation8 + $0x348] sm:$0xff] }
 0xd12   :  { %2659 = vmatmul.f32.vlgmr.msrb.gmra.mxu0 %v2470_v39 }
 0xd17   :  { %v2472_v24 = vpop.f32.mrf.mxu3 }
 0xd18   :  { %v2473_v25 = vadd.f32 %v2472_v24, %v2450_v41  ;;  %v2760_v24 = vld [vmem:[#allocation8 + $0x330] sm:$0xff] }
 0xd1a   :  { %2679 = vmatmul.f32.vlgmr.msrb.gmra.mxu1 %v2473_v25  ;;  %v2761_v25 = vld [vmem:[#allocation8 + $0x338] sm:$0xff] }
 0xd1e   :  { %v2614_v42 = vpop.f32.mrf.mxu2 }
 0xd1f   :  { %v2615_v44 = vadd.f32 %v6245_v43, %v2614_v42  ;;  %v2758_v42 = vld [vmem:[#allocation8 + $0x320] sm:$0xff] }
 0xd26   :  { %v2617_v50 = vpop.f32.mrf.mxu2 }
 0xd27   :  { %v2637_v45 = vpop.f32.mrf.mxu3  ;;  %v2618_v51 = vadd.f32 %v6245_v43, %v2617_v50  ;;  %v2759_v43 = vld [vmem:[#allocation8 + $0x328] sm:$0xff] }
 0xd28   :  { %v2638_v46 = vadd.f32 %v2637_v45, %v2615_v44  ;;  %v2756_v44 = vld [vmem:[#allocation8 + $0x310] sm:$0xff]  ;;  %v2757_v45 = vld [vmem:[#allocation8 + $0x318] sm:$0xff] }
 0xd2a   :  { %2725 = vmatpush.msra.mxu0 %v2638_v46 }
 0xd2c   :  { %2786 = vmatpush.msrb.mxu0 %v2784_v14 }
 0xd2e   :  { %2787 = vmatpush.msrb.mxu0 %v2782_v16 }
 0xd2f   :  { %v2640_v54 = vpop.f32.mrf.mxu3 }
 0xd30   :  { %v2641_v55 = vadd.f32 %v2640_v54, %v2618_v51  ;;  %2788 = vmatpush.msrb.mxu0 %v2780_v18  ;;  %v2754_v51 = vld [vmem:[#allocation8 + $0x300] sm:$0xff]  ;;  %v2755_v54 = vld [vmem:[#allocation8 + $0x308] sm:$0xff] }
 0xd32   :  { %2748 = vmatpush.msra.mxu1 %v2641_v55  ;;  %2789 = vmatpush.msrb.mxu0 %v2778_v22 }
 0xd34   :  { %2809 = vmatpush.msrb.mxu1 %v2785_v15  ;;  %2790 = vmatpush.msrb.mxu0 %v2776_v26 }
 0xd36   :  { %2810 = vmatpush.msrb.mxu1 %v2783_v17  ;;  %2791 = vmatpush.msrb.mxu0 %v2774_v27  ;;  %v2996_v27 = vld [vmem:[#allocation10 + $0x2f0] sm:$0xff] }
 0xd38   :  { %2811 = vmatpush.msrb.mxu1 %v2781_v19  ;;  %2792 = vmatpush.msrb.mxu0 %v2772_v28  ;;  %v2994_v28 = vld [vmem:[#allocation10 + $0x2e0] sm:$0xff] }
 0xd3a   :  { %2812 = vmatpush.msrb.mxu1 %v2779_v23  ;;  %2793 = vmatpush.msrb.mxu0 %v2770_v30  ;;  %v2995_v30 = vld [vmem:[#allocation10 + $0x2e8] sm:$0xff] }
 0xd3c   :  { %2813 = vmatpush.msrb.mxu1 %v2777_v61  ;;  %2794 = vmatpush.msrb.mxu0 %v2768_v33 }
 0xd3e   :  { %2814 = vmatpush.msrb.mxu1 %v2775_v62  ;;  %2795 = vmatpush.msrb.mxu0 %v2766_v52  ;;  %v2997_v62 = vld [vmem:[#allocation10 + $0x2f8] sm:$0xff] }
 0xd3f   :  { %3083 = vmatpush.msrb.mxu2 %v2997_v62  ;;  %v3007_v62 = vld [vmem:[#allocation10 + $0x348] sm:$0xff] }
 0xd40   :  { %2815 = vmatpush.msrb.mxu1 %v2773_v29  ;;  %2796 = vmatpush.msrb.mxu0 %v2764_v35  ;;  %v3026_v29 = vld [vmem:[#allocation10 + $0x3e0] sm:$0xff] }
 0xd41   :  { %3084 = vmatpush.msrb.mxu2 %v2995_v30  ;;  %v3005_v30 = vld [vmem:[#allocation10 + $0x338] sm:$0xff] }
 0xd42   :  { %2816 = vmatpush.msrb.mxu1 %v2771_v31  ;;  %2797 = vmatpush.msrb.mxu0 %v2762_v37  ;;  %v3027_v31 = vld [vmem:[#allocation10 + $0x3e8] sm:$0xff] }
 0xd44   :  { %2817 = vmatpush.msrb.mxu1 %v2769_v34  ;;  %2798 = vmatpush.msrb.mxu0 %v2760_v24  ;;  %v2992_v24 = vld [vmem:[#allocation10 + $0x2d0] sm:$0xff] }
 0xd46   :  { %2818 = vmatpush.msrb.mxu1 %v2767_v53  ;;  %2799 = vmatpush.msrb.mxu0 %v2758_v42  ;;  %v2993_v42 = vld [vmem:[#allocation10 + $0x2d8] sm:$0xff] }
 0xd47   :  { %3085 = vmatpush.msrb.mxu2 %v2993_v42 }
 0xd48   :  { %2819 = vmatpush.msrb.mxu1 %v2765_v36  ;;  %2800 = vmatpush.msrb.mxu0 %v2756_v44  ;;  %v2990_v44 = vld [vmem:[#allocation10 + $0x2c0] sm:$0xff] }
 0xd4a   :  { %2820 = vmatpush.msrb.mxu1 %v2763_v38  ;;  %2801 = vmatpush.msrb.mxu0 %v2754_v51  ;;  %v2988_v51 = vld [vmem:[#allocation10 + $0x2b0] sm:$0xff] }
 0xd4c   :  { %2821 = vmatpush.msrb.mxu1 %v2761_v25  ;;  %v3024_v25 = vld [vmem:[#allocation10 + $0x3d0] sm:$0xff] }
 0xd4e   :  { %2822 = vmatpush.msrb.mxu1 %v2759_v43  ;;  %v3025_v43 = vld [vmem:[#allocation10 + $0x3d8] sm:$0xff] }
 0xd50   :  { %2823 = vmatpush.msrb.mxu1 %v2757_v45  ;;  %v3022_v45 = vld [vmem:[#allocation10 + $0x3c0] sm:$0xff] }
 0xd52   :  { %2824 = vmatpush.msrb.mxu1 %v2755_v54  ;;  %v3020_v54 = vld [vmem:[#allocation10 + $0x3b0] sm:$0xff] }
 0xd8f   :  { %v2660_v58 = vpop.f32.mrf.mxu0 }
 0xd90   :  { %v2683_v59 = vmul.f32 0.088388346, %v2660_v58 }
 0xd92   :  { %v2685_v60 = vsel %vm915_vm1, %v2683_v59, -inf }
 0xd93   :  { %2686 = vmax.xlane.f32.xlu2 %v2685_v60  ;;  %v2849_v60 = vpop.f32.mrf.mxu2 }
 0xd97   :  { %v2680_v63 = vpop.f32.mrf.mxu1 }
 0xd98   :  { %v2684_v0 = vmul.f32 0.088388346, %v2680_v63  ;;  %v2872_v63 = vpop.f32.mrf.mxu3 }
 0xd9a   :  { %v2688_v1 = vsel %vm915_vm1, %v2684_v0, -inf }
 0xd9b   :  { %2689 = vmax.xlane.f32.xlu0 %v2688_v1 }
 0xe06   :  { %v2687_v2 = vpop.xlane.xlu2 %2686 }
 0xe07   :  { %v2691_v3 = vsub.f32 %v2683_v59, %v2687_v2  ;;  %v5945_v59 = vld [vmem:[%s8606_s19 + $0x2] sm:$0x3] }
 0xe08   :  { %v2882_v1 = vperm.slane %v5945_v59, 1 }
 0xe09   :  { %v2693_v8 = vmul.f32 1.442695, %v2691_v3 }
 0xe0b   :  { %6309 = vpow2.f32 %v2693_v8 }
 0xe0e   :  { %v2690_v9 = vpop.xlane.xlu0 %2689 }
 0xe0f   :  { %v2692_v10 = vsub.f32 %v2684_v0, %v2690_v9  ;;  %v2881_v0 = vperm.slane %v5945_v59, 0  ;;  %v2986_v59 = vld [vmem:[#allocation10 + $0x2a0] sm:$0xff] }
 0xe11   :  { %v6310_v6 = vpop.eup %6309  ;;  %v2695_v7 = vmul.f32 1.442695, %v2692_v10 }
 0xe12   :  { %v2697_v11 = vsel %vm915_vm1, %v6310_v6, 0.0 }
 0xe13   :  { %6311 = vpow2.f32 %v2695_v7  ;;  %2698 = vadd.xlane.f32.xlu1 %v2697_v11 }
 0xe19   :  { %v7885_v12 = vpop.eup %6311 }
 0xe1a   :  { %v2700_v13 = vsel %vm915_vm1, %v7885_v12, 0.0 }
 0xe1b   :  { %2701 = vadd.xlane.f32.xlu2 %v2700_v13  ;;  %v2875_v13 = vpop.f32.mrf.mxu3 }
 0xe86   :  { %v2699_v32 = vpop.xlane.xlu1 %2698 }
 0xe87   :  { %6313 = vrcp.f32 %v2699_v32 }
 0xe8d   :  { %v6314_v39 = vpop.eup %6313 }
 0xe8e   :  { %v2705_v40 = vmul.f32 %v6314_v39, %v6310_v6  ;;  %v2702_v41 = vpop.xlane.xlu2 %2701 }
 0xe8f   :  { %6315 = vrcp.f32 %v2702_v41 }
 0xe90   :  { %5943 = vmatmul.msk.f32.vlgmr.msra.gmra.mxu0 %vm915_vm1, %v2705_v40 }
 0xe91   :  { %3037 = vmatpush.msra.mxu0 %v2996_v27  ;;  %v3006_v27 = vld [vmem:[#allocation10 + $0x340] sm:$0xff] }
 0xe93   :  { %3038 = vmatpush.msra.mxu0 %v2994_v28  ;;  %v3004_v28 = vld [vmem:[#allocation10 + $0x330] sm:$0xff] }
 0xe95   :  { %v6316_v46 = vpop.eup %6315  ;;  %3039 = vmatpush.msra.mxu0 %v2992_v24  ;;  %v2999_v24 = vld [vmem:[#allocation10 + $0x308] sm:$0xff] }
 0xe96   :  { %v2706_v50 = vmul.f32 %v6316_v46, %v7885_v12  ;;  %v2852_v12 = vpop.f32.mrf.mxu2  ;;  %v2991_v46 = vld [vmem:[#allocation10 + $0x2c8] sm:$0xff] }
 0xe97   :  { %3040 = vmatpush.msra.mxu0 %v2990_v44  ;;  %3086 = vmatpush.msrb.mxu2 %v2991_v46  ;;  %v3164_v44 = vld [vmem:[#allocation11 + $0x2f0] sm:$0xff]  ;;  %v3162_v46 = vld [vmem:[#allocation11 + $0x2e0] sm:$0xff] }
 0xe98   :  { %5944 = vmatmul.msk.f32.vlgmr.msra.gmra.mxu1 %vm915_vm1, %v2706_v50  ;;  %v3023_v50 = vld [vmem:[#allocation10 + $0x3c8] sm:$0xff] }
 0xe99   :  { %3041 = vmatpush.msra.mxu0 %v2988_v51 }
 0xe9b   :  { %3042 = vmatpush.msra.mxu0 %v2986_v59 }
 0xf0d   :  { %v2727_v55 = vpop.f32.mrf.mxu0 }
 0xf0e   :  { %2802 = vmatmul.f32.vlgmr.msrb.gmra.mxu0 %v2727_v55  ;;  %2825 = vmatmul.f32.vlgmr.msrb.gmra.mxu1 %v2727_v55  ;;  %v2989_v55 = vld [vmem:[#allocation10 + $0x2b8] sm:$0xff] }
 0xf0f   :  { %3087 = vmatpush.msrb.mxu2 %v2989_v55  ;;  %v3161_v55 = vld [vmem:[#allocation11 + $0x2d8] sm:$0xff] }
 0xf15   :  { %v2750_v58 = vpop.f32.mrf.mxu1 }
 0xf16   :  { %2805 = vmatmul.f32.gmra.mxu0 %v2750_v58  ;;  %2828 = vmatmul.f32.gmra.mxu1 %v2750_v58  ;;  %v3021_v58 = vld [vmem:[#allocation10 + $0x3b8] sm:$0xff] }
 0xf8b   :  { %v2803_v2 = vpop.f32.mrf.mxu0  ;;  %v2826_v3 = vpop.f32.mrf.mxu1 }
 0xf8c   :  { %v2850_v8 = vadd.f32 %v2849_v60, %v2803_v2  ;;  %v2873_v9 = vadd.f32 %v2872_v63, %v2826_v3  ;;  %v3018_v60 = vld [vmem:[#allocation10 + $0x3a0] sm:$0xff]  ;;  %v2987_v63 = vld [vmem:[#allocation10 + $0x2a8] sm:$0xff]  ;;  %v3016_v2 = vld [vmem:[#allocation10 + $0x390] sm:$0xff] }
 0xf8d   :  { %3088 = vmatpush.msrb.mxu2 %v2987_v63  ;;  %v2985_v3 = vld [vmem:[#allocation10 + $0x298] sm:$0xff]  ;;  %v3194_v63 = vld [vmem:[#allocation11 + $0x3e0] sm:$0xff] }
 0xf8e   :  { %v2885_v10 = vadd.f32 %v2881_v0, %v2850_v8  ;;  %v2886_v6 = vadd.f32 %v2882_v1, %v2873_v9  ;;  %v3017_v8 = vld [vmem:[#allocation10 + $0x398] sm:$0xff]  ;;  %v2982_v9 = vld [vmem:[#allocation10 + $0x280] sm:$0xff] }
 0xf8f   :  { %3089 = vmatpush.msrb.mxu2 %v2985_v3 }
 0xf90   :  { %v2889_v7 = vadd.f32 %v2885_v10, %v7804_v4  ;;  %v2890_v11 = vadd.f32 %v2886_v6, %v7806_v5  ;;  %v3028_v4 = vld [vmem:[#allocation10 + $0x3f0] sm:$0xff]  ;;  %v3029_v5 = vld [vmem:[#allocation10 + $0x3f8] sm:$0xff]  ;;  %v3014_v10 = vld [vmem:[#allocation10 + $0x380] sm:$0xff] }
 0xf91   :  { %3060 = vmatpush.msra.mxu1 %v3028_v4  ;;  %3106 = vmatpush.msrb.mxu3 %v3029_v5  ;;  %v2983_v6 = vld [vmem:[#allocation10 + $0x288] sm:$0xff]  ;;  %v2972_v5 = vld [vmem:[#allocation10 + $0x230] sm:$0xff] }
 0xf92   :  { %v2897_v14 = vadd.f32 %v2890_v11, %v2889_v7  ;;  %3090 = vmatpush.msrb.mxu2 %v2983_v6  ;;  %v2975_v4 = vld [vmem:[#allocation10 + $0x248] sm:$0xff] }
 0xf93   :  { %v2806_v15 = vpop.f32.mrf.mxu0  ;;  %v2829_v16 = vpop.f32.mrf.mxu1  ;;  %3061 = vmatpush.msra.mxu1 %v3026_v29  ;;  %3107 = vmatpush.msrb.mxu3 %v3027_v31  ;;  %v2973_v29 = vld [vmem:[#allocation10 + $0x238] sm:$0xff]  ;;  %v2970_v31 = vld [vmem:[#allocation10 + $0x220] sm:$0xff] }
 0xf94   :  { %v2853_v17 = vadd.f32 %v2852_v12, %v2806_v15  ;;  %v2876_v18 = vadd.f32 %v2875_v13, %v2829_v16  ;;  %2898 = vadd.xlane.f32.xlu0 %v2897_v14  ;;  %v3012_v12 = vld [vmem:[#allocation10 + $0x370] sm:$0xff]  ;;  %v2981_v13 = vld [vmem:[#allocation10 + $0x278] sm:$0xff]  ;;  %v2978_v15 = vld [vmem:[#allocation10 + $0x260] sm:$0xff] }
 0xf95   :  { %3062 = vmatpush.msra.mxu1 %v3024_v25  ;;  %3108 = vmatpush.msrb.mxu3 %v3025_v43  ;;  %v3013_v14 = vld [vmem:[#allocation10 + $0x378] sm:$0xff]  ;;  %v3010_v16 = vld [vmem:[#allocation10 + $0x360] sm:$0xff] }
 0xf96   :  { %v2887_v19 = vadd.f32 %v2881_v0, %v2853_v17  ;;  %v2888_v22 = vadd.f32 %v2882_v1, %v2876_v18  ;;  %v3019_v0 = vld [vmem:[#allocation10 + $0x3a8] sm:$0xff]  ;;  %v2984_v1 = vld [vmem:[#allocation10 + $0x290] sm:$0xff]  ;;  %3091 = vmatpush.msrb.mxu2 %v2981_v13 }
 0xf97   :  { %3063 = vmatpush.msra.mxu1 %v3022_v45  ;;  %3109 = vmatpush.msrb.mxu3 %v3023_v50  ;;  %v2979_v17 = vld [vmem:[#allocation10 + $0x268] sm:$0xff]  ;;  %v3165_v45 = vld [vmem:[#allocation11 + $0x2f8] sm:$0xff] }
 0xf98   :  { %v2891_v23 = vadd.f32 %v2887_v19, %v7814_v20  ;;  %v2892_v26 = vadd.f32 %v2888_v22, %v7816_v21  ;;  %3043 = vmatpush.msra.mxu0 %v2984_v1  ;;  %v3011_v18 = vld [vmem:[#allocation10 + $0x368] sm:$0xff]  ;;  %3092 = vmatpush.msrb.mxu2 %v2979_v17  ;;  %v2976_v19 = vld [vmem:[#allocation10 + $0x250] sm:$0xff] }
 0xf99   :  { %3064 = vmatpush.msra.mxu1 %v3020_v54  ;;  %3110 = vmatpush.msrb.mxu3 %v3021_v58  ;;  %v3008_v22 = vld [vmem:[#allocation10 + $0x350] sm:$0xff]  ;;  %v3163_v50 = vld [vmem:[#allocation11 + $0x2e8] sm:$0xff] }
 0xf9a   :  { %v2900_v61 = vadd.f32 %v2892_v26, %v2891_v23  ;;  %3044 = vmatpush.msra.mxu0 %v2982_v9  ;;  %v3160_v54 = vld [vmem:[#allocation11 + $0x2d0] sm:$0xff]  ;;  %v3159_v1 = vld [vmem:[#allocation11 + $0x2c8] sm:$0xff] }
 0xf9b   :  { %3065 = vmatpush.msra.mxu1 %v3018_v60  ;;  %3111 = vmatpush.msrb.mxu3 %v3019_v0  ;;  %v3196_v58 = vld [vmem:[#allocation11 + $0x3f0] sm:$0xff]  ;;  %v3197_v60 = vld [vmem:[#allocation11 + $0x3f8] sm:$0xff]  ;;  %v3158_v0 = vld [vmem:[#allocation11 + $0x2c0] sm:$0xff] }
 0xf9c   :  { %2901 = vadd.xlane.f32.xlu1 %v2900_v61  ;;  %v2974_v61 = vld [vmem:[#allocation10 + $0x240] sm:$0xff]  ;;  %v3192_v9 = vld [vmem:[#allocation11 + $0x3d0] sm:$0xff]  ;;  %v3191_v13 = vld [vmem:[#allocation11 + $0x3c8] sm:$0xff] }
 0xf9d   :  { %3066 = vmatpush.msra.mxu1 %v3016_v2  ;;  %3112 = vmatpush.msrb.mxu3 %v3017_v8  ;;  %v3195_v2 = vld [vmem:[#allocation11 + $0x3e8] sm:$0xff]  ;;  %v3188_v17 = vld [vmem:[#allocation11 + $0x3b0] sm:$0xff] }
 0xf9f   :  { %3067 = vmatpush.msra.mxu1 %v3014_v10  ;;  %v3193_v10 = vld [vmem:[#allocation11 + $0x3d8] sm:$0xff] }
 0xfa1   :  { %3068 = vmatpush.msra.mxu1 %v3012_v12  ;;  %v3190_v12 = vld [vmem:[#allocation11 + $0x3c0] sm:$0xff] }
 0xfa3   :  { %3069 = vmatpush.msra.mxu1 %v3010_v16  ;;  %v3155_v16 = vld [vmem:[#allocation11 + $0x2a8] sm:$0xff] }
 0xfa5   :  { %3070 = vmatpush.msra.mxu1 %v3008_v22  ;;  %v3152_v22 = vld [vmem:[#allocation11 + $0x290] sm:$0xff] }
 0xfa7   :  { %3071 = vmatpush.msra.mxu1 %v3006_v27  ;;  %v7925_v27 = vld [vmem:[%s8607_s15 + $0x2] sm:$0x3] }
 0xfa9   :  { %3072 = vmatpush.msra.mxu1 %v3004_v28 }
0x1007   :  { %v2899_v20 = vpop.xlane.xlu0 %2898 }
0x1008   :  { %v2903_v21 = vmul.f32 %v2899_v20, %v7668_v49  ;;  %v3002_v20 = vld [vmem:[#allocation10 + $0x320] sm:$0xff] }
0x1009   :  { %3073 = vmatpush.msra.mxu1 %v3002_v20 }
0x100a   :  { %v7898_v32 = vsub.f32 %v2889_v7, %v2903_v21  ;;  %v7900_v33 = vsub.f32 %v2890_v11, %v2903_v21  ;;  %v3015_v7 = vld [vmem:[#allocation10 + $0x388] sm:$0xff]  ;;  %v2980_v11 = vld [vmem:[#allocation10 + $0x270] sm:$0xff] }
0x100b   :  { %3113 = vmatpush.msrb.mxu3 %v3015_v7  ;;  %3045 = vmatpush.msra.mxu0 %v2980_v11  ;;  %v2971_v21 = vld [vmem:[#allocation10 + $0x228] sm:$0xff]  ;;  %v3156_v7 = vld [vmem:[#allocation11 + $0x2b0] sm:$0xff]  ;;  %v3157_v11 = vld [vmem:[#allocation11 + $0x2b8] sm:$0xff] }
0x100c   :  { %v2909_v34 = vmul.f32 %v7898_v32, %v7898_v32  ;;  %v2910_v52 = vmul.f32 %v7900_v33, %v7900_v33 }
0x100d   :  { %3114 = vmatpush.msrb.mxu3 %v3013_v14  ;;  %3046 = vmatpush.msra.mxu0 %v2978_v15  ;;  %v3154_v15 = vld [vmem:[#allocation11 + $0x2a0] sm:$0xff] }
0x100e   :  { %v2913_v53 = vadd.f32 %v2910_v52, %v2909_v34  ;;  %v3003_v34 = vld [vmem:[#allocation10 + $0x328] sm:$0xff]  ;;  %v2968_v52 = vld [vmem:[#allocation10 + $0x210] sm:$0xff] }
0x100f   :  { %v2902_v35 = vpop.xlane.xlu1 %2901  ;;  %3115 = vmatpush.msrb.mxu3 %v3011_v18  ;;  %3047 = vmatpush.msra.mxu0 %v2976_v19  ;;  %v3189_v18 = vld [vmem:[#allocation11 + $0x3b8] sm:$0xff] }
0x1010   :  { %v2904_v36 = vmul.f32 %v2902_v35, %v7668_v49  ;;  %2914 = vadd.xlane.f32.xlu2 %v2913_v53  ;;  %v3000_v53 = vld [vmem:[#allocation10 + $0x310] sm:$0xff]  ;;  %v2969_v35 = vld [vmem:[#allocation10 + $0x218] sm:$0xff] }
0x1011   :  { %3048 = vmatpush.msra.mxu0 %v2974_v61  ;;  %3074 = vmatpush.msra.mxu1 %v3000_v53  ;;  %v3187_v61 = vld [vmem:[#allocation11 + $0x3a8] sm:$0xff]  ;;  %v2948_v53 = vperm.slane %v7925_v27, 0 }
0x1012   :  { %v7907_v37 = vsub.f32 %v2891_v23, %v2904_v36  ;;  %v7909_v38 = vsub.f32 %v2892_v26, %v2904_v36  ;;  %v2977_v23 = vld [vmem:[#allocation10 + $0x258] sm:$0xff] }
0x1013   :  { %v3009_v26 = vld [vmem:[#allocation10 + $0x358] sm:$0xff]  ;;  %3093 = vmatpush.msrb.mxu2 %v2977_v23  ;;  %3049 = vmatpush.msra.mxu0 %v2972_v5  ;;  %v3151_v5 = vld [vmem:[#allocation11 + $0x288] sm:$0xff] }
0x1014   :  { %v2911_v39 = vmul.f32 %v7907_v37, %v7907_v37  ;;  %v2912_v40 = vmul.f32 %v7909_v38, %v7909_v38  ;;  %3116 = vmatpush.msrb.mxu3 %v3009_v26  ;;  %v3001_v36 = vld [vmem:[#allocation10 + $0x318] sm:$0xff]  ;;  %v3186_v26 = vld [vmem:[#allocation11 + $0x3a0] sm:$0xff] }
0x1015   :  { %3094 = vmatpush.msrb.mxu2 %v2975_v4  ;;  %3050 = vmatpush.msra.mxu0 %v2970_v31  ;;  %v3153_v23 = vld [vmem:[#allocation11 + $0x298] sm:$0xff] }
0x1016   :  { %v2916_v41 = vadd.f32 %v2912_v40, %v2911_v39  ;;  %3117 = vmatpush.msrb.mxu3 %v3007_v62  ;;  %v2966_v39 = vld [vmem:[#allocation10 + $0x200] sm:$0xff] }
0x1017   :  { %3095 = vmatpush.msrb.mxu2 %v2973_v29  ;;  %3051 = vmatpush.msra.mxu0 %v2968_v52  ;;  %v2998_v40 = vld [vmem:[#allocation10 + $0x300] sm:$0xff]  ;;  %v3184_v29 = vld [vmem:[#allocation11 + $0x390] sm:$0xff]  ;;  %v3149_v52 = vld [vmem:[#allocation11 + $0x278] sm:$0xff] }
0x1018   :  { %2917 = vadd.xlane.f32.xlu0 %v2916_v41  ;;  %3118 = vmatpush.msrb.mxu3 %v3005_v30  ;;  %v2967_v41 = vld [vmem:[#allocation10 + $0x208] sm:$0xff]  ;;  %v3150_v62 = vld [vmem:[#allocation11 + $0x280] sm:$0xff]  ;;  %v3185_v30 = vld [vmem:[#allocation11 + $0x398] sm:$0xff] }
0x1019   :  { %3096 = vmatpush.msrb.mxu2 %v2971_v21  ;;  %3052 = vmatpush.msra.mxu0 %v2966_v39  ;;  %v5947_v21 = vld [vmem:[%s8608_s27 + $0x2] sm:$0x3]  ;;  %v3183_v39 = vld [vmem:[#allocation11 + $0x388] sm:$0xff] }
0x101a   :  { %3119 = vmatpush.msrb.mxu3 %v3003_v34  ;;  %3075 = vmatpush.msra.mxu1 %v2998_v40  ;;  %v3148_v34 = vld [vmem:[#allocation11 + $0x270] sm:$0xff] }
0x101b   :  { %3097 = vmatpush.msrb.mxu2 %v2969_v35  ;;  %3205 = vmatpush.msrb.mxu0 %v3164_v44  ;;  %v2949_v35 = vperm.slane %v7925_v27, 1  ;;  %v2957_v44 = vperm.slane %v5947_v21, 0  ;;  %v3173_v27 = vld [vmem:[#allocation11 + $0x338] sm:$0xff] }
0x101c   :  { %3120 = vmatpush.msrb.mxu3 %v3001_v36  ;;  %3228 = vmatpush.msrb.mxu1 %v3196_v58  ;;  %v3182_v36 = vld [vmem:[#allocation11 + $0x380] sm:$0xff] }
0x101d   :  { %3098 = vmatpush.msrb.mxu2 %v2967_v41  ;;  %3206 = vmatpush.msrb.mxu0 %v3162_v46  ;;  %v3180_v46 = vld [vmem:[#allocation11 + $0x370] sm:$0xff] }
0x101e   :  { %3121 = vmatpush.msrb.mxu3 %v2999_v24  ;;  %3229 = vmatpush.msrb.mxu1 %v3194_v63  ;;  %v3146_v24 = vld [vmem:[#allocation11 + $0x260] sm:$0xff] }
0x101f   :  { %3251 = vmatpush.msra.mxu2 %v3165_v45  ;;  %3207 = vmatpush.msrb.mxu0 %v3160_v54  ;;  %v2958_v45 = vperm.slane %v5947_v21, 1  ;;  %v3144_v54 = vld [vmem:[#allocation11 + $0x250] sm:$0xff] }
0x1020   :  { %3274 = vmatpush.msra.mxu3 %v3197_v60  ;;  %3230 = vmatpush.msrb.mxu1 %v3192_v9 }
0x1021   :  { %3252 = vmatpush.msra.mxu2 %v3163_v50  ;;  %3208 = vmatpush.msrb.mxu0 %v3158_v0  ;;  %v3181_v50 = vld [vmem:[#allocation11 + $0x378] sm:$0xff]  ;;  %v3142_v0 = vld [vmem:[#allocation11 + $0x240] sm:$0xff] }
0x1022   :  { %3275 = vmatpush.msra.mxu3 %v3195_v2  ;;  %3231 = vmatpush.msrb.mxu1 %v3190_v12  ;;  %v3141_v12 = vld [vmem:[#allocation11 + $0x238] sm:$0xff] }
0x1023   :  { %3253 = vmatpush.msra.mxu2 %v3161_v55  ;;  %3209 = vmatpush.msrb.mxu0 %v3156_v7  ;;  %v3145_v55 = vld [vmem:[#allocation11 + $0x258] sm:$0xff] }
0x1024   :  { %3276 = vmatpush.msra.mxu3 %v3193_v10  ;;  %3232 = vmatpush.msrb.mxu1 %v3188_v17  ;;  %v3136_v17 = vld [vmem:[#allocation11 + $0x210] sm:$0xff] }
0x1025   :  { %3254 = vmatpush.msra.mxu2 %v3159_v1  ;;  %3210 = vmatpush.msrb.mxu0 %v3154_v15  ;;  %v3143_v1 = vld [vmem:[#allocation11 + $0x248] sm:$0xff] }
0x1026   :  { %3277 = vmatpush.msra.mxu3 %v3191_v13  ;;  %3233 = vmatpush.msrb.mxu1 %v3186_v26  ;;  %v3138_v13 = vld [vmem:[#allocation11 + $0x220] sm:$0xff]  ;;  %v3139_v15 = vld [vmem:[#allocation11 + $0x228] sm:$0xff]  ;;  %v3172_v26 = vld [vmem:[#allocation11 + $0x330] sm:$0xff] }
0x1027   :  { %3255 = vmatpush.msra.mxu2 %v3157_v11  ;;  %3211 = vmatpush.msrb.mxu0 %v3152_v22  ;;  %v3140_v11 = vld [vmem:[#allocation11 + $0x230] sm:$0xff]  ;;  %v3175_v22 = vld [vmem:[#allocation11 + $0x348] sm:$0xff] }
0x1028   :  { %3278 = vmatpush.msra.mxu3 %v3189_v18  ;;  %3234 = vmatpush.msrb.mxu1 %v3184_v29  ;;  %v3174_v18 = vld [vmem:[#allocation11 + $0x340] sm:$0xff] }
0x1029   :  { %3256 = vmatpush.msra.mxu2 %v3155_v16  ;;  %3212 = vmatpush.msrb.mxu0 %v3150_v62  ;;  %v3177_v16 = vld [vmem:[#allocation11 + $0x358] sm:$0xff]  ;;  %v3171_v62 = vld [vmem:[#allocation11 + $0x328] sm:$0xff]  ;;  %v3166_v29 = vld [vmem:[#allocation11 + $0x300] sm:$0xff] }
0x102a   :  { %3279 = vmatpush.msra.mxu3 %v3187_v61  ;;  %3235 = vmatpush.msrb.mxu1 %v3182_v36  ;;  %v3135_v61 = vld [vmem:[#allocation11 + $0x208] sm:$0xff] }
0x102b   :  { %3257 = vmatpush.msra.mxu2 %v3153_v23  ;;  %3213 = vmatpush.msrb.mxu0 %v3148_v34  ;;  %v3134_v23 = vld [vmem:[#allocation11 + $0x200] sm:$0xff] }
0x102c   :  { %3280 = vmatpush.msra.mxu3 %v3185_v30  ;;  %3236 = vmatpush.msrb.mxu1 %v3180_v46  ;;  %v3167_v30 = vld [vmem:[#allocation11 + $0x308] sm:$0xff] }
0x102d   :  { %3258 = vmatpush.msra.mxu2 %v3151_v5  ;;  %3214 = vmatpush.msrb.mxu0 %v3146_v24  ;;  %v3168_v5 = vld [vmem:[#allocation11 + $0x310] sm:$0xff] }
0x102e   :  { %3281 = vmatpush.msra.mxu3 %v3183_v39 }
0x102f   :  { %3259 = vmatpush.msra.mxu2 %v3149_v52  ;;  %3215 = vmatpush.msrb.mxu0 %v3144_v54 }
0x1030   :  { %3282 = vmatpush.msra.mxu3 %v3181_v50 }
0x1031   :  { %3216 = vmatpush.msrb.mxu0 %v3142_v0  ;;  %v3472_v0 = vld [vmem:[%s8612_s12 + $0x60] sm:$0xff] }
0x1033   :  { %3217 = vmatpush.msrb.mxu0 %v3140_v11  ;;  %v3465_v11 = vld [vmem:[%s8612_s12 + $0x28] sm:$0xff] }
0x1035   :  { %3218 = vmatpush.msrb.mxu0 %v3138_v13  ;;  %v3461_v13 = vld [vmem:[%s8612_s12 + $0x8] sm:$0xff] }
0x1037   :  { %3219 = vmatpush.msrb.mxu0 %v3136_v17 }
0x1039   :  { %3220 = vmatpush.msrb.mxu0 %v3134_v23 }
0x1083   :  { %v2915_v25 = vpop.xlane.xlu2 %2914 }
0x1084   :  { %v2919_v42 = vmul.f32 %v2915_v25, %v7668_v49  ;;  %v3147_v25 = vld [vmem:[#allocation11 + $0x268] sm:$0xff] }
0x1085   :  { %3260 = vmatpush.msra.mxu2 %v3147_v25 }
0x1086   :  { %v7916_v43 = vadd.f32 1e-05, %v2919_v42 }
0x1087   :  { %3261 = vmatpush.msra.mxu2 %v3145_v55 }
0x1088   :  { %6317 = vrsqrt.f32 %v7916_v43  ;;  %vm2929_vm0 = vweird.f32 %v7916_v43 }
0x1089   :  { %3262 = vmatpush.msra.mxu2 %v3143_v1  ;;  %v3471_v1 = vld [vmem:[%s8612_s12 + $0x58] sm:$0xff] }
0x108b   :  { %v2918_v51 = vpop.xlane.xlu0 %2917  ;;  %3263 = vmatpush.msra.mxu2 %v3141_v12  ;;  %v3463_v12 = vld [vmem:[%s8612_s12 + $0x18] sm:$0xff] }
0x108c   :  { %v2920_v59 = vmul.f32 %v2918_v51, %v7668_v49 }
0x108d   :  { %3264 = vmatpush.msra.mxu2 %v3139_v15  ;;  %v3459_v15 = vld [vmem:[%s8613_s28] sm:$0xff] }
0x108e   :  { %v6318_v3 = vpop.eup %6317  ;;  %v7920_v8 = vadd.f32 1e-05, %v2920_v59 }
0x108f   :  { %v2924_v6 = vmul.f32 %v6318_v3, %v7916_v43  ;;  %vm2930_vm15 = vweird.f32 %v6318_v3 }
0x1090   :  { %6319 = vrsqrt.f32 %v7920_v8  ;;  %vm2931_vm2 = vmor %vm2929_vm0, %vm2930_vm15  ;;  %vm2939_vm4 = vweird.f32 %v7920_v8 }
0x1091   :  { %v2925_v14 = vmul.f32 %v6318_v3, %v2924_v6 }
0x1093   :  { %v2926_v19 = vmul.f32 0.5, %v2925_v14  ;;  %v3176_v14 = vld [vmem:[#allocation11 + $0x350] sm:$0xff] }
0x1095   :  { %v2927_v4 = vsub.f32 1.5, %v2926_v19  ;;  %v3137_v19 = vld [vmem:[#allocation11 + $0x218] sm:$0xff] }
0x1096   :  { %v6320_v28 = vpop.eup %6319  ;;  %3265 = vmatpush.msra.mxu2 %v3137_v19 }
0x1097   :  { %v2928_v31 = vmul.f32 %v6318_v3, %v2927_v4  ;;  %v2934_v20 = vmul.f32 %v6320_v28, %v7920_v8  ;;  %vm2940_vm3 = vweird.f32 %v6320_v28  ;;  %v3170_v4 = vld [vmem:[#allocation11 + $0x320] sm:$0xff] }
0x1098   :  { %vm2941_vm5 = vmor %vm2939_vm4, %vm2940_vm3  ;;  %3266 = vmatpush.msra.mxu2 %v3135_v61 }
0x1099   :  { %v2932_v40 = vsel %vm2931_vm2, %v6318_v3, %v2928_v31  ;;  %v2935_v41 = vmul.f32 %v6320_v28, %v2934_v20  ;;  %v5948_v31 = vld [vmem:[%s8609_s25 + $0x2] sm:$0x3] }
0x109a   :  { %v2943_v42 = vmul.f32 %v2932_v40, %v7898_v32  ;;  %v2944_v43 = vmul.f32 %v2932_v40, %v7900_v33  ;;  %v3033_v20 = vperm.slane %v5948_v31, 0 }
0x109b   :  { %v2936_v51 = vmul.f32 0.5, %v2935_v41 }
0x109c   :  { %v2952_v58 = vmul.f32 %v2948_v53, %v2943_v42  ;;  %v2953_v59 = vmul.f32 %v2949_v35, %v2944_v43 }
0x109d   :  { %v2937_v60 = vsub.f32 1.5, %v2936_v51 }
0x109e   :  { %v7935_v32 = vadd.f32 %v2957_v44, %v2952_v58  ;;  %v7937_v33 = vadd.f32 %v2958_v45, %v2953_v59  ;;  %v3475_v59 = vld [vmem:[%s8612_s12 + $0x78] sm:$0xff] }
0x109f   :  { %v2938_v63 = vmul.f32 %v6320_v28, %v2937_v60  ;;  %v3474_v60 = vld [vmem:[%s8612_s12 + $0x70] sm:$0xff] }
0x10a0   :  { %3053 = vmatmul.f32.vlgmr.msra.gmra.mxu0 %v7935_v32  ;;  %3076 = vmatmul.f32.vlgmr.msra.gmra.mxu1 %v7937_v33 }
0x10a1   :  { %v2942_v2 = vsel %vm2941_vm5, %v6320_v28, %v2938_v63  ;;  %3099 = vmatmul.f32.vlgmr.msrb.gmra.mxu2 %v7935_v32  ;;  %3122 = vmatmul.f32.vlgmr.msrb.gmra.mxu3 %v7937_v33  ;;  %v3169_v28 = vld [vmem:[#allocation11 + $0x318] sm:$0xff]  ;;  %v3473_v63 = vld [vmem:[%s8612_s12 + $0x68] sm:$0xff] }
0x10a2   :  { %v2945_v3 = vmul.f32 %v2942_v2, %v7907_v37  ;;  %v2946_v9 = vmul.f32 %v2942_v2, %v7909_v38  ;;  %v3178_v37 = vld [vmem:[#allocation11 + $0x360] sm:$0xff]  ;;  %v3179_v38 = vld [vmem:[#allocation11 + $0x368] sm:$0xff]  ;;  %3480 = vmatpush.msrb.mxu2 %v3475_v59  ;;  %v3470_v2 = vld [vmem:[%s8612_s12 + $0x50] sm:$0xff] }
0x10a3   :  { %3237 = vmatpush.msrb.mxu1 %v3178_v37  ;;  %3283 = vmatpush.msra.mxu3 %v3179_v38  ;;  %v3464_v37 = vld [vmem:[%s8612_s12 + $0x20] sm:$0xff]  ;;  %v3462_v38 = vld [vmem:[%s8612_s12 + $0x10] sm:$0xff] }
0x10a4   :  { %v2954_v10 = vmul.f32 %v2948_v53, %v2945_v3  ;;  %v2955_v8 = vmul.f32 %v2949_v35, %v2946_v9  ;;  %v3034_v35 = vperm.slane %v5948_v31, 1  ;;  %3481 = vmatpush.msrb.mxu2 %v3474_v60  ;;  %v3469_v3 = vld [vmem:[%s8612_s12 + $0x48] sm:$0xff]  ;;  %v3468_v9 = vld [vmem:[%s8612_s12 + $0x40] sm:$0xff] }
0x10a5   :  { %3238 = vmatpush.msrb.mxu1 %v3176_v14  ;;  %3284 = vmatpush.msra.mxu3 %v3177_v16  ;;  %v3460_v14 = vld [vmem:[%s8612_s12] sm:$0xff] }
0x10a6   :  { %v7946_v6 = vadd.f32 %v2957_v44, %v2954_v10  ;;  %v7948_v7 = vadd.f32 %v2958_v45, %v2955_v8  ;;  %3482 = vmatpush.msrb.mxu2 %v3473_v63  ;;  %v3467_v10 = vld [vmem:[%s8612_s12 + $0x38] sm:$0xff]  ;;  %v3466_v8 = vld [vmem:[%s8612_s12 + $0x30] sm:$0xff]  ;;  %v3199_v16 = vld [vmem:[#allocation13 + $0x2] sm:$0x3] }
0x10a7   :  { %3239 = vmatpush.msrb.mxu1 %v3174_v18  ;;  %3285 = vmatpush.msra.mxu3 %v3175_v22  ;;  %v3201_v18 = vperm.slane %v3199_v16, 0  ;;  %v3202_v23 = vperm.slane %v3199_v16, 1  ;;  %v3389_v59 = vld [vmem:[%s8615_s24 + $0x60] sm:$0xff] }
0x10a8   :  { %3056 = vmatmul.f32.gmra.mxu0 %v7946_v6  ;;  %3079 = vmatmul.f32.gmra.mxu1 %v7948_v7  ;;  %v3505_v60 = vld [vmem:[%s8614_s1 + $0x20] sm:$0xff] }
0x10a9   :  { %3102 = vmatmul.f32.gmra.mxu2 %v7946_v6  ;;  %3125 = vmatmul.f32.gmra.mxu3 %v7948_v7  ;;  %v3405_v63 = vld [vmem:[%s8615_s24 + $0xe0] sm:$0xff] }
0x10aa   :  { %3240 = vmatpush.msrb.mxu1 %v3172_v26  ;;  %3286 = vmatpush.msra.mxu3 %v3173_v27 }
0x10ab   :  { %3483 = vmatpush.msrb.mxu2 %v3472_v0  ;;  %v3388_v0 = vld [vmem:[%s8615_s24 + $0x58] sm:$0xff] }
0x10ac   :  { %3241 = vmatpush.msrb.mxu1 %v3170_v4  ;;  %3287 = vmatpush.msra.mxu3 %v3171_v62 }
0x10ad   :  { %3484 = vmatpush.msrb.mxu2 %v3471_v1  ;;  %v3504_v1 = vld [vmem:[%s8614_s1 + $0x18] sm:$0xff] }
0x10ae   :  { %3242 = vmatpush.msrb.mxu1 %v3168_v5  ;;  %3288 = vmatpush.msra.mxu3 %v3169_v28 }
0x10af   :  { %3485 = vmatpush.msrb.mxu2 %v3470_v2  ;;  %v3404_v2 = vld [vmem:[%s8615_s24 + $0xd8] sm:$0xff] }
0x10b0   :  { %3243 = vmatpush.msrb.mxu1 %v3166_v29  ;;  %3289 = vmatpush.msra.mxu3 %v3167_v30 }
0x10b1   :  { %3486 = vmatpush.msrb.mxu2 %v3469_v3  ;;  %v3387_v3 = vld [vmem:[%s8615_s24 + $0x50] sm:$0xff] }
0x10b3   :  { %3487 = vmatpush.msrb.mxu2 %v3468_v9  ;;  %v6246_v9 = vld [vmem:[#allocation16] ss:$0 sm:$0xff] }
0x10b5   :  { %3488 = vmatpush.msrb.mxu2 %v3467_v10  ;;  %v3503_v10 = vld [vmem:[%s8614_s1 + $0x10] sm:$0xff] }
0x10b7   :  { %3489 = vmatpush.msrb.mxu2 %v3466_v8  ;;  %v3403_v8 = vld [vmem:[%s8615_s24 + $0xd0] sm:$0xff] }
0x10b9   :  { %3490 = vmatpush.msrb.mxu2 %v3465_v11  ;;  %v3386_v11 = vld [vmem:[%s8615_s24 + $0x48] sm:$0xff] }
0x10bb   :  { %3491 = vmatpush.msrb.mxu2 %v3464_v37  ;;  %v3502_v37 = vld [vmem:[%s8614_s1 + $0x8] sm:$0xff] }
0x10bd   :  { %3492 = vmatpush.msrb.mxu2 %v3463_v12  ;;  %v3402_v12 = vld [vmem:[%s8615_s24 + $0xc8] sm:$0xff] }
0x10bf   :  { %3493 = vmatpush.msrb.mxu2 %v3462_v38 }
0x10c1   :  { %3494 = vmatpush.msrb.mxu2 %v3461_v13 }
0x10c3   :  { %3495 = vmatpush.msrb.mxu2 %v3460_v14  ;;  %v3385_v14 = vld [vmem:[%s8615_s24 + $0x40] sm:$0xff] }
0x111d   :  { %v3054_v21 = vpop.f32.mrf.mxu0  ;;  %v3077_v34 = vpop.f32.mrf.mxu1 }
0x111e   :  { %v3055_v52 = vadd.f32 %v3054_v21, %v3033_v20 }
0x1120   :  { %v3078_v53 = vadd.f32 %v3077_v34, %v3055_v52 }
0x1122   :  { %v3129_v36 = vmax.f32 %v3078_v53, 0.0 }
0x1124   :  { %v3100_v39 = vpop.f32.mrf.mxu2  ;;  %v3123_v40 = vpop.f32.mrf.mxu3  ;;  %3221 = vmatmul.f32.vlgmr.msrb.gmra.mxu0 %v3129_v36  ;;  %3267 = vmatmul.f32.vlgmr.msra.gmra.mxu2 %v3129_v36 }
0x1125   :  { %v3101_v41 = vadd.f32 %v3100_v39, %v3034_v35  ;;  %v3057_v24 = vpop.f32.mrf.mxu0  ;;  %v3080_v43 = vpop.f32.mrf.mxu1  ;;  %v3516_v39 = vld [vmem:[%s8614_s1 + $0x78] sm:$0xff] }
0x1126   :  { %v3058_v25 = vadd.f32 %v3057_v24, %v3033_v20  ;;  %3521 = vmatpush.msrb.mxu3 %v3516_v39  ;;  %v3511_v24 = vld [vmem:[%s8614_s1 + $0x50] sm:$0xff]  ;;  %v3396_v39 = vld [vmem:[%s8615_s24 + $0x98] sm:$0xff] }
0x1127   :  { %v3124_v42 = vadd.f32 %v3123_v40, %v3101_v41  ;;  %v3515_v40 = vld [vmem:[%s8614_s1 + $0x70] sm:$0xff]  ;;  %v3514_v41 = vld [vmem:[%s8614_s1 + $0x68] sm:$0xff] }
0x1128   :  { %v3081_v44 = vadd.f32 %v3080_v43, %v3058_v25  ;;  %3522 = vmatpush.msrb.mxu3 %v3515_v40  ;;  %v3510_v25 = vld [vmem:[%s8614_s1 + $0x48] sm:$0xff]  ;;  %v3508_v43 = vld [vmem:[%s8614_s1 + $0x38] sm:$0xff]  ;;  %v3379_v40 = vld [vmem:[%s8615_s24 + $0x10] sm:$0xff] }
0x1129   :  { %v3130_v45 = vmax.f32 %v3124_v42, 0.0  ;;  %v3509_v42 = vld [vmem:[%s8614_s1 + $0x40] sm:$0xff] }
0x112a   :  { %v3131_v46 = vmax.f32 %v3081_v44, 0.0  ;;  %3523 = vmatpush.msrb.mxu3 %v3514_v41  ;;  %v3507_v44 = vld [vmem:[%s8614_s1 + $0x30] sm:$0xff] }
0x112b   :  { %3244 = vmatmul.f32.vlgmr.msrb.gmra.mxu1 %v3130_v45  ;;  %3290 = vmatmul.f32.vlgmr.msra.gmra.mxu3 %v3130_v45  ;;  %v3392_v45 = vld [vmem:[%s8615_s24 + $0x78] sm:$0xff]  ;;  %v3395_v41 = vld [vmem:[%s8615_s24 + $0x90] sm:$0xff] }
0x112c   :  { %v3103_v50 = vpop.f32.mrf.mxu2  ;;  %3224 = vmatmul.f32.gmra.mxu0 %v3131_v46  ;;  %3270 = vmatmul.f32.gmra.mxu2 %v3131_v46  ;;  %v3126_v54 = vpop.f32.mrf.mxu3  ;;  %v3408_v46 = vld [vmem:[%s8615_s24 + $0xf8] sm:$0xff] }
0x112d   :  { %v3104_v51 = vadd.f32 %v3103_v50, %v3034_v35  ;;  %3413 = vmatpush.msra.mxu0 %v3392_v45  ;;  %v3391_v50 = vld [vmem:[%s8615_s24 + $0x70] sm:$0xff]  ;;  %3436 = vmatpush.msra.mxu1 %v3408_v46 }
0x112e   :  { %v3556_v45 = vld [vmem:[%s8616_s26 + $0x70] sm:$0xff] }
0x112f   :  { %v3127_v55 = vadd.f32 %v3126_v54, %v3104_v51  ;;  %v3407_v51 = vld [vmem:[%s8615_s24 + $0xf0] sm:$0xff]  ;;  %v3390_v54 = vld [vmem:[%s8615_s24 + $0x68] sm:$0xff]  ;;  %3414 = vmatpush.msra.mxu0 %v3391_v50 }
0x1130   :  { %3437 = vmatpush.msra.mxu1 %v3407_v51  ;;  %v3571_v46 = vld [vmem:[#allocation17 + $0x68] sm:$0xff]  ;;  %v3555_v50 = vld [vmem:[%s8616_s26 + $0x68] sm:$0xff] }
0x1131   :  { %v3132_v58 = vmax.f32 %v3127_v55, 0.0  ;;  %v3506_v55 = vld [vmem:[%s8614_s1 + $0x28] sm:$0xff]  ;;  %3415 = vmatpush.msra.mxu0 %v3390_v54  ;;  %v3554_v54 = vld [vmem:[%s8616_s26 + $0x60] sm:$0xff] }
0x1132   :  { %v3570_v51 = vld [vmem:[#allocation17 + $0x60] sm:$0xff] }
0x1133   :  { %3247 = vmatmul.f32.gmra.mxu1 %v3132_v58  ;;  %3293 = vmatmul.f32.gmra.mxu3 %v3132_v58  ;;  %v3406_v58 = vld [vmem:[%s8615_s24 + $0xe8] sm:$0xff] }
0x1134   :  { %3496 = vmatmul.f32.vlgmr.msrb.gmra.mxu2 %v3459_v15  ;;  %3438 = vmatpush.msra.mxu1 %v3406_v58  ;;  %v3553_v58 = vld [vmem:[%s8616_s26 + $0x58] sm:$0xff] }
0x1135   :  { %3416 = vmatpush.msra.mxu0 %v3389_v59  ;;  %v3568_v59 = vld [vmem:[#allocation17 + $0x50] sm:$0xff] }
0x1136   :  { %3439 = vmatpush.msra.mxu1 %v3405_v63  ;;  %v3567_v63 = vld [vmem:[#allocation17 + $0x48] sm:$0xff] }
0x1137   :  { %3417 = vmatpush.msra.mxu0 %v3388_v0  ;;  %v3551_v0 = vld [vmem:[%s8616_s26 + $0x48] sm:$0xff] }
0x1138   :  { %3440 = vmatpush.msra.mxu1 %v3404_v2  ;;  %v3550_v2 = vld [vmem:[%s8616_s26 + $0x40] sm:$0xff] }
0x1139   :  { %3418 = vmatpush.msra.mxu0 %v3387_v3  ;;  %v3565_v3 = vld [vmem:[#allocation17 + $0x38] sm:$0xff] }
0x113a   :  { %3441 = vmatpush.msra.mxu1 %v3403_v8 }
0x113b   :  { %3419 = vmatpush.msra.mxu0 %v3386_v11  ;;  %v3548_v11 = vld [vmem:[%s8616_s26 + $0x30] sm:$0xff] }
0x113c   :  { %3442 = vmatpush.msra.mxu1 %v3402_v12  ;;  %v3563_v12 = vld [vmem:[#allocation17 + $0x28] sm:$0xff] }
0x113d   :  { %3420 = vmatpush.msra.mxu0 %v3385_v14  ;;  %v3562_v14 = vld [vmem:[#allocation17 + $0x20] sm:$0xff] }
0x11a1   :  { %v3222_v17 = vpop.f32.mrf.mxu0 }
0x11a2   :  { %v3223_v26 = vadd.f32 %v3222_v17, %v3201_v18  ;;  %v3501_v17 = vld [vmem:[%s8614_s1] sm:$0xff] }
0x11a7   :  { %v3268_v22 = vpop.f32.mrf.mxu2 }
0x11a8   :  { %v3245_v19 = vpop.f32.mrf.mxu1  ;;  %v3269_v27 = vadd.f32 %v3268_v22, %v3202_v23 }
0x11a9   :  { %v3246_v61 = vadd.f32 %v3245_v19, %v3223_v26  ;;  %v3225_v5 = vpop.f32.mrf.mxu0 }
0x11aa   :  { %v3226_v20 = vadd.f32 %v3225_v5, %v3201_v18  ;;  %v3401_v18 = vld [vmem:[%s8615_s24 + $0xc0] sm:$0xff] }
0x11ab   :  { %v7976_v29 = vadd.f32 %v3246_v61, %v7935_v32  ;;  %3443 = vmatpush.msra.mxu1 %v3401_v18  ;;  %v3560_v18 = vld [vmem:[#allocation17 + $0x10] sm:$0xff] }
0x11ae   :  { %v3291_v4 = vpop.f32.mrf.mxu3 }
0x11af   :  { %v3292_v62 = vadd.f32 %v3291_v4, %v3269_v27  ;;  %v3271_v31 = vpop.f32.mrf.mxu2 }
0x11b0   :  { %v3248_v30 = vpop.f32.mrf.mxu1  ;;  %v3272_v52 = vadd.f32 %v3271_v31, %v3202_v23 }
0x11b1   :  { %v7973_v28 = vadd.f32 %v3292_v62, %v7937_v33  ;;  %v3249_v34 = vadd.f32 %v3248_v30, %v3226_v20  ;;  %v3384_v20 = vld [vmem:[%s8615_s24 + $0x38] sm:$0xff] }
0x11b2   :  { %3421 = vmatpush.msra.mxu0 %v3384_v20 }
0x11b3   :  { %v3305_v21 = vadd.f32 %v7973_v28, %v7976_v29  ;;  %v7981_v35 = vadd.f32 %v3249_v34, %v7946_v6  ;;  %v3513_v6 = vld [vmem:[%s8614_s1 + $0x60] sm:$0xff]  ;;  %v3383_v34 = vld [vmem:[%s8615_s24 + $0x30] sm:$0xff] }
0x11b4   :  { %3524 = vmatpush.msrb.mxu3 %v3513_v6  ;;  %3422 = vmatpush.msra.mxu0 %v3383_v34  ;;  %v3378_v6 = vld [vmem:[%s8615_s24 + $0x8] sm:$0xff] }
0x11b5   :  { %3306 = vadd.xlane.f32.xlu1 %v3305_v21  ;;  %v3400_v21 = vld [vmem:[%s8615_s24 + $0xb8] sm:$0xff]  ;;  %v3635_v34 = vld [vmem:[#allocation20 + $0x78] sm:$0xff] }
0x11b6   :  { %v3294_v53 = vpop.f32.mrf.mxu3  ;;  %3444 = vmatpush.msra.mxu1 %v3400_v21  ;;  %3640 = vmatpush.msra.mxu2 %v3635_v34  ;;  %v3716_v34 = vld [vmem:[%s8619_s9 + $0x58] sm:$0xff] }
0x11b7   :  { %v3295_v33 = vadd.f32 %v3294_v53, %v3272_v52  ;;  %v3497_v13 = vpop.f32.mrf.mxu2  ;;  %v3399_v52 = vld [vmem:[%s8615_s24 + $0xb0] sm:$0xff]  ;;  %v3382_v53 = vld [vmem:[%s8615_s24 + $0x28] sm:$0xff] }
0x11b8   :  { %v3498_v16 = vadd.f32 %v6246_v9, %v3497_v13  ;;  %3445 = vmatpush.msra.mxu1 %v3399_v52  ;;  %3423 = vmatpush.msra.mxu0 %v3382_v53  ;;  %v3549_v9 = vld [vmem:[%s8616_s26 + $0x38] sm:$0xff] }
0x11b9   :  { %v7984_v32 = vadd.f32 %v3295_v33, %v7948_v7  ;;  %v3512_v7 = vld [vmem:[%s8614_s1 + $0x58] sm:$0xff]  ;;  %v3398_v33 = vld [vmem:[%s8615_s24 + $0xa8] sm:$0xff] }
0x11ba   :  { %3525 = vmatpush.msrb.mxu3 %v3512_v7  ;;  %v3500_v23 = vmax.f32 %v3498_v16, 0.0  ;;  %3446 = vmatpush.msra.mxu1 %v3398_v33  ;;  %v3394_v7 = vld [vmem:[%s8615_s24 + $0x88] sm:$0xff]  ;;  %v3561_v16 = vld [vmem:[#allocation17 + $0x18] sm:$0xff]  ;;  %v3633_v53 = vld [vmem:[#allocation20 + $0x68] sm:$0xff] }
0x11bb   :  { %v3308_v36 = vadd.f32 %v7984_v32, %v7981_v35  ;;  %v3634_v52 = vld [vmem:[#allocation20 + $0x70] sm:$0xff]  ;;  %v5949_v33 = vld [vmem:[%s8610_s18 + $0x2] sm:$0x3] }
0x11bc   :  { %3526 = vmatpush.msrb.mxu3 %v3511_v24  ;;  %v3377_v24 = vld [vmem:[%s8615_s24] sm:$0xff]  ;;  %3641 = vmatpush.msra.mxu2 %v3634_v52 }
0x11bd   :  { %3309 = vadd.xlane.f32.xlu2 %v3308_v36  ;;  %v3380_v36 = vld [vmem:[%s8615_s24 + $0x18] sm:$0xff]  ;;  %v3674_v52 = vld [vmem:[%s8620_s11 + $0x60] sm:$0xff] }
0x11be   :  { %3527 = vmatpush.msrb.mxu3 %v3510_v25  ;;  %v3393_v25 = vld [vmem:[%s8615_s24 + $0x80] sm:$0xff]  ;;  %3642 = vmatpush.msra.mxu2 %v3633_v53  ;;  %v3715_v53 = vld [vmem:[%s8619_s9 + $0x50] sm:$0xff] }
0x11c0   :  { %3528 = vmatpush.msrb.mxu3 %v3509_v42  ;;  %v3573_v42 = vld [vmem:[#allocation17 + $0x78] sm:$0xff] }
0x11c2   :  { %3529 = vmatpush.msrb.mxu3 %v3508_v43  ;;  %v3557_v43 = vld [vmem:[%s8616_s26 + $0x78] sm:$0xff] }
0x11c4   :  { %3530 = vmatpush.msrb.mxu3 %v3507_v44  ;;  %v3572_v44 = vld [vmem:[#allocation17 + $0x70] sm:$0xff] }
0x11c6   :  { %3531 = vmatpush.msrb.mxu3 %v3506_v55  ;;  %v3569_v55 = vld [vmem:[#allocation17 + $0x58] sm:$0xff] }
0x11c8   :  { %3532 = vmatpush.msrb.mxu3 %v3505_v60  ;;  %v3552_v60 = vld [vmem:[%s8616_s26 + $0x50] sm:$0xff] }
0x11ca   :  { %3533 = vmatpush.msrb.mxu3 %v3504_v1  ;;  %v3566_v1 = vld [vmem:[#allocation17 + $0x40] sm:$0xff] }
0x11cc   :  { %3534 = vmatpush.msrb.mxu3 %v3503_v10  ;;  %v3564_v10 = vld [vmem:[#allocation17 + $0x30] sm:$0xff] }
0x11ce   :  { %3535 = vmatpush.msrb.mxu3 %v3502_v37 }
0x11d0   :  { %3536 = vmatpush.msrb.mxu3 %v3501_v17  ;;  %v3545_v17 = vld [vmem:[%s8616_s26 + $0x18] sm:$0xff] }
0x11d1   :  { %3537 = vmatmul.f32.vlgmr.msrb.gmra.mxu3 %v3500_v23 }
0x1228   :  { %v3307_v38 = vpop.xlane.xlu1 %3306 }
0x1229   :  { %v3311_v15 = vmul.f32 %v3307_v38, %v7668_v49  ;;  %v3547_v38 = vld [vmem:[%s8616_s26 + $0x28] sm:$0xff] }
0x122b   :  { %v8022_v19 = vsub.f32 %v7976_v29, %v3311_v15  ;;  %v8025_v22 = vsub.f32 %v7973_v28, %v3311_v15  ;;  %v3546_v15 = vld [vmem:[%s8616_s26 + $0x20] sm:$0xff] }
0x122d   :  { %v3317_v26 = vmul.f32 %v8022_v19, %v8022_v19  ;;  %v3318_v61 = vmul.f32 %v8025_v22, %v8025_v22 }
0x122f   :  { %v3321_v27 = vadd.f32 %v3318_v61, %v3317_v26  ;;  %v3544_v26 = vld [vmem:[%s8616_s26 + $0x10] sm:$0xff] }
0x1230   :  { %v3310_v4 = vpop.xlane.xlu2 %3309 }
0x1231   :  { %v3312_v62 = vmul.f32 %v3310_v4, %v7668_v49  ;;  %3322 = vadd.xlane.f32.xlu0 %v3321_v27  ;;  %v3559_v27 = vld [vmem:[#allocation17 + $0x8] sm:$0xff]  ;;  %v3543_v4 = vld [vmem:[%s8616_s26 + $0x8] sm:$0xff] }
0x1233   :  { %v8033_v5 = vsub.f32 %v7981_v35, %v3312_v62  ;;  %v8036_v28 = vsub.f32 %v7984_v32, %v3312_v62  ;;  %v3381_v35 = vld [vmem:[%s8615_s24 + $0x20] sm:$0xff] }
0x1234   :  { %v3397_v32 = vld [vmem:[%s8615_s24 + $0xa0] sm:$0xff]  ;;  %3424 = vmatpush.msra.mxu0 %v3381_v35 }
0x1235   :  { %v3319_v29 = vmul.f32 %v8033_v5, %v8033_v5  ;;  %v3320_v30 = vmul.f32 %v8036_v28, %v8036_v28  ;;  %3447 = vmatpush.msra.mxu1 %v3397_v32 }
0x1236   :  { %3425 = vmatpush.msra.mxu0 %v3380_v36  ;;  %v3632_v36 = vld [vmem:[#allocation20 + $0x60] sm:$0xff] }
0x1237   :  { %v3324_v31 = vadd.f32 %v3320_v30, %v3319_v29  ;;  %3448 = vmatpush.msra.mxu1 %v3396_v39  ;;  %v3558_v30 = vld [vmem:[#allocation17] sm:$0xff]  ;;  %v5950_v39 = vld [vmem:[%s8611_s20 + $0x2] sm:$0x3]  ;;  %3643 = vmatpush.msra.mxu2 %v3632_v36  ;;  %v3759_v36 = vld [vmem:[%s8621_s30 + $0x58] sm:$0xff] }
0x1238   :  { %3426 = vmatpush.msra.mxu0 %v3379_v40 }
0x1239   :  { %3325 = vadd.xlane.f32.xlu1 %v3324_v31  ;;  %3449 = vmatpush.msra.mxu1 %v3395_v41  ;;  %v3542_v31 = vld [vmem:[%s8616_s26] sm:$0xff] }
0x123a   :  { %3427 = vmatpush.msra.mxu0 %v3378_v6  ;;  %v3356_v6 = vperm.slane %v5949_v33, 0 }
0x123b   :  { %3450 = vmatpush.msra.mxu1 %v3394_v7  ;;  %v3357_v7 = vperm.slane %v5949_v33, 1  ;;  %v3673_v33 = vld [vmem:[%s8620_s11 + $0x58] sm:$0xff] }
0x123c   :  { %3428 = vmatpush.msra.mxu0 %v3377_v24 }
0x123d   :  { %3451 = vmatpush.msra.mxu1 %v3393_v25 }
0x123e   :  { %3574 = vmatpush.msrb.mxu0 %v3573_v42  ;;  %v3365_v42 = vperm.slane %v5950_v39, 0 }
0x123f   :  { %3594 = vmatpush.msrb.mxu1 %v3557_v43  ;;  %v3366_v43 = vperm.slane %v5950_v39, 1 }
0x1240   :  { %3575 = vmatpush.msrb.mxu0 %v3572_v44 }
0x1241   :  { %3595 = vmatpush.msrb.mxu1 %v3556_v45 }
0x1242   :  { %3576 = vmatpush.msrb.mxu0 %v3571_v46 }
0x1243   :  { %3596 = vmatpush.msrb.mxu1 %v3555_v50 }
0x1244   :  { %3577 = vmatpush.msrb.mxu0 %v3570_v51 }
0x1245   :  { %3597 = vmatpush.msrb.mxu1 %v3554_v54 }
0x1246   :  { %3578 = vmatpush.msrb.mxu0 %v3569_v55 }
0x1247   :  { %3598 = vmatpush.msrb.mxu1 %v3553_v58 }
0x1248   :  { %3579 = vmatpush.msrb.mxu0 %v3568_v59 }
0x1249   :  { %3599 = vmatpush.msrb.mxu1 %v3552_v60 }
0x124a   :  { %3580 = vmatpush.msrb.mxu0 %v3567_v63 }
0x124b   :  { %3600 = vmatpush.msrb.mxu1 %v3551_v0 }
0x124c   :  { %3581 = vmatpush.msrb.mxu0 %v3566_v1 }
0x124d   :  { %3601 = vmatpush.msrb.mxu1 %v3550_v2 }
0x124e   :  { %3582 = vmatpush.msrb.mxu0 %v3565_v3 }
0x124f   :  { %3602 = vmatpush.msrb.mxu1 %v3549_v9 }
0x1250   :  { %3583 = vmatpush.msrb.mxu0 %v3564_v10 }
0x1251   :  { %3603 = vmatpush.msrb.mxu1 %v3548_v11 }
0x1252   :  { %3584 = vmatpush.msrb.mxu0 %v3563_v12  ;;  %v3629_v12 = vld [vmem:[#allocation20 + $0x48] sm:$0xff] }
0x1253   :  { %3604 = vmatpush.msrb.mxu1 %v3547_v38  ;;  %v3628_v38 = vld [vmem:[#allocation20 + $0x40] sm:$0xff] }
0x1254   :  { %3585 = vmatpush.msrb.mxu0 %v3562_v14  ;;  %v3624_v14 = vld [vmem:[#allocation20 + $0x20] sm:$0xff] }
0x1255   :  { %3605 = vmatpush.msrb.mxu1 %v3546_v15  ;;  %v3623_v15 = vld [vmem:[#allocation20 + $0x18] sm:$0xff] }
0x1256   :  { %3586 = vmatpush.msrb.mxu0 %v3561_v16  ;;  %v3622_v16 = vld [vmem:[#allocation20 + $0x10] sm:$0xff] }
0x1257   :  { %3606 = vmatpush.msrb.mxu1 %v3545_v17  ;;  %v3621_v17 = vld [vmem:[#allocation20 + $0x8] sm:$0xff] }
0x1258   :  { %3587 = vmatpush.msrb.mxu0 %v3560_v18  ;;  %v3620_v18 = vld [vmem:[#allocation20] sm:$0xff] }
0x1259   :  { %3607 = vmatpush.msrb.mxu1 %v3544_v26  ;;  %v3719_v26 = vld [vmem:[%s8619_s9 + $0x70] sm:$0xff] }
0x125a   :  { %3588 = vmatpush.msrb.mxu0 %v3559_v27  ;;  %v3677_v27 = vld [vmem:[%s8620_s11 + $0x78] sm:$0xff] }
0x125b   :  { %3608 = vmatpush.msrb.mxu1 %v3543_v4  ;;  %3682 = vmatpush.msra.mxu3 %v3677_v27  ;;  %v3763_v4 = vld [vmem:[%s8621_s30 + $0x78] sm:$0xff]  ;;  %v5998_v27 = vld [vmem:[%s8621_s30 + $0xc8] sm:$0xff] }
0x125c   :  { %3589 = vmatpush.msrb.mxu0 %v3558_v30  ;;  %v3762_v30 = vld [vmem:[%s8621_s30 + $0x70] sm:$0xff] }
0x125d   :  { %3609 = vmatpush.msrb.mxu1 %v3542_v31  ;;  %v3675_v31 = vld [vmem:[%s8620_s11 + $0x68] sm:$0xff] }
0x12a4   :  { %v3323_v8 = vpop.xlane.xlu0 %3322 }
0x12a5   :  { %v3327_v37 = vmul.f32 %v3323_v8, %v7668_v49 }
0x12a7   :  { %v3329_v13 = vadd.f32 1e-05, %v3327_v37  ;;  %v3541_v37 = vld [vmem:[%s8618_s3] sm:$0xff] }
0x12a9   :  { %6321 = vrsqrt.f32 %v3329_v13  ;;  %vm3337_vm7 = vweird.f32 %v3329_v13 }
0x12ac   :  { %v3326_v23 = vpop.xlane.xlu1 %3325 }
0x12ad   :  { %v3328_v61 = vmul.f32 %v3326_v23, %v7668_v49  ;;  %v3720_v23 = vld [vmem:[%s8619_s9 + $0x78] sm:$0xff] }
0x12af   :  { %v6322_v62 = vpop.eup %6321  ;;  %v3330_v29 = vadd.f32 1e-05, %v3328_v61  ;;  %v3718_v61 = vld [vmem:[%s8619_s9 + $0x68] sm:$0xff] }
0x12b0   :  { %v3332_v20 = vmul.f32 %v6322_v62, %v3329_v13  ;;  %vm3338_vm6 = vweird.f32 %v6322_v62  ;;  %v3627_v13 = vld [vmem:[#allocation20 + $0x38] sm:$0xff] }
0x12b1   :  { %6323 = vrsqrt.f32 %v3330_v29  ;;  %vm3339_vm8 = vmor %vm3337_vm7, %vm3338_vm6  ;;  %vm3347_vm10 = vweird.f32 %v3330_v29 }
0x12b2   :  { %v3333_v21 = vmul.f32 %v6322_v62, %v3332_v20  ;;  %v3761_v20 = vld [vmem:[%s8621_s30 + $0x68] sm:$0xff] }
0x12b4   :  { %v3334_v49 = vmul.f32 0.5, %v3333_v21  ;;  %v6248_v21 = vld [vmem:[#allocation14] ss:$0 sm:$0xff] }
0x12b6   :  { %v3335_v35 = vsub.f32 1.5, %v3334_v49  ;;  %v3760_v49 = vld [vmem:[%s8621_s30 + $0x60] sm:$0xff] }
0x12b7   :  { %v6324_v32 = vpop.eup %6323 }
0x12b8   :  { %v3336_v40 = vmul.f32 %v6322_v62, %v3335_v35  ;;  %v3342_v41 = vmul.f32 %v6324_v32, %v3330_v29  ;;  %vm3348_vm9 = vweird.f32 %v6324_v32  ;;  %v3717_v29 = vld [vmem:[%s8619_s9 + $0x60] sm:$0xff] }
0x12b9   :  { %vm3349_vm11 = vmor %vm3347_vm10, %vm3348_vm9 }
0x12ba   :  { %v3340_v24 = vsel %vm3339_vm8, %v6322_v62, %v3336_v40  ;;  %v3343_v25 = vmul.f32 %v6324_v32, %v3342_v41  ;;  %v3676_v62 = vld [vmem:[%s8620_s11 + $0x70] sm:$0xff]  ;;  %v3714_v40 = vld [vmem:[%s8619_s9 + $0x48] sm:$0xff] }
0x12bb   :  { %v3351_v44 = vmul.f32 %v3340_v24, %v8022_v19  ;;  %v3352_v45 = vmul.f32 %v3340_v24, %v8025_v22  ;;  %3683 = vmatpush.msra.mxu3 %v3676_v62  ;;  %v3672_v41 = vld [vmem:[%s8620_s11 + $0x50] sm:$0xff]  ;;  %v3713_v24 = vld [vmem:[%s8619_s9 + $0x40] sm:$0xff] }
0x12bc   :  { %v3344_v46 = vmul.f32 0.5, %v3343_v25  ;;  %v3671_v25 = vld [vmem:[%s8620_s11 + $0x48] sm:$0xff]  ;;  %v3748_v62 = vld [vmem:[%s8621_s30] sm:$0xff] }
0x12bd   :  { %v3360_v50 = vmul.f32 %v3356_v6, %v3351_v44  ;;  %v3361_v51 = vmul.f32 %v3357_v7, %v3352_v45  ;;  %3684 = vmatpush.msra.mxu3 %v3675_v31  ;;  %v3670_v44 = vld [vmem:[%s8620_s11 + $0x40] sm:$0xff]  ;;  %v5995_v31 = vld [vmem:[%s8621_s30 + $0xb0] sm:$0xff] }
0x12be   :  { %v3345_v54 = vsub.f32 1.5, %v3344_v46  ;;  %v3756_v45 = vld [vmem:[%s8621_s30 + $0x40] sm:$0xff]  ;;  %v3711_v46 = vld [vmem:[%s8619_s9 + $0x30] sm:$0xff] }
0x12bf   :  { %v3369_v55 = vadd.f32 %v3365_v42, %v3360_v50  ;;  %v3370_v58 = vadd.f32 %v3366_v43, %v3361_v51  ;;  %3685 = vmatpush.msra.mxu3 %v3674_v52  ;;  %v3669_v50 = vld [vmem:[%s8620_s11 + $0x38] sm:$0xff]  ;;  %v5991_v52 = vld [vmem:[%s8621_s30 + $0x90] sm:$0xff] }
0x12c0   :  { %v3346_v59 = vmul.f32 %v6324_v32, %v3345_v54 }
0x12c1   :  { %v3373_v60 = vadd.f32 %v3369_v55, %v7570_v47  ;;  %v3374_v63 = vadd.f32 %v3370_v58, %v7572_v48  ;;  %v6247_v47 = vld [vmem:[%s8617_s8] ss:$0 sm:$0xff]  ;;  %v3538_v48 = vpop.f32.mrf.mxu3  ;;  %3686 = vmatpush.msra.mxu3 %v3673_v33  ;;  %v3755_v55 = vld [vmem:[%s8621_s30 + $0x38] sm:$0xff]  ;;  %v6250_v33 = vld [vmem:[#allocation22] ss:$0 sm:$0xff] }
0x12c2   :  { %v3350_v0 = vsel %vm3349_vm11, %v6324_v32, %v3346_v59  ;;  %v3539_v11 = vadd.f32 %v6247_v47, %v3538_v48  ;;  %v3710_v59 = vld [vmem:[%s8619_s9 + $0x28] sm:$0xff]  ;;  %v3665_v47 = vld [vmem:[%s8620_s11 + $0x18] sm:$0xff] }
0x12c3   :  { %v3353_v19 = vmul.f32 %v3350_v0, %v8033_v5  ;;  %v3354_v22 = vmul.f32 %v3350_v0, %v8036_v28  ;;  %3429 = vmatmul.f32.vlgmr.msra.gmra.mxu0 %v3373_v60  ;;  %3452 = vmatmul.f32.vlgmr.msra.gmra.mxu1 %v3374_v63  ;;  %v3631_v5 = vld [vmem:[#allocation20 + $0x58] sm:$0xff]  ;;  %v3630_v28 = vld [vmem:[#allocation20 + $0x50] sm:$0xff]  ;;  %v3668_v60 = vld [vmem:[%s8620_s11 + $0x30] sm:$0xff] }
0x12c4   :  { %3644 = vmatpush.msra.mxu2 %v3631_v5  ;;  %3725 = vmatpush.msra.mxu0 %v3720_v23  ;;  %v3754_v63 = vld [vmem:[%s8621_s30 + $0x30] sm:$0xff] }
0x12c5   :  { %v3362_v1 = vmul.f32 %v3356_v6, %v3353_v19  ;;  %v3363_v2 = vmul.f32 %v3357_v7, %v3354_v22  ;;  %3768 = vmatpush.msra.mxu1 %v3763_v4  ;;  %v3758_v6 = vld [vmem:[%s8621_s30 + $0x50] sm:$0xff]  ;;  %3687 = vmatpush.msra.mxu3 %v3672_v41  ;;  %v3709_v19 = vld [vmem:[%s8619_s9 + $0x20] sm:$0xff]  ;;  %v3667_v22 = vld [vmem:[%s8620_s11 + $0x28] sm:$0xff] }
0x12c6   :  { %3645 = vmatpush.msra.mxu2 %v3630_v28  ;;  %3726 = vmatpush.msra.mxu0 %v3719_v26  ;;  %v3706_v28 = vld [vmem:[%s8619_s9 + $0x8] sm:$0xff]  ;;  %v5999_v23 = vld [vmem:[%s8621_s30 + $0xd0] sm:$0xff]  ;;  %v3662_v4 = vld [vmem:[%s8620_s11] sm:$0xff] }
0x12c7   :  { %v3371_v3 = vadd.f32 %v3365_v42, %v3362_v1  ;;  %v3372_v9 = vadd.f32 %v3366_v43, %v3363_v2  ;;  %3769 = vmatpush.msra.mxu1 %v3762_v30  ;;  %v3757_v42 = vld [vmem:[%s8621_s30 + $0x48] sm:$0xff]  ;;  %v3712_v43 = vld [vmem:[%s8619_s9 + $0x38] sm:$0xff]  ;;  %3688 = vmatpush.msra.mxu3 %v3671_v25  ;;  %v6252_v41 = vld [vmem:[#allocation26] ss:$0 sm:$0xff] }
0x12c8   :  { %3646 = vmatpush.msra.mxu2 %v3629_v12  ;;  %3727 = vmatpush.msra.mxu0 %v3718_v61  ;;  %v3753_v1 = vld [vmem:[%s8621_s30 + $0x28] sm:$0xff]  ;;  %v3708_v2 = vld [vmem:[%s8619_s9 + $0x18] sm:$0xff] }
0x12c9   :  { %v3375_v10 = vadd.f32 %v3371_v3, %v7585_v56  ;;  %v3376_v8 = vadd.f32 %v3372_v9, %v7587_v57  ;;  %v3626_v56 = vld [vmem:[#allocation20 + $0x30] sm:$0xff]  ;;  %v3625_v57 = vld [vmem:[#allocation20 + $0x28] sm:$0xff]  ;;  %3770 = vmatpush.msra.mxu1 %v3761_v20  ;;  %3689 = vmatpush.msra.mxu3 %v3670_v44  ;;  %v3663_v26 = vld [vmem:[%s8620_s11 + $0x8] sm:$0xff] }
0x12ca   :  { %3647 = vmatpush.msra.mxu2 %v3628_v38  ;;  %3728 = vmatpush.msra.mxu0 %v3717_v29  ;;  %v3666_v3 = vld [vmem:[%s8620_s11 + $0x20] sm:$0xff]  ;;  %v3749_v61 = vld [vmem:[%s8621_s30 + $0x8] sm:$0xff]  ;;  %v5996_v30 = vld [vmem:[%s8621_s30 + $0xb8] sm:$0xff] }
0x12cb   :  { %3432 = vmatmul.f32.gmra.mxu0 %v3375_v10  ;;  %3455 = vmatmul.f32.gmra.mxu1 %v3376_v8  ;;  %v3752_v9 = vld [vmem:[%s8621_s30 + $0x20] sm:$0xff]  ;;  %v6249_v10 = vld [vmem:[#allocation19] ss:$0 sm:$0xff]  ;;  %v3707_v8 = vld [vmem:[%s8619_s9 + $0x10] sm:$0xff] }
0x12cc   :  { %3648 = vmatpush.msra.mxu2 %v3627_v13  ;;  %3729 = vmatpush.msra.mxu0 %v3716_v34  ;;  %v3705_v38 = vld [vmem:[%s8619_s9] sm:$0xff]  ;;  %v6004_v13 = vld [vmem:[%s8621_s30 + $0xf8] sm:$0xff]  ;;  %v5994_v20 = vld [vmem:[%s8621_s30 + $0xa8] sm:$0xff] }
0x12cd   :  { %3771 = vmatpush.msra.mxu1 %v3760_v49  ;;  %3690 = vmatpush.msra.mxu3 %v3669_v50  ;;  %v5997_v29 = vld [vmem:[%s8621_s30 + $0xc0] sm:$0xff]  ;;  %v5992_v34 = vld [vmem:[%s8621_s30 + $0x98] sm:$0xff]  ;;  %v5990_v49 = vld [vmem:[%s8621_s30 + $0x88] sm:$0xff] }
0x12ce   :  { %3649 = vmatpush.msra.mxu2 %v3626_v56  ;;  %3730 = vmatpush.msra.mxu0 %v3715_v53  ;;  %v5989_v53 = vld [vmem:[%s8621_s30 + $0x80] sm:$0xff] }
0x12cf   :  { %3772 = vmatpush.msra.mxu1 %v3759_v36  ;;  %3691 = vmatpush.msra.mxu3 %v3668_v60 }
0x12d0   :  { %3650 = vmatpush.msra.mxu2 %v3625_v57  ;;  %3731 = vmatpush.msra.mxu0 %v3714_v40  ;;  %v6003_v57 = vld [vmem:[%s8621_s30 + $0xf0] sm:$0xff] }
0x12d1   :  { %3773 = vmatpush.msra.mxu1 %v3758_v6  ;;  %3692 = vmatpush.msra.mxu3 %v3667_v22  ;;  %v6251_v40 = vld [vmem:[#allocation25] ss:$0 sm:$0xff] }
0x12d2   :  { %3651 = vmatpush.msra.mxu2 %v3624_v14  ;;  %3732 = vmatpush.msra.mxu0 %v3713_v24  ;;  %v6002_v14 = vld [vmem:[%s8621_s30 + $0xe8] sm:$0xff] }
0x12d3   :  { %3590 = vmatmul.f32.vlgmr.msrb.gmra.mxu0 %v3539_v11  ;;  %3610 = vmatmul.f32.vlgmr.msrb.gmra.mxu1 %v3541_v37  ;;  %v3751_v37 = vld [vmem:[%s8621_s30 + $0x18] sm:$0xff] }
0x12d4   :  { %3652 = vmatpush.msra.mxu2 %v3623_v15  ;;  %3774 = vmatpush.msra.mxu1 %v3757_v42  ;;  %v6001_v15 = vld [vmem:[%s8621_s30 + $0xe0] sm:$0xff]  ;;  %v6253_v42 = vld [vmem:[#allocation23] ss:$0 sm:$0xff] }
0x12d5   :  { %3733 = vmatpush.msra.mxu0 %v3712_v43  ;;  %3693 = vmatpush.msra.mxu3 %v3666_v3  ;;  %v5972_v3 = vld [vmem:[%s8620_s11 + $0xf8] sm:$0xff] }
0x12d6   :  { %3653 = vmatpush.msra.mxu2 %v3622_v16  ;;  %3775 = vmatpush.msra.mxu1 %v3756_v45  ;;  %v6000_v16 = vld [vmem:[%s8621_s30 + $0xd8] sm:$0xff] }
0x12d7   :  { %3734 = vmatpush.msra.mxu0 %v3711_v46  ;;  %3694 = vmatpush.msra.mxu3 %v3665_v47  ;;  %v5987_v47 = vld [vmem:[%s8619_s9 + $0xf0] sm:$0xff] }
0x12d8   :  { %3654 = vmatpush.msra.mxu2 %v3621_v17  ;;  %3776 = vmatpush.msra.mxu1 %v3755_v55  ;;  %v3664_v17 = vld [vmem:[%s8620_s11 + $0x10] sm:$0xff] }
0x12d9   :  { %3735 = vmatpush.msra.mxu0 %v3710_v59  ;;  %3695 = vmatpush.msra.mxu3 %v3664_v17 }
0x12da   :  { %3655 = vmatpush.msra.mxu2 %v3620_v18  ;;  %3777 = vmatpush.msra.mxu1 %v3754_v63  ;;  %v3750_v18 = vld [vmem:[%s8621_s30 + $0x10] sm:$0xff] }
0x12db   :  { %3736 = vmatpush.msra.mxu0 %v3709_v19  ;;  %3696 = vmatpush.msra.mxu3 %v3663_v26 }
0x12dc   :  { %3778 = vmatpush.msra.mxu1 %v3753_v1 }
0x12dd   :  { %3737 = vmatpush.msra.mxu0 %v3708_v2  ;;  %3697 = vmatpush.msra.mxu3 %v3662_v4  ;;  %v5961_v4 = vld [vmem:[%s8620_s11 + $0xa0] sm:$0xff] }
0x12de   :  { %3779 = vmatpush.msra.mxu1 %v3752_v9  ;;  %v5971_v9 = vld [vmem:[%s8620_s11 + $0xf0] sm:$0xff] }
0x12df   :  { %3738 = vmatpush.msra.mxu0 %v3707_v8  ;;  %v5988_v8 = vld [vmem:[%s8619_s9 + $0xf8] sm:$0xff] }
0x12e0   :  { %3780 = vmatpush.msra.mxu1 %v3751_v37  ;;  %v5968_v37 = vld [vmem:[%s8620_s11 + $0xd8] sm:$0xff] }
0x12e1   :  { %3739 = vmatpush.msra.mxu0 %v3706_v28  ;;  %v5966_v28 = vld [vmem:[%s8620_s11 + $0xc8] sm:$0xff] }
0x12e2   :  { %3781 = vmatpush.msra.mxu1 %v3750_v18 }
0x12e3   :  { %3740 = vmatpush.msra.mxu0 %v3705_v38 }
0x12e4   :  { %3782 = vmatpush.msra.mxu1 %v3749_v61 }
0x12e5   :  { %4034 = vmatpush.msrb.mxu0 %v6004_v13  ;;  %v5965_v13 = vld [vmem:[%s8620_s11 + $0xc0] sm:$0xff] }
0x12e6   :  { %3783 = vmatpush.msra.mxu1 %v3748_v62  ;;  %v5985_v62 = vld [vmem:[%s8619_s9 + $0xe0] sm:$0xff] }
0x12e7   :  { %4035 = vmatpush.msrb.mxu0 %v6003_v57  ;;  %v5964_v57 = vld [vmem:[%s8620_s11 + $0xb8] sm:$0xff] }
0x12e9   :  { %4036 = vmatpush.msrb.mxu0 %v6002_v14  ;;  %v5963_v14 = vld [vmem:[%s8620_s11 + $0xb0] sm:$0xff] }
0x12eb   :  { %4037 = vmatpush.msrb.mxu0 %v6001_v15  ;;  %v5962_v15 = vld [vmem:[%s8620_s11 + $0xa8] sm:$0xff] }
0x12ed   :  { %4038 = vmatpush.msrb.mxu0 %v6000_v16 }
0x12ef   :  { %4039 = vmatpush.msrb.mxu0 %v5999_v23 }
0x12f1   :  { %4040 = vmatpush.msrb.mxu0 %v5998_v27 }
0x12f3   :  { %4041 = vmatpush.msrb.mxu0 %v5997_v29  ;;  %v5960_v29 = vld [vmem:[%s8620_s11 + $0x98] sm:$0xff] }
0x12f5   :  { %4042 = vmatpush.msrb.mxu0 %v5996_v30  ;;  %v5984_v30 = vld [vmem:[%s8619_s9 + $0xd8] sm:$0xff] }
0x12f7   :  { %4043 = vmatpush.msrb.mxu0 %v5995_v31  ;;  %v5959_v31 = vld [vmem:[%s8620_s11 + $0x90] sm:$0xff] }
0x12f9   :  { %4044 = vmatpush.msrb.mxu0 %v5994_v20  ;;  %v5983_v20 = vld [vmem:[%s8619_s9 + $0xd0] sm:$0xff] }
0x1340   :  { %v3430_v35 = vpop.f32.mrf.mxu0  ;;  %v3453_v32 = vpop.f32.mrf.mxu1 }
0x1341   :  { %v3431_v39 = vadd.f32 %v6248_v21, %v3430_v35 }
0x1343   :  { %v8107_v7 = vadd.f32 %v3453_v32, %v3431_v39 }
0x1348   :  { %v3433_v51 = vpop.f32.mrf.mxu0  ;;  %v3456_v54 = vpop.f32.mrf.mxu1 }
0x1349   :  { %v3434_v58 = vadd.f32 %v6248_v21, %v3433_v51  ;;  %v5993_v21 = vld [vmem:[%s8621_s30 + $0xa0] sm:$0xff] }
0x134a   :  { %4045 = vmatpush.msrb.mxu0 %v5993_v21  ;;  %v5958_v21 = vld [vmem:[%s8620_s11 + $0x88] sm:$0xff] }
0x134b   :  { %v8121_v0 = vadd.f32 %v3456_v54, %v3434_v58  ;;  %v8173_v54 = vld [vmem:[#allocation26 + $0x1] ss:$0 sm:$0xff] }
0x134c   :  { %4046 = vmatpush.msrb.mxu0 %v5992_v34  ;;  %v5982_v34 = vld [vmem:[%s8619_s9 + $0xc8] sm:$0xff] }
0x134e   :  { %4047 = vmatpush.msrb.mxu0 %v5991_v52  ;;  %v5957_v52 = vld [vmem:[%s8620_s11 + $0x80] sm:$0xff] }
0x1350   :  { %v3591_v48 = vpop.f32.mrf.mxu0  ;;  %v3611_v11 = vpop.f32.mrf.mxu1  ;;  %4048 = vmatpush.msrb.mxu0 %v5990_v49  ;;  %v5981_v49 = vld [vmem:[%s8619_s9 + $0xc0] sm:$0xff] }
0x1351   :  { %v3612_v5 = vadd.f32 %v3611_v11, %v3591_v48  ;;  %v5969_v48 = vld [vmem:[%s8620_s11 + $0xe0] sm:$0xff]  ;;  %v5986_v11 = vld [vmem:[%s8619_s9 + $0xe8] sm:$0xff] }
0x1352   :  { %4049 = vmatpush.msrb.mxu0 %v5989_v53  ;;  %v5980_v53 = vld [vmem:[%s8619_s9 + $0xb8] sm:$0xff] }
0x1353   :  { %v3618_v12 = vadd.f32 %v6249_v10, %v3612_v5  ;;  %v5970_v10 = vld [vmem:[%s8620_s11 + $0xe8] sm:$0xff]  ;;  %v5967_v5 = vld [vmem:[%s8620_s11 + $0xd0] sm:$0xff] }
0x1355   :  { %v3619_v56 = vmax.f32 %v3618_v12, 0.0 }
0x1357   :  { %3656 = vmatmul.f32.vlgmr.msra.gmra.mxu2 %v3619_v56 }
0x13da   :  { %v3657_v35 = vpop.f32.mrf.mxu2 }
0x13db   :  { %v3658_v32 = vadd.f32 %v6250_v33, %v3657_v35  ;;  %v5979_v33 = vld [vmem:[%s8619_s9 + $0xb0] sm:$0xff]  ;;  %v5978_v35 = vld [vmem:[%s8619_s9 + $0xa8] sm:$0xff] }
0x13dd   :  { %v8157_v36 = vadd.f32 %v3658_v32, %v8107_v7  ;;  %v8163_v39 = vadd.f32 %v3658_v32, %v8121_v0  ;;  %v5977_v32 = vld [vmem:[%s8619_s9 + $0xa0] sm:$0xff] }
0x13df   :  { %3698 = vmatmul.f32.vlgmr.msra.gmra.mxu3 %v8157_v36  ;;  %3741 = vmatmul.f32.vlgmr.msra.gmra.mxu0 %v8157_v36 }
0x13e0   :  { %3784 = vmatmul.f32.vlgmr.msra.gmra.mxu1 %v8157_v36 }
0x13e7   :  { %3701 = vmatmul.f32.gmra.mxu3 %v8163_v39  ;;  %3744 = vmatmul.f32.gmra.mxu0 %v8163_v39 }
0x13e8   :  { %3787 = vmatmul.f32.gmra.mxu1 %v8163_v39 }
0x13ef   :  { %4050 = vmatmul.f32.vlgmr.msrb.gmra.mxu0 %v8157_v36 }
0x13f7   :  { %4053 = vmatmul.f32.gmra.mxu0 %v8163_v39 }
0x145c   :  { %v3742_v6 = vpop.f32.mrf.mxu0 }
0x145d   :  { %v3743_v7 = vadd.f32 %v6251_v40, %v3742_v6  ;;  %v3785_v24 = vpop.f32.mrf.mxu1  ;;  %v5974_v6 = vld [vmem:[%s8619_s9 + $0x88] sm:$0xff] }
0x145e   :  { %v3786_v25 = vadd.f32 %v6252_v41, %v3785_v24 }
0x145f   :  { %5951 = vmatpush.xpose.msk.msrb.mxu2 %vm3791_vm12, %v3743_v7  ;;  %v5973_v7 = vld [vmem:[%s8619_s9 + $0x80] sm:$0xff] }
0x1460   :  { %3886 = vmatpush.msrb.mxu3 %v3786_v25  ;;  %v3921_v25 = vld [vmem:[%s8622_s16 + $0x38] sm:$0xff] }
0x1461   :  { %4231 = vmatpush.msra.mxu0 %v3921_v25 }
0x1462   :  { %v3699_v43 = vpop.f32.mrf.mxu3  ;;  %3944 = vmatpush.msra.mxu3 %v5972_v3 }
0x1463   :  { %v3700_v44 = vadd.f32 %v6253_v42, %v3699_v43  ;;  %v3919_v43 = vld [vmem:[%s8622_s16 + $0x28] sm:$0xff] }
0x1464   :  { %v3745_v45 = vpop.f32.mrf.mxu0  ;;  %3945 = vmatpush.msra.mxu3 %v5971_v9  ;;  %v6255_v9 = vld [vmem:[#allocation23 + $0x1] ss:$0 sm:$0xff] }
0x1465   :  { %v3746_v46 = vadd.f32 %v6251_v40, %v3745_v45  ;;  %v3788_v50 = vpop.f32.mrf.mxu1  ;;  %5952 = vmatmul.msk.f32.vlgmr.msrb.gmra.mxu2 %vm3791_vm12, %v3700_v44  ;;  %v5976_v40 = vld [vmem:[%s8619_s9 + $0x98] sm:$0xff]  ;;  %v3918_v45 = vld [vmem:[%s8622_s16 + $0x20] sm:$0xff] }
0x1466   :  { %v3789_v51 = vadd.f32 %v6252_v41, %v3788_v50  ;;  %3946 = vmatpush.msra.mxu3 %v5970_v10  ;;  %v5975_v41 = vld [vmem:[%s8619_s9 + $0x90] sm:$0xff] }
0x1467   :  { %5953 = vmatpush.xpose.msk.msra.mxu2 %vm3791_vm12, %v3746_v46 }
0x1468   :  { %3947 = vmatpush.msra.mxu3 %v5969_v48 }
0x146a   :  { %v3702_v55 = vpop.f32.mrf.mxu3  ;;  %3948 = vmatpush.msra.mxu3 %v5968_v37 }
0x146b   :  { %3909 = vmatpush.msrb.mxu2 %v3789_v51  ;;  %v3703_v58 = vadd.f32 %v6253_v42, %v3702_v55  ;;  %v3920_v42 = vld [vmem:[%s8622_s16 + $0x30] sm:$0xff]  ;;  %v3917_v55 = vld [vmem:[%s8622_s16 + $0x18] sm:$0xff] }
0x146c   :  { %v4051_v59 = vpop.f32.mrf.mxu0  ;;  %3949 = vmatpush.msra.mxu3 %v5967_v5  ;;  %4232 = vmatpush.msra.mxu0 %v3920_v42 }
0x146d   :  { %v8176_v60 = vadd.f32 %v8173_v54, %v4051_v59  ;;  %5954 = vmatmul.msk.f32.vlgmr.msra.gmra.mxu2 %vm3791_vm12, %v3703_v58  ;;  %v3916_v59 = vld [vmem:[%s8622_s16 + $0x10] sm:$0xff] }
0x146e   :  { %3989 = vmatpush.msra.mxu2 %v5988_v8  ;;  %3950 = vmatpush.msra.mxu3 %v5966_v28 }
0x146f   :  { %4233 = vmatpush.msra.mxu0 %v3919_v43 }
0x1470   :  { %3990 = vmatpush.msra.mxu2 %v5987_v47  ;;  %3951 = vmatpush.msra.mxu3 %v5965_v13 }
0x1471   :  { %4234 = vmatpush.msra.mxu0 %v3918_v45 }
0x1472   :  { %3991 = vmatpush.msra.mxu2 %v5986_v11  ;;  %3952 = vmatpush.msra.mxu3 %v5964_v57 }
0x1473   :  { %4235 = vmatpush.msra.mxu0 %v3917_v55  ;;  %v7083_v55 = vmov 128.0  }
0x1474   :  { %3953 = vmatpush.msra.mxu3 %v5963_v14  ;;  %3992 = vmatpush.msra.mxu2 %v5985_v62  ;;  %v4054_v44 = vpop.f32.mrf.mxu0  ;;  %v6017_v62 = vld [vmem:[%s8622_s16 + $0x70] sm:$0xff] }
0x1475   :  { %v4055_v58 = vadd.f32 %v8173_v54, %v4054_v44  ;;  %4236 = vmatpush.msra.mxu0 %v3916_v59  ;;  %v3914_v54 = vld [vmem:[%s8622_s16] sm:$0xff] }
0x1476   :  { %3954 = vmatpush.msra.mxu3 %v5962_v15  ;;  %3993 = vmatpush.msra.mxu2 %v5984_v30  ;;  %v6015_v30 = vld [vmem:[%s8622_s16 + $0x60] sm:$0xff] }
0x1478   :  { %3955 = vmatpush.msra.mxu3 %v5961_v4  ;;  %3994 = vmatpush.msra.mxu2 %v5983_v20  ;;  %v6018_v4 = vld [vmem:[%s8622_s16 + $0x78] sm:$0xff]  ;;  %v6013_v20 = vld [vmem:[%s8622_s16 + $0x50] sm:$0xff] }
0x147a   :  { %3956 = vmatpush.msra.mxu3 %v5960_v29  ;;  %3995 = vmatpush.msra.mxu2 %v5982_v34  ;;  %v6016_v29 = vld [vmem:[%s8622_s16 + $0x68] sm:$0xff] }
0x147c   :  { %3957 = vmatpush.msra.mxu3 %v5959_v31  ;;  %3996 = vmatpush.msra.mxu2 %v5981_v49  ;;  %v6014_v31 = vld [vmem:[%s8622_s16 + $0x58] sm:$0xff] }
0x147e   :  { %3958 = vmatpush.msra.mxu3 %v5958_v21  ;;  %3997 = vmatpush.msra.mxu2 %v5980_v53  ;;  %v6012_v21 = vld [vmem:[%s8622_s16 + $0x48] sm:$0xff] }
0x1480   :  { %3959 = vmatpush.msra.mxu3 %v5957_v52  ;;  %3998 = vmatpush.msra.mxu2 %v5979_v33 }
0x1482   :  { %3999 = vmatpush.msra.mxu2 %v5978_v35 }
0x1484   :  { %4000 = vmatpush.msra.mxu2 %v5977_v32  ;;  %v6011_v32 = vld [vmem:[%s8622_s16 + $0x40] sm:$0xff] }
0x1486   :  { %4001 = vmatpush.msra.mxu2 %v5976_v40 }
0x1488   :  { %4002 = vmatpush.msra.mxu2 %v5975_v41 }
0x148a   :  { %4003 = vmatpush.msra.mxu2 %v5974_v6  ;;  %v6257_v6 = vld [vmem:[#allocation28] ss:$0 sm:$0xff] }
0x148c   :  { %4004 = vmatpush.msra.mxu2 %v5973_v7 }
0x14e8   :  { %v3815_v63 = vpop.f32.mrf.mxu2 }
0x14e9   :  { %v3844_v0 = vmul.f32 0.125, %v3815_v63  ;;  %v3915_v63 = vld [vmem:[%s8622_s16 + $0x8] sm:$0xff] }
0x14ea   :  { %4237 = vmatpush.msra.mxu0 %v3915_v63 }
0x14eb   :  { %v3846_v19 = vsel %vm915_vm1, %v3844_v0, -inf }
0x14ec   :  { %3847 = vmax.xlane.f32.xlu0 %v3846_v19  ;;  %4238 = vmatpush.msra.mxu0 %v3914_v54  ;;  %v4375_v54 = vld [vmem:[#allocation35 + $0x1f0] sm:$0xff] }
0x14f0   :  { %v3841_v22 = vpop.f32.mrf.mxu2 }
0x14f1   :  { %v3845_v1 = vmul.f32 0.125, %v3841_v22 }
0x14f3   :  { %v3849_v2 = vsel %vm915_vm1, %v3845_v1, -inf }
0x14f4   :  { %3850 = vmax.xlane.f32.xlu2 %v3849_v2  ;;  %v6256_v2 = vld [vmem:[#allocation25 + $0x1] ss:$0 sm:$0xff] }
0x155f   :  { %v3848_v12 = vpop.xlane.xlu0 %3847 }
0x1560   :  { %v3852_v38 = vsub.f32 %v3844_v0, %v3848_v12 }
0x1562   :  { %v3854_v56 = vmul.f32 1.442695, %v3852_v38 }
0x1564   :  { %6325 = vpow2.f32 %v3854_v56 }
0x1567   :  { %v3851_v16 = vpop.xlane.xlu2 %3850 }
0x1568   :  { %v3853_v17 = vsub.f32 %v3845_v1, %v3851_v16 }
0x156a   :  { %v6326_v18 = vpop.eup %6325  ;;  %v3856_v23 = vmul.f32 1.442695, %v3853_v17 }
0x156b   :  { %v3858_v26 = vsel %vm915_vm1, %v6326_v18, 0.0 }
0x156c   :  { %6327 = vpow2.f32 %v3856_v23  ;;  %3859 = vadd.xlane.f32.xlu2 %v3858_v26 }
0x1572   :  { %v8196_v61 = vpop.eup %6327 }
0x1573   :  { %v3861_v27 = vsel %vm915_vm1, %v8196_v61, 0.0 }
0x1574   :  { %3862 = vadd.xlane.f32.xlu1 %v3861_v27 }
0x15df   :  { %v3860_v24 = vpop.xlane.xlu2 %3859 }
0x15e0   :  { %6329 = vrcp.f32 %v3860_v24 }
0x15e6   :  { %v6330_v46 = vpop.eup %6329 }
0x15e7   :  { %v3866_v50 = vmul.f32 %v6330_v46, %v6326_v18  ;;  %v3863_v51 = vpop.xlane.xlu1 %3862 }
0x15e8   :  { %6331 = vrcp.f32 %v3863_v51 }
0x15e9   :  { %5955 = vmatmul.msk.f32.vlgmr.msrb.gmra.mxu3 %vm915_vm1, %v3866_v50 }
0x15ea   :  { %4174 = vmatpush.msrb.mxu3 %v4055_v58 }
0x15ee   :  { %v6332_v0 = vpop.eup %6331 }
0x15ef   :  { %v3867_v19 = vmul.f32 %v6332_v0, %v8196_v61  ;;  %v4373_v0 = vld [vmem:[#allocation35 + $0x1e0] sm:$0xff] }
0x15f1   :  { %5956 = vmatmul.msk.f32.vlgmr.msrb.gmra.mxu2 %vm915_vm1, %v3867_v19  ;;  %3960 = vmatmul.f32.vlgmr.msra.gmra.mxu3 %v8157_v36  ;;  %v4374_v19 = vld [vmem:[#allocation35 + $0x1e8] sm:$0xff] }
0x15f2   :  { %4202 = vmatpush.msrb.mxu2 %v6018_v4  ;;  %4410 = vmatpush.msra.mxu3 %v4374_v19  ;;  %v4355_v4 = vld [vmem:[#allocation35 + $0x150] sm:$0xff] }
0x15f3   :  { %v4323_v19 = vld [vmem:[#allocation35 + $0x50] sm:$0xff] }
0x15f4   :  { %4203 = vmatpush.msrb.mxu2 %v6017_v62  ;;  %v4356_v62 = vld [vmem:[#allocation35 + $0x158] sm:$0xff] }
0x15f6   :  { %4204 = vmatpush.msrb.mxu2 %v6016_v29  ;;  %v4349_v29 = vld [vmem:[#allocation35 + $0x120] sm:$0xff] }
0x15f8   :  { %4205 = vmatpush.msrb.mxu2 %v6015_v30  ;;  %v4350_v30 = vld [vmem:[#allocation35 + $0x128] sm:$0xff] }
0x15f9   :  { %3963 = vmatmul.f32.gmra.mxu3 %v8163_v39  ;;  %4005 = vmatmul.f32.vlgmr.msra.gmra.mxu2 %v8157_v36 }
0x15fa   :  { %4206 = vmatpush.msrb.mxu2 %v6014_v31  ;;  %v4351_v31 = vld [vmem:[#allocation35 + $0x130] sm:$0xff] }
0x15fc   :  { %4207 = vmatpush.msrb.mxu2 %v6013_v20  ;;  %v4352_v20 = vld [vmem:[#allocation35 + $0x138] sm:$0xff] }
0x15fe   :  { %4208 = vmatpush.msrb.mxu2 %v6012_v21  ;;  %v4345_v21 = vld [vmem:[#allocation35 + $0x100] sm:$0xff] }
0x1600   :  { %4209 = vmatpush.msrb.mxu2 %v6011_v32  ;;  %v4344_v32 = vld [vmem:[#allocation35 + $0xf8] sm:$0xff] }
0x1601   :  { %4008 = vmatmul.f32.gmra.mxu2 %v8163_v39 }
0x1602   :  { %4433 = vmatpush.msra.mxu2 %v4375_v54  ;;  %v4324_v54 = vld [vmem:[#allocation35 + $0x58] sm:$0xff] }
0x166c   :  { %v3888_v22 = vpop.f32.mrf.mxu3 }
0x166d   :  { %6021 = vmatmul.msk.f32.vlgmr.msra.gmra.mxu0 %vm3791_vm12, %v3888_v22 }
0x1674   :  { %v3911_v1 = vpop.f32.mrf.mxu2  ;;  %v3961_v3 = vpop.f32.mrf.mxu3 }
0x1675   :  { %6022 = vmatmul.msk.f32.gmra.mxu0 %vm3791_vm12, %v3911_v1  ;;  %v3962_v47 = vadd.f32 %v6255_v9, %v3961_v3  ;;  %v4369_v1 = vld [vmem:[#allocation35 + $0x1c0] sm:$0xff]  ;;  %v4371_v3 = vld [vmem:[#allocation35 + $0x1d0] sm:$0xff] }
0x1676   :  { %4434 = vmatpush.msra.mxu2 %v4371_v3  ;;  %v4313_v3 = vld [vmem:[#allocation35] sm:$0xff] }
0x167c   :  { %v4006_v10 = vpop.f32.mrf.mxu2  ;;  %v3964_v11 = vpop.f32.mrf.mxu3 }
0x167d   :  { %v4007_v8 = vadd.f32 %v6256_v2, %v4006_v10  ;;  %v3965_v5 = vadd.f32 %v6255_v9, %v3964_v11  ;;  %v4372_v9 = vld [vmem:[#allocation35 + $0x1d8] sm:$0xff] }
0x167f   :  { %6005 = vmatpush.xpose.msk.msrb.mxu1 %vm3791_vm12, %v4007_v8 }
0x1682   :  { %6006 = vmatmul.msk.f32.vlgmr.msrb.gmra.mxu1 %vm3791_vm12, %v3962_v47 }
0x1684   :  { %v4009_v48 = vpop.f32.mrf.mxu2 }
0x1685   :  { %v4010_v37 = vadd.f32 %v6256_v2, %v4009_v48  ;;  %v4370_v2 = vld [vmem:[#allocation35 + $0x1c8] sm:$0xff] }
0x1686   :  { %4411 = vmatpush.msra.mxu3 %v4370_v2  ;;  %v4320_v2 = vld [vmem:[#allocation35 + $0x38] sm:$0xff] }
0x1687   :  { %6007 = vmatpush.xpose.msk.msra.mxu1 %vm3791_vm12, %v4010_v37 }
0x168a   :  { %6008 = vmatmul.msk.f32.vlgmr.msra.gmra.mxu1 %vm3791_vm12, %v3965_v5 }
0x168b   :  { %4151 = vmatpush.msrb.mxu1 %v8176_v60 }
0x168d   :  { %4387 = vmatpush.msra.mxu1 %v4373_v0  ;;  %v4322_v0 = vld [vmem:[#allocation35 + $0x48] sm:$0xff] }
0x168f   :  { %4388 = vmatpush.msra.mxu1 %v4369_v1  ;;  %v4319_v1 = vld [vmem:[#allocation35 + $0x30] sm:$0xff] }
0x16ea   :  { %v4240_v7 = vpop.f32.mrf.mxu0 }
0x16f2   :  { %v4243_v44 = vpop.f32.mrf.mxu0 }
0x16ff   :  { %v4080_v28 = vpop.f32.mrf.mxu1 }
0x1700   :  { %v4109_v12 = vmul.f32 0.125, %v4080_v28 }
0x1702   :  { %v4111_v38 = vsel %vm915_vm1, %v4109_v12, -inf }
0x1703   :  { %4112 = vmax.xlane.f32.xlu0 %v4111_v38  ;;  %v4365_v38 = vld [vmem:[#allocation35 + $0x1a0] sm:$0xff] }
0x1704   :  { %4389 = vmatpush.msra.mxu1 %v4365_v38  ;;  %v4502_v38 = vld [vmem:[#allocation37 + $0x78] sm:$0xff] }
0x1707   :  { %v4106_v13 = vpop.f32.mrf.mxu1 }
0x1708   :  { %v4110_v56 = vmul.f32 0.125, %v4106_v13  ;;  %v4366_v13 = vld [vmem:[#allocation35 + $0x1a8] sm:$0xff] }
0x1709   :  { %4412 = vmatpush.msra.mxu3 %v4366_v13  ;;  %v4550_v13 = vld [vmem:[#allocation37 + $0x1f8] sm:$0xff] }
0x170a   :  { %v4114_v57 = vsel %vm915_vm1, %v4110_v56, -inf }
0x170b   :  { %4115 = vmax.xlane.f32.xlu1 %v4114_v57  ;;  %v4368_v57 = vld [vmem:[#allocation35 + $0x1b8] sm:$0xff] }
0x1776   :  { %v4113_v14 = vpop.xlane.xlu0 %4112 }
0x1777   :  { %v4117_v15 = vsub.f32 %v4109_v12, %v4113_v14  ;;  %v4361_v14 = vld [vmem:[#allocation35 + $0x180] sm:$0xff] }
0x1778   :  { %4390 = vmatpush.msra.mxu1 %v4361_v14 }
0x1779   :  { %v4119_v16 = vmul.f32 1.442695, %v4117_v15  ;;  %v4362_v15 = vld [vmem:[#allocation35 + $0x188] sm:$0xff] }
0x177a   :  { %4413 = vmatpush.msra.mxu3 %v4362_v15 }
0x177b   :  { %6333 = vpow2.f32 %v4119_v16  ;;  %v4363_v16 = vld [vmem:[#allocation35 + $0x190] sm:$0xff] }
0x177e   :  { %v4116_v60 = vpop.xlane.xlu1 %4115 }
0x177f   :  { %v4118_v17 = vsub.f32 %v4110_v56, %v4116_v60  ;;  %v4367_v56 = vld [vmem:[#allocation35 + $0x1b0] sm:$0xff]  ;;  %v4364_v60 = vld [vmem:[#allocation35 + $0x198] sm:$0xff] }
0x1780   :  { %4435 = vmatpush.msra.mxu2 %v4367_v56  ;;  %v4501_v56 = vld [vmem:[#allocation37 + $0x70] sm:$0xff] }
0x1781   :  { %v6334_v18 = vpop.eup %6333  ;;  %v4121_v23 = vmul.f32 1.442695, %v4118_v17  ;;  %v4357_v17 = vld [vmem:[#allocation35 + $0x160] sm:$0xff] }
0x1782   :  { %v4123_v26 = vsel %vm915_vm1, %v6334_v18, 0.0  ;;  %4436 = vmatpush.msra.mxu2 %v4363_v16  ;;  %4391 = vmatpush.msra.mxu1 %v4357_v17  ;;  %v4500_v16 = vld [vmem:[#allocation37 + $0x68] sm:$0xff]  ;;  %v4518_v17 = vld [vmem:[#allocation37 + $0xf8] sm:$0xff] }
0x1783   :  { %6335 = vpow2.f32 %v4121_v23  ;;  %4124 = vadd.xlane.f32.xlu2 %v4123_v26  ;;  %v4359_v23 = vld [vmem:[#allocation35 + $0x170] sm:$0xff]  ;;  %v4360_v26 = vld [vmem:[#allocation35 + $0x178] sm:$0xff] }
0x1784   :  { %4437 = vmatpush.msra.mxu2 %v4359_v23  ;;  %v4499_v23 = vld [vmem:[#allocation37 + $0x60] sm:$0xff] }
0x1786   :  { %4438 = vmatpush.msra.mxu2 %v4355_v4  ;;  %v4517_v4 = vld [vmem:[#allocation37 + $0xf0] sm:$0xff] }
0x1788   :  { %4439 = vmatpush.msra.mxu2 %v4351_v31  ;;  %v4532_v31 = vld [vmem:[#allocation37 + $0x168] sm:$0xff] }
0x1789   :  { %v6336_v61 = vpop.eup %6335 }
0x178a   :  { %v4126_v27 = vsel %vm915_vm1, %v6336_v61, 0.0 }
0x178b   :  { %4127 = vadd.xlane.f32.xlu0 %v4126_v27  ;;  %v4354_v27 = vld [vmem:[#allocation35 + $0x148] sm:$0xff] }
0x17f6   :  { %v4125_v34 = vpop.xlane.xlu2 %4124 }
0x17f7   :  { %6337 = vrcp.f32 %v4125_v34  ;;  %v4346_v34 = vld [vmem:[#allocation35 + $0x108] sm:$0xff] }
0x17fd   :  { %v6338_v52 = vpop.eup %6337 }
0x17fe   :  { %v4131_v49 = vmul.f32 %v6338_v52, %v6334_v18  ;;  %v4128_v53 = vpop.xlane.xlu0 %4127  ;;  %v4358_v18 = vld [vmem:[#allocation35 + $0x168] sm:$0xff]  ;;  %v4347_v52 = vld [vmem:[#allocation35 + $0x110] sm:$0xff] }
0x17ff   :  { %6339 = vrcp.f32 %v4128_v53  ;;  %4414 = vmatpush.msra.mxu3 %v4358_v18  ;;  %4440 = vmatpush.msra.mxu2 %v4347_v52  ;;  %v4341_v53 = vld [vmem:[#allocation35 + $0xe0] sm:$0xff] }
0x1800   :  { %6009 = vmatmul.msk.f32.vlgmr.msrb.gmra.mxu1 %vm915_vm1, %v4131_v49  ;;  %6341 = vrcp.f32 %v7083_v55  ;;  %v4348_v49 = vld [vmem:[#allocation35 + $0x118] sm:$0xff]  ;;  %v4326_v55 = vld [vmem:[#allocation35 + $0x68] sm:$0xff]  ;;  %v4515_v52 = vld [vmem:[#allocation37 + $0xe0] sm:$0xff] }
0x1801   :  { %4415 = vmatpush.msra.mxu3 %v4354_v27  ;;  %v4547_v27 = vld [vmem:[#allocation37 + $0x1e0] sm:$0xff] }
0x1803   :  { %4416 = vmatpush.msra.mxu3 %v4350_v30  ;;  %v4516_v30 = vld [vmem:[#allocation37 + $0xe8] sm:$0xff] }
0x1805   :  { %v6340_v33 = vpop.eup %6339  ;;  %4417 = vmatpush.msra.mxu3 %v4346_v34  ;;  %v4546_v34 = vld [vmem:[#allocation37 + $0x1d8] sm:$0xff] }
0x1806   :  { %v4132_v35 = vmul.f32 %v6340_v33, %v6336_v61  ;;  %v6342_v58 = vpop.eup %6341  ;;  %v4353_v61 = vld [vmem:[#allocation35 + $0x140] sm:$0xff]  ;;  %v4342_v33 = vld [vmem:[#allocation35 + $0xe8] sm:$0xff] }
0x1807   :  { %v4261_v59 = vmul.f32 128.0, %v6342_v58  ;;  %vm4265_vm13 = vweird.f32 %v6342_v58  ;;  %4392 = vmatpush.msra.mxu1 %v4353_v61  ;;  %4418 = vmatpush.msra.mxu3 %v4342_v33 }
0x1808   :  { %6010 = vmatmul.msk.f32.vlgmr.msrb.gmra.mxu3 %vm915_vm1, %v4132_v35  ;;  %v4343_v35 = vld [vmem:[#allocation35 + $0xf0] sm:$0xff] }
0x1809   :  { %v4262_v63 = vsub.f32 1.0, %v4261_v59  ;;  %4393 = vmatpush.msra.mxu1 %v4349_v29  ;;  %4441 = vmatpush.msra.mxu2 %v4343_v35  ;;  %v4328_v59 = vld [vmem:[#allocation35 + $0x78] sm:$0xff]  ;;  %v4497_v35 = vld [vmem:[#allocation37 + $0x50] sm:$0xff] }
0x180b   :  { %v4263_v22 = vmul.f32 %v6342_v58, %v4262_v63  ;;  %4394 = vmatpush.msra.mxu1 %v4345_v21  ;;  %v4321_v63 = vld [vmem:[#allocation35 + $0x40] sm:$0xff]  ;;  %v4498_v21 = vld [vmem:[#allocation37 + $0x58] sm:$0xff] }
0x180d   :  { %4395 = vmatpush.msra.mxu1 %v4341_v53  ;;  %v8276_v53 = vld [vmem:[#allocation29] ss:$0 sm:$0xff] }
0x187d   :  { %v4153_v40 = vpop.f32.mrf.mxu1 }
0x187e   :  { %6019 = vmatmul.msk.f32.vlgmr.msrb.gmra.mxu2 %vm3791_vm12, %v4153_v40  ;;  %v4337_v40 = vld [vmem:[#allocation35 + $0xc0] sm:$0xff] }
0x187f   :  { %4396 = vmatpush.msra.mxu1 %v4337_v40  ;;  %v4514_v40 = vld [vmem:[#allocation37 + $0xd8] sm:$0xff] }
0x188b   :  { %v4176_v41 = vpop.f32.mrf.mxu3 }
0x188c   :  { %6020 = vmatmul.msk.f32.gmra.mxu2 %vm3791_vm12, %v4176_v41  ;;  %v4338_v41 = vld [vmem:[#allocation35 + $0xc8] sm:$0xff] }
0x188d   :  { %4419 = vmatpush.msra.mxu3 %v4338_v41  ;;  %v4530_v41 = vld [vmem:[#allocation37 + $0x158] sm:$0xff] }
0x1901   :  { %v4211_v24 = vpop.f32.mrf.mxu2 }
0x1902   :  { %v4241_v25 = vadd.f32 %v4240_v7, %v4211_v24  ;;  %v4340_v7 = vld [vmem:[#allocation35 + $0xd8] sm:$0xff]  ;;  %v4333_v24 = vld [vmem:[#allocation35 + $0xa0] sm:$0xff] }
0x1903   :  { %4397 = vmatpush.msra.mxu1 %v4333_v24  ;;  %v4544_v24 = vld [vmem:[#allocation37 + $0x1c8] sm:$0xff] }
0x1904   :  { %v4250_v42 = vadd.f32 %v6257_v6, %v4241_v25  ;;  %v4334_v25 = vld [vmem:[#allocation35 + $0xa8] sm:$0xff] }
0x1905   :  { %4420 = vmatpush.msra.mxu3 %v4334_v25 }
0x1906   :  { %v4252_v43 = vadd.f32 %v4250_v42, %v8157_v36  ;;  %v4376_v36 = vld [vmem:[#allocation35 + $0x1f8] sm:$0xff]  ;;  %v4335_v42 = vld [vmem:[#allocation35 + $0xb0] sm:$0xff] }
0x1907   :  { %4456 = vmatpush.msrb.mxu0 %v4376_v36  ;;  %v4318_v36 = vld [vmem:[#allocation35 + $0x28] sm:$0xff] }
0x1908   :  { %4256 = vadd.xlane.f32.xlu1 %v4252_v43 }
0x1909   :  { %4457 = vmatpush.msrb.mxu0 %v4372_v9  ;;  %v4314_v9 = vld [vmem:[#allocation35 + $0x8] sm:$0xff] }
0x190b   :  { %4458 = vmatpush.msrb.mxu0 %v4368_v57  ;;  %v4549_v57 = vld [vmem:[#allocation37 + $0x1f0] sm:$0xff] }
0x190d   :  { %4459 = vmatpush.msrb.mxu0 %v4364_v60  ;;  %v4548_v60 = vld [vmem:[#allocation37 + $0x1e8] sm:$0xff] }
0x190f   :  { %v4214_v45 = vpop.f32.mrf.mxu2  ;;  %4460 = vmatpush.msrb.mxu0 %v4360_v26  ;;  %v4534_v26 = vld [vmem:[#allocation37 + $0x178] sm:$0xff] }
0x1910   :  { %v4244_v46 = vadd.f32 %v4243_v44, %v4214_v45  ;;  %v4329_v44 = vld [vmem:[#allocation35 + $0x80] sm:$0xff]  ;;  %v4330_v45 = vld [vmem:[#allocation35 + $0x88] sm:$0xff] }
0x1911   :  { %4461 = vmatpush.msrb.mxu0 %v4356_v62  ;;  %4398 = vmatpush.msra.mxu1 %v4329_v44  ;;  %v4533_v62 = vld [vmem:[#allocation37 + $0x170] sm:$0xff] }
0x1912   :  { %v4251_v50 = vadd.f32 %v6257_v6, %v4244_v46  ;;  %v4339_v6 = vld [vmem:[#allocation35 + $0xd0] sm:$0xff]  ;;  %4421 = vmatpush.msra.mxu3 %v4330_v45  ;;  %v4495_v45 = vld [vmem:[#allocation37 + $0x40] sm:$0xff] }
0x1913   :  { %4462 = vmatpush.msrb.mxu0 %v4352_v20  ;;  %4442 = vmatpush.msra.mxu2 %v4339_v6  ;;  %v4331_v46 = vld [vmem:[#allocation35 + $0x90] sm:$0xff] }
0x1914   :  { %v4253_v51 = vadd.f32 %v4251_v50, %v8163_v39  ;;  %v4264_v39 = vadd.f32 %v6342_v58, %v4263_v22  ;;  %v4332_v50 = vld [vmem:[#allocation35 + $0x98] sm:$0xff]  ;;  %4422 = vmatpush.msra.mxu3 %v4326_v55  ;;  %v4317_v22 = vld [vmem:[#allocation35 + $0x20] sm:$0xff]  ;;  %v4529_v44 = vld [vmem:[#allocation37 + $0x150] sm:$0xff] }
0x1915   :  { %4463 = vmatpush.msrb.mxu0 %v4348_v49  ;;  %4443 = vmatpush.msra.mxu2 %v4335_v42  ;;  %v4531_v49 = vld [vmem:[#allocation37 + $0x160] sm:$0xff]  ;;  %v8280_v42 = vld [vmem:[#allocation31] ss:$0 sm:$0xff]  ;;  %v4512_v55 = vld [vmem:[#allocation37 + $0xc8] sm:$0xff] }
0x1916   :  { %4258 = vadd.xlane.f32.xlu2 %v4253_v51  ;;  %v8259_v10 = vsel %vm4265_vm13, %v6342_v58, %v4264_v39  ;;  %v4327_v58 = vld [vmem:[#allocation35 + $0x70] sm:$0xff]  ;;  %4423 = vmatpush.msra.mxu3 %v4322_v0  ;;  %v4494_v0 = vld [vmem:[#allocation37 + $0x38] sm:$0xff] }
0x1917   :  { %4464 = vmatpush.msrb.mxu0 %v4344_v32  ;;  %4444 = vmatpush.msra.mxu2 %v4331_v46  ;;  %v4315_v39 = vld [vmem:[#allocation35 + $0x10] sm:$0xff]  ;;  %v4543_v46 = vld [vmem:[#allocation37 + $0x1c0] sm:$0xff] }
0x1918   :  { %4424 = vmatpush.msra.mxu3 %v4318_v36  ;;  %v4545_v32 = vld [vmem:[#allocation37 + $0x1d0] sm:$0xff] }
0x1919   :  { %4465 = vmatpush.msrb.mxu0 %v4340_v7  ;;  %4445 = vmatpush.msra.mxu2 %v4327_v58  ;;  %v4496_v7 = vld [vmem:[#allocation37 + $0x48] sm:$0xff] }
0x191a   :  { %4425 = vmatpush.msra.mxu3 %v4314_v9  ;;  %v4528_v58 = vld [vmem:[#allocation37 + $0x148] sm:$0xff]  ;;  %v4526_v9 = vld [vmem:[#allocation37 + $0x138] sm:$0xff] }
0x191b   :  { %4446 = vmatpush.msra.mxu2 %v4323_v19  ;;  %v4542_v19 = vld [vmem:[#allocation37 + $0x1b8] sm:$0xff] }
0x191c   :  { %4578 = vmatpush.msrb.mxu3 %v4518_v17  ;;  %v4508_v17 = vld [vmem:[#allocation37 + $0xa8] sm:$0xff] }
0x191d   :  { %4447 = vmatpush.msra.mxu2 %v4319_v1  ;;  %v4493_v1 = vld [vmem:[#allocation37 + $0x30] sm:$0xff] }
0x191e   :  { %4579 = vmatpush.msrb.mxu3 %v4517_v4  ;;  %v4487_v4 = vld [vmem:[#allocation37] sm:$0xff] }
0x191f   :  { %4448 = vmatpush.msra.mxu2 %v4315_v39 }
0x1920   :  { %4580 = vmatpush.msrb.mxu3 %v4516_v30  ;;  %v4535_v30 = vld [vmem:[#allocation37 + $0x180] sm:$0xff] }
0x1921   :  { %4601 = vmatpush.msrb.mxu2 %v4534_v26  ;;  %v4507_v26 = vld [vmem:[#allocation37 + $0xa0] sm:$0xff] }
0x1922   :  { %4581 = vmatpush.msrb.mxu3 %v4515_v52  ;;  %v4503_v52 = vld [vmem:[#allocation37 + $0x80] sm:$0xff] }
0x1923   :  { %4602 = vmatpush.msrb.mxu2 %v4533_v62  ;;  %v4506_v62 = vld [vmem:[#allocation37 + $0x98] sm:$0xff] }
0x1924   :  { %4582 = vmatpush.msrb.mxu3 %v4514_v40 }
0x1925   :  { %4603 = vmatpush.msrb.mxu2 %v4532_v31  ;;  %v4505_v31 = vld [vmem:[#allocation37 + $0x90] sm:$0xff] }
0x1927   :  { %4604 = vmatpush.msrb.mxu2 %v4531_v49  ;;  %v4519_v49 = vld [vmem:[#allocation37 + $0x100] sm:$0xff] }
0x1929   :  { %4605 = vmatpush.msrb.mxu2 %v4530_v41 }
0x192b   :  { %4606 = vmatpush.msrb.mxu2 %v4529_v44 }
0x192d   :  { %4607 = vmatpush.msrb.mxu2 %v4528_v58 }
0x197b   :  { %v4257_v8 = vpop.xlane.xlu1 %4256 }
0x197c   :  { %v4267_v47 = vmul.f32 %v8259_v10, %v4257_v8  ;;  %v4316_v8 = vld [vmem:[#allocation35 + $0x18] sm:$0xff] }
0x197e   :  { %v8262_v48 = vsub.f32 %v4252_v43, %v4267_v47  ;;  %v4336_v43 = vld [vmem:[#allocation35 + $0xb8] sm:$0xff] }
0x197f   :  { %4466 = vmatpush.msrb.mxu0 %v4336_v43  ;;  %v4513_v43 = vld [vmem:[#allocation37 + $0xd0] sm:$0xff] }
0x1980   :  { %v4271_v11 = vmul.f32 %v8262_v48, %v8262_v48  ;;  %4583 = vmatpush.msrb.mxu3 %v4513_v43 }
0x1981   :  { %4467 = vmatpush.msrb.mxu0 %v4332_v50 }
0x1982   :  { %4273 = vadd.xlane.f32.xlu0 %v4271_v11  ;;  %4584 = vmatpush.msrb.mxu3 %v4512_v55 }
0x1983   :  { %4468 = vmatpush.msrb.mxu0 %v4328_v59 }
0x1985   :  { %4469 = vmatpush.msrb.mxu0 %v4324_v54  ;;  %v4511_v54 = vld [vmem:[#allocation37 + $0xc0] sm:$0xff] }
0x1986   :  { %4585 = vmatpush.msrb.mxu3 %v4511_v54 }
0x1987   :  { %4470 = vmatpush.msrb.mxu0 %v4320_v2  ;;  %v4541_v2 = vld [vmem:[#allocation37 + $0x1b0] sm:$0xff] }
0x1989   :  { %v4259_v37 = vpop.xlane.xlu2 %4258  ;;  %4471 = vmatpush.msrb.mxu0 %v4316_v8  ;;  %v4492_v8 = vld [vmem:[#allocation37 + $0x28] sm:$0xff] }
0x198a   :  { %v4268_v5 = vmul.f32 %v8259_v10, %v4259_v37 }
0x198b   :  { %4624 = vmatpush.msra.mxu0 %v4550_v13 }
0x198c   :  { %v8267_v28 = vsub.f32 %v4253_v51, %v4268_v5  ;;  %v4325_v51 = vld [vmem:[#allocation35 + $0x60] sm:$0xff] }
0x198d   :  { %4399 = vmatpush.msra.mxu1 %v4325_v51  ;;  %4625 = vmatpush.msra.mxu0 %v4549_v57  ;;  %v4538_v57 = vld [vmem:[#allocation37 + $0x198] sm:$0xff] }
0x198e   :  { %v4272_v12 = vmul.f32 %v8267_v28, %v8267_v28 }
0x198f   :  { %4400 = vmatpush.msra.mxu1 %v4321_v63  ;;  %4626 = vmatpush.msra.mxu0 %v4548_v60  ;;  %v4489_v60 = vld [vmem:[#allocation37 + $0x10] sm:$0xff] }
0x1990   :  { %4275 = vadd.xlane.f32.xlu1 %v4272_v12 }
0x1991   :  { %4401 = vmatpush.msra.mxu1 %v4317_v22  ;;  %4627 = vmatpush.msra.mxu0 %v4547_v27  ;;  %v4527_v22 = vld [vmem:[#allocation37 + $0x140] sm:$0xff]  ;;  %v4536_v27 = vld [vmem:[#allocation37 + $0x188] sm:$0xff] }
0x1992   :  { %4608 = vmatpush.msrb.mxu2 %v4527_v22 }
0x1993   :  { %4402 = vmatpush.msra.mxu1 %v4313_v3  ;;  %4628 = vmatpush.msra.mxu0 %v4546_v34  ;;  %v4510_v3 = vld [vmem:[#allocation37 + $0xb8] sm:$0xff]  ;;  %v4520_v34 = vld [vmem:[#allocation37 + $0x108] sm:$0xff] }
0x1994   :  { %4586 = vmatpush.msrb.mxu3 %v4510_v3  ;;  %4609 = vmatpush.msrb.mxu2 %v4526_v9  ;;  %v6260_v9 = vld [vmem:[#allocation38] ss:$0 sm:$0xff] }
0x1995   :  { %4555 = vmatpush.msrb.mxu1 %v4502_v38  ;;  %4629 = vmatpush.msra.mxu0 %v4545_v32  ;;  %v4539_v38 = vld [vmem:[#allocation37 + $0x1a0] sm:$0xff] }
0x1997   :  { %4556 = vmatpush.msrb.mxu1 %v4501_v56  ;;  %4630 = vmatpush.msra.mxu0 %v4544_v24  ;;  %v4490_v56 = vld [vmem:[#allocation37 + $0x18] sm:$0xff] }
0x1999   :  { %4557 = vmatpush.msrb.mxu1 %v4500_v16  ;;  %4631 = vmatpush.msra.mxu0 %v4543_v46 }
0x199b   :  { %4558 = vmatpush.msrb.mxu1 %v4499_v23  ;;  %4632 = vmatpush.msra.mxu0 %v4542_v19  ;;  %v4488_v23 = vld [vmem:[#allocation37 + $0x8] sm:$0xff] }
0x199d   :  { %4559 = vmatpush.msrb.mxu1 %v4498_v21  ;;  %4633 = vmatpush.msra.mxu0 %v4541_v2  ;;  %v4504_v21 = vld [vmem:[#allocation37 + $0x88] sm:$0xff] }
0x199f   :  { %4560 = vmatpush.msrb.mxu1 %v4497_v35 }
0x19a1   :  { %4561 = vmatpush.msrb.mxu1 %v4496_v7 }
0x19a3   :  { %4562 = vmatpush.msrb.mxu1 %v4495_v45 }
0x19a5   :  { %4563 = vmatpush.msrb.mxu1 %v4494_v0 }
0x19a7   :  { %4564 = vmatpush.msrb.mxu1 %v4493_v1 }
0x19a9   :  { %4565 = vmatpush.msrb.mxu1 %v4492_v8 }
0x19f5   :  { %v4274_v47 = vpop.xlane.xlu0 %4273 }
0x19f6   :  { %v4277_v11 = vmul.f32 %v4274_v47, %v8259_v10  ;;  %v4540_v47 = vld [vmem:[#allocation37 + $0x1a8] sm:$0xff] }
0x19f7   :  { %4634 = vmatpush.msra.mxu0 %v4540_v47 }
0x19f8   :  { %v4279_v37 = vadd.f32 1e-05, %v4277_v11  ;;  %v4509_v11 = vld [vmem:[#allocation37 + $0xb0] sm:$0xff] }
0x19f9   :  { %4587 = vmatpush.msrb.mxu3 %v4509_v11  ;;  %4635 = vmatpush.msra.mxu0 %v4539_v38 }
0x19fa   :  { %6343 = vrsqrt.f32 %v4279_v37  ;;  %vm4287_vm15 = vweird.f32 %v4279_v37 }
0x19fb   :  { %4636 = vmatpush.msra.mxu0 %v4538_v57  ;;  %4588 = vmatpush.msrb.mxu3 %v4508_v17 }
0x19fd   :  { %4589 = vmatpush.msrb.mxu3 %v4507_v26  ;;  %v6070_v26 = vld [vmem:[%s8621_s30 + $0x178] sm:$0xff] }
0x19ff   :  { %4590 = vmatpush.msrb.mxu3 %v4506_v62  ;;  %v6068_v62 = vld [vmem:[%s8621_s30 + $0x168] sm:$0xff] }
0x1a00   :  { %v6344_v5 = vpop.eup %6343 }
0x1a01   :  { %v4282_v12 = vmul.f32 %v6344_v5, %v4279_v37  ;;  %vm4288_vm14 = vweird.f32 %v6344_v5  ;;  %v4525_v37 = vld [vmem:[#allocation37 + $0x130] sm:$0xff]  ;;  %4591 = vmatpush.msrb.mxu3 %v4505_v31  ;;  %v6067_v31 = vld [vmem:[%s8621_s30 + $0x160] sm:$0xff] }
0x1a02   :  { %vm4289_vm0 = vmor %vm4287_vm15, %vm4288_vm14  ;;  %4610 = vmatpush.msrb.mxu2 %v4525_v37 }
0x1a03   :  { %v4283_v14 = vmul.f32 %v6344_v5, %v4282_v12  ;;  %v4276_v15 = vpop.xlane.xlu1 %4275  ;;  %v4491_v12 = vld [vmem:[#allocation37 + $0x20] sm:$0xff]  ;;  %4592 = vmatpush.msrb.mxu3 %v4504_v21  ;;  %v6066_v21 = vld [vmem:[%s8621_s30 + $0x158] sm:$0xff] }
0x1a04   :  { %v4278_v18 = vmul.f32 %v4276_v15, %v8259_v10  ;;  %4566 = vmatpush.msrb.mxu1 %v4491_v12 }
0x1a05   :  { %v4284_v61 = vmul.f32 0.5, %v4283_v14  ;;  %4593 = vmatpush.msrb.mxu3 %v4503_v52  ;;  %v6065_v52 = vld [vmem:[%s8621_s30 + $0x150] sm:$0xff] }
0x1a06   :  { %v8273_v29 = vadd.f32 1e-05, %v4278_v18  ;;  %4567 = vmatpush.msrb.mxu1 %v4490_v56  ;;  %v4537_v18 = vld [vmem:[#allocation37 + $0x190] sm:$0xff] }
0x1a07   :  { %v4285_v20 = vsub.f32 1.5, %v4284_v61  ;;  %4637 = vmatpush.msra.mxu0 %v4537_v18  ;;  %v4523_v61 = vld [vmem:[#allocation37 + $0x120] sm:$0xff] }
0x1a08   :  { %6345 = vrsqrt.f32 %v8273_v29  ;;  %vm4297_vm3 = vweird.f32 %v8273_v29  ;;  %4568 = vmatpush.msrb.mxu1 %v4489_v60 }
0x1a09   :  { %v4286_v33 = vmul.f32 %v6344_v5, %v4285_v20  ;;  %4638 = vmatpush.msra.mxu0 %v4536_v27  ;;  %v4521_v20 = vld [vmem:[#allocation37 + $0x110] sm:$0xff] }
0x1a0a   :  { %4569 = vmatpush.msrb.mxu1 %v4488_v23  ;;  %v6069_v27 = vld [vmem:[%s8621_s30 + $0x170] sm:$0xff] }
0x1a0b   :  { %v4290_v6 = vsel %vm4289_vm0, %v6344_v5, %v4286_v33  ;;  %4639 = vmatpush.msra.mxu0 %v4535_v30  ;;  %v6051_v30 = vld [vmem:[%s8619_s9 + $0x160] sm:$0xff] }
0x1a0c   :  { %v4301_v25 = vmul.f32 %v4290_v6, %v8262_v48  ;;  %4570 = vmatpush.msrb.mxu1 %v4487_v4  ;;  %v6052_v4 = vld [vmem:[%s8619_s9 + $0x168] sm:$0xff] }
0x1a0e   :  { %v6346_v50 = vpop.eup %6345  ;;  %v4306_v51 = vmul.f32 %v8276_v53, %v4301_v25 }
0x1a0f   :  { %v4292_v59 = vmul.f32 %v6346_v50, %v8273_v29  ;;  %vm4298_vm2 = vweird.f32 %v6346_v50  ;;  %v4522_v29 = vld [vmem:[#allocation37 + $0x118] sm:$0xff] }
0x1a10   :  { %v8285_v48 = vadd.f32 %v8280_v42, %v4306_v51  ;;  %vm4299_vm4 = vmor %vm4297_vm3, %vm4298_vm2 }
0x1a11   :  { %v4293_v63 = vmul.f32 %v6346_v50, %v4292_v59 }
0x1a12   :  { %4403 = vmatmul.f32.vlgmr.msra.gmra.mxu1 %v8285_v48  ;;  %4426 = vmatmul.f32.vlgmr.msra.gmra.mxu3 %v8285_v48 }
0x1a13   :  { %v4294_v36 = vmul.f32 0.5, %v4293_v63  ;;  %4449 = vmatmul.f32.vlgmr.msra.gmra.mxu2 %v8285_v48  ;;  %4472 = vmatmul.f32.vlgmr.msrb.gmra.mxu0 %v8285_v48 }
0x1a15   :  { %v4295_v39 = vsub.f32 1.5, %v4294_v36 }
0x1a17   :  { %v4296_v5 = vmul.f32 %v6346_v50, %v4295_v39 }
0x1a19   :  { %v4300_v13 = vsel %vm4299_vm4, %v6346_v50, %v4296_v5 }
0x1a1a   :  { %v4302_v14 = vmul.f32 %v4300_v13, %v8267_v28  ;;  %v4524_v28 = vld [vmem:[#allocation37 + $0x128] sm:$0xff] }
0x1a1b   :  { %4611 = vmatpush.msrb.mxu2 %v4524_v28 }
0x1a1c   :  { %v4307_v15 = vmul.f32 %v8276_v53, %v4302_v14  ;;  %v4377_v53 = vld [vmem:[%s7313_s14] sm:$0xf] }
0x1a1d   :  { %4612 = vmatpush.msrb.mxu2 %v4523_v61  ;;  %v4379_v33 = vperm.slane %v4377_v53, 0  ;;  %v4382_v35 = vperm.slane %v4377_v53, 3  ;;  %v4380_v24 = vperm.slane %v4377_v53, 1  ;;  %v6053_v61 = vld [vmem:[%s8619_s9 + $0x170] sm:$0xff] }
0x1a1e   :  { %v8296_v16 = vadd.f32 %v8280_v42, %v4307_v15  ;;  %v4381_v42 = vperm.slane %v4377_v53, 2 }
0x1a1f   :  { %4613 = vmatpush.msrb.mxu2 %v4522_v29  ;;  %v6038_v29 = vld [vmem:[%s8620_s11 + $0x178] sm:$0xff] }
0x1a20   :  { %4406 = vmatmul.f32.gmra.mxu1 %v8296_v16  ;;  %4429 = vmatmul.f32.gmra.mxu3 %v8296_v16 }
0x1a21   :  { %4452 = vmatmul.f32.gmra.mxu2 %v8296_v16  ;;  %4475 = vmatmul.f32.gmra.mxu0 %v8296_v16 }
0x1a22   :  { %4614 = vmatpush.msrb.mxu2 %v4521_v20  ;;  %4723 = vmatpush.msra.mxu1 %v6038_v29  ;;  %v6050_v20 = vld [vmem:[%s8619_s9 + $0x158] sm:$0xff]  ;;  %v6094_v29 = vld [vmem:[%s8620_s11 + $0x1c8] sm:$0xff] }
0x1a24   :  { %4615 = vmatpush.msrb.mxu2 %v4520_v34  ;;  %v6049_v34 = vld [vmem:[%s8619_s9 + $0x150] sm:$0xff] }
0x1a26   :  { %4616 = vmatpush.msrb.mxu2 %v4519_v49 }
0x1a28   :  { %4813 = vmatpush.msra.mxu2 %v6070_v26  ;;  %v6096_v26 = vld [vmem:[%s8620_s11 + $0x1d8] sm:$0xff] }
0x1a2a   :  { %4814 = vmatpush.msra.mxu2 %v6069_v27  ;;  %v6095_v27 = vld [vmem:[%s8620_s11 + $0x1d0] sm:$0xff] }
0x1a2c   :  { %4815 = vmatpush.msra.mxu2 %v6068_v62 }
0x1a2e   :  { %4816 = vmatpush.msra.mxu2 %v6067_v31 }
0x1a30   :  { %4817 = vmatpush.msra.mxu2 %v6066_v21 }
0x1a32   :  { %4818 = vmatpush.msra.mxu2 %v6065_v52  ;;  %v6108_v52 = vld [vmem:[%s8619_s9 + $0x1b8] sm:$0xff] }
0x1a8f   :  { %v4404_v32 = vpop.f32.mrf.mxu1 }
0x1a90   :  { %v4405_v40 = vadd.f32 %v4404_v32, %v4379_v33  ;;  %v4473_v41 = vpop.f32.mrf.mxu0 }
0x1a91   :  { %v4474_v6 = vadd.f32 %v4473_v41, %v4382_v35 }
0x1a92   :  { %v4479_v7 = vmax.f32 %v4405_v40, 0.0 }
0x1a93   :  { %v4482_v25 = vmax.f32 %v4474_v6, 0.0 }
0x1a94   :  { %4571 = vmatmul.f32.vlgmr.msrb.gmra.mxu1 %v4479_v7  ;;  %v6048_v7 = vld [vmem:[%s8619_s9 + $0x148] sm:$0xff] }
0x1a95   :  { %4640 = vmatmul.f32.vlgmr.msra.gmra.mxu0 %v4482_v25  ;;  %v4427_v43 = vpop.f32.mrf.mxu3  ;;  %v6036_v25 = vld [vmem:[%s8620_s11 + $0x168] sm:$0xff] }
0x1a96   :  { %v4428_v44 = vadd.f32 %v4427_v43, %v4380_v24  ;;  %v4450_v45 = vpop.f32.mrf.mxu2  ;;  %v6063_v43 = vld [vmem:[%s8621_s30 + $0x140] sm:$0xff] }
0x1a97   :  { %v4451_v46 = vadd.f32 %v4450_v45, %v4381_v42  ;;  %v6046_v45 = vld [vmem:[%s8619_s9 + $0x138] sm:$0xff] }
0x1a98   :  { %v4480_v50 = vmax.f32 %v4428_v44, 0.0  ;;  %v6035_v44 = vld [vmem:[%s8620_s11 + $0x160] sm:$0xff] }
0x1a99   :  { %v4481_v51 = vmax.f32 %v4451_v46, 0.0  ;;  %v6062_v46 = vld [vmem:[%s8621_s30 + $0x138] sm:$0xff] }
0x1a9a   :  { %4594 = vmatmul.f32.vlgmr.msrb.gmra.mxu3 %v4480_v50  ;;  %v6034_v50 = vld [vmem:[%s8620_s11 + $0x158] sm:$0xff] }
0x1a9b   :  { %4617 = vmatmul.f32.vlgmr.msrb.gmra.mxu2 %v4481_v51  ;;  %v6045_v51 = vld [vmem:[%s8619_s9 + $0x130] sm:$0xff] }
0x1a9d   :  { %v4407_v55 = vpop.f32.mrf.mxu1 }
0x1a9e   :  { %v4408_v58 = vadd.f32 %v4407_v55, %v4379_v33  ;;  %v4476_v59 = vpop.f32.mrf.mxu0  ;;  %v6061_v55 = vld [vmem:[%s8621_s30 + $0x130] sm:$0xff] }
0x1a9f   :  { %v4477_v63 = vadd.f32 %v4476_v59, %v4382_v35  ;;  %v6044_v59 = vld [vmem:[%s8619_s9 + $0x128] sm:$0xff] }
0x1aa0   :  { %v4483_v0 = vmax.f32 %v4408_v58, 0.0  ;;  %v6033_v58 = vld [vmem:[%s8620_s11 + $0x150] sm:$0xff] }
0x1aa1   :  { %v4486_v19 = vmax.f32 %v4477_v63, 0.0  ;;  %v6060_v63 = vld [vmem:[%s8621_s30 + $0x128] sm:$0xff] }
0x1aa2   :  { %4574 = vmatmul.f32.gmra.mxu1 %v4483_v0  ;;  %v6032_v0 = vld [vmem:[%s8620_s11 + $0x148] sm:$0xff] }
0x1aa3   :  { %4643 = vmatmul.f32.gmra.mxu0 %v4486_v19  ;;  %v4430_v54 = vpop.f32.mrf.mxu3  ;;  %v6043_v19 = vld [vmem:[%s8619_s9 + $0x120] sm:$0xff] }
0x1aa4   :  { %v4431_v22 = vadd.f32 %v4430_v54, %v4380_v24  ;;  %v4453_v36 = vpop.f32.mrf.mxu2  ;;  %v6064_v24 = vld [vmem:[%s8621_s30 + $0x148] sm:$0xff]  ;;  %v6059_v54 = vld [vmem:[%s8621_s30 + $0x120] sm:$0xff] }
0x1aa5   :  { %v4454_v1 = vadd.f32 %v4453_v36, %v4381_v42  ;;  %4819 = vmatpush.msra.mxu2 %v6064_v24  ;;  %v6047_v42 = vld [vmem:[%s8619_s9 + $0x140] sm:$0xff]  ;;  %v6042_v36 = vld [vmem:[%s8619_s9 + $0x118] sm:$0xff] }
0x1aa6   :  { %v4484_v2 = vmax.f32 %v4431_v22, 0.0  ;;  %v6031_v22 = vld [vmem:[%s8620_s11 + $0x140] sm:$0xff] }
0x1aa7   :  { %v4485_v3 = vmax.f32 %v4454_v1, 0.0  ;;  %4820 = vmatpush.msra.mxu2 %v6063_v43  ;;  %v6058_v1 = vld [vmem:[%s8621_s30 + $0x118] sm:$0xff]  ;;  %v6087_v43 = vld [vmem:[%s8620_s11 + $0x190] sm:$0xff] }
0x1aa8   :  { %4597 = vmatmul.f32.gmra.mxu3 %v4484_v2  ;;  %v6030_v2 = vld [vmem:[%s8620_s11 + $0x138] sm:$0xff] }
0x1aa9   :  { %4620 = vmatmul.f32.gmra.mxu2 %v4485_v3  ;;  %v6041_v3 = vld [vmem:[%s8619_s9 + $0x110] sm:$0xff] }
0x1aaa   :  { %4821 = vmatpush.msra.mxu2 %v6062_v46 }
0x1aac   :  { %4822 = vmatpush.msra.mxu2 %v6061_v55  ;;  %v6102_v55 = vld [vmem:[%s8619_s9 + $0x188] sm:$0xff] }
0x1aae   :  { %4823 = vmatpush.msra.mxu2 %v6060_v63 }
0x1ab0   :  { %4824 = vmatpush.msra.mxu2 %v6059_v54 }
0x1ab2   :  { %4825 = vmatpush.msra.mxu2 %v6058_v1  ;;  %v6262_v1 = vld [vmem:[#allocation34] ss:$0 sm:$0xff] }
0x1b11   :  { %v4572_v39 = vpop.f32.mrf.mxu1 }
0x1b12   :  { %v4573_v8 = vadd.f32 %v6260_v9, %v4572_v39  ;;  %v4641_v12 = vpop.f32.mrf.mxu0  ;;  %v6029_v39 = vld [vmem:[%s8620_s11 + $0x130] sm:$0xff] }
0x1b1d   :  { %v4595_v47 = vpop.f32.mrf.mxu3 }
0x1b1e   :  { %v4596_v11 = vadd.f32 %v4595_v47, %v4573_v8  ;;  %v4618_v37 = vpop.f32.mrf.mxu2  ;;  %v6040_v8 = vld [vmem:[%s8619_s9 + $0x108] sm:$0xff] }
0x1b1f   :  { %v4575_v56 = vpop.f32.mrf.mxu1  ;;  %v6056_v47 = vld [vmem:[%s8621_s30 + $0x108] sm:$0xff] }
0x1b20   :  { %v4619_v5 = vadd.f32 %v4618_v37, %v4596_v11  ;;  %v4576_v57 = vadd.f32 %v6260_v9, %v4575_v56  ;;  %v4644_v28 = vpop.f32.mrf.mxu0  ;;  %v6057_v9 = vld [vmem:[%s8621_s30 + $0x110] sm:$0xff]  ;;  %v6028_v11 = vld [vmem:[%s8620_s11 + $0x128] sm:$0xff]  ;;  %v6039_v37 = vld [vmem:[%s8619_s9 + $0x100] sm:$0xff] }
0x1b21   :  { %4826 = vmatpush.msra.mxu2 %v6057_v9  ;;  %v6026_v56 = vld [vmem:[%s8620_s11 + $0x118] sm:$0xff] }
0x1b22   :  { %v4642_v38 = vadd.f32 %v4641_v12, %v4619_v5  ;;  %v6055_v5 = vld [vmem:[%s8621_s30 + $0x100] sm:$0xff] }
0x1b23   :  { %4827 = vmatpush.msra.mxu2 %v6056_v47  ;;  %v6027_v12 = vld [vmem:[%s8620_s11 + $0x120] sm:$0xff] }
0x1b24   :  { %v4647_v13 = vadd.f32 %v4642_v38, %v8285_v48  ;;  %v6054_v48 = vld [vmem:[%s8619_s9 + $0x178] sm:$0xff] }
0x1b25   :  { %4768 = vmatpush.msra.mxu3 %v6054_v48  ;;  %4828 = vmatpush.msra.mxu2 %v6055_v5  ;;  %v6100_v38 = vld [vmem:[%s8620_s11 + $0x1f8] sm:$0xff]  ;;  %v6023_v48 = vld [vmem:[%s8620_s11 + $0x100] sm:$0xff] }
0x1b26   :  { %4651 = vadd.xlane.f32.xlu2 %v4647_v13 }
0x1b27   :  { %4769 = vmatpush.msra.mxu3 %v6053_v61  ;;  %v6112_v61 = vld [vmem:[%s8619_s9 + $0x1d8] sm:$0xff] }
0x1b29   :  { %4770 = vmatpush.msra.mxu3 %v6052_v4  ;;  %v6111_v4 = vld [vmem:[%s8619_s9 + $0x1d0] sm:$0xff] }
0x1b2b   :  { %v4598_v14 = vpop.f32.mrf.mxu3  ;;  %4771 = vmatpush.msra.mxu3 %v6051_v30  ;;  %v6110_v30 = vld [vmem:[%s8619_s9 + $0x1c8] sm:$0xff] }
0x1b2c   :  { %v4599_v15 = vadd.f32 %v4598_v14, %v4576_v57  ;;  %v4621_v60 = vpop.f32.mrf.mxu2  ;;  %v6099_v57 = vld [vmem:[%s8620_s11 + $0x1f0] sm:$0xff] }
0x1b2d   :  { %4772 = vmatpush.msra.mxu3 %v6050_v20  ;;  %v6115_v14 = vld [vmem:[%s8619_s9 + $0x1f0] sm:$0xff]  ;;  %v6109_v20 = vld [vmem:[%s8619_s9 + $0x1c0] sm:$0xff] }
0x1b2e   :  { %v4622_v17 = vadd.f32 %v4621_v60, %v4599_v15  ;;  %v6025_v15 = vld [vmem:[%s8620_s11 + $0x110] sm:$0xff]  ;;  %v6098_v60 = vld [vmem:[%s8620_s11 + $0x1e8] sm:$0xff] }
0x1b2f   :  { %4773 = vmatpush.msra.mxu3 %v6049_v34  ;;  %v6092_v34 = vld [vmem:[%s8620_s11 + $0x1b8] sm:$0xff] }
0x1b30   :  { %v4645_v18 = vadd.f32 %v4644_v28, %v4622_v17  ;;  %v6114_v17 = vld [vmem:[%s8619_s9 + $0x1e8] sm:$0xff] }
0x1b31   :  { %4774 = vmatpush.msra.mxu3 %v6048_v7  ;;  %v6024_v28 = vld [vmem:[%s8620_s11 + $0x108] sm:$0xff] }
0x1b32   :  { %v4648_v23 = vadd.f32 %v4645_v18, %v8296_v16  ;;  %v6037_v16 = vld [vmem:[%s8620_s11 + $0x170] sm:$0xff]  ;;  %v6097_v18 = vld [vmem:[%s8620_s11 + $0x1e0] sm:$0xff] }
0x1b33   :  { %4724 = vmatpush.msra.mxu1 %v6037_v16  ;;  %4775 = vmatpush.msra.mxu3 %v6047_v42  ;;  %v6093_v16 = vld [vmem:[%s8620_s11 + $0x1c0] sm:$0xff]  ;;  %v6104_v42 = vld [vmem:[%s8619_s9 + $0x198] sm:$0xff] }
0x1b34   :  { %4653 = vadd.xlane.f32.xlu0 %v4648_v23 }
0x1b35   :  { %4725 = vmatpush.msra.mxu1 %v6036_v25  ;;  %4776 = vmatpush.msra.mxu3 %v6046_v45  ;;  %v6088_v25 = vld [vmem:[%s8620_s11 + $0x198] sm:$0xff] }
0x1b37   :  { %4726 = vmatpush.msra.mxu1 %v6035_v44  ;;  %4777 = vmatpush.msra.mxu3 %v6045_v51  ;;  %v6103_v44 = vld [vmem:[%s8619_s9 + $0x190] sm:$0xff] }
0x1b39   :  { %4727 = vmatpush.msra.mxu1 %v6034_v50  ;;  %4778 = vmatpush.msra.mxu3 %v6044_v59  ;;  %v6086_v50 = vld [vmem:[%s8620_s11 + $0x188] sm:$0xff]  ;;  %v6085_v59 = vld [vmem:[%s8620_s11 + $0x180] sm:$0xff] }
0x1b3b   :  { %4728 = vmatpush.msra.mxu1 %v6033_v58  ;;  %4779 = vmatpush.msra.mxu3 %v6043_v19 }
0x1b3d   :  { %4729 = vmatpush.msra.mxu1 %v6032_v0  ;;  %4780 = vmatpush.msra.mxu3 %v6042_v36  ;;  %v6101_v0 = vld [vmem:[%s8619_s9 + $0x180] sm:$0xff] }
0x1b3f   :  { %4730 = vmatpush.msra.mxu1 %v6031_v22  ;;  %4781 = vmatpush.msra.mxu3 %v6041_v3  ;;  %v6261_v22 = vld [vmem:[#allocation32] ss:$0 sm:$0xff] }
0x1b41   :  { %4731 = vmatpush.msra.mxu1 %v6030_v2  ;;  %4782 = vmatpush.msra.mxu3 %v6040_v8 }
0x1b43   :  { %4732 = vmatpush.msra.mxu1 %v6029_v39  ;;  %4783 = vmatpush.msra.mxu3 %v6039_v37 }
0x1b45   :  { %4733 = vmatpush.msra.mxu1 %v6028_v11  ;;  %4989 = vmatpush.msrb.mxu3 %v6100_v38 }
0x1b47   :  { %4734 = vmatpush.msra.mxu1 %v6027_v12  ;;  %4990 = vmatpush.msrb.mxu3 %v6099_v57  ;;  %v6263_v57 = vld [vmem:[#allocation23 + $0x2] ss:$0 sm:$0xff] }
0x1b49   :  { %4735 = vmatpush.msra.mxu1 %v6026_v56  ;;  %4991 = vmatpush.msrb.mxu3 %v6098_v60  ;;  %v6264_v56 = vld [vmem:[#allocation25 + $0x2] ss:$0 sm:$0xff] }
0x1b4b   :  { %4736 = vmatpush.msra.mxu1 %v6025_v15  ;;  %4992 = vmatpush.msrb.mxu3 %v6097_v18 }
0x1b4d   :  { %4737 = vmatpush.msra.mxu1 %v6024_v28  ;;  %4993 = vmatpush.msrb.mxu3 %v6096_v26  ;;  %v6265_v28 = vld [vmem:[#allocation26 + $0x2] ss:$0 sm:$0xff] }
0x1b4f   :  { %4738 = vmatpush.msra.mxu1 %v6023_v48  ;;  %4994 = vmatpush.msrb.mxu3 %v6095_v27 }
0x1b51   :  { %4995 = vmatpush.msrb.mxu3 %v6094_v29 }
0x1b53   :  { %4996 = vmatpush.msrb.mxu3 %v6093_v16 }
0x1b55   :  { %4997 = vmatpush.msrb.mxu3 %v6092_v34 }
0x1b99   :  { %v4652_v49 = vpop.xlane.xlu2 %4651 }
0x1b9a   :  { %v4655_v53 = vmul.f32 %v4652_v49, %v8259_v10  ;;  %v6091_v49 = vld [vmem:[%s8620_s11 + $0x1b0] sm:$0xff] }
0x1b9b   :  { %4998 = vmatpush.msrb.mxu3 %v6091_v49  ;;  %v6132_v49 = vld [vmem:[%s8621_s30 + $0x1f8] sm:$0xff] }
0x1b9c   :  { %v8320_v33 = vsub.f32 %v4647_v13, %v4655_v53  ;;  %v6116_v13 = vld [vmem:[%s8619_s9 + $0x1f8] sm:$0xff]  ;;  %v6107_v53 = vld [vmem:[%s8619_s9 + $0x1b0] sm:$0xff] }
0x1b9d   :  { %5034 = vmatpush.msrb.mxu2 %v6116_v13 }
0x1b9e   :  { %v4659_v35 = vmul.f32 %v8320_v33, %v8320_v33 }
0x1b9f   :  { %5035 = vmatpush.msrb.mxu2 %v6115_v14 }
0x1ba0   :  { %4661 = vadd.xlane.f32.xlu1 %v4659_v35  ;;  %v6090_v35 = vld [vmem:[%s8620_s11 + $0x1a8] sm:$0xff] }
0x1ba1   :  { %5036 = vmatpush.msrb.mxu2 %v6114_v17  ;;  %4999 = vmatpush.msrb.mxu3 %v6090_v35  ;;  %v6130_v35 = vld [vmem:[%s8621_s30 + $0x1e8] sm:$0xff] }
0x1ba7   :  { %v4654_v32 = vpop.xlane.xlu0 %4653 }
0x1ba8   :  { %v4656_v40 = vmul.f32 %v4654_v32, %v8259_v10  ;;  %v6106_v32 = vld [vmem:[%s8619_s9 + $0x1a8] sm:$0xff] }
0x1baa   :  { %v8325_v41 = vsub.f32 %v4648_v23, %v4656_v40  ;;  %v6113_v23 = vld [vmem:[%s8619_s9 + $0x1e0] sm:$0xff] }
0x1bab   :  { %5037 = vmatpush.msrb.mxu2 %v6113_v23  ;;  %v6089_v40 = vld [vmem:[%s8620_s11 + $0x1a0] sm:$0xff] }
0x1bac   :  { %v4660_v6 = vmul.f32 %v8325_v41, %v8325_v41  ;;  %5000 = vmatpush.msrb.mxu3 %v6089_v40 }
0x1bad   :  { %5038 = vmatpush.msrb.mxu2 %v6112_v61 }
0x1bae   :  { %4663 = vadd.xlane.f32.xlu2 %v4660_v6  ;;  %v6105_v6 = vld [vmem:[%s8619_s9 + $0x1a0] sm:$0xff]  ;;  %5001 = vmatpush.msrb.mxu3 %v6088_v25  ;;  %v6127_v25 = vld [vmem:[%s8621_s30 + $0x1d0] sm:$0xff] }
0x1baf   :  { %5039 = vmatpush.msrb.mxu2 %v6111_v4 }
0x1bb0   :  { %5002 = vmatpush.msrb.mxu3 %v6087_v43 }
0x1bb1   :  { %5040 = vmatpush.msrb.mxu2 %v6110_v30 }
0x1bb2   :  { %5003 = vmatpush.msrb.mxu3 %v6086_v50 }
0x1bb3   :  { %5041 = vmatpush.msrb.mxu2 %v6109_v20 }
0x1bb4   :  { %5004 = vmatpush.msrb.mxu3 %v6085_v59  ;;  %v6124_v59 = vld [vmem:[%s8621_s30 + $0x1b8] sm:$0xff] }
0x1bb5   :  { %5042 = vmatpush.msrb.mxu2 %v6108_v52 }
0x1bb7   :  { %5043 = vmatpush.msrb.mxu2 %v6107_v53  ;;  %v6131_v53 = vld [vmem:[%s8621_s30 + $0x1f0] sm:$0xff] }
0x1bb9   :  { %5044 = vmatpush.msrb.mxu2 %v6106_v32  ;;  %v6129_v32 = vld [vmem:[%s8621_s30 + $0x1e0] sm:$0xff] }
0x1bbb   :  { %5045 = vmatpush.msrb.mxu2 %v6105_v6 }
0x1bbd   :  { %5046 = vmatpush.msrb.mxu2 %v6104_v42  ;;  %v6126_v42 = vld [vmem:[%s8621_s30 + $0x1c8] sm:$0xff] }
0x1bbf   :  { %5047 = vmatpush.msrb.mxu2 %v6103_v44 }
0x1bc1   :  { %5048 = vmatpush.msrb.mxu2 %v6102_v55 }
0x1bc3   :  { %5049 = vmatpush.msrb.mxu2 %v6101_v0  ;;  %v6122_v0 = vld [vmem:[%s8621_s30 + $0x1a8] sm:$0xff] }
0x1c13   :  { %v4662_v62 = vpop.xlane.xlu1 %4661 }
0x1c14   :  { %v4665_v31 = vmul.f32 %v4662_v62, %v8259_v10  ;;  %v8417_v62 = vld [vmem:[#allocation25 + $0x3] ss:$0 sm:$0xff] }
0x1c16   :  { %v4667_v21 = vadd.f32 1e-05, %v4665_v31 }
0x1c18   :  { %6347 = vrsqrt.f32 %v4667_v21  ;;  %vm4675_vm6 = vweird.f32 %v4667_v21 }
0x1c1e   :  { %v6348_v7 = vpop.eup %6347 }
0x1c1f   :  { %v4670_v24 = vmul.f32 %v6348_v7, %v4667_v21  ;;  %vm4676_vm5 = vweird.f32 %v6348_v7 }
0x1c20   :  { %vm4677_vm7 = vmor %vm4675_vm6, %vm4676_vm5 }
0x1c21   :  { %v4671_v45 = vmul.f32 %v6348_v7, %v4670_v24  ;;  %v4664_v46 = vpop.xlane.xlu2 %4663 }
0x1c22   :  { %v4666_v51 = vmul.f32 %v4664_v46, %v8259_v10 }
0x1c23   :  { %v4672_v58 = vmul.f32 0.5, %v4671_v45 }
0x1c24   :  { %v4668_v63 = vadd.f32 1e-05, %v4666_v51 }
0x1c25   :  { %v4673_v19 = vsub.f32 1.5, %v4672_v58  ;;  %v6125_v58 = vld [vmem:[%s8621_s30 + $0x1c0] sm:$0xff] }
0x1c26   :  { %6349 = vrsqrt.f32 %v4668_v63  ;;  %vm4685_vm9 = vweird.f32 %v4668_v63 }
0x1c27   :  { %v4674_v54 = vmul.f32 %v6348_v7, %v4673_v19  ;;  %v6121_v19 = vld [vmem:[%s8621_s30 + $0x1a0] sm:$0xff] }
0x1c29   :  { %v4678_v36 = vsel %vm4677_vm7, %v6348_v7, %v4674_v54  ;;  %v6128_v7 = vld [vmem:[%s8621_s30 + $0x1d8] sm:$0xff] }
0x1c2a   :  { %v4689_v2 = vmul.f32 %v4678_v36, %v8320_v33  ;;  %v6120_v54 = vld [vmem:[%s8621_s30 + $0x198] sm:$0xff]  ;;  %v6118_v36 = vld [vmem:[%s8621_s30 + $0x188] sm:$0xff] }
0x1c2c   :  { %v6350_v3 = vpop.eup %6349  ;;  %v4694_v9 = vmul.f32 %v6261_v22, %v4689_v2 }
0x1c2d   :  { %v4680_v39 = vmul.f32 %v6350_v3, %v4668_v63  ;;  %vm4686_vm8 = vweird.f32 %v6350_v3  ;;  %v6123_v63 = vld [vmem:[%s8621_s30 + $0x1b0] sm:$0xff] }
0x1c2e   :  { %v8398_v8 = vadd.f32 %v6262_v1, %v4694_v9  ;;  %vm4687_vm10 = vmor %vm4685_vm9, %vm4686_vm8 }
0x1c2f   :  { %v4681_v47 = vmul.f32 %v6350_v3, %v4680_v39  ;;  %v6084_v39 = vld [vmem:[%s8622_s16 + $0xb8] sm:$0xff] }
0x1c30   :  { %4739 = vmatmul.f32.vlgmr.msra.gmra.mxu1 %v8398_v8  ;;  %4784 = vmatmul.f32.vlgmr.msra.gmra.mxu3 %v8398_v8 }
0x1c31   :  { %v4682_v11 = vmul.f32 0.5, %v4681_v47  ;;  %4829 = vmatmul.f32.vlgmr.msra.gmra.mxu2 %v8398_v8  ;;  %v6083_v47 = vld [vmem:[%s8622_s16 + $0xb0] sm:$0xff] }
0x1c32   :  { %5276 = vmatpush.msra.mxu2 %v6084_v39 }
0x1c33   :  { %v4683_v37 = vsub.f32 1.5, %v4682_v11  ;;  %v6082_v11 = vld [vmem:[%s8622_s16 + $0xa8] sm:$0xff] }
0x1c34   :  { %5277 = vmatpush.msra.mxu2 %v6083_v47 }
0x1c35   :  { %v4684_v5 = vmul.f32 %v6350_v3, %v4683_v37  ;;  %v6081_v37 = vld [vmem:[%s8622_s16 + $0xa0] sm:$0xff] }
0x1c36   :  { %5278 = vmatpush.msra.mxu2 %v6082_v11 }
0x1c37   :  { %v4688_v12 = vsel %vm4687_vm10, %v6350_v3, %v4684_v5 }
0x1c38   :  { %v4690_v33 = vmul.f32 %v4688_v12, %v8325_v41  ;;  %v6080_v12 = vld [vmem:[%s8622_s16 + $0x98] sm:$0xff]  ;;  %5279 = vmatpush.msra.mxu2 %v6081_v37 }
0x1c3a   :  { %v4695_v38 = vmul.f32 %v6261_v22, %v4690_v33  ;;  %v6119_v22 = vld [vmem:[%s8621_s30 + $0x190] sm:$0xff]  ;;  %5280 = vmatpush.msra.mxu2 %v6080_v12 }
0x1c3b   :  { %v6079_v33 = vld [vmem:[%s8622_s16 + $0x90] sm:$0xff] }
0x1c3c   :  { %v8404_v13 = vadd.f32 %v6262_v1, %v4695_v38  ;;  %v6117_v1 = vld [vmem:[%s8621_s30 + $0x180] sm:$0xff]  ;;  %v6078_v38 = vld [vmem:[%s8622_s16 + $0x88] sm:$0xff]  ;;  %5281 = vmatpush.msra.mxu2 %v6079_v33 }
0x1c3e   :  { %4742 = vmatmul.f32.gmra.mxu1 %v8404_v13  ;;  %4787 = vmatmul.f32.gmra.mxu3 %v8404_v13 }
0x1c3f   :  { %4832 = vmatmul.f32.gmra.mxu2 %v8404_v13 }
0x1c40   :  { %5282 = vmatpush.msra.mxu2 %v6078_v38  ;;  %v5415_v38 = vld [vmem:[#allocation35 + $0x3e0] sm:$0xff] }
0x1c46   :  { %5005 = vmatmul.f32.vlgmr.msrb.gmra.mxu3 %v8398_v8 }
0x1c47   :  { %5050 = vmatmul.f32.vlgmr.msrb.gmra.mxu2 %v8398_v8 }
0x1c4e   :  { %5008 = vmatmul.f32.gmra.mxu3 %v8404_v13 }
0x1c4f   :  { %5053 = vmatmul.f32.gmra.mxu2 %v8404_v13 }
0x1cad   :  { %v4740_v14 = vpop.f32.mrf.mxu1 }
0x1cae   :  { %v4741_v60 = vadd.f32 %v6263_v57, %v4740_v14 }
0x1cb3   :  { %v4785_v41 = vpop.f32.mrf.mxu3 }
0x1cb4   :  { %v4786_v15 = vadd.f32 %v6264_v56, %v4785_v41  ;;  %v4830_v17 = vpop.f32.mrf.mxu2 }
0x1cb5   :  { %v4831_v61 = vadd.f32 %v6265_v28, %v4830_v17 }
0x1cb6   :  { %6071 = vmatpush.xpose.msk.msrb.mxu0 %vm3791_vm12, %v4786_v15 }
0x1cb9   :  { %6072 = vmatmul.msk.f32.vlgmr.msrb.gmra.mxu0 %vm3791_vm12, %v4741_v60  ;;  %v6266_v60 = vld [vmem:[#allocation23 + $0x3] ss:$0 sm:$0xff] }
0x1cbb   :  { %v4743_v23 = vpop.f32.mrf.mxu1 }
0x1cbc   :  { %v4744_v4 = vadd.f32 %v6263_v57, %v4743_v23  ;;  %v6077_v23 = vld [vmem:[%s8622_s16 + $0x80] sm:$0xff] }
0x1cbd   :  { %5283 = vmatpush.msra.mxu2 %v6077_v23 }
0x1cc1   :  { %v4788_v18 = vpop.f32.mrf.mxu3 }
0x1cc2   :  { %v4789_v48 = vadd.f32 %v6264_v56, %v4788_v18  ;;  %v4833_v26 = vpop.f32.mrf.mxu2 }
0x1cc3   :  { %v4834_v27 = vadd.f32 %v6265_v28, %v4833_v26  ;;  %v6268_v26 = vld [vmem:[#allocation26 + $0x3] ss:$0 sm:$0xff] }
0x1cc4   :  { %6073 = vmatpush.xpose.msk.msra.mxu0 %vm3791_vm12, %v4789_v48 }
0x1cc5   :  { %4953 = vmatpush.msrb.mxu1 %v4834_v27 }
0x1cc7   :  { %6074 = vmatmul.msk.f32.vlgmr.msra.gmra.mxu0 %vm3791_vm12, %v4744_v4 }
0x1cc8   :  { %4930 = vmatpush.msrb.mxu0 %v4831_v61 }
0x1cc9   :  { %v5006_v15 = vpop.f32.mrf.mxu3 }
0x1cca   :  { %v5051_v29 = vpop.f32.mrf.mxu2  ;;  %5079 = vmatpush.msra.mxu0 %v6132_v49  ;;  %v5007_v17 = vadd.f32 %v6266_v60, %v5006_v15  ;;  %v5412_v15 = vld [vmem:[#allocation35 + $0x3c8] sm:$0xff] }
0x1ccb   :  { %v5052_v30 = vadd.f32 %v8417_v62, %v5051_v29 }
0x1ccc   :  { %5080 = vmatpush.msra.mxu0 %v6131_v53 }
0x1ccd   :  { %6133 = vmatpush.xpose.msk.msra.mxu1 %vm3791_vm12, %v5052_v30 }
0x1cce   :  { %5081 = vmatpush.msra.mxu0 %v6130_v35 }
0x1cd0   :  { %5082 = vmatpush.msra.mxu0 %v6129_v32 }
0x1cd1   :  { %v5009_v28 = vpop.f32.mrf.mxu3 }
0x1cd2   :  { %5083 = vmatpush.msra.mxu0 %v6128_v7  ;;  %v5054_v56 = vpop.f32.mrf.mxu2  ;;  %v5010_v18 = vadd.f32 %v6266_v60, %v5009_v28  ;;  %v5413_v60 = vld [vmem:[#allocation35 + $0x3d0] sm:$0xff] }
0x1cd3   :  { %v5055_v14 = vadd.f32 %v8417_v62, %v5054_v56  ;;  %v5416_v56 = vld [vmem:[#allocation35 + $0x3e8] sm:$0xff] }
0x1cd4   :  { %5084 = vmatpush.msra.mxu0 %v6127_v25 }
0x1cd6   :  { %5085 = vmatpush.msra.mxu0 %v6126_v42  ;;  %v6146_v42 = vld [vmem:[%s8622_s16 + $0xf8] sm:$0xff] }
0x1cd7   :  { %5247 = vmatpush.msra.mxu3 %v6146_v42  ;;  %v5387_v42 = vld [vmem:[#allocation35 + $0x300] sm:$0xff] }
0x1cd8   :  { %5086 = vmatpush.msra.mxu0 %v6125_v58 }
0x1cda   :  { %5087 = vmatpush.msra.mxu0 %v6124_v59 }
0x1cdc   :  { %5088 = vmatpush.msra.mxu0 %v6123_v63 }
0x1cde   :  { %5089 = vmatpush.msra.mxu0 %v6122_v0 }
0x1ce0   :  { %5090 = vmatpush.msra.mxu0 %v6121_v19 }
0x1ce2   :  { %5091 = vmatpush.msra.mxu0 %v6120_v54  ;;  %v6139_v54 = vld [vmem:[%s8622_s16 + $0xc0] sm:$0xff] }
0x1ce4   :  { %5092 = vmatpush.msra.mxu0 %v6119_v22 }
0x1ce6   :  { %5093 = vmatpush.msra.mxu0 %v6118_v36 }
0x1ce8   :  { %5094 = vmatpush.msra.mxu0 %v6117_v1  ;;  %v6269_v1 = vld [vmem:[#allocation28 + $0x1] ss:$0 sm:$0xff] }
0x1d36   :  { %v4859_v31 = vpop.f32.mrf.mxu0 }
0x1d37   :  { %v4888_v16 = vmul.f32 0.125, %v4859_v31 }
0x1d39   :  { %v4890_v20 = vsel %vm915_vm1, %v4888_v16, -inf }
0x1d3a   :  { %4891 = vmax.xlane.f32.xlu2 %v4890_v20 }
0x1d44   :  { %v4885_v21 = vpop.f32.mrf.mxu0 }
0x1d45   :  { %v4889_v34 = vmul.f32 0.125, %v4885_v21 }
0x1d47   :  { %v4893_v52 = vsel %vm915_vm1, %v4889_v34, -inf }
0x1d48   :  { %4894 = vmax.xlane.f32.xlu0 %v4893_v52 }
0x1dad   :  { %v4892_v40 = vpop.xlane.xlu2 %4891 }
0x1dae   :  { %v4896_v6 = vsub.f32 %v4888_v16, %v4892_v40 }
0x1db0   :  { %v4898_v24 = vmul.f32 1.442695, %v4896_v6 }
0x1db2   :  { %6351 = vpow2.f32 %v4898_v24 }
0x1db8   :  { %v6352_v43 = vpop.eup %6351 }
0x1db9   :  { %v4902_v44 = vsel %vm915_vm1, %v6352_v43, 0.0 }
0x1dba   :  { %4903 = vadd.xlane.f32.xlu0 %v4902_v44  ;;  %v6144_v44 = vld [vmem:[%s8622_s16 + $0xe8] sm:$0xff] }
0x1dbb   :  { %v4895_v45 = vpop.xlane.xlu0 %4894 }
0x1dbc   :  { %v4897_v46 = vsub.f32 %v4889_v34, %v4895_v45  ;;  %v6143_v45 = vld [vmem:[%s8622_s16 + $0xe0] sm:$0xff] }
0x1dbe   :  { %v4900_v50 = vmul.f32 1.442695, %v4897_v46  ;;  %v6142_v46 = vld [vmem:[%s8622_s16 + $0xd8] sm:$0xff] }
0x1dc0   :  { %6353 = vpow2.f32 %v4900_v50  ;;  %v6141_v50 = vld [vmem:[%s8622_s16 + $0xd0] sm:$0xff] }
0x1dc6   :  { %v6354_v51 = vpop.eup %6353 }
0x1dc7   :  { %v4905_v55 = vsel %vm915_vm1, %v6354_v51, 0.0 }
0x1dc8   :  { %4906 = vadd.xlane.f32.xlu1 %v4905_v55 }
0x1e2d   :  { %v4904_v2 = vpop.xlane.xlu0 %4903 }
0x1e2e   :  { %6355 = vrcp.f32 %v4904_v2 }
0x1e34   :  { %v6356_v3 = vpop.eup %6355 }
0x1e35   :  { %v4910_v9 = vmul.f32 %v6356_v3, %v6352_v43  ;;  %v6145_v43 = vld [vmem:[%s8622_s16 + $0xf0] sm:$0xff] }
0x1e36   :  { %5248 = vmatpush.msra.mxu3 %v6145_v43  ;;  %v5388_v43 = vld [vmem:[#allocation35 + $0x308] sm:$0xff] }
0x1e37   :  { %6075 = vmatmul.msk.f32.vlgmr.msrb.gmra.mxu0 %vm915_vm1, %v4910_v9 }
0x1e38   :  { %5249 = vmatpush.msra.mxu3 %v6144_v44  ;;  %5430 = vmatpush.msrb.mxu0 %v5415_v38  ;;  %v5389_v44 = vld [vmem:[#allocation35 + $0x310] sm:$0xff]  ;;  %v5366_v38 = vld [vmem:[#allocation35 + $0x258] sm:$0xff] }
0x1e3a   :  { %5250 = vmatpush.msra.mxu3 %v6143_v45  ;;  %v5390_v45 = vld [vmem:[#allocation35 + $0x318] sm:$0xff] }
0x1e3b   :  { %v4907_v5 = vpop.xlane.xlu1 %4906 }
0x1e3c   :  { %6357 = vrcp.f32 %v4907_v5  ;;  %5251 = vmatpush.msra.mxu3 %v6142_v46  ;;  %v5383_v46 = vld [vmem:[#allocation35 + $0x2e0] sm:$0xff] }
0x1e3e   :  { %5252 = vmatpush.msra.mxu3 %v6141_v50  ;;  %v5384_v50 = vld [vmem:[#allocation35 + $0x2e8] sm:$0xff] }
0x1e3f   :  { %5095 = vmatmul.f32.vlgmr.msra.gmra.mxu0 %v8398_v8 }
0x1e42   :  { %v6358_v57 = vpop.eup %6357 }
0x1e43   :  { %v4911_v41 = vmul.f32 %v6358_v57, %v6354_v51  ;;  %v6140_v51 = vld [vmem:[%s8622_s16 + $0xc8] sm:$0xff]  ;;  %v5417_v57 = vld [vmem:[#allocation35 + $0x3f0] sm:$0xff] }
0x1e44   :  { %5253 = vmatpush.msra.mxu3 %v6140_v51  ;;  %v5385_v51 = vld [vmem:[#allocation35 + $0x2f0] sm:$0xff] }
0x1e45   :  { %6076 = vmatmul.msk.f32.vlgmr.msrb.gmra.mxu1 %vm915_vm1, %v4911_v41  ;;  %v5418_v41 = vld [vmem:[#allocation35 + $0x3f8] sm:$0xff] }
0x1e46   :  { %6135 = vmatpush.xpose.msk.msrb.mxu1 %vm3791_vm12, %v5055_v14  ;;  %5254 = vmatpush.msra.mxu3 %v6139_v54  ;;  %v5411_v14 = vld [vmem:[#allocation35 + $0x3c0] sm:$0xff]  ;;  %v5376_v54 = vld [vmem:[#allocation35 + $0x2a8] sm:$0xff] }
0x1e47   :  { %5098 = vmatmul.f32.gmra.mxu0 %v8404_v13  ;;  %5499 = vmatpush.msrb.mxu2 %v5418_v41  ;;  %v5361_v41 = vld [vmem:[#allocation35 + $0x230] sm:$0xff] }
0x1e48   :  { %5476 = vmatpush.msrb.mxu3 %v5417_v57  ;;  %5431 = vmatpush.msrb.mxu0 %v5411_v14  ;;  %v5360_v57 = vld [vmem:[#allocation35 + $0x228] sm:$0xff]  ;;  %v5362_v14 = vld [vmem:[#allocation35 + $0x238] sm:$0xff] }
0x1e4a   :  { %5477 = vmatpush.msrb.mxu3 %v5413_v60  ;;  %v5356_v60 = vld [vmem:[#allocation35 + $0x208] sm:$0xff] }
0x1e4d   :  { %6134 = vmatmul.msk.f32.vlgmr.msra.gmra.mxu1 %vm3791_vm12, %v5007_v17 }
0x1e55   :  { %6136 = vmatmul.msk.f32.vlgmr.msrb.gmra.mxu1 %vm3791_vm12, %v5010_v18 }
0x1eb4   :  { %v4932_v48 = vpop.f32.mrf.mxu0 }
0x1eb5   :  { %6149 = vmatmul.msk.f32.vlgmr.msra.gmra.mxu2 %vm3791_vm12, %v4932_v48 }
0x1ebc   :  { %v5096_v61 = vpop.f32.mrf.mxu0 }
0x1ebd   :  { %v5097_v27 = vadd.f32 %v6268_v26, %v5096_v61 }
0x1ebf   :  { %5196 = vmatpush.msra.mxu1 %v5097_v27  ;;  %v5407_v27 = vld [vmem:[#allocation35 + $0x3a0] sm:$0xff] }
0x1ec0   :  { %5432 = vmatpush.msrb.mxu0 %v5407_v27  ;;  %v5545_v27 = vld [vmem:[#allocation37 + $0x270] sm:$0xff] }
0x1ec2   :  { %v4955_v4 = vpop.f32.mrf.mxu1 }
0x1ec3   :  { %6150 = vmatmul.msk.f32.gmra.mxu2 %vm3791_vm12, %v4955_v4  ;;  %v5408_v4 = vld [vmem:[#allocation35 + $0x3a8] sm:$0xff] }
0x1ec4   :  { %v5099_v62 = vpop.f32.mrf.mxu0 }
0x1ec5   :  { %v5100_v29 = vadd.f32 %v6268_v26, %v5099_v62  ;;  %v5409_v62 = vld [vmem:[#allocation35 + $0x3b0] sm:$0xff] }
0x1ec6   :  { %5478 = vmatpush.msrb.mxu3 %v5409_v62 }
0x1ec7   :  { %5219 = vmatpush.msrb.mxu1 %v5100_v29  ;;  %v5410_v29 = vld [vmem:[#allocation35 + $0x3b8] sm:$0xff] }
0x1eca   :  { %v5125_v30 = vpop.f32.mrf.mxu1 }
0x1ecb   :  { %v5154_v31 = vmul.f32 0.125, %v5125_v30  ;;  %v5403_v30 = vld [vmem:[#allocation35 + $0x380] sm:$0xff] }
0x1ecc   :  { %5433 = vmatpush.msrb.mxu0 %v5403_v30  ;;  %v5560_v30 = vld [vmem:[#allocation37 + $0x2e8] sm:$0xff] }
0x1ecd   :  { %v5156_v16 = vsel %vm915_vm1, %v5154_v31, -inf }
0x1ece   :  { %5157 = vmax.xlane.f32.xlu1 %v5156_v16  ;;  %v5405_v16 = vld [vmem:[#allocation35 + $0x390] sm:$0xff] }
0x1ecf   :  { %5479 = vmatpush.msrb.mxu3 %v5405_v16 }
0x1ed2   :  { %v5151_v20 = vpop.f32.mrf.mxu1 }
0x1ed3   :  { %v5155_v21 = vmul.f32 0.125, %v5151_v20  ;;  %v5406_v20 = vld [vmem:[#allocation35 + $0x398] sm:$0xff] }
0x1ed5   :  { %v5159_v34 = vsel %vm915_vm1, %v5155_v21, -inf }
0x1ed6   :  { %5160 = vmax.xlane.f32.xlu2 %v5159_v34  ;;  %v5400_v34 = vld [vmem:[#allocation35 + $0x368] sm:$0xff] }
0x1f38   :  { %v5285_v2 = vpop.f32.mrf.mxu2 }
0x1f41   :  { %v5158_v52 = vpop.xlane.xlu1 %5157 }
0x1f42   :  { %v5162_v49 = vsub.f32 %v5154_v31, %v5158_v52  ;;  %v5404_v31 = vld [vmem:[#allocation35 + $0x388] sm:$0xff]  ;;  %v5401_v52 = vld [vmem:[#allocation35 + $0x370] sm:$0xff] }
0x1f43   :  { %5480 = vmatpush.msrb.mxu3 %v5401_v52  ;;  %v5577_v52 = vld [vmem:[#allocation37 + $0x370] sm:$0xff] }
0x1f44   :  { %v5164_v53 = vmul.f32 1.442695, %v5162_v49  ;;  %v5402_v49 = vld [vmem:[#allocation35 + $0x378] sm:$0xff] }
0x1f46   :  { %6359 = vpow2.f32 %v5164_v53  ;;  %v5288_v11 = vpop.f32.mrf.mxu2  ;;  %v5395_v53 = vld [vmem:[#allocation35 + $0x340] sm:$0xff] }
0x1f49   :  { %v5161_v35 = vpop.xlane.xlu2 %5160 }
0x1f4a   :  { %v5163_v32 = vsub.f32 %v5155_v21, %v5161_v35  ;;  %v5399_v21 = vld [vmem:[#allocation35 + $0x360] sm:$0xff]  ;;  %v5396_v35 = vld [vmem:[#allocation35 + $0x348] sm:$0xff] }
0x1f4b   :  { %5434 = vmatpush.msrb.mxu0 %v5399_v21  ;;  %v5594_v21 = vld [vmem:[#allocation37 + $0x3f8] sm:$0xff] }
0x1f4c   :  { %v6360_v40 = vpop.eup %6359  ;;  %v5166_v6 = vmul.f32 1.442695, %v5163_v32  ;;  %v5397_v32 = vld [vmem:[#allocation35 + $0x350] sm:$0xff] }
0x1f4d   :  { %v5168_v7 = vsel %vm915_vm1, %v6360_v40, 0.0  ;;  %5435 = vmatpush.msrb.mxu0 %v5395_v53  ;;  %5481 = vmatpush.msrb.mxu3 %v5397_v32  ;;  %v5576_v32 = vld [vmem:[#allocation37 + $0x368] sm:$0xff] }
0x1f4e   :  { %6361 = vpow2.f32 %v5166_v6  ;;  %5169 = vadd.xlane.f32.xlu0 %v5168_v7  ;;  %v5391_v6 = vld [vmem:[#allocation35 + $0x320] sm:$0xff]  ;;  %v5392_v7 = vld [vmem:[#allocation35 + $0x328] sm:$0xff] }
0x1f4f   :  { %5436 = vmatpush.msrb.mxu0 %v5391_v6 }
0x1f51   :  { %5437 = vmatpush.msrb.mxu0 %v5387_v42  ;;  %v5591_v42 = vld [vmem:[#allocation37 + $0x3e0] sm:$0xff] }
0x1f53   :  { %5438 = vmatpush.msrb.mxu0 %v5383_v46  ;;  %v5574_v46 = vld [vmem:[#allocation37 + $0x358] sm:$0xff] }
0x1f54   :  { %v6362_v24 = vpop.eup %6361 }
0x1f55   :  { %v5171_v25 = vsel %vm915_vm1, %v6362_v24, 0.0 }
0x1f56   :  { %5172 = vadd.xlane.f32.xlu1 %v5171_v25  ;;  %v5394_v25 = vld [vmem:[#allocation35 + $0x338] sm:$0xff] }
0x1fc1   :  { %v5170_v55 = vpop.xlane.xlu0 %5169 }
0x1fc2   :  { %6363 = vrcp.f32 %v5170_v55  ;;  %v5386_v55 = vld [vmem:[#allocation35 + $0x2f8] sm:$0xff] }
0x1fc8   :  { %v6364_v58 = vpop.eup %6363 }
0x1fc9   :  { %v5176_v59 = vmul.f32 %v6364_v58, %v6360_v40  ;;  %v5173_v63 = vpop.xlane.xlu1 %5172  ;;  %v5398_v40 = vld [vmem:[#allocation35 + $0x358] sm:$0xff]  ;;  %v5379_v58 = vld [vmem:[#allocation35 + $0x2c0] sm:$0xff] }
0x1fca   :  { %6365 = vrcp.f32 %v5173_v63  ;;  %v5381_v63 = vld [vmem:[#allocation35 + $0x2d0] sm:$0xff]  ;;  %5439 = vmatpush.msrb.mxu0 %v5379_v58  ;;  %v5556_v58 = vld [vmem:[#allocation37 + $0x2c8] sm:$0xff] }
0x1fcb   :  { %6137 = vmatmul.msk.f32.vlgmr.msra.gmra.mxu1 %vm915_vm1, %v5176_v59  ;;  %v5380_v59 = vld [vmem:[#allocation35 + $0x2c8] sm:$0xff] }
0x1fcc   :  { %5453 = vmatpush.msra.mxu1 %v5416_v56  ;;  %v5359_v56 = vld [vmem:[#allocation35 + $0x220] sm:$0xff] }
0x1fce   :  { %5454 = vmatpush.msra.mxu1 %v5412_v15  ;;  %v5355_v15 = vld [vmem:[#allocation35 + $0x200] sm:$0xff] }
0x1fd0   :  { %v6366_v0 = vpop.eup %6365  ;;  %5455 = vmatpush.msra.mxu1 %v5408_v4  ;;  %v5561_v4 = vld [vmem:[#allocation37 + $0x2f0] sm:$0xff] }
0x1fd1   :  { %v5177_v19 = vmul.f32 %v6366_v0, %v6362_v24  ;;  %v5393_v24 = vld [vmem:[#allocation35 + $0x330] sm:$0xff]  ;;  %v5382_v0 = vld [vmem:[#allocation35 + $0x2d8] sm:$0xff] }
0x1fd2   :  { %5456 = vmatpush.msra.mxu1 %v5404_v31  ;;  %5482 = vmatpush.msrb.mxu3 %v5393_v24  ;;  %v5578_v31 = vld [vmem:[#allocation37 + $0x378] sm:$0xff] }
0x1fd3   :  { %6138 = vmatmul.msk.f32.vlgmr.msrb.gmra.mxu1 %vm915_vm1, %v5177_v19  ;;  %v5375_v19 = vld [vmem:[#allocation35 + $0x2a0] sm:$0xff]  ;;  %v5558_v24 = vld [vmem:[#allocation37 + $0x2d8] sm:$0xff] }
0x1fd4   :  { %5457 = vmatpush.msra.mxu1 %v5400_v34  ;;  %5483 = vmatpush.msrb.mxu3 %v5389_v44  ;;  %v5559_v34 = vld [vmem:[#allocation37 + $0x2e0] sm:$0xff]  ;;  %v5541_v44 = vld [vmem:[#allocation37 + $0x250] sm:$0xff] }
0x1fd5   :  { %5440 = vmatpush.msrb.mxu0 %v5375_v19  ;;  %v5539_v19 = vld [vmem:[#allocation37 + $0x240] sm:$0xff] }
0x1fd6   :  { %5458 = vmatpush.msra.mxu1 %v5396_v35  ;;  %5484 = vmatpush.msrb.mxu3 %v5385_v51 }
0x1fd8   :  { %5459 = vmatpush.msra.mxu1 %v5392_v7  ;;  %5485 = vmatpush.msrb.mxu3 %v5381_v63  ;;  %v5542_v7 = vld [vmem:[#allocation37 + $0x258] sm:$0xff]  ;;  %v5589_v63 = vld [vmem:[#allocation37 + $0x3d0] sm:$0xff] }
0x1fda   :  { %5460 = vmatpush.msra.mxu1 %v5388_v43 }
0x1fdc   :  { %5461 = vmatpush.msra.mxu1 %v5384_v50  ;;  %v5590_v50 = vld [vmem:[#allocation37 + $0x3d8] sm:$0xff] }
0x1fde   :  { %5462 = vmatpush.msra.mxu1 %v5380_v59  ;;  %v5573_v59 = vld [vmem:[#allocation37 + $0x350] sm:$0xff] }
0x1fe0   :  { %5463 = vmatpush.msra.mxu1 %v5376_v54  ;;  %v5555_v54 = vld [vmem:[#allocation37 + $0x2c0] sm:$0xff] }
0x2048   :  { %v5198_v22 = vpop.f32.mrf.mxu1 }
0x2049   :  { %6147 = vmatmul.msk.f32.vlgmr.msra.gmra.mxu3 %vm3791_vm12, %v5198_v22  ;;  %v5377_v22 = vld [vmem:[#allocation35 + $0x2b0] sm:$0xff] }
0x204a   :  { %5486 = vmatpush.msrb.mxu3 %v5377_v22 }
0x2050   :  { %v5221_v36 = vpop.f32.mrf.mxu1 }
0x2051   :  { %6148 = vmatmul.msk.f32.gmra.mxu3 %vm3791_vm12, %v5221_v36  ;;  %v5378_v36 = vld [vmem:[#allocation35 + $0x2b8] sm:$0xff] }
0x20cc   :  { %v5256_v3 = vpop.f32.mrf.mxu3 }
0x20cd   :  { %v5286_v9 = vadd.f32 %v5285_v2, %v5256_v3  ;;  %v5372_v2 = vld [vmem:[#allocation35 + $0x288] sm:$0xff]  ;;  %v5373_v3 = vld [vmem:[#allocation35 + $0x290] sm:$0xff] }
0x20ce   :  { %5464 = vmatpush.msra.mxu1 %v5372_v2  ;;  %5487 = vmatpush.msrb.mxu3 %v5373_v3  ;;  %v6270_v2 = vld [vmem:[#allocation29 + $0x1] ss:$0 sm:$0xff] }
0x20cf   :  { %v5296_v39 = vadd.f32 %v6269_v1, %v5286_v9  ;;  %v5374_v9 = vld [vmem:[#allocation35 + $0x298] sm:$0xff] }
0x20d1   :  { %v5298_v47 = vadd.f32 %v5296_v39, %v8398_v8  ;;  %v5414_v8 = vld [vmem:[#allocation35 + $0x3d8] sm:$0xff]  ;;  %v5367_v39 = vld [vmem:[#allocation35 + $0x260] sm:$0xff] }
0x20d2   :  { %5500 = vmatpush.msrb.mxu2 %v5414_v8  ;;  %v5357_v8 = vld [vmem:[#allocation35 + $0x210] sm:$0xff] }
0x20d3   :  { %5304 = vadd.xlane.f32.xlu2 %v5298_v47 }
0x20d4   :  { %v5259_v37 = vpop.f32.mrf.mxu3  ;;  %5501 = vmatpush.msrb.mxu2 %v5410_v29  ;;  %v5544_v29 = vld [vmem:[#allocation37 + $0x268] sm:$0xff] }
0x20d5   :  { %v5289_v5 = vadd.f32 %v5288_v11, %v5259_v37  ;;  %v5369_v11 = vld [vmem:[#allocation35 + $0x270] sm:$0xff]  ;;  %v5370_v37 = vld [vmem:[#allocation35 + $0x278] sm:$0xff] }
0x20d6   :  { %5502 = vmatpush.msrb.mxu2 %v5406_v20  ;;  %5488 = vmatpush.msrb.mxu3 %v5369_v11  ;;  %v5543_v20 = vld [vmem:[#allocation37 + $0x260] sm:$0xff] }
0x20d7   :  { %v5297_v12 = vadd.f32 %v6269_v1, %v5289_v5  ;;  %v5371_v1 = vld [vmem:[#allocation35 + $0x280] sm:$0xff] }
0x20d8   :  { %5503 = vmatpush.msrb.mxu2 %v5402_v49  ;;  %5441 = vmatpush.msrb.mxu0 %v5371_v1  ;;  %v5363_v5 = vld [vmem:[#allocation35 + $0x240] sm:$0xff]  ;;  %v5593_v49 = vld [vmem:[#allocation37 + $0x3f0] sm:$0xff]  ;;  %v5588_v1 = vld [vmem:[#allocation37 + $0x3c8] sm:$0xff] }
0x20d9   :  { %v5299_v33 = vadd.f32 %v5297_v12, %v8404_v13  ;;  %v5364_v12 = vld [vmem:[#allocation35 + $0x248] sm:$0xff]  ;;  %v5571_v11 = vld [vmem:[#allocation37 + $0x340] sm:$0xff] }
0x20da   :  { %5504 = vmatpush.msrb.mxu2 %v5398_v40  ;;  %5442 = vmatpush.msrb.mxu0 %v5367_v39  ;;  %v5592_v40 = vld [vmem:[#allocation37 + $0x3e8] sm:$0xff]  ;;  %v5538_v39 = vld [vmem:[#allocation37 + $0x238] sm:$0xff] }
0x20db   :  { %5306 = vadd.xlane.f32.xlu0 %v5299_v33 }
0x20dc   :  { %5505 = vmatpush.msrb.mxu2 %v5394_v25  ;;  %5443 = vmatpush.msrb.mxu0 %v5363_v5  ;;  %v5575_v25 = vld [vmem:[#allocation37 + $0x360] sm:$0xff] }
0x20de   :  { %5506 = vmatpush.msrb.mxu2 %v5390_v45  ;;  %5444 = vmatpush.msrb.mxu0 %v5359_v56  ;;  %v5557_v45 = vld [vmem:[#allocation37 + $0x2d0] sm:$0xff] }
0x20e0   :  { %5507 = vmatpush.msrb.mxu2 %v5386_v55  ;;  %5445 = vmatpush.msrb.mxu0 %v5355_v15  ;;  %v5540_v55 = vld [vmem:[#allocation37 + $0x248] sm:$0xff] }
0x20e2   :  { %5508 = vmatpush.msrb.mxu2 %v5382_v0 }
0x20e4   :  { %5509 = vmatpush.msrb.mxu2 %v5378_v36  ;;  %v5572_v36 = vld [vmem:[#allocation37 + $0x348] sm:$0xff] }
0x20e6   :  { %5510 = vmatpush.msrb.mxu2 %v5374_v9 }
0x20e8   :  { %5511 = vmatpush.msrb.mxu2 %v5370_v37  ;;  %v5587_v37 = vld [vmem:[#allocation37 + $0x3c0] sm:$0xff] }
0x20ea   :  { %5512 = vmatpush.msrb.mxu2 %v5366_v38  ;;  %v5553_v38 = vld [vmem:[#allocation37 + $0x2b0] sm:$0xff] }
0x20ec   :  { %5513 = vmatpush.msrb.mxu2 %v5362_v14  ;;  %v5586_v14 = vld [vmem:[#allocation37 + $0x3b8] sm:$0xff] }
0x2146   :  { %v5305_v17 = vpop.xlane.xlu2 %5304 }
0x2147   :  { %v5308_v13 = vmul.f32 %v5305_v17, %v8259_v10  ;;  %v5358_v17 = vld [vmem:[#allocation35 + $0x218] sm:$0xff] }
0x2148   :  { %5514 = vmatpush.msrb.mxu2 %v5358_v17 }
0x2149   :  { %v8478_v28 = vsub.f32 %v5298_v47, %v5308_v13  ;;  %v5368_v47 = vld [vmem:[#allocation35 + $0x268] sm:$0xff] }
0x214a   :  { %5465 = vmatpush.msra.mxu1 %v5368_v47  ;;  %5669 = vmatpush.msra.mxu2 %v5594_v21  ;;  %v5554_v47 = vld [vmem:[#allocation37 + $0x2b8] sm:$0xff]  ;;  %v5549_v21 = vld [vmem:[#allocation37 + $0x290] sm:$0xff] }
0x214b   :  { %v5312_v18 = vmul.f32 %v8478_v28, %v8478_v28 }
0x214c   :  { %5466 = vmatpush.msra.mxu1 %v5364_v12  ;;  %5670 = vmatpush.msra.mxu2 %v5593_v49  ;;  %v5548_v49 = vld [vmem:[#allocation37 + $0x288] sm:$0xff] }
0x214d   :  { %5314 = vadd.xlane.f32.xlu1 %v5312_v18 }
0x214e   :  { %v5307_v23 = vpop.xlane.xlu0 %5306  ;;  %5467 = vmatpush.msra.mxu1 %v5360_v57  ;;  %5671 = vmatpush.msra.mxu2 %v5592_v40  ;;  %v6271_v57 = vld [vmem:[#allocation31 + $0x1] ss:$0 sm:$0xff]  ;;  %v5547_v40 = vld [vmem:[#allocation37 + $0x280] sm:$0xff] }
0x214f   :  { %v5309_v48 = vmul.f32 %v5307_v23, %v8259_v10 }
0x2150   :  { %5468 = vmatpush.msra.mxu1 %v5356_v60  ;;  %5672 = vmatpush.msra.mxu2 %v5591_v42  ;;  %v5536_v60 = vld [vmem:[#allocation37 + $0x228] sm:$0xff] }
0x2151   :  { %v8483_v26 = vsub.f32 %v5299_v33, %v5309_v48  ;;  %v5365_v33 = vld [vmem:[#allocation35 + $0x250] sm:$0xff]  ;;  %v5546_v48 = vld [vmem:[#allocation37 + $0x278] sm:$0xff]  ;;  %v5564_v42 = vld [vmem:[#allocation37 + $0x308] sm:$0xff] }
0x2152   :  { %5489 = vmatpush.msrb.mxu3 %v5365_v33  ;;  %5600 = vmatpush.msra.mxu0 %v5546_v48  ;;  %v5537_v33 = vld [vmem:[#allocation37 + $0x230] sm:$0xff] }
0x2153   :  { %v5313_v61 = vmul.f32 %v8483_v26, %v8483_v26  ;;  %5673 = vmatpush.msra.mxu2 %v5590_v50 }
0x2154   :  { %5490 = vmatpush.msrb.mxu3 %v5361_v41  ;;  %5601 = vmatpush.msra.mxu0 %v5545_v27  ;;  %v5570_v41 = vld [vmem:[#allocation37 + $0x338] sm:$0xff]  ;;  %v5551_v27 = vld [vmem:[#allocation37 + $0x2a0] sm:$0xff] }
0x2155   :  { %5316 = vadd.xlane.f32.xlu2 %v5313_v61  ;;  %v5562_v61 = vld [vmem:[#allocation37 + $0x2f8] sm:$0xff]  ;;  %5674 = vmatpush.msra.mxu2 %v5589_v63 }
0x2156   :  { %5491 = vmatpush.msrb.mxu3 %v5357_v8  ;;  %5623 = vmatpush.msrb.mxu1 %v5562_v61  ;;  %v5552_v8 = vld [vmem:[#allocation37 + $0x2a8] sm:$0xff]  ;;  %v5535_v61 = vld [vmem:[#allocation37 + $0x220] sm:$0xff] }
0x2157   :  { %5602 = vmatpush.msra.mxu0 %v5544_v29  ;;  %5675 = vmatpush.msra.mxu2 %v5588_v1  ;;  %v5550_v29 = vld [vmem:[#allocation37 + $0x298] sm:$0xff] }
0x2158   :  { %5624 = vmatpush.msrb.mxu1 %v5561_v4  ;;  %5646 = vmatpush.msra.mxu3 %v5578_v31 }
0x2159   :  { %5603 = vmatpush.msra.mxu0 %v5543_v20  ;;  %5676 = vmatpush.msra.mxu2 %v5587_v37  ;;  %v5533_v20 = vld [vmem:[#allocation37 + $0x210] sm:$0xff] }
0x215a   :  { %5625 = vmatpush.msrb.mxu1 %v5560_v30  ;;  %5647 = vmatpush.msra.mxu3 %v5577_v52  ;;  %v5532_v52 = vld [vmem:[#allocation37 + $0x208] sm:$0xff] }
0x215b   :  { %5604 = vmatpush.msra.mxu0 %v5542_v7  ;;  %5677 = vmatpush.msra.mxu2 %v5586_v14  ;;  %v5582_v7 = vld [vmem:[#allocation37 + $0x398] sm:$0xff] }
0x215c   :  { %5626 = vmatpush.msrb.mxu1 %v5559_v34  ;;  %5648 = vmatpush.msra.mxu3 %v5576_v32  ;;  %v5568_v34 = vld [vmem:[#allocation37 + $0x328] sm:$0xff]  ;;  %v5531_v32 = vld [vmem:[#allocation37 + $0x200] sm:$0xff] }
0x215d   :  { %5605 = vmatpush.msra.mxu0 %v5541_v44  ;;  %v5563_v44 = vld [vmem:[#allocation37 + $0x300] sm:$0xff] }
0x215e   :  { %5627 = vmatpush.msrb.mxu1 %v5558_v24  ;;  %5649 = vmatpush.msra.mxu3 %v5575_v25  ;;  %v5565_v24 = vld [vmem:[#allocation37 + $0x310] sm:$0xff] }
0x215f   :  { %5606 = vmatpush.msra.mxu0 %v5540_v55  ;;  %v5581_v25 = vld [vmem:[#allocation37 + $0x390] sm:$0xff] }
0x2160   :  { %5628 = vmatpush.msrb.mxu1 %v5557_v45  ;;  %5650 = vmatpush.msra.mxu3 %v5574_v46  ;;  %v5579_v45 = vld [vmem:[#allocation37 + $0x380] sm:$0xff] }
0x2161   :  { %5607 = vmatpush.msra.mxu0 %v5539_v19  ;;  %v6151_v46 = vld [vmem:[%s7313_s14 + $0x4] sm:$0xf]  ;;  %s7084_s14 = smov [#allocation40]  }
0x2162   :  { %5629 = vmatpush.msrb.mxu1 %v5556_v58  ;;  %5651 = vmatpush.msra.mxu3 %v5573_v59  ;;  %v5422_v50 = vperm.slane %v6151_v46, 0  ;;  %s5754_s0 = sshll.u32 %s7084_s14, 4  ;;  %s5755_s0 = int_to_ptr.vmem [resolvable:$true] %s5754_s0 }
0x2163   :  { %5608 = vmatpush.msra.mxu0 %v5538_v39 }
0x2164   :  { %5630 = vmatpush.msrb.mxu1 %v5555_v54  ;;  %5652 = vmatpush.msra.mxu3 %v5572_v36  ;;  %v5424_v54 = vperm.slane %v6151_v46, 2 }
0x2165   :  { %5609 = vmatpush.msra.mxu0 %v5537_v33 }
0x2166   :  { %5631 = vmatpush.msrb.mxu1 %v5554_v47  ;;  %5653 = vmatpush.msra.mxu3 %v5571_v11 }
0x2167   :  { %5610 = vmatpush.msra.mxu0 %v5536_v60 }
0x2168   :  { %5632 = vmatpush.msrb.mxu1 %v5553_v38  ;;  %5654 = vmatpush.msra.mxu3 %v5570_v41 }
0x2169   :  { %5611 = vmatpush.msra.mxu0 %v5535_v61 }
0x216a   :  { %5633 = vmatpush.msrb.mxu1 %v5552_v8  ;;  %v6272_v8 = vld [vmem:[#allocation38 + $0x1] ss:$0 sm:$0xff] }
0x216c   :  { %5634 = vmatpush.msrb.mxu1 %v5551_v27 }
0x216e   :  { %5635 = vmatpush.msrb.mxu1 %v5550_v29 }
0x2170   :  { %5636 = vmatpush.msrb.mxu1 %v5549_v21 }
0x2172   :  { %5637 = vmatpush.msrb.mxu1 %v5548_v49 }
0x2174   :  { %5638 = vmatpush.msrb.mxu1 %v5547_v40 }
0x21c0   :  { %v5315_v13 = vpop.xlane.xlu1 %5314 }
0x21c1   :  { %v5318_v18 = vmul.f32 %v5315_v13, %v8259_v10  ;;  %v5569_v13 = vld [vmem:[#allocation37 + $0x330] sm:$0xff] }
0x21c2   :  { %5655 = vmatpush.msra.mxu3 %v5569_v13 }
0x21c3   :  { %v8488_v23 = vadd.f32 1e-05, %v5318_v18  ;;  %v5585_v18 = vld [vmem:[#allocation37 + $0x3b0] sm:$0xff] }
0x21c4   :  { %5678 = vmatpush.msra.mxu2 %v5585_v18  ;;  %5656 = vmatpush.msra.mxu3 %v5568_v34 }
0x21c5   :  { %6367 = vrsqrt.f32 %v8488_v23  ;;  %vm5328_vm11 = vweird.f32 %v8488_v23 }
0x21c8   :  { %v5317_v62 = vpop.xlane.xlu2 %5316 }
0x21c9   :  { %v5319_v16 = vmul.f32 %v5317_v62, %v8259_v10  ;;  %v5534_v62 = vld [vmem:[#allocation37 + $0x218] sm:$0xff] }
0x21ca   :  { %5612 = vmatpush.msra.mxu0 %v5534_v62 }
0x21cb   :  { %v8492_v53 = vpop.eup %6367  ;;  %v8494_v35 = vadd.f32 1e-05, %v5319_v16 }
0x21cc   :  { %v5323_v6 = vmul.f32 %v8492_v53, %v8488_v23  ;;  %vm5329_vm1 = vweird.f32 %v8492_v53  ;;  %5613 = vmatpush.msra.mxu0 %v5533_v20 }
0x21cd   :  { %6369 = vrsqrt.f32 %v8494_v35  ;;  %vm5330_vm12 = vmor %vm5328_vm11, %vm5329_vm1  ;;  %vm5338_vm14 = vweird.f32 %v8494_v35 }
0x21ce   :  { %v5324_v43 = vmul.f32 %v8492_v53, %v5323_v6  ;;  %5614 = vmatpush.msra.mxu0 %v5532_v52  ;;  %v5566_v6 = vld [vmem:[#allocation37 + $0x318] sm:$0xff] }
0x21d0   :  { %v5325_v51 = vmul.f32 0.5, %v5324_v43  ;;  %5615 = vmatpush.msra.mxu0 %v5531_v32  ;;  %v5580_v43 = vld [vmem:[#allocation37 + $0x388] sm:$0xff] }
0x21d2   :  { %v5326_v0 = vsub.f32 1.5, %v5325_v51  ;;  %v5423_v51 = vperm.slane %v6151_v46, 1 }
0x21d3   :  { %v6370_v22 = vpop.eup %6369 }
0x21d4   :  { %v5327_v3 = vmul.f32 %v8492_v53, %v5326_v0  ;;  %v5333_v9 = vmul.f32 %v6370_v22, %v8494_v35  ;;  %vm5339_vm13 = vweird.f32 %v6370_v22  ;;  %v5583_v35 = vld [vmem:[#allocation37 + $0x3a0] sm:$0xff] }
0x21d5   :  { %vm5340_vm15 = vmor %vm5338_vm14, %vm5339_vm13 }
0x21d6   :  { %v5331_v5 = vsel %vm5330_vm12, %v8492_v53, %v5327_v3  ;;  %v5334_v12 = vmul.f32 %v6370_v22, %v5333_v9  ;;  %v5567_v53 = vld [vmem:[#allocation37 + $0x320] sm:$0xff] }
0x21d7   :  { %v5342_v56 = vmul.f32 %v5331_v5, %v8478_v28  ;;  %5657 = vmatpush.msra.mxu3 %v5567_v53 }
0x21d8   :  { %v5335_v15 = vmul.f32 0.5, %v5334_v12 }
0x21d9   :  { %v5347_v17 = vmul.f32 %v6270_v2, %v5342_v56  ;;  %5658 = vmatpush.msra.mxu3 %v5566_v6 }
0x21da   :  { %v5336_v23 = vsub.f32 1.5, %v5335_v15 }
0x21db   :  { %v8508_v28 = vadd.f32 %v6271_v57, %v5347_v17  ;;  %5659 = vmatpush.msra.mxu3 %v5565_v24 }
0x21dc   :  { %v5337_v48 = vmul.f32 %v6370_v22, %v5336_v23 }
0x21dd   :  { %5446 = vmatmul.f32.vlgmr.msrb.gmra.mxu0 %v8508_v28  ;;  %5469 = vmatmul.f32.vlgmr.msra.gmra.mxu1 %v8508_v28 }
0x21de   :  { %v5341_v4 = vsel %vm5340_vm15, %v6370_v22, %v5337_v48  ;;  %5492 = vmatmul.f32.vlgmr.msrb.gmra.mxu3 %v8508_v28  ;;  %5515 = vmatmul.f32.vlgmr.msrb.gmra.mxu2 %v8508_v28  ;;  %v5425_v22 = vperm.slane %v6151_v46, 3 }
0x21df   :  { %v5343_v30 = vmul.f32 %v5341_v4, %v8483_v26  ;;  %v5584_v26 = vld [vmem:[#allocation37 + $0x3a8] sm:$0xff]  ;;  %5660 = vmatpush.msra.mxu3 %v5564_v42 }
0x21e0   :  { %5679 = vmatpush.msra.mxu2 %v5584_v26 }
0x21e1   :  { %v5348_v31 = vmul.f32 %v6270_v2, %v5343_v30  ;;  %5661 = vmatpush.msra.mxu3 %v5563_v44 }
0x21e2   :  { %5680 = vmatpush.msra.mxu2 %v5583_v35 }
0x21e3   :  { %v8516_v16 = vadd.f32 %v6271_v57, %v5348_v31 }
0x21e4   :  { %5681 = vmatpush.msra.mxu2 %v5582_v7 }
0x21e5   :  { %5449 = vmatmul.f32.gmra.mxu0 %v8516_v16  ;;  %5472 = vmatmul.f32.gmra.mxu1 %v8516_v16 }
0x21e6   :  { %5495 = vmatmul.f32.gmra.mxu3 %v8516_v16  ;;  %5518 = vmatmul.f32.gmra.mxu2 %v8516_v16 }
0x21e7   :  { %5682 = vmatpush.msra.mxu2 %v5581_v25 }
0x21e9   :  { %5683 = vmatpush.msra.mxu2 %v5580_v43 }
0x21eb   :  { %5684 = vmatpush.msra.mxu2 %v5579_v45 }
0x225a   :  { %v5447_v55 = vpop.f32.mrf.mxu0  ;;  %v5470_v58 = vpop.f32.mrf.mxu1 }
0x225b   :  { %v5448_v59 = vadd.f32 %v5447_v55, %v5422_v50  ;;  %v5471_v63 = vadd.f32 %v5470_v58, %v5423_v51 }
0x225d   :  { %v5522_v0 = vmax.f32 %v5448_v59, 0.0  ;;  %v5523_v19 = vmax.f32 %v5471_v63, 0.0 }
0x225f   :  { %5616 = vmatmul.f32.vlgmr.msra.gmra.mxu0 %v5522_v0  ;;  %5639 = vmatmul.f32.vlgmr.msrb.gmra.mxu1 %v5523_v19  ;;  %v6273_v0 = vld [vmem:[#allocation32 + $0x1] ss:$0 sm:$0xff] }
0x2261   :  { %v5493_v36 = vpop.f32.mrf.mxu3  ;;  %v5516_v1 = vpop.f32.mrf.mxu2 }
0x2262   :  { %v5494_v2 = vadd.f32 %v5493_v36, %v5424_v54  ;;  %v5517_v3 = vadd.f32 %v5516_v1, %v5425_v22  ;;  %v5450_v9 = vpop.f32.mrf.mxu0  ;;  %v5473_v39 = vpop.f32.mrf.mxu1  ;;  %v6274_v36 = vld [vmem:[#allocation34 + $0x1] ss:$0 sm:$0xff] }
0x2263   :  { %v5451_v47 = vadd.f32 %v5450_v9, %v5422_v50  ;;  %v5474_v11 = vadd.f32 %v5473_v39, %v5423_v51 }
0x2264   :  { %v5524_v37 = vmax.f32 %v5494_v2, 0.0  ;;  %v5525_v5 = vmax.f32 %v5517_v3, 0.0 }
0x2265   :  { %v5526_v12 = vmax.f32 %v5451_v47, 0.0  ;;  %v5527_v33 = vmax.f32 %v5474_v11, 0.0 }
0x2266   :  { %5662 = vmatmul.f32.vlgmr.msra.gmra.mxu3 %v5524_v37  ;;  %5685 = vmatmul.f32.vlgmr.msra.gmra.mxu2 %v5525_v5 }
0x2267   :  { %5619 = vmatmul.f32.gmra.mxu0 %v5526_v12  ;;  %5642 = vmatmul.f32.gmra.mxu1 %v5527_v33 }
0x2269   :  { %v5496_v38 = vpop.f32.mrf.mxu3  ;;  %v5519_v56 = vpop.f32.mrf.mxu2 }
0x226a   :  { %v5497_v57 = vadd.f32 %v5496_v38, %v5424_v54  ;;  %v5520_v41 = vadd.f32 %v5519_v56, %v5425_v22 }
0x226c   :  { %v5528_v14 = vmax.f32 %v5497_v57, 0.0  ;;  %v5529_v15 = vmax.f32 %v5520_v41, 0.0 }
0x226e   :  { %5665 = vmatmul.f32.gmra.mxu3 %v5528_v14  ;;  %5688 = vmatmul.f32.gmra.mxu2 %v5529_v15 }
0x22dc   :  { %v5617_v60 = vpop.f32.mrf.mxu0  ;;  %v5640_v13 = vpop.f32.mrf.mxu1 }
0x22dd   :  { %v5618_v17 = vadd.f32 %v6272_v8, %v5617_v60 }
0x22df   :  { %v5641_v18 = vadd.f32 %v5640_v13, %v5618_v17 }
0x22e4   :  { %v5620_v23 = vpop.f32.mrf.mxu0  ;;  %v5643_v30 = vpop.f32.mrf.mxu1 }
0x22e5   :  { %v5621_v4 = vadd.f32 %v6272_v8, %v5620_v23 }
0x22e7   :  { %v5644_v31 = vadd.f32 %v5643_v30, %v5621_v4 }
0x22e9   :  { %v5663_v48 = vpop.f32.mrf.mxu3  ;;  %v5686_v61 = vpop.f32.mrf.mxu2 }
0x22ea   :  { %v5664_v27 = vadd.f32 %v5663_v48, %v5641_v18 }
0x22ec   :  { %v5687_v62 = vadd.f32 %v5686_v61, %v5664_v27 }
0x22ee   :  { %v5692_v29 = vadd.f32 %v5687_v62, %v8508_v28 }
0x22f0   :  { %5698 = vadd.xlane.f32.xlu0 %v5692_v29 }
0x22f1   :  { %v5666_v20 = vpop.f32.mrf.mxu3  ;;  %v5689_v34 = vpop.f32.mrf.mxu2 }
0x22f2   :  { %v5667_v21 = vadd.f32 %v5666_v20, %v5644_v31 }
0x22f4   :  { %v5690_v26 = vadd.f32 %v5689_v34, %v5667_v21 }
0x22f6   :  { %v5693_v52 = vadd.f32 %v5690_v26, %v8516_v16 }
0x22f8   :  { %5700 = vadd.xlane.f32.xlu1 %v5693_v52 }
0x2363   :  { %v5699_v49 = vpop.xlane.xlu0 %5698 }
0x2364   :  { %v5702_v53 = vmul.f32 %v5699_v49, %v8259_v10 }
0x2366   :  { %v5704_v35 = vsub.f32 %v5692_v29, %v5702_v53 }
0x2368   :  { %v5706_v32 = vmul.f32 %v5704_v35, %v5704_v35 }
0x236a   :  { %5708 = vadd.xlane.f32.xlu2 %v5706_v32 }
0x236b   :  { %v5701_v40 = vpop.xlane.xlu1 %5700 }
0x236c   :  { %v5703_v6 = vmul.f32 %v5701_v40, %v8259_v10 }
0x236e   :  { %v5705_v28 = vsub.f32 %v5693_v52, %v5703_v6 }
0x2370   :  { %v5707_v7 = vmul.f32 %v5705_v28, %v5705_v28 }
0x2372   :  { %5710 = vadd.xlane.f32.xlu0 %v5707_v7 }
0x23dd   :  { %v5709_v24 = vpop.xlane.xlu2 %5708 }
0x23de   :  { %v5712_v25 = vmul.f32 %v5709_v24, %v8259_v10 }
0x23e0   :  { %v5714_v42 = vadd.f32 1e-05, %v5712_v25 }
0x23e2   :  { %6371 = vrsqrt.f32 %v5714_v42  ;;  %vm5722_vm2 = vweird.f32 %v5714_v42 }
0x23e5   :  { %v5711_v43 = vpop.xlane.xlu0 %5710 }
0x23e6   :  { %v5713_v16 = vmul.f32 %v5711_v43, %v8259_v10 }
0x23e8   :  { %v6372_v44 = vpop.eup %6371  ;;  %v5715_v45 = vadd.f32 1e-05, %v5713_v16 }
0x23e9   :  { %v5717_v46 = vmul.f32 %v6372_v44, %v5714_v42  ;;  %vm5723_vm0 = vweird.f32 %v6372_v44 }
0x23ea   :  { %6373 = vrsqrt.f32 %v5715_v45  ;;  %vm5724_vm3 = vmor %vm5722_vm2, %vm5723_vm0  ;;  %vm5732_vm5 = vweird.f32 %v5715_v45 }
0x23eb   :  { %v5718_v50 = vmul.f32 %v6372_v44, %v5717_v46 }
0x23ed   :  { %v5719_v51 = vmul.f32 0.5, %v5718_v50 }
0x23ef   :  { %v5720_v55 = vsub.f32 1.5, %v5719_v51 }
0x23f0   :  { %v6374_v58 = vpop.eup %6373 }
0x23f1   :  { %v5721_v59 = vmul.f32 %v6372_v44, %v5720_v55  ;;  %v5727_v63 = vmul.f32 %v6374_v58, %v5715_v45  ;;  %vm5733_vm4 = vweird.f32 %v6374_v58 }
0x23f2   :  { %vm5734_vm6 = vmor %vm5732_vm5, %vm5733_vm4 }
0x23f3   :  { %v5725_v19 = vsel %vm5724_vm3, %v6372_v44, %v5721_v59  ;;  %v5728_v54 = vmul.f32 %v6374_v58, %v5727_v63 }
0x23f4   :  { %v5736_v22 = vmul.f32 %v5725_v19, %v5704_v35 }
0x23f5   :  { %v5729_v10 = vmul.f32 0.5, %v5728_v54 }
0x23f6   :  { %v5741_v1 = vmul.f32 %v6273_v0, %v5736_v22 }
0x23f7   :  { %v5730_v2 = vsub.f32 1.5, %v5729_v10 }
0x23f8   :  { %v5746_v3 = vadd.f32 %v6274_v36, %v5741_v1 }
0x23f9   :  { %v5731_v9 = vmul.f32 %v6374_v58, %v5730_v2 }
0x23fa   :  { %5748 = vst [vmem:[#allocation40] sm:$0xff] %v5746_v3 }
0x23fb   :  { %v5735_v39 = vsel %vm5734_vm6, %v6374_v58, %v5731_v9 }
0x23fc   :  { %v5737_v47 = vmul.f32 %v5735_v39, %v5705_v28 }
0x23fe   :  { %v5742_v11 = vmul.f32 %v6273_v0, %v5737_v47 }
0x2400   :  { %v5747_v37 = vadd.f32 %v6274_v36, %v5742_v11 }
0x2402   :  { %5749 = vst [vmem:[#allocation40 + $0x8] sm:$0xff] %v5747_v37 }
0x2403   :  { %6974 = shalt.err (!%p6971_p12)
}
0x2404   :  { %5762 = dma.vmem_to_hbm [thread:$0]  %s5755_s0, 256, %s5757_s23, [#allocation4], %s7051_s2, %s7051_s2, %s7052_s7  }
0x2405   :  { %7001 = dma.done.wait [#allocation4], 256  }
0x2406   :  { %7002 = vsyncadd [#allocation4], 4294967040 }
0x2407   :  { %5767 = vsyncpa [#allocation3], 1 }
0x2408   :  { %5768 = vsyncpa [#allocation6], 1 }
0x2409   :  { %5769 = vsyncpa [#allocation9], 1 }
0x240a   :  { %5770 = vsyncpa [#allocation12], 1 }
0x240b   :  { %5771 = vsyncpa [#allocation15], 1 }
0x240c   :  { %5772 = vsyncpa [#allocation18], 1 }
0x240d   :  { %5773 = vsyncpa [#allocation21], 1 }
0x240e   :  { %5774 = vsyncpa [#allocation24], 1 }
0x240f   :  { %5775 = vsyncpa [#allocation27], 1 }
0x2410   :  { %5776 = vsyncpa [#allocation30], 1 }
0x2411   :  { %5777 = vsyncpa [#allocation33], 1 }
0x2412   :  { %5778 = vsyncpa [#allocation36], 1 }
0x2413   :  { %5779 = vsyncpa [#allocation39], 1 }
0x2414   :  { %5780 = vsyncpa [#allocation4], 1 }

</bundles_post_ra>
